<compile_context>
chip_gen: v7x
topology: tpu7x:2x2x1
jax: 0.10.0
libtpu: 0.0.40
codegen_flags: <defaults>
</compile_context>

<pallas_src>
import functools
import math

import jax
import jax.numpy as jnp
import numpy as np
from jax.experimental import pallas as pl
from jax.experimental.pallas import tpu as pltpu

NEG_SLOPE = 0.1  # nn.LeakyReLU(0.1)


def _num_tensorcores_per_chip():
    """Best-effort TensorCores-per-chip (v7x / v4 megacore -> 2, else 1)."""
    try:
        kind = jax.devices()[0].device_kind.lower()
    except Exception:
        return 1
    return 2 if any(t in kind for t in ("v7", "7x", "v4")) else 1


def _freblock_kernel(wb_ref, xr_ref, xi_ref, o_ref, pad_ref, *, Nb, C, H, W):
    """One grid step: Nb batch elements, real+imag fused on the channel axis."""
    C2 = 2 * C
    Hp, Wp = H + 2, W + 2
    f32 = jnp.float32

    # Zero only the 1-pixel halo of the scratch; the interior is always fully
    # overwritten before each conv, so the zero border is preserved for both
    # padding=1 convolutions.  (Not gated on program_id: with "parallel"
    # semantics each core has its own scratch and runs only its own steps.)
    zrow = jnp.zeros((Nb, C2, 1, Wp), f32)
    pad_ref[:, :, 0:1, :] = zrow
    pad_ref[:, :, Hp - 1:Hp, :] = zrow
    zcol = jnp.zeros((Nb, C2, Hp, 1), f32)
    pad_ref[:, :, :, 0:1] = zcol
    pad_ref[:, :, :, Wp - 1:Wp] = zcol

    def dw_conv3x3(w, b):
        # Depthwise 3x3 (padding=1) over all 2C channels and Nb batch elems.
        # pad_ref holds the zero-bordered input; w: (2C, 9) taps, b: (2C,).
        acc = jnp.broadcast_to(b.reshape(1, C2, 1, 1), (Nb, C2, H, W))
        # Hoist the 3 column (lane) shifts; reuse across the 3 row offsets.
        for dw in range(3):
            col = pad_ref[:, :, :, dw:dw + W]              # (Nb, C2, H+2, W)
            for dh in range(3):
                tap = w[:, dh * 3 + dw].reshape(1, C2, 1, 1)
                acc = acc + tap * col[:, :, dh:dh + H, :]
        return acc

    wb1 = wb_ref[0]                                        # (2C, 10) conv1
    wb2 = wb_ref[1]                                        # (2C, 10) conv2

    # conv1 (padding=1): place the [real; imag] input in the scratch interior.
    pad_ref[:, :C, 1:H + 1, 1:W + 1] = xr_ref[...]
    pad_ref[:, C:, 1:H + 1, 1:W + 1] = xi_ref[...]
    h = dw_conv3x3(wb1[:, :9], wb1[:, 9])
    # LeakyReLU(0.1)
    h = jnp.where(h >= 0, h, NEG_SLOPE * h)
    # conv2 (padding=1): interior <- h, border is still zero.
    pad_ref[:, :, 1:H + 1, 1:W + 1] = h
    o_ref[...] = dw_conv3x3(wb2[:, :9], wb2[:, 9]).astype(o_ref.dtype)


def _pack_params(params, C):
    """Pack the 8 parameter tensors into one (2, 2C, 10) array:
    [conv index, [real; imag] channel, 9 taps + bias]."""
    def pack(wr, br, wi, bi):
        w = jnp.concatenate([wr.reshape(C, 9), wi.reshape(C, 9)], axis=0)
        b = jnp.concatenate([br.reshape(C, 1), bi.reshape(C, 1)], axis=0)
        return jnp.concatenate([w, b], axis=1)             # (2C, 10)
    return jnp.stack(
        [pack(params["w1r"], params["b1r"], params["w1i"], params["b1i"]),
         pack(params["w2r"], params["b2r"], params["w2i"], params["b2i"])],
        axis=0)                                            # (2, 2C, 10)


def fre_block_spa(x_real, x_imag, params):
    """params: dict with w1r,w2r,w1i,w2i as (C,3,3) and b1r,b2r,b1i,b2i as (C,)."""
    N, C, H, W = x_real.shape
    C2 = 2 * C
    wb = _pack_params(params, C)

    # One grid step per TensorCore: v5e/v6e -> 1 fat step; v7x -> 1 per core.
    steps = math.gcd(N, _num_tensorcores_per_chip())
    Nb = N // steps

    kernel = functools.partial(_freblock_kernel, Nb=Nb, C=C, H=H, W=W)

    out = pl.pallas_call(
        kernel,
        out_shape=jax.ShapeDtypeStruct((N, C2, H, W), jnp.float32),
        grid=(steps,),
        in_specs=[
            pl.BlockSpec((2, C2, 10), lambda n: (0, 0, 0)),       # packed params
            pl.BlockSpec((Nb, C, H, W), lambda n: (n, 0, 0, 0)),  # x_real
            pl.BlockSpec((Nb, C, H, W), lambda n: (n, 0, 0, 0)),  # x_imag
        ],
        out_specs=pl.BlockSpec((Nb, C2, H, W), lambda n: (n, 0, 0, 0)),
        scratch_shapes=[pltpu.VMEM((Nb, C2, H + 2, W + 2), jnp.float32)],
        compiler_params=pltpu.CompilerParams(
            dimension_semantics=("parallel",)),
    )(wb, x_real, x_imag)

    # TODO(synk): for large C or H*W, switch to a lane-dense (channel-folded)
    # layout with pltpu.roll-based border handling instead of the padded scratch.
    return jax.lax.complex(out[:, :C], out[:, C:])


# ----------------------- plain-JAX reference -----------------------
def _ref_depthwise(x, w, b):
    # x: (N,C,H,W), w: (C,3,3), b: (C,)
    C = x.shape[1]
    out = jax.lax.conv_general_dilated(
        x, w.reshape(C, 1, 3, 3), window_strides=(1, 1),
        padding=((1, 1), (1, 1)),
        dimension_numbers=("NCHW", "OIHW", "NCHW"),
        feature_group_count=C)
    return out + b.reshape(1, C, 1, 1)


def _ref_chain(x, w1, b1, w2, b2):
    h = _ref_depthwise(x, w1, b1)
    h = jnp.where(h >= 0, h, NEG_SLOPE * h)
    return _ref_depthwise(h, w2, b2)


def ref_fre_block_spa(x_real, x_imag, p):
    real = _ref_chain(x_real, p["w1r"], p["b1r"], p["w2r"], p["b2r"])
    imag = _ref_chain(x_imag, p["w1i"], p["b1i"], p["w2i"], p["b2i"])
    return jax.lax.complex(real, imag)


if __name__ == "__main__":
    N, C, H, W = 2, 4, 16, 16  # nc = C = 4

    key = jax.random.PRNGKey(0)
    keys = jax.random.split(key, 10)

    # Deterministic synthetic parameters: 4x Conv2d(nc, nc, 3, groups=nc)
    # (depthwise: weight (C, 3, 3), bias (C,)).
    def mk_w(k):
        return jax.random.normal(k, (C, 3, 3), jnp.float32) * 0.2

    def mk_b(k):
        return jax.random.normal(k, (C,), jnp.float32) * 0.1

    params = {
        "w1r": mk_w(keys[0]), "b1r": mk_b(keys[1]),
        "w2r": mk_w(keys[2]), "b2r": mk_b(keys[3]),
        "w1i": mk_w(keys[4]), "b1i": mk_b(keys[5]),
        "w2i": mk_w(keys[6]), "b2i": mk_b(keys[7]),
    }

    x_real = jax.random.normal(keys[8], (N, C, H, W), jnp.float32)
    x_imag = jax.random.normal(keys[9], (N, C, H, W), jnp.float32)

    fre = jax.jit(fre_block_spa)
    out = jax.block_until_ready(fre(x_real, x_imag, params))
    ref = jax.block_until_ready(ref_fre_block_spa(x_real, x_imag, params))

    assert out.dtype == jnp.complex64 and out.shape == (N, C, H, W)
    np.testing.assert_allclose(np.asarray(out.real), np.asarray(ref.real),
                               rtol=1e-4, atol=1e-4)
    np.testing.assert_allclose(np.asarray(out.imag), np.asarray(ref.imag),
                               rtol=1e-4, atol=1e-4)

    print("KERNEL_OK")
</pallas_src>

<mosaic_0001>
module attributes {stable_mosaic.version = 11 : i64} {
  func.func @_freblock_kernel(%arg0: i32, %arg1: memref<2x8x10xf32, #tpu.memory_space<vmem>>, %arg2: memref<2x4x16x16xf32, #tpu.memory_space<vmem>>, %arg3: memref<2x4x16x16xf32, #tpu.memory_space<vmem>>, %arg4: memref<2x8x16x16xf32, #tpu.memory_space<vmem>>, %arg5: memref<2x8x18x18xf32, #tpu.memory_space<vmem>>) attributes {dimension_semantics = [#tpu.dimension_semantics<parallel>], iteration_bounds = array<i64: 1>, scalar_prefetch = 0 : i64, scratch_operands = 1 : i64, tpu.core_type = #tpu.core_type<tc>, window_params = [{pipeline_mode = #tpu.pipeline_mode<synchronous>, transform_indices = @transform_0, window_bounds = array<i64: 2, 8, 10>}, {transform_indices = @transform_1, window_bounds = array<i64: 2, 4, 16, 16>}, {transform_indices = @transform_2, window_bounds = array<i64: 2, 4, 16, 16>}, {transform_indices = @transform_3, window_bounds = array<i64: 2, 8, 16, 16>}]} {
    %cst = arith.constant 0.000000e+00 : f32
    %0 = vector.broadcast %cst : f32 to vector<2x8x1x18xf32>
    %c0 = arith.constant 0 : index
    %c0_0 = arith.constant 0 : index
    %c0_1 = arith.constant 0 : index
    %c0_2 = arith.constant 0 : index
    %1 = vector.load %arg5[%c0, %c0_0, %c0_1, %c0_2] : memref<2x8x18x18xf32, #tpu.memory_space<vmem>>, vector<2x8x1x18xf32>
    tpu.vector_store %arg5[%c0, %c0_0, %c0_1, %c0_2], %0 {strides = array<i32>} : memref<2x8x18x18xf32, #tpu.memory_space<vmem>>, vector<2x8x1x18xf32>,
    %c0_3 = arith.constant 0 : index
    %c0_4 = arith.constant 0 : index
    %c17 = arith.constant 17 : index
    %c0_5 = arith.constant 0 : index
    %2 = vector.load %arg5[%c0_3, %c0_4, %c17, %c0_5] : memref<2x8x18x18xf32, #tpu.memory_space<vmem>>, vector<2x8x1x18xf32>
    tpu.vector_store %arg5[%c0_3, %c0_4, %c17, %c0_5], %0 {strides = array<i32>} : memref<2x8x18x18xf32, #tpu.memory_space<vmem>>, vector<2x8x1x18xf32>,
    %cst_6 = arith.constant 0.000000e+00 : f32
    %3 = vector.broadcast %cst_6 : f32 to vector<2x8x18x1xf32>
    %c0_7 = arith.constant 0 : index
    %c0_8 = arith.constant 0 : index
    %c0_9 = arith.constant 0 : index
    %c0_10 = arith.constant 0 : index
    %4 = vector.load %arg5[%c0_7, %c0_8, %c0_9, %c0_10] : memref<2x8x18x18xf32, #tpu.memory_space<vmem>>, vector<2x8x18x1xf32>
    tpu.vector_store %arg5[%c0_7, %c0_8, %c0_9, %c0_10], %3 {strides = array<i32>} : memref<2x8x18x18xf32, #tpu.memory_space<vmem>>, vector<2x8x18x1xf32>,
    %c0_11 = arith.constant 0 : index
    %c0_12 = arith.constant 0 : index
    %c0_13 = arith.constant 0 : index
    %c17_14 = arith.constant 17 : index
    %5 = vector.load %arg5[%c0_11, %c0_12, %c0_13, %c17_14] : memref<2x8x18x18xf32, #tpu.memory_space<vmem>>, vector<2x8x18x1xf32>
    tpu.vector_store %arg5[%c0_11, %c0_12, %c0_13, %c17_14], %3 {strides = array<i32>} : memref<2x8x18x18xf32, #tpu.memory_space<vmem>>, vector<2x8x18x1xf32>,
    %c0_15 = arith.constant 0 : index
    %c0_16 = arith.constant 0 : index
    %c0_17 = arith.constant 0 : index
    %6 = vector.load %arg1[%c0_15, %c0_16, %c0_17] : memref<2x8x10xf32, #tpu.memory_space<vmem>>, vector<1x8x10xf32>
    %7 = vector.shape_cast %6 : vector<1x8x10xf32> to vector<8x10xf32>
    %c1 = arith.constant 1 : index
    %c0_18 = arith.constant 0 : index
    %c0_19 = arith.constant 0 : index
    %8 = vector.load %arg1[%c1, %c0_18, %c0_19] : memref<2x8x10xf32, #tpu.memory_space<vmem>>, vector<1x8x10xf32>
    %9 = vector.shape_cast %8 : vector<1x8x10xf32> to vector<8x10xf32>
    %c0_20 = arith.constant 0 : index
    %c0_21 = arith.constant 0 : index
    %c0_22 = arith.constant 0 : index
    %c0_23 = arith.constant 0 : index
    %10 = vector.load %arg2[%c0_20, %c0_21, %c0_22, %c0_23] : memref<2x4x16x16xf32, #tpu.memory_space<vmem>>, vector<2x4x16x16xf32>
    %c0_24 = arith.constant 0 : index
    %c0_25 = arith.constant 0 : index
    %c1_26 = arith.constant 1 : index
    %c1_27 = arith.constant 1 : index
    %11 = vector.load %arg5[%c0_24, %c0_25, %c1_26, %c1_27] : memref<2x8x18x18xf32, #tpu.memory_space<vmem>>, vector<2x4x16x16xf32>
    tpu.vector_store %arg5[%c0_24, %c0_25, %c1_26, %c1_27], %10 {strides = array<i32>} : memref<2x8x18x18xf32, #tpu.memory_space<vmem>>, vector<2x4x16x16xf32>,
    %c0_28 = arith.constant 0 : index
    %c0_29 = arith.constant 0 : index
    %c0_30 = arith.constant 0 : index
    %c0_31 = arith.constant 0 : index
    %12 = vector.load %arg3[%c0_28, %c0_29, %c0_30, %c0_31] : memref<2x4x16x16xf32, #tpu.memory_space<vmem>>, vector<2x4x16x16xf32>
    %c0_32 = arith.constant 0 : index
    %c4 = arith.constant 4 : index
    %c1_33 = arith.constant 1 : index
    %c1_34 = arith.constant 1 : index
    %13 = vector.load %arg5[%c0_32, %c4, %c1_33, %c1_34] : memref<2x8x18x18xf32, #tpu.memory_space<vmem>>, vector<2x4x16x16xf32>
    tpu.vector_store %arg5[%c0_32, %c4, %c1_33, %c1_34], %12 {strides = array<i32>} : memref<2x8x18x18xf32, #tpu.memory_space<vmem>>, vector<2x4x16x16xf32>,
    %14 = vector.extract_strided_slice %7 {offsets = [0, 0], sizes = [8, 9], strides = [1, 1]} : vector<8x10xf32> to vector<8x9xf32>
    %15 = vector.extract_strided_slice %7 {offsets = [0, 9], sizes = [8, 1], strides = [1, 1]} : vector<8x10xf32> to vector<8x1xf32>
    %16 = vector.shape_cast %15 : vector<8x1xf32> to vector<8xf32>
    %17 = vector.shape_cast %16 : vector<8xf32> to vector<1x8x1x1xf32>
    %18 = vector.shape_cast %17 : vector<1x8x1x1xf32> to vector<1x8x1x1xf32>
    %19 = vector.broadcast %18 : vector<1x8x1x1xf32> to vector<2x8x16x16xf32>
    %c0_35 = arith.constant 0 : index
    %c0_36 = arith.constant 0 : index
    %c0_37 = arith.constant 0 : index
    %c0_38 = arith.constant 0 : index
    %20 = vector.load %arg5[%c0_35, %c0_36, %c0_37, %c0_38] : memref<2x8x18x18xf32, #tpu.memory_space<vmem>>, vector<2x8x18x16xf32>
    %21 = vector.extract_strided_slice %14 {offsets = [0, 0], sizes = [8, 1], strides = [1, 1]} : vector<8x9xf32> to vector<8x1xf32>
    %22 = vector.shape_cast %21 : vector<8x1xf32> to vector<8xf32>
    %23 = vector.shape_cast %22 : vector<8xf32> to vector<1x8x1x1xf32>
    %24 = vector.extract_strided_slice %20 {offsets = [0, 0, 0, 0], sizes = [2, 8, 16, 16], strides = [1, 1, 1, 1]} : vector<2x8x18x16xf32> to vector<2x8x16x16xf32>
    %25 = vector.broadcast %23 : vector<1x8x1x1xf32> to vector<2x8x16x16xf32>
    %26 = arith.mulf %25, %24 : vector<2x8x16x16xf32>
    %27 = arith.addf %19, %26 : vector<2x8x16x16xf32>
    %28 = vector.extract_strided_slice %14 {offsets = [0, 3], sizes = [8, 1], strides = [1, 1]} : vector<8x9xf32> to vector<8x1xf32>
    %29 = vector.shape_cast %28 : vector<8x1xf32> to vector<8xf32>
    %30 = vector.shape_cast %29 : vector<8xf32> to vector<1x8x1x1xf32>
    %31 = vector.extract_strided_slice %20 {offsets = [0, 0, 1, 0], sizes = [2, 8, 16, 16], strides = [1, 1, 1, 1]} : vector<2x8x18x16xf32> to vector<2x8x16x16xf32>
    %32 = vector.broadcast %30 : vector<1x8x1x1xf32> to vector<2x8x16x16xf32>
    %33 = arith.mulf %32, %31 : vector<2x8x16x16xf32>
    %34 = arith.addf %27, %33 : vector<2x8x16x16xf32>
    %35 = vector.extract_strided_slice %14 {offsets = [0, 6], sizes = [8, 1], strides = [1, 1]} : vector<8x9xf32> to vector<8x1xf32>
    %36 = vector.shape_cast %35 : vector<8x1xf32> to vector<8xf32>
    %37 = vector.shape_cast %36 : vector<8xf32> to vector<1x8x1x1xf32>
    %38 = vector.extract_strided_slice %20 {offsets = [0, 0, 2, 0], sizes = [2, 8, 16, 16], strides = [1, 1, 1, 1]} : vector<2x8x18x16xf32> to vector<2x8x16x16xf32>
    %39 = vector.broadcast %37 : vector<1x8x1x1xf32> to vector<2x8x16x16xf32>
    %40 = arith.mulf %39, %38 : vector<2x8x16x16xf32>
    %41 = arith.addf %34, %40 : vector<2x8x16x16xf32>
    %c0_39 = arith.constant 0 : index
    %c0_40 = arith.constant 0 : index
    %c0_41 = arith.constant 0 : index
    %c1_42 = arith.constant 1 : index
    %42 = vector.load %arg5[%c0_39, %c0_40, %c0_41, %c1_42] : memref<2x8x18x18xf32, #tpu.memory_space<vmem>>, vector<2x8x18x16xf32>
    %43 = vector.extract_strided_slice %14 {offsets = [0, 1], sizes = [8, 1], strides = [1, 1]} : vector<8x9xf32> to vector<8x1xf32>
    %44 = vector.shape_cast %43 : vector<8x1xf32> to vector<8xf32>
    %45 = vector.shape_cast %44 : vector<8xf32> to vector<1x8x1x1xf32>
    %46 = vector.extract_strided_slice %42 {offsets = [0, 0, 0, 0], sizes = [2, 8, 16, 16], strides = [1, 1, 1, 1]} : vector<2x8x18x16xf32> to vector<2x8x16x16xf32>
    %47 = vector.broadcast %45 : vector<1x8x1x1xf32> to vector<2x8x16x16xf32>
    %48 = arith.mulf %47, %46 : vector<2x8x16x16xf32>
    %49 = arith.addf %41, %48 : vector<2x8x16x16xf32>
    %50 = vector.extract_strided_slice %14 {offsets = [0, 4], sizes = [8, 1], strides = [1, 1]} : vector<8x9xf32> to vector<8x1xf32>
    %51 = vector.shape_cast %50 : vector<8x1xf32> to vector<8xf32>
    %52 = vector.shape_cast %51 : vector<8xf32> to vector<1x8x1x1xf32>
    %53 = vector.extract_strided_slice %42 {offsets = [0, 0, 1, 0], sizes = [2, 8, 16, 16], strides = [1, 1, 1, 1]} : vector<2x8x18x16xf32> to vector<2x8x16x16xf32>
    %54 = vector.broadcast %52 : vector<1x8x1x1xf32> to vector<2x8x16x16xf32>
    %55 = arith.mulf %54, %53 : vector<2x8x16x16xf32>
    %56 = arith.addf %49, %55 : vector<2x8x16x16xf32>
    %57 = vector.extract_strided_slice %14 {offsets = [0, 7], sizes = [8, 1], strides = [1, 1]} : vector<8x9xf32> to vector<8x1xf32>
    %58 = vector.shape_cast %57 : vector<8x1xf32> to vector<8xf32>
    %59 = vector.shape_cast %58 : vector<8xf32> to vector<1x8x1x1xf32>
    %60 = vector.extract_strided_slice %42 {offsets = [0, 0, 2, 0], sizes = [2, 8, 16, 16], strides = [1, 1, 1, 1]} : vector<2x8x18x16xf32> to vector<2x8x16x16xf32>
    %61 = vector.broadcast %59 : vector<1x8x1x1xf32> to vector<2x8x16x16xf32>
    %62 = arith.mulf %61, %60 : vector<2x8x16x16xf32>
    %63 = arith.addf %56, %62 : vector<2x8x16x16xf32>
    %c0_43 = arith.constant 0 : index
    %c0_44 = arith.constant 0 : index
    %c0_45 = arith.constant 0 : index
    %c2 = arith.constant 2 : index
    %64 = vector.load %arg5[%c0_43, %c0_44, %c0_45, %c2] : memref<2x8x18x18xf32, #tpu.memory_space<vmem>>, vector<2x8x18x16xf32>
    %65 = vector.extract_strided_slice %14 {offsets = [0, 2], sizes = [8, 1], strides = [1, 1]} : vector<8x9xf32> to vector<8x1xf32>
    %66 = vector.shape_cast %65 : vector<8x1xf32> to vector<8xf32>
    %67 = vector.shape_cast %66 : vector<8xf32> to vector<1x8x1x1xf32>
    %68 = vector.extract_strided_slice %64 {offsets = [0, 0, 0, 0], sizes = [2, 8, 16, 16], strides = [1, 1, 1, 1]} : vector<2x8x18x16xf32> to vector<2x8x16x16xf32>
    %69 = vector.broadcast %67 : vector<1x8x1x1xf32> to vector<2x8x16x16xf32>
    %70 = arith.mulf %69, %68 : vector<2x8x16x16xf32>
    %71 = arith.addf %63, %70 : vector<2x8x16x16xf32>
    %72 = vector.extract_strided_slice %14 {offsets = [0, 5], sizes = [8, 1], strides = [1, 1]} : vector<8x9xf32> to vector<8x1xf32>
    %73 = vector.shape_cast %72 : vector<8x1xf32> to vector<8xf32>
    %74 = vector.shape_cast %73 : vector<8xf32> to vector<1x8x1x1xf32>
    %75 = vector.extract_strided_slice %64 {offsets = [0, 0, 1, 0], sizes = [2, 8, 16, 16], strides = [1, 1, 1, 1]} : vector<2x8x18x16xf32> to vector<2x8x16x16xf32>
    %76 = vector.broadcast %74 : vector<1x8x1x1xf32> to vector<2x8x16x16xf32>
    %77 = arith.mulf %76, %75 : vector<2x8x16x16xf32>
    %78 = arith.addf %71, %77 : vector<2x8x16x16xf32>
    %79 = vector.extract_strided_slice %14 {offsets = [0, 8], sizes = [8, 1], strides = [1, 1]} : vector<8x9xf32> to vector<8x1xf32>
    %80 = vector.shape_cast %79 : vector<8x1xf32> to vector<8xf32>
    %81 = vector.shape_cast %80 : vector<8xf32> to vector<1x8x1x1xf32>
    %82 = vector.extract_strided_slice %64 {offsets = [0, 0, 2, 0], sizes = [2, 8, 16, 16], strides = [1, 1, 1, 1]} : vector<2x8x18x16xf32> to vector<2x8x16x16xf32>
    %83 = vector.broadcast %81 : vector<1x8x1x1xf32> to vector<2x8x16x16xf32>
    %84 = arith.mulf %83, %82 : vector<2x8x16x16xf32>
    %85 = arith.addf %78, %84 : vector<2x8x16x16xf32>
    %cst_46 = arith.constant 0.000000e+00 : f32
    %86 = vector.broadcast %cst_46 : f32 to vector<2x8x16x16xf32>
    %87 = arith.cmpf oge, %85, %86 : vector<2x8x16x16xf32>
    %cst_47 = arith.constant 1.000000e-01 : f32
    %88 = vector.broadcast %cst_47 : f32 to vector<2x8x16x16xf32>
    %89 = arith.mulf %88, %85 : vector<2x8x16x16xf32>
    %90 = arith.select %87, %85, %89 : vector<2x8x16x16xi1>, vector<2x8x16x16xf32>
    %c0_48 = arith.constant 0 : index
    %c0_49 = arith.constant 0 : index
    %c1_50 = arith.constant 1 : index
    %c1_51 = arith.constant 1 : index
    %91 = vector.load %arg5[%c0_48, %c0_49, %c1_50, %c1_51] : memref<2x8x18x18xf32, #tpu.memory_space<vmem>>, vector<2x8x16x16xf32>
    tpu.vector_store %arg5[%c0_48, %c0_49, %c1_50, %c1_51], %90 {strides = array<i32>} : memref<2x8x18x18xf32, #tpu.memory_space<vmem>>, vector<2x8x16x16xf32>,
    %92 = vector.extract_strided_slice %9 {offsets = [0, 0], sizes = [8, 9], strides = [1, 1]} : vector<8x10xf32> to vector<8x9xf32>
    %93 = vector.extract_strided_slice %9 {offsets = [0, 9], sizes = [8, 1], strides = [1, 1]} : vector<8x10xf32> to vector<8x1xf32>
    %94 = vector.shape_cast %93 : vector<8x1xf32> to vector<8xf32>
    %95 = vector.shape_cast %94 : vector<8xf32> to vector<1x8x1x1xf32>
    %96 = vector.shape_cast %95 : vector<1x8x1x1xf32> to vector<1x8x1x1xf32>
    %97 = vector.broadcast %96 : vector<1x8x1x1xf32> to vector<2x8x16x16xf32>
    %c0_52 = arith.constant 0 : index
    %c0_53 = arith.constant 0 : index
    %c0_54 = arith.constant 0 : index
    %c0_55 = arith.constant 0 : index
    %98 = vector.load %arg5[%c0_52, %c0_53, %c0_54, %c0_55] : memref<2x8x18x18xf32, #tpu.memory_space<vmem>>, vector<2x8x18x16xf32>
    %99 = vector.extract_strided_slice %92 {offsets = [0, 0], sizes = [8, 1], strides = [1, 1]} : vector<8x9xf32> to vector<8x1xf32>
    %100 = vector.shape_cast %99 : vector<8x1xf32> to vector<8xf32>
    %101 = vector.shape_cast %100 : vector<8xf32> to vector<1x8x1x1xf32>
    %102 = vector.extract_strided_slice %98 {offsets = [0, 0, 0, 0], sizes = [2, 8, 16, 16], strides = [1, 1, 1, 1]} : vector<2x8x18x16xf32> to vector<2x8x16x16xf32>
    %103 = vector.broadcast %101 : vector<1x8x1x1xf32> to vector<2x8x16x16xf32>
    %104 = arith.mulf %103, %102 : vector<2x8x16x16xf32>
    %105 = arith.addf %97, %104 : vector<2x8x16x16xf32>
    %106 = vector.extract_strided_slice %92 {offsets = [0, 3], sizes = [8, 1], strides = [1, 1]} : vector<8x9xf32> to vector<8x1xf32>
    %107 = vector.shape_cast %106 : vector<8x1xf32> to vector<8xf32>
    %108 = vector.shape_cast %107 : vector<8xf32> to vector<1x8x1x1xf32>
    %109 = vector.extract_strided_slice %98 {offsets = [0, 0, 1, 0], sizes = [2, 8, 16, 16], strides = [1, 1, 1, 1]} : vector<2x8x18x16xf32> to vector<2x8x16x16xf32>
    %110 = vector.broadcast %108 : vector<1x8x1x1xf32> to vector<2x8x16x16xf32>
    %111 = arith.mulf %110, %109 : vector<2x8x16x16xf32>
    %112 = arith.addf %105, %111 : vector<2x8x16x16xf32>
    %113 = vector.extract_strided_slice %92 {offsets = [0, 6], sizes = [8, 1], strides = [1, 1]} : vector<8x9xf32> to vector<8x1xf32>
    %114 = vector.shape_cast %113 : vector<8x1xf32> to vector<8xf32>
    %115 = vector.shape_cast %114 : vector<8xf32> to vector<1x8x1x1xf32>
    %116 = vector.extract_strided_slice %98 {offsets = [0, 0, 2, 0], sizes = [2, 8, 16, 16], strides = [1, 1, 1, 1]} : vector<2x8x18x16xf32> to vector<2x8x16x16xf32>
    %117 = vector.broadcast %115 : vector<1x8x1x1xf32> to vector<2x8x16x16xf32>
    %118 = arith.mulf %117, %116 : vector<2x8x16x16xf32>
    %119 = arith.addf %112, %118 : vector<2x8x16x16xf32>
    %c0_56 = arith.constant 0 : index
    %c0_57 = arith.constant 0 : index
    %c0_58 = arith.constant 0 : index
    %c1_59 = arith.constant 1 : index
    %120 = vector.load %arg5[%c0_56, %c0_57, %c0_58, %c1_59] : memref<2x8x18x18xf32, #tpu.memory_space<vmem>>, vector<2x8x18x16xf32>
    %121 = vector.extract_strided_slice %92 {offsets = [0, 1], sizes = [8, 1], strides = [1, 1]} : vector<8x9xf32> to vector<8x1xf32>
    %122 = vector.shape_cast %121 : vector<8x1xf32> to vector<8xf32>
    %123 = vector.shape_cast %122 : vector<8xf32> to vector<1x8x1x1xf32>
    %124 = vector.extract_strided_slice %120 {offsets = [0, 0, 0, 0], sizes = [2, 8, 16, 16], strides = [1, 1, 1, 1]} : vector<2x8x18x16xf32> to vector<2x8x16x16xf32>
    %125 = vector.broadcast %123 : vector<1x8x1x1xf32> to vector<2x8x16x16xf32>
    %126 = arith.mulf %125, %124 : vector<2x8x16x16xf32>
    %127 = arith.addf %119, %126 : vector<2x8x16x16xf32>
    %128 = vector.extract_strided_slice %92 {offsets = [0, 4], sizes = [8, 1], strides = [1, 1]} : vector<8x9xf32> to vector<8x1xf32>
    %129 = vector.shape_cast %128 : vector<8x1xf32> to vector<8xf32>
    %130 = vector.shape_cast %129 : vector<8xf32> to vector<1x8x1x1xf32>
    %131 = vector.extract_strided_slice %120 {offsets = [0, 0, 1, 0], sizes = [2, 8, 16, 16], strides = [1, 1, 1, 1]} : vector<2x8x18x16xf32> to vector<2x8x16x16xf32>
    %132 = vector.broadcast %130 : vector<1x8x1x1xf32> to vector<2x8x16x16xf32>
    %133 = arith.mulf %132, %131 : vector<2x8x16x16xf32>
    %134 = arith.addf %127, %133 : vector<2x8x16x16xf32>
    %135 = vector.extract_strided_slice %92 {offsets = [0, 7], sizes = [8, 1], strides = [1, 1]} : vector<8x9xf32> to vector<8x1xf32>
    %136 = vector.shape_cast %135 : vector<8x1xf32> to vector<8xf32>
    %137 = vector.shape_cast %136 : vector<8xf32> to vector<1x8x1x1xf32>
    %138 = vector.extract_strided_slice %120 {offsets = [0, 0, 2, 0], sizes = [2, 8, 16, 16], strides = [1, 1, 1, 1]} : vector<2x8x18x16xf32> to vector<2x8x16x16xf32>
    %139 = vector.broadcast %137 : vector<1x8x1x1xf32> to vector<2x8x16x16xf32>
    %140 = arith.mulf %139, %138 : vector<2x8x16x16xf32>
    %141 = arith.addf %134, %140 : vector<2x8x16x16xf32>
    %c0_60 = arith.constant 0 : index
    %c0_61 = arith.constant 0 : index
    %c0_62 = arith.constant 0 : index
    %c2_63 = arith.constant 2 : index
    %142 = vector.load %arg5[%c0_60, %c0_61, %c0_62, %c2_63] : memref<2x8x18x18xf32, #tpu.memory_space<vmem>>, vector<2x8x18x16xf32>
    %143 = vector.extract_strided_slice %92 {offsets = [0, 2], sizes = [8, 1], strides = [1, 1]} : vector<8x9xf32> to vector<8x1xf32>
    %144 = vector.shape_cast %143 : vector<8x1xf32> to vector<8xf32>
    %145 = vector.shape_cast %144 : vector<8xf32> to vector<1x8x1x1xf32>
    %146 = vector.extract_strided_slice %142 {offsets = [0, 0, 0, 0], sizes = [2, 8, 16, 16], strides = [1, 1, 1, 1]} : vector<2x8x18x16xf32> to vector<2x8x16x16xf32>
    %147 = vector.broadcast %145 : vector<1x8x1x1xf32> to vector<2x8x16x16xf32>
    %148 = arith.mulf %147, %146 : vector<2x8x16x16xf32>
    %149 = arith.addf %141, %148 : vector<2x8x16x16xf32>
    %150 = vector.extract_strided_slice %92 {offsets = [0, 5], sizes = [8, 1], strides = [1, 1]} : vector<8x9xf32> to vector<8x1xf32>
    %151 = vector.shape_cast %150 : vector<8x1xf32> to vector<8xf32>
    %152 = vector.shape_cast %151 : vector<8xf32> to vector<1x8x1x1xf32>
    %153 = vector.extract_strided_slice %142 {offsets = [0, 0, 1, 0], sizes = [2, 8, 16, 16], strides = [1, 1, 1, 1]} : vector<2x8x18x16xf32> to vector<2x8x16x16xf32>
    %154 = vector.broadcast %152 : vector<1x8x1x1xf32> to vector<2x8x16x16xf32>
    %155 = arith.mulf %154, %153 : vector<2x8x16x16xf32>
    %156 = arith.addf %149, %155 : vector<2x8x16x16xf32>
    %157 = vector.extract_strided_slice %92 {offsets = [0, 8], sizes = [8, 1], strides = [1, 1]} : vector<8x9xf32> to vector<8x1xf32>
    %158 = vector.shape_cast %157 : vector<8x1xf32> to vector<8xf32>
    %159 = vector.shape_cast %158 : vector<8xf32> to vector<1x8x1x1xf32>
    %160 = vector.extract_strided_slice %142 {offsets = [0, 0, 2, 0], sizes = [2, 8, 16, 16], strides = [1, 1, 1, 1]} : vector<2x8x18x16xf32> to vector<2x8x16x16xf32>
    %161 = vector.broadcast %159 : vector<1x8x1x1xf32> to vector<2x8x16x16xf32>
    %162 = arith.mulf %161, %160 : vector<2x8x16x16xf32>
    %163 = arith.addf %156, %162 : vector<2x8x16x16xf32>
    %c0_64 = arith.constant 0 : index
    %c0_65 = arith.constant 0 : index
    %c0_66 = arith.constant 0 : index
    %c0_67 = arith.constant 0 : index
    %164 = vector.load %arg4[%c0_64, %c0_65, %c0_66, %c0_67] : memref<2x8x16x16xf32, #tpu.memory_space<vmem>>, vector<2x8x16x16xf32>
    tpu.vector_store %arg4[%c0_64, %c0_65, %c0_66, %c0_67], %163 {strides = array<i32>} : memref<2x8x16x16xf32, #tpu.memory_space<vmem>>, vector<2x8x16x16xf32>,
    return
  }
  func.func @transform_0(%arg0: i32) -> (i32, i32, i32) {
    %c0_i32 = arith.constant 0 : i32
    %c0_i32_0 = arith.constant 0 : i32
    %c0_i32_1 = arith.constant 0 : i32
    %c0_i32_2 = arith.constant 0 : i32
    return %c0_i32, %c0_i32_0, %c0_i32_1 : i32, i32, i32
  }
  func.func @transform_1(%arg0: i32) -> (i32, i32, i32, i32) {
    %c0_i32 = arith.constant 0 : i32
    %c0_i32_0 = arith.constant 0 : i32
    %c0_i32_1 = arith.constant 0 : i32
    %c0_i32_2 = arith.constant 0 : i32
    return %arg0, %c0_i32, %c0_i32_0, %c0_i32_1 : i32, i32, i32, i32
  }
  func.func @transform_2(%arg0: i32) -> (i32, i32, i32, i32) {
    %c0_i32 = arith.constant 0 : i32
    %c0_i32_0 = arith.constant 0 : i32
    %c0_i32_1 = arith.constant 0 : i32
    %c0_i32_2 = arith.constant 0 : i32
    return %arg0, %c0_i32, %c0_i32_0, %c0_i32_1 : i32, i32, i32, i32
  }
  func.func @transform_3(%arg0: i32) -> (i32, i32, i32, i32) {
    %c0_i32 = arith.constant 0 : i32
    %c0_i32_0 = arith.constant 0 : i32
    %c0_i32_1 = arith.constant 0 : i32
    %c0_i32_2 = arith.constant 0 : i32
    return %arg0, %c0_i32, %c0_i32_0, %c0_i32_1 : i32, i32, i32, i32
  }
}

</mosaic_0001>

<bundles_post_ra>
// kernel: custom-call
= control target key start
LH: loop header
LB: loop body
LE: loop exit
PB: predicated region body
PF: predicated region fallthrough
CT: control target
= control target key end

     0   :  { %s126_s0 = inlined_call_operand.vmem [shape: f32[2,4,16,16], index: 0, kind: input, shape index: {}]   ;;  %s127_s1 = inlined_call_operand.vmem [shape: f32[2,4,16,16], index: 1, kind: input, shape index: {}]   ;;  %s128_s2 = inlined_call_operand.hbm [shape: c64[2,4,16,16], index: 2, kind: output, shape index: {}]  }
   0x1   :  { %s87_s11 = scalar_lea.hbm %s128_s2, 2048 }
   0x2   :  { %4 = vsyncpa [#allocation0], 0  ;;  %s5_s14 = sshll.u32 %s126_s0, 4  ;;  %s6_s14 = int_to_ptr.vmem [resolvable:$true] %s5_s14 }
   0x3   :  { %s18_s15 = scalar_lea.vmem %s6_s14, 2048  ;;  %p23_p1 = scmp.lt.s32.totalorder %s6_s14, %s6_s14 }
   0x4   :  { %p19_p0 = scmp.ne.s32.totalorder %s6_s14, %s18_s15  ;;  %p24_p2 = scmp.lt.s32.totalorder %s18_s15, %s18_s15 }
   0x6   :  { %p25_p3 = por %p24_p2, %p23_p1 }
   0x8   :  { %p26_p4 = pnand %p25_p3, %p19_p0 }
   0xa   :  { %29 = shalt.err (!%p26_p4)  }
   0xb   :  { %p31_p5 = scmp.ne.s32.totalorder %s128_s2, %s87_s11  ;;  %s32_s0 = scalar_lea.hbm %s128_s2, 4096 }
   0xc   :  { %p33_p6 = scmp.lt.u32.totalorder %s32_s0, %s87_s11  ;;  %p34_p7 = scmp.lt.u32.totalorder %s87_s11, %s128_s2 }
   0xe   :  { %p35_p8 = por %p34_p7, %p33_p6 }
  0x10   :  { %p36_p9 = pnand %p35_p8, %p31_p5 }
  0x12   :  { %39 = shalt.err (!%p36_p9)  }
  0x13   :  { %8 = dma.vmem_to_hbm [thread:$0]  %s6_s14, 2048, %s128_s2, [#allocation0] }
  0x14   :  { %65 = dma.done.wait [#allocation0], 2048  }
  0x15   :  { %66 = vsyncadd [#allocation0], 4294965248 }
  0x16   :  { %10 = vsyncpa [#allocation0], 1 }
  0x17   :  { %11 = vsyncpa [#allocation1], 0  ;;  %s12_s28 = sshll.u32 %s127_s1, 4  ;;  %s13_s28 = int_to_ptr.vmem [resolvable:$true] %s12_s28 }
  0x18   :  { %s40_s29 = scalar_lea.vmem %s13_s28, 2048  ;;  %p45_p11 = scmp.lt.s32.totalorder %s13_s28, %s13_s28 }
  0x19   :  { %p41_p10 = scmp.ne.s32.totalorder %s13_s28, %s40_s29  ;;  %p46_p12 = scmp.lt.s32.totalorder %s40_s29, %s40_s29 }
  0x1b   :  { %p47_p13 = por %p46_p12, %p45_p11 }
  0x1d   :  { %p48_p0 = pnand %p47_p13, %p41_p10 }
  0x1f   :  { %51 = shalt.err (!%p48_p0)  }
  0x20   :  { %p53_p1 = scmp.ne.s32.totalorder %s87_s11, %s32_s0  ;;  %p56_p2 = scmp.lt.u32.totalorder %s32_s0, %s32_s0 }
  0x22   :  { %p57_p3 = por %p56_p2, %p34_p7 }
  0x24   :  { %p59_p4 = por %p57_p3, %p33_p6 }
  0x26   :  { %p60_p5 = pnand %p59_p4, %p53_p1 }
  0x28   :  { %63 = shalt.err (!%p60_p5)  }
  0x29   :  { %15 = dma.vmem_to_hbm [thread:$0]  %s13_s28, 2048, %s87_s11, [#allocation1] }
  0x2a   :  { %67 = dma.done.wait [#allocation1], 2048  }
  0x2b   :  { %68 = vsyncadd [#allocation1], 4294965248 }
  0x2c   :  { %17 = vsyncpa [#allocation1], 1 }

// kernel: fre_block_spa.1
= control target key start
LH: loop header
LB: loop body
LE: loop exit
PB: predicated region body
PF: predicated region fallthrough
CT: control target
= control target key end

     0   :  { %v11908_v2 = vmov 0   ;;  %v11910_v3 = vmov 9   ;;  %s6167_s16 = smov 1   ;;  %vm14_vm0 = vcmask 139264   ;;  %vm47_vm1 = vcmask 7168   ;;  %s6178_s25 = smov 126   ;;  %s11896_s1 = inlined_call_operand.vmem [shape: f32[2,4,16,16], index: 1, kind: input, shape index: {}]   ;;  %s11897_s2 = inlined_call_operand.vmem [shape: f32[2,4,16,16], index: 2, kind: input, shape index: {}]   ;;  %s11898_s0 = inlined_call_operand.vmem [shape: f32[2,8,10], index: 0, kind: input, shape index: {}]   ;;  %s11899_s3 = inlined_call_operand.vmem [shape: f32[2,8,16,16], index: 3, kind: output, shape index: {}]  }
   0x1   :  { %v152_v0 = vld [vmem:[%s11896_s1 + $0x10] sm:$0xff]  ;;  %v150_v1 = vld [vmem:[%s11896_s1] sm:$0xff]  ;;  %6037 = vset.pattern.permute.xlu0 %v11908_v2  ;;  %6035 = vset.pattern.permute.xlu1 %v11910_v3  ;;  %v6213_v4 = vld [vmem:[%s11896_s1 + $0x18] sm:$0xff]  ;;  %v6168_v6 = vmov 0.0   ;;  %vm97_vm2 = vcmask 146568   ;;  %vm50_vm3 = vcmask 1024   ;;  %v349_v25 = vlaneseq }
   0x2   :  { %186 = vrot.lane.b32.xlu1 %v152_v0, %s6167_s16  ;;  %182 = vrot.lane.b32.xlu0 %v150_v1, %s6167_s16  ;;  %v6218_v5 = vld [vmem:[%s11896_s1 + $0x8] sm:$0xff]  ;;  %16 = vst.msk [vmem:[#allocation2 + $0x18] sm:$0x1] %vm14_vm0, %v6168_v6  ;;  %15 = vst.msk [vmem:[#allocation2] sm:$0x1] %vm14_vm0, %v6168_v6  ;;  %vm100_vm4 = vcmask 140424  }
   0x3   :  { %53 = vst.msk [vmem:[#allocation2 + $0x20] sm:$0xff] %vm47_vm1, %v6168_v6  ;;  %49 = vst.msk [vmem:[#allocation2 + $0x8] sm:$0xff] %vm47_vm1, %v6168_v6  ;;  %v155_v7 = vld [vmem:[%s11896_s1 + $0x28] sm:$0xff]  ;;  %v154_v8 = vld [vmem:[%s11896_s1 + $0x20] sm:$0xff]  ;;  %v6169_v23 = vmov 1966171168  }
   0x4   :  { %17 = vst.msk [vmem:[#allocation2 + $0x30] sm:$0x1] %vm14_vm0, %v6168_v6  ;;  %18 = vst.msk [vmem:[#allocation2 + $0x48] sm:$0x1] %vm14_vm0, %v6168_v6  ;;  %v157_v9 = vld [vmem:[%s11896_s1 + $0x38] sm:$0xff]  ;;  %v156_v10 = vld [vmem:[%s11896_s1 + $0x30] sm:$0xff]  ;;  %v347_v24 = vunpack.c.l.s4 %v6169_v23 }
   0x5   :  { %19 = vst.msk [vmem:[#allocation2 + $0x60] sm:$0x1] %vm14_vm0, %v6168_v6  ;;  %20 = vst.msk [vmem:[#allocation2 + $0x78] sm:$0x1] %vm14_vm0, %v6168_v6  ;;  %v159_v11 = vld [vmem:[%s11896_s1 + $0x48] sm:$0xff]  ;;  %v158_v12 = vld [vmem:[%s11896_s1 + $0x40] sm:$0xff] }
   0x6   :  { %21 = vst.msk [vmem:[#allocation2 + $0x90] sm:$0x1] %vm14_vm0, %v6168_v6  ;;  %22 = vst.msk [vmem:[#allocation2 + $0xa8] sm:$0x1] %vm14_vm0, %v6168_v6  ;;  %188 = vrot.lane.b32.xlu1 %v6213_v4, %s6167_s16  ;;  %184 = vrot.lane.b32.xlu0 %v6218_v5, %s6167_s16  ;;  %v161_v13 = vld [vmem:[%s11896_s1 + $0x58] sm:$0xff]  ;;  %v160_v14 = vld [vmem:[%s11896_s1 + $0x50] sm:$0xff]  ;;  %v348_v28 = vunpack.c.0.s8 %v347_v24 }
   0x7   :  { %23 = vst.msk [vmem:[#allocation2 + $0xc0] sm:$0x1] %vm14_vm0, %v6168_v6  ;;  %24 = vst.msk [vmem:[#allocation2 + $0xd8] sm:$0x1] %vm14_vm0, %v6168_v6  ;;  %v163_v15 = vld [vmem:[%s11896_s1 + $0x68] sm:$0xff]  ;;  %v162_v16 = vld [vmem:[%s11896_s1 + $0x60] sm:$0xff] }
   0x8   :  { %25 = vst.msk [vmem:[#allocation2 + $0xf0] sm:$0x1] %vm14_vm0, %v6168_v6  ;;  %26 = vst.msk [vmem:[#allocation2 + $0x108] sm:$0x1] %vm14_vm0, %v6168_v6  ;;  %v165_v17 = vld [vmem:[%s11896_s1 + $0x78] sm:$0xff]  ;;  %v164_v18 = vld [vmem:[%s11896_s1 + $0x70] sm:$0xff] }
   0x9   :  { %27 = vst.msk [vmem:[#allocation2 + $0x120] sm:$0x1] %vm14_vm0, %v6168_v6  ;;  %28 = vst.msk [vmem:[#allocation2 + $0x138] sm:$0x1] %vm14_vm0, %v6168_v6  ;;  %v248_v19 = vld [vmem:[%s11897_s2 + $0x8] sm:$0xff]  ;;  %v247_v20 = vld [vmem:[%s11897_s2] sm:$0xff] }
   0xa   :  { %29 = vst.msk [vmem:[#allocation2 + $0x150] sm:$0x1] %vm14_vm0, %v6168_v6  ;;  %30 = vst.msk [vmem:[#allocation2 + $0x168] sm:$0x1] %vm14_vm0, %v6168_v6  ;;  %192 = vrot.lane.b32.xlu1 %v155_v7, %s6167_s16  ;;  %190 = vrot.lane.b32.xlu0 %v154_v8, %s6167_s16  ;;  %v250_v21 = vld [vmem:[%s11897_s2 + $0x18] sm:$0xff]  ;;  %v249_v22 = vld [vmem:[%s11897_s2 + $0x10] sm:$0xff] }
   0xb   :  { %31 = vst.msk [vmem:[#allocation2 + $0x11] sm:$0x1] %vm14_vm0, %v6168_v6  ;;  %32 = vst.msk [vmem:[#allocation2 + $0x29] sm:$0x1] %vm14_vm0, %v6168_v6  ;;  %v252_v26 = vld [vmem:[%s11897_s2 + $0x28] sm:$0xff]  ;;  %v251_v27 = vld [vmem:[%s11897_s2 + $0x20] sm:$0xff] }
   0xc   :  { %33 = vst.msk [vmem:[#allocation2 + $0x41] sm:$0x1] %vm14_vm0, %v6168_v6  ;;  %34 = vst.msk [vmem:[#allocation2 + $0x59] sm:$0x1] %vm14_vm0, %v6168_v6  ;;  %v350_v29 = vshrl.u32 %v349_v25, 7  ;;  %v254_v30 = vld [vmem:[%s11897_s2 + $0x38] sm:$0xff] }
   0xd   :  { %35 = vst.msk [vmem:[#allocation2 + $0x71] sm:$0x1] %vm14_vm0, %v6168_v6  ;;  %36 = vst.msk [vmem:[#allocation2 + $0x89] sm:$0x1] %vm14_vm0, %v6168_v6  ;;  %v253_v31 = vld [vmem:[%s11897_s2 + $0x30] sm:$0xff]  ;;  %v256_v33 = vld [vmem:[%s11897_s2 + $0x48] sm:$0xff] }
   0xe   :  { %37 = vst.msk [vmem:[#allocation2 + $0xa1] sm:$0x1] %vm14_vm0, %v6168_v6  ;;  %38 = vst.msk [vmem:[#allocation2 + $0xb9] sm:$0x1] %vm14_vm0, %v6168_v6  ;;  %196 = vrot.lane.b32.xlu1 %v157_v9, %s6167_s16  ;;  %194 = vrot.lane.b32.xlu0 %v156_v10, %s6167_s16  ;;  %v6560_v32 = vsub.s32 %v348_v28, %v350_v29  ;;  %v255_v34 = vld [vmem:[%s11897_s2 + $0x40] sm:$0xff]  ;;  %v258_v37 = vld [vmem:[%s11897_s2 + $0x58] sm:$0xff] }
   0xf   :  { %39 = vst.msk [vmem:[#allocation2 + $0xd1] sm:$0x1] %vm14_vm0, %v6168_v6  ;;  %40 = vst.msk [vmem:[#allocation2 + $0xe9] sm:$0x1] %vm14_vm0, %v6168_v6  ;;  %v147_v35 = vld [vmem:[%s11898_s0] sm:$0xff]  ;;  %v257_v38 = vld [vmem:[%s11897_s2 + $0x50] sm:$0xff] }
  0x10   :  { %41 = vst.msk [vmem:[#allocation2 + $0x101] sm:$0x1] %vm14_vm0, %v6168_v6  ;;  %42 = vst.msk [vmem:[#allocation2 + $0x119] sm:$0x1] %vm14_vm0, %v6168_v6  ;;  %v352_v36 = vrot.slane %v147_v35, %v6560_v32  ;;  %v345_v40 = vcombine.high %v147_v35, %v147_v35  ;;  %v260_v41 = vld [vmem:[%s11897_s2 + $0x68] sm:$0xff]  ;;  %v259_v42 = vld [vmem:[%s11897_s2 + $0x60] sm:$0xff] }
  0x11   :  { %43 = vst.msk [vmem:[#allocation2 + $0x131] sm:$0x1] %vm14_vm0, %v6168_v6  ;;  %44 = vst.msk [vmem:[#allocation2 + $0x149] sm:$0x1] %vm14_vm0, %v6168_v6  ;;  %v6591_v44 = vsub.s32 0, %v350_v29  ;;  %v262_v47 = vld [vmem:[%s11897_s2 + $0x78] sm:$0xff] }
  0x12   :  { %45 = vst.msk [vmem:[#allocation2 + $0x161] sm:$0x1] %vm14_vm0, %v6168_v6  ;;  %46 = vst.msk [vmem:[#allocation2 + $0x179] sm:$0x1] %vm14_vm0, %v6168_v6  ;;  %200 = vrot.lane.b32.xlu1 %v159_v11, %s6167_s16  ;;  %198 = vrot.lane.b32.xlu0 %v158_v12, %s6167_s16  ;;  %v360_v39 = vcombine.high %v352_v36, %v352_v36  ;;  %v368_v45 = vrot.slane %v352_v36, %v6560_v32  ;;  %v261_v48 = vld [vmem:[%s11897_s2 + $0x70] sm:$0xff]  ;;  %v11906_v59 = vmov 3  }
  0x13   :  { %56 = vst.msk [vmem:[#allocation2 + $0x38] sm:$0xff] %vm47_vm1, %v6168_v6  ;;  %59 = vst.msk [vmem:[#allocation2 + $0x50] sm:$0xff] %vm47_vm1, %v6168_v6  ;;  %v359_v46 = vrot.slane %v345_v40, %v6560_v32  ;;  %v11904_v1 = vmov 6   ;;  %v11902_v4 = vmov 1   ;;  %vm230_vm5 = vcmask 138248   ;;  %s6174_s2 = smov 127  }
  0x14   :  { %62 = vst.msk [vmem:[#allocation2 + $0x68] sm:$0xff] %vm47_vm1, %v6168_v6  ;;  %65 = vst.msk [vmem:[#allocation2 + $0x80] sm:$0xff] %vm47_vm1, %v6168_v6  ;;  %v382_v43 = vrot.slane %v360_v39, %v6560_v32  ;;  %v390_v50 = vcombine.high %v368_v45, %v368_v45  ;;  %v6623_v56 = vrot.slane %v368_v45, %v6591_v44  ;;  %v11900_v45 = vmov 4  }
  0x15   :  { %68 = vst.msk [vmem:[#allocation2 + $0x98] sm:$0xff] %vm47_vm1, %v6168_v6  ;;  %71 = vst.msk [vmem:[#allocation2 + $0xb0] sm:$0xff] %vm47_vm1, %v6168_v6  ;;  %v375_v51 = vrot.slane %v359_v46, %v6560_v32  ;;  %v361_v58 = vcombine.high %v359_v46, %v359_v46  ;;  %vm730_vm6 = vcmask 1046528   ;;  %vm1003_vm7 = vcmask 1045504  }
  0x16   :  { %74 = vst.msk [vmem:[#allocation2 + $0xc8] sm:$0xff] %vm47_vm1, %v6168_v6  ;;  %77 = vst.msk [vmem:[#allocation2 + $0xe0] sm:$0xff] %vm47_vm1, %v6168_v6  ;;  %204 = vrot.lane.b32.xlu1 %v161_v13, %s6167_s16  ;;  %202 = vrot.lane.b32.xlu0 %v160_v14, %s6167_s16  ;;  %v6604_v49 = vrot.slane %v382_v43, %v6591_v44  ;;  %v6610_v52 = vrot.slane %v390_v50, %v6591_v44 }
  0x17   :  { %80 = vst.msk [vmem:[#allocation2 + $0xf8] sm:$0xff] %vm47_vm1, %v6168_v6  ;;  %83 = vst.msk [vmem:[#allocation2 + $0x110] sm:$0xff] %vm47_vm1, %v6168_v6  ;;  %v6613_v53 = vrot.slane %v375_v51, %v6591_v44  ;;  %v391_v54 = vcombine.high %v375_v51, %v375_v51  ;;  %v392_v57 = vcombine.high %v382_v43, %v382_v43 }
  0x18   :  { %86 = vst.msk [vmem:[#allocation2 + $0x128] sm:$0xff] %vm47_vm1, %v6168_v6  ;;  %89 = vst.msk [vmem:[#allocation2 + $0x140] sm:$0xff] %vm47_vm1, %v6168_v6  ;;  %v389_v61 = vrot.slane %v361_v58, %v6560_v32 }
  0x19   :  { %92 = vst.msk [vmem:[#allocation2 + $0x158] sm:$0xff] %vm47_vm1, %v6168_v6  ;;  %95 = vst.msk [vmem:[#allocation2 + $0x170] sm:$0xff] %vm47_vm1, %v6168_v6  ;;  %v6618_v55 = vrot.slane %v391_v54, %v6591_v44  ;;  %v6629_v60 = vrot.slane %v392_v57, %v6591_v44 }
  0x1a   :  { %52 = vst.msk [vmem:[#allocation2 + $0x18] sm:$0xff] %vm47_vm1, %v6168_v6  ;;  %48 = vst.msk [vmem:[#allocation2] sm:$0xff] %vm47_vm1, %v6168_v6  ;;  %208 = vrot.lane.b32.xlu1 %v163_v15, %s6167_s16  ;;  %206 = vrot.lane.b32.xlu0 %v162_v16, %s6167_s16  ;;  %v6636_v62 = vrot.slane %v389_v61, %v6591_v44  ;;  %v393_v63 = vcombine.high %v389_v61, %v389_v61 }
  0x1b   :  { %103 = vst.msk [vmem:[#allocation2 + $0x20] sm:$0xff] %vm97_vm2, %v6168_v6  ;;  %99 = vst.msk [vmem:[#allocation2 + $0x8] sm:$0xff] %vm97_vm2, %v6168_v6 }
  0x1c   :  { %55 = vst.msk [vmem:[#allocation2 + $0x30] sm:$0xff] %vm47_vm1, %v6168_v6  ;;  %58 = vst.msk [vmem:[#allocation2 + $0x48] sm:$0xff] %vm47_vm1, %v6168_v6  ;;  %v6641_v0 = vrot.slane %v393_v63, %v6591_v44 }
  0x1d   :  { %61 = vst.msk [vmem:[#allocation2 + $0x60] sm:$0xff] %vm47_vm1, %v6168_v6  ;;  %64 = vst.msk [vmem:[#allocation2 + $0x78] sm:$0xff] %vm47_vm1, %v6168_v6 }
  0x1e   :  { %67 = vst.msk [vmem:[#allocation2 + $0x90] sm:$0xff] %vm47_vm1, %v6168_v6  ;;  %70 = vst.msk [vmem:[#allocation2 + $0xa8] sm:$0xff] %vm47_vm1, %v6168_v6  ;;  %212 = vrot.lane.b32.xlu1 %v165_v17, %s6167_s16  ;;  %210 = vrot.lane.b32.xlu0 %v164_v18, %s6167_s16 }
  0x1f   :  { %73 = vst.msk [vmem:[#allocation2 + $0xc0] sm:$0xff] %vm47_vm1, %v6168_v6  ;;  %76 = vst.msk [vmem:[#allocation2 + $0xd8] sm:$0xff] %vm47_vm1, %v6168_v6 }
  0x20   :  { %79 = vst.msk [vmem:[#allocation2 + $0xf0] sm:$0xff] %vm47_vm1, %v6168_v6  ;;  %82 = vst.msk [vmem:[#allocation2 + $0x108] sm:$0xff] %vm47_vm1, %v6168_v6 }
  0x21   :  { %85 = vst.msk [vmem:[#allocation2 + $0x120] sm:$0xff] %vm47_vm1, %v6168_v6  ;;  %88 = vst.msk [vmem:[#allocation2 + $0x138] sm:$0xff] %vm47_vm1, %v6168_v6 }
  0x22   :  { %91 = vst.msk [vmem:[#allocation2 + $0x150] sm:$0xff] %vm47_vm1, %v6168_v6  ;;  %94 = vst.msk [vmem:[#allocation2 + $0x168] sm:$0xff] %vm47_vm1, %v6168_v6  ;;  %281 = vrot.lane.b32.xlu1 %v248_v19, %s6167_s16  ;;  %279 = vrot.lane.b32.xlu0 %v247_v20, %s6167_s16 }
  0x23   :  { %106 = vst.msk [vmem:[#allocation2 + $0x38] sm:$0xff] %vm97_vm2, %v6168_v6  ;;  %109 = vst.msk [vmem:[#allocation2 + $0x50] sm:$0xff] %vm97_vm2, %v6168_v6 }
  0x24   :  { %112 = vst.msk [vmem:[#allocation2 + $0x68] sm:$0xff] %vm97_vm2, %v6168_v6  ;;  %115 = vst.msk [vmem:[#allocation2 + $0x80] sm:$0xff] %vm97_vm2, %v6168_v6 }
  0x25   :  { %118 = vst.msk [vmem:[#allocation2 + $0x98] sm:$0xff] %vm97_vm2, %v6168_v6  ;;  %121 = vst.msk [vmem:[#allocation2 + $0xb0] sm:$0xff] %vm97_vm2, %v6168_v6 }
  0x26   :  { %124 = vst.msk [vmem:[#allocation2 + $0xc8] sm:$0xff] %vm97_vm2, %v6168_v6  ;;  %127 = vst.msk [vmem:[#allocation2 + $0xe0] sm:$0xff] %vm97_vm2, %v6168_v6  ;;  %285 = vrot.lane.b32.xlu1 %v250_v21, %s6167_s16  ;;  %283 = vrot.lane.b32.xlu0 %v249_v22, %s6167_s16 }
  0x27   :  { %130 = vst.msk [vmem:[#allocation2 + $0xf8] sm:$0xff] %vm97_vm2, %v6168_v6  ;;  %133 = vst.msk [vmem:[#allocation2 + $0x110] sm:$0xff] %vm97_vm2, %v6168_v6 }
  0x28   :  { %136 = vst.msk [vmem:[#allocation2 + $0x128] sm:$0xff] %vm97_vm2, %v6168_v6  ;;  %139 = vst.msk [vmem:[#allocation2 + $0x140] sm:$0xff] %vm97_vm2, %v6168_v6 }
  0x29   :  { %142 = vst.msk [vmem:[#allocation2 + $0x158] sm:$0xff] %vm97_vm2, %v6168_v6  ;;  %145 = vst.msk [vmem:[#allocation2 + $0x170] sm:$0xff] %vm97_vm2, %v6168_v6 }
  0x2a   :  { %54 = vst.msk [vmem:[#allocation2 + $0x28] sm:$0x3] %vm50_vm3, %v6168_v6  ;;  %51 = vst.msk [vmem:[#allocation2 + $0x10] sm:$0x3] %vm50_vm3, %v6168_v6  ;;  %289 = vrot.lane.b32.xlu1 %v252_v26, %s6167_s16  ;;  %287 = vrot.lane.b32.xlu0 %v251_v27, %s6167_s16 }
  0x2b   :  { %57 = vst.msk [vmem:[#allocation2 + $0x40] sm:$0x3] %vm50_vm3, %v6168_v6  ;;  %60 = vst.msk [vmem:[#allocation2 + $0x58] sm:$0x3] %vm50_vm3, %v6168_v6 }
  0x2c   :  { %63 = vst.msk [vmem:[#allocation2 + $0x70] sm:$0x3] %vm50_vm3, %v6168_v6  ;;  %66 = vst.msk [vmem:[#allocation2 + $0x88] sm:$0x3] %vm50_vm3, %v6168_v6 }
  0x2d   :  { %69 = vst.msk [vmem:[#allocation2 + $0xa0] sm:$0x3] %vm50_vm3, %v6168_v6  ;;  %72 = vst.msk [vmem:[#allocation2 + $0xb8] sm:$0x3] %vm50_vm3, %v6168_v6 }
  0x2e   :  { %75 = vst.msk [vmem:[#allocation2 + $0xd0] sm:$0x3] %vm50_vm3, %v6168_v6  ;;  %78 = vst.msk [vmem:[#allocation2 + $0xe8] sm:$0x3] %vm50_vm3, %v6168_v6  ;;  %293 = vrot.lane.b32.xlu1 %v254_v30, %s6167_s16  ;;  %291 = vrot.lane.b32.xlu0 %v253_v31, %s6167_s16 }
  0x2f   :  { %81 = vst.msk [vmem:[#allocation2 + $0x100] sm:$0x3] %vm50_vm3, %v6168_v6  ;;  %84 = vst.msk [vmem:[#allocation2 + $0x118] sm:$0x3] %vm50_vm3, %v6168_v6 }
  0x30   :  { %87 = vst.msk [vmem:[#allocation2 + $0x130] sm:$0x3] %vm50_vm3, %v6168_v6  ;;  %90 = vst.msk [vmem:[#allocation2 + $0x148] sm:$0x3] %vm50_vm3, %v6168_v6 }
  0x31   :  { %93 = vst.msk [vmem:[#allocation2 + $0x160] sm:$0x3] %vm50_vm3, %v6168_v6  ;;  %96 = vst.msk [vmem:[#allocation2 + $0x178] sm:$0x3] %vm50_vm3, %v6168_v6 }
  0x32   :  { %102 = vst.msk [vmem:[#allocation2 + $0x18] sm:$0xff] %vm97_vm2, %v6168_v6  ;;  %98 = vst.msk [vmem:[#allocation2] sm:$0xff] %vm97_vm2, %v6168_v6  ;;  %297 = vrot.lane.b32.xlu1 %v256_v33, %s6167_s16  ;;  %295 = vrot.lane.b32.xlu0 %v255_v34, %s6167_s16 }
  0x33   :  { %105 = vst.msk [vmem:[#allocation2 + $0x30] sm:$0xff] %vm97_vm2, %v6168_v6  ;;  %108 = vst.msk [vmem:[#allocation2 + $0x48] sm:$0xff] %vm97_vm2, %v6168_v6 }
  0x34   :  { %111 = vst.msk [vmem:[#allocation2 + $0x60] sm:$0xff] %vm97_vm2, %v6168_v6  ;;  %114 = vst.msk [vmem:[#allocation2 + $0x78] sm:$0xff] %vm97_vm2, %v6168_v6 }
  0x35   :  { %117 = vst.msk [vmem:[#allocation2 + $0x90] sm:$0xff] %vm97_vm2, %v6168_v6  ;;  %120 = vst.msk [vmem:[#allocation2 + $0xa8] sm:$0xff] %vm97_vm2, %v6168_v6 }
  0x36   :  { %123 = vst.msk [vmem:[#allocation2 + $0xc0] sm:$0xff] %vm97_vm2, %v6168_v6  ;;  %126 = vst.msk [vmem:[#allocation2 + $0xd8] sm:$0xff] %vm97_vm2, %v6168_v6  ;;  %301 = vrot.lane.b32.xlu1 %v258_v37, %s6167_s16  ;;  %299 = vrot.lane.b32.xlu0 %v257_v38, %s6167_s16 }
  0x37   :  { %129 = vst.msk [vmem:[#allocation2 + $0xf0] sm:$0xff] %vm97_vm2, %v6168_v6  ;;  %132 = vst.msk [vmem:[#allocation2 + $0x108] sm:$0xff] %vm97_vm2, %v6168_v6 }
  0x38   :  { %135 = vst.msk [vmem:[#allocation2 + $0x120] sm:$0xff] %vm97_vm2, %v6168_v6  ;;  %138 = vst.msk [vmem:[#allocation2 + $0x138] sm:$0xff] %vm97_vm2, %v6168_v6 }
  0x39   :  { %141 = vst.msk [vmem:[#allocation2 + $0x150] sm:$0xff] %vm97_vm2, %v6168_v6  ;;  %144 = vst.msk [vmem:[#allocation2 + $0x168] sm:$0xff] %vm97_vm2, %v6168_v6 }
  0x3a   :  { %104 = vst.msk [vmem:[#allocation2 + $0x28] sm:$0x3] %vm100_vm4, %v6168_v6  ;;  %101 = vst.msk [vmem:[#allocation2 + $0x10] sm:$0x3] %vm100_vm4, %v6168_v6  ;;  %305 = vrot.lane.b32.xlu1 %v260_v41, %s6167_s16  ;;  %303 = vrot.lane.b32.xlu0 %v259_v42, %s6167_s16 }
  0x3b   :  { %107 = vst.msk [vmem:[#allocation2 + $0x40] sm:$0x3] %vm100_vm4, %v6168_v6  ;;  %110 = vst.msk [vmem:[#allocation2 + $0x58] sm:$0x3] %vm100_vm4, %v6168_v6 }
  0x3c   :  { %113 = vst.msk [vmem:[#allocation2 + $0x70] sm:$0x3] %vm100_vm4, %v6168_v6  ;;  %116 = vst.msk [vmem:[#allocation2 + $0x88] sm:$0x3] %vm100_vm4, %v6168_v6 }
  0x3d   :  { %119 = vst.msk [vmem:[#allocation2 + $0xa0] sm:$0x3] %vm100_vm4, %v6168_v6  ;;  %122 = vst.msk [vmem:[#allocation2 + $0xb8] sm:$0x3] %vm100_vm4, %v6168_v6 }
  0x3e   :  { %125 = vst.msk [vmem:[#allocation2 + $0xd0] sm:$0x3] %vm100_vm4, %v6168_v6  ;;  %128 = vst.msk [vmem:[#allocation2 + $0xe8] sm:$0x3] %vm100_vm4, %v6168_v6  ;;  %309 = vrot.lane.b32.xlu1 %v262_v47, %s6167_s16  ;;  %307 = vrot.lane.b32.xlu0 %v261_v48, %s6167_s16 }
  0x3f   :  { %131 = vst.msk [vmem:[#allocation2 + $0x100] sm:$0x3] %vm100_vm4, %v6168_v6  ;;  %134 = vst.msk [vmem:[#allocation2 + $0x118] sm:$0x3] %vm100_vm4, %v6168_v6 }
  0x40   :  { %137 = vst.msk [vmem:[#allocation2 + $0x130] sm:$0x3] %vm100_vm4, %v6168_v6  ;;  %140 = vst.msk [vmem:[#allocation2 + $0x148] sm:$0x3] %vm100_vm4, %v6168_v6 }
  0x41   :  { %143 = vst.msk [vmem:[#allocation2 + $0x160] sm:$0x3] %vm100_vm4, %v6168_v6  ;;  %146 = vst.msk [vmem:[#allocation2 + $0x178] sm:$0x3] %vm100_vm4, %v6168_v6 }
  0x42   :  { %12126 = vst [vmem:[#allocation3_spill] sm:$0xff] %v6560_v32  ;;  %12127 = vst [vmem:[#allocation4_spill] sm:$0xff] %v6591_v44  ;;  %511 = vperm.xlu0 %6037, %v6604_v49   ;;  %431 = vperm.xlu1 %6035, %v6604_v49  }
  0x46   :  { %435 = vperm.xlu1 %6035, %v6610_v52   ;;  %523 = vperm.xlu0 %6037, %v6613_v53  }
  0x4a   :  { %443 = vperm.xlu1 %6035, %v6613_v53   ;;  %531 = vperm.xlu0 %6037, %v6618_v55  }
  0x4e   :  { %6038 = vset.pattern.permute.xlu0 %v11906_v59  ;;  %451 = vperm.xlu1 %6035, %v6618_v55  }
  0x4f   :  { %603 = vperm.xlu0 %6038, %v6623_v56  }
  0x52   :  { %6036 = vset.pattern.permute.xlu1 %v11908_v2 }
  0x53   :  { %615 = vperm.xlu0 %6038, %v6629_v60   ;;  %507 = vperm.xlu1 %6036, %v6623_v56  }
  0x57   :  { %515 = vperm.xlu1 %6036, %v6610_v52   ;;  %623 = vperm.xlu0 %6038, %v6636_v62  }
  0x5b   :  { %519 = vperm.xlu1 %6036, %v6629_v60   ;;  %631 = vperm.xlu0 %6038, %v6641_v0  }
  0x5f   :  { %527 = vperm.xlu1 %6036, %v6636_v62   ;;  %6041 = vset.pattern.permute.xlu0 %v11904_v1 }
  0x60   :  { %880 = vperm.xlu0 %6041, %v6604_v49  }
  0x63   :  { %535 = vperm.xlu1 %6036, %v6641_v0  }
  0x64   :  { %892 = vperm.xlu0 %6041, %v6613_v53  }
  0x67   :  { %6039 = vset.pattern.permute.xlu1 %v11906_v59 }
  0x68   :  { %900 = vperm.xlu0 %6041, %v6618_v55   ;;  %607 = vperm.xlu1 %6039, %v6604_v49  }
  0x6c   :  { %6042 = vset.pattern.permute.xlu0 %v11902_v4  ;;  %611 = vperm.xlu1 %6039, %v6610_v52  }
  0x6d   :  { %1197 = vperm.xlu0 %6042, %v6623_v56  }
  0x70   :  { %619 = vperm.xlu1 %6039, %v6613_v53  }
  0x71   :  { %1209 = vperm.xlu0 %6042, %v6629_v60  }
  0x74   :  { %v187_v5 = vpop.permute.xlu1 %186  ;;  %v183_v6 = vpop.permute.xlu0 %182  ;;  %627 = vperm.xlu1 %6039, %v6618_v55  }
  0x75   :  { %233 = vst.msk [vmem:[#allocation2 + $0x19] sm:$0xff] %vm230_vm5, %v187_v5  ;;  %231 = vst.msk [vmem:[#allocation2 + $0x1] sm:$0xff] %vm230_vm5, %v183_v6  ;;  %1217 = vperm.xlu0 %6042, %v6636_v62  }
  0x78   :  { %v189_v7 = vpop.permute.xlu1 %188  ;;  %v185_v8 = vpop.permute.xlu0 %184  ;;  %6040 = vset.pattern.permute.xlu1 %v11904_v1 }
  0x79   :  { %234 = vst.msk [vmem:[#allocation2 + $0x21] sm:$0xff] %vm230_vm5, %v189_v7  ;;  %232 = vst.msk [vmem:[#allocation2 + $0x9] sm:$0xff] %vm230_vm5, %v185_v8  ;;  %1225 = vperm.xlu0 %6042, %v6641_v0   ;;  %876 = vperm.xlu1 %6040, %v6623_v56  }
  0x7c   :  { %v193_v9 = vpop.permute.xlu1 %192  ;;  %v191_v10 = vpop.permute.xlu0 %190 }
  0x7d   :  { %236 = vst.msk [vmem:[#allocation2 + $0x39] sm:$0xff] %vm230_vm5, %v193_v9  ;;  %235 = vst.msk [vmem:[#allocation2 + $0x31] sm:$0xff] %vm230_vm5, %v191_v10  ;;  %884 = vperm.xlu1 %6040, %v6610_v52   ;;  %6045 = vset.pattern.permute.xlu0 %v11900_v45  ;;  %v6748_v10 = vld [vmem:[#allocation2] sm:$0xff] }
  0x80   :  { %v197_v11 = vpop.permute.xlu1 %196  ;;  %v195_v12 = vpop.permute.xlu0 %194 }
  0x81   :  { %238 = vst.msk [vmem:[#allocation2 + $0x51] sm:$0xff] %vm230_vm5, %v197_v11  ;;  %237 = vst.msk [vmem:[#allocation2 + $0x49] sm:$0xff] %vm230_vm5, %v195_v12  ;;  %888 = vperm.xlu1 %6040, %v6629_v60   ;;  %v6750_v11 = vld [vmem:[#allocation2 + $0x8] sm:$0xff] }
  0x84   :  { %v201_v13 = vpop.permute.xlu1 %200  ;;  %v199_v14 = vpop.permute.xlu0 %198 }
  0x85   :  { %240 = vst.msk [vmem:[#allocation2 + $0xc9] sm:$0xff] %vm230_vm5, %v201_v13  ;;  %239 = vst.msk [vmem:[#allocation2 + $0xc1] sm:$0xff] %vm230_vm5, %v199_v14  ;;  %896 = vperm.xlu1 %6040, %v6636_v62  }
  0x88   :  { %v205_v15 = vpop.permute.xlu1 %204  ;;  %v203_v16 = vpop.permute.xlu0 %202 }
  0x89   :  { %242 = vst.msk [vmem:[#allocation2 + $0xe1] sm:$0xff] %vm230_vm5, %v205_v15  ;;  %241 = vst.msk [vmem:[#allocation2 + $0xd9] sm:$0xff] %vm230_vm5, %v203_v16  ;;  %904 = vperm.xlu1 %6040, %v6641_v0  }
  0x8c   :  { %v209_v17 = vpop.permute.xlu1 %208  ;;  %v207_v18 = vpop.permute.xlu0 %206 }
  0x8d   :  { %244 = vst.msk [vmem:[#allocation2 + $0xf9] sm:$0xff] %vm230_vm5, %v209_v17  ;;  %243 = vst.msk [vmem:[#allocation2 + $0xf1] sm:$0xff] %vm230_vm5, %v207_v18  ;;  %6043 = vset.pattern.permute.xlu1 %v11902_v4 }
  0x8e   :  { %1201 = vperm.xlu1 %6043, %v6604_v49  }
  0x90   :  { %v213_v19 = vpop.permute.xlu1 %212  ;;  %v211_v20 = vpop.permute.xlu0 %210 }
  0x91   :  { %246 = vst.msk [vmem:[#allocation2 + $0x111] sm:$0xff] %vm230_vm5, %v213_v19  ;;  %245 = vst.msk [vmem:[#allocation2 + $0x109] sm:$0xff] %vm230_vm5, %v211_v20 }
  0x92   :  { %1205 = vperm.xlu1 %6043, %v6610_v52  }
  0x94   :  { %v282_v21 = vpop.permute.xlu1 %281  ;;  %v280_v22 = vpop.permute.xlu0 %279 }
  0x95   :  { %329 = vst.msk [vmem:[#allocation2 + $0x69] sm:$0xff] %vm230_vm5, %v282_v21  ;;  %328 = vst.msk [vmem:[#allocation2 + $0x61] sm:$0xff] %vm230_vm5, %v280_v22  ;;  %v6774_v22 = vld [vmem:[#allocation2 + $0x18] sm:$0xff] }
  0x96   :  { %1213 = vperm.xlu1 %6043, %v6613_v53  }
  0x98   :  { %v286_v23 = vpop.permute.xlu1 %285  ;;  %v284_v24 = vpop.permute.xlu0 %283 }
  0x99   :  { %331 = vst.msk [vmem:[#allocation2 + $0x81] sm:$0xff] %vm230_vm5, %v286_v23  ;;  %330 = vst.msk [vmem:[#allocation2 + $0x79] sm:$0xff] %vm230_vm5, %v284_v24  ;;  %v6776_v23 = vld [vmem:[#allocation2 + $0x20] sm:$0xff] }
  0x9a   :  { %1221 = vperm.xlu1 %6043, %v6618_v55  }
  0x9c   :  { %v290_v25 = vpop.permute.xlu1 %289  ;;  %v288_v26 = vpop.permute.xlu0 %287 }
  0x9d   :  { %333 = vst.msk [vmem:[#allocation2 + $0x99] sm:$0xff] %vm230_vm5, %v290_v25  ;;  %332 = vst.msk [vmem:[#allocation2 + $0x91] sm:$0xff] %vm230_vm5, %v288_v26 }
  0x9e   :  { %6044 = vset.pattern.permute.xlu1 %v11900_v45 }
  0xa0   :  { %v294_v27 = vpop.permute.xlu1 %293  ;;  %v292_v28 = vpop.permute.xlu0 %291  ;;  %v6806_v45 = vld [vmem:[#allocation2 + $0x78] sm:$0xff]  ;;  %v6808_v4 = vld [vmem:[#allocation2 + $0x80] sm:$0xff] }
  0xa1   :  { %335 = vst.msk [vmem:[#allocation2 + $0xb1] sm:$0xff] %vm230_vm5, %v294_v27  ;;  %334 = vst.msk [vmem:[#allocation2 + $0xa9] sm:$0xff] %vm230_vm5, %v292_v28  ;;  %v6782_v27 = vld [vmem:[#allocation2 + $0x30] sm:$0xff]  ;;  %v6784_v28 = vld [vmem:[#allocation2 + $0x38] sm:$0xff] }
  0xa4   :  { %v298_v29 = vpop.permute.xlu1 %297  ;;  %v296_v30 = vpop.permute.xlu0 %295  ;;  %v6814_v59 = vld [vmem:[#allocation2 + $0x90] sm:$0xff]  ;;  %v6816_v2 = vld [vmem:[#allocation2 + $0x98] sm:$0xff] }
  0xa5   :  { %337 = vst.msk [vmem:[#allocation2 + $0x129] sm:$0xff] %vm230_vm5, %v298_v29  ;;  %336 = vst.msk [vmem:[#allocation2 + $0x121] sm:$0xff] %vm230_vm5, %v296_v30 }
  0xa6   :  { %12160 = vst [vmem:[#allocation37_spill] sm:$0xff] %v6814_v59  ;;  %12161 = vst [vmem:[#allocation38_spill] sm:$0xff] %v6816_v2 }
  0xa8   :  { %v302_v31 = vpop.permute.xlu1 %301  ;;  %v300_v33 = vpop.permute.xlu0 %299  ;;  %v6822_v44 = vld [vmem:[#allocation2 + $0xa8] sm:$0xff]  ;;  %v6824_v32 = vld [vmem:[#allocation2 + $0xb0] sm:$0xff] }
  0xa9   :  { %339 = vst.msk [vmem:[#allocation2 + $0x141] sm:$0xff] %vm230_vm5, %v302_v31  ;;  %338 = vst.msk [vmem:[#allocation2 + $0x139] sm:$0xff] %vm230_vm5, %v300_v33 }
  0xaa   :  { %12162 = vst [vmem:[#allocation39_spill] sm:$0xff] %v6822_v44 }
  0xac   :  { %v306_v34 = vpop.permute.xlu1 %305  ;;  %v304_v35 = vpop.permute.xlu0 %303 }
  0xad   :  { %341 = vst.msk [vmem:[#allocation2 + $0x159] sm:$0xff] %vm230_vm5, %v306_v34  ;;  %340 = vst.msk [vmem:[#allocation2 + $0x151] sm:$0xff] %vm230_vm5, %v304_v35  ;;  %v6790_v34 = vld [vmem:[#allocation2 + $0x48] sm:$0xff]  ;;  %v6792_v35 = vld [vmem:[#allocation2 + $0x50] sm:$0xff] }
  0xae   :  { %12156 = vst [vmem:[#allocation33_spill] sm:$0xff] %v6790_v34  ;;  %12157 = vst [vmem:[#allocation34_spill] sm:$0xff] %v6792_v35 }
  0xb0   :  { %v310_v36 = vpop.permute.xlu1 %309  ;;  %v308_v37 = vpop.permute.xlu0 %307 }
  0xb1   :  { %343 = vst.msk [vmem:[#allocation2 + $0x171] sm:$0xff] %vm230_vm5, %v310_v36  ;;  %342 = vst.msk [vmem:[#allocation2 + $0x169] sm:$0xff] %vm230_vm5, %v308_v37 }
  0xc1   :  { %v6704_v38 = vpop.permute.xlu0 %511  ;;  %v6706_v39 = vpop.permute.xlu1 %431 }
  0xc2   :  { %12128 = vst [vmem:[#allocation5_spill] sm:$0xff] %v6704_v38  ;;  %12129 = vst [vmem:[#allocation6_spill] sm:$0xff] %v6706_v39 }
  0xc5   :  { %v6708_v40 = vpop.permute.xlu1 %435  ;;  %v6710_v41 = vpop.permute.xlu0 %523 }
  0xc6   :  { %12130 = vst [vmem:[#allocation7_spill] sm:$0xff] %v6708_v40  ;;  %12131 = vst [vmem:[#allocation8_spill] sm:$0xff] %v6710_v41 }
  0xc9   :  { %v6712_v42 = vpop.permute.xlu1 %443  ;;  %v6714_v43 = vpop.permute.xlu0 %531 }
  0xca   :  { %12132 = vst [vmem:[#allocation9_spill] sm:$0xff] %v6712_v42  ;;  %12133 = vst [vmem:[#allocation10_spill] sm:$0xff] %v6714_v43 }
  0xcd   :  { %v6718_v46 = vpop.permute.xlu1 %451 }
  0xce   :  { %12134 = vst [vmem:[#allocation11_spill] sm:$0xff] %v6718_v46  ;;  %v6720_v47 = vpop.permute.xlu0 %603  ;;  %v6992_v46 = vld [vmem:[#allocation2 + $0x40] sm:$0x3] }
  0xcf   :  { %12135 = vst [vmem:[#allocation12_spill] sm:$0xff] %v6720_v47 }
  0xd2   :  { %v6722_v48 = vpop.permute.xlu0 %615  ;;  %v6724_v50 = vpop.permute.xlu1 %507 }
  0xd3   :  { %12136 = vst [vmem:[#allocation13_spill] sm:$0xff] %v6722_v48  ;;  %12137 = vst [vmem:[#allocation14_spill] sm:$0xff] %v6724_v50 }
  0xd6   :  { %v6726_v51 = vpop.permute.xlu1 %515  ;;  %v6728_v54 = vpop.permute.xlu0 %623 }
  0xd7   :  { %12138 = vst [vmem:[#allocation15_spill] sm:$0xff] %v6726_v51  ;;  %12139 = vst [vmem:[#allocation16_spill] sm:$0xff] %v6728_v54 }
  0xda   :  { %v6730_v57 = vpop.permute.xlu1 %519  ;;  %v6732_v58 = vpop.permute.xlu0 %631 }
  0xdb   :  { %12140 = vst [vmem:[#allocation17_spill] sm:$0xff] %v6730_v57  ;;  %12141 = vst [vmem:[#allocation18_spill] sm:$0xff] %v6732_v58  ;;  %v11931_v58 = vmov 7  }
  0xde   :  { %v6734_v61 = vpop.permute.xlu1 %527 }
  0xdf   :  { %12142 = vst [vmem:[#allocation19_spill] sm:$0xff] %v6734_v61  ;;  %v6736_v63 = vpop.permute.xlu0 %880 }
  0xe0   :  { %12143 = vst [vmem:[#allocation20_spill] sm:$0xff] %v6736_v63 }
  0xe2   :  { %v6738_v5 = vpop.permute.xlu1 %535 }
  0xe3   :  { %12144 = vst [vmem:[#allocation21_spill] sm:$0xff] %v6738_v5  ;;  %v6740_v6 = vpop.permute.xlu0 %892 }
  0xe4   :  { %12145 = vst [vmem:[#allocation22_spill] sm:$0xff] %v6740_v6  ;;  %v6890_v6 = vld [vmem:[#allocation2 + $0x170] sm:$0xff] }
  0xe7   :  { %v6742_v7 = vpop.permute.xlu0 %900  ;;  %v6744_v8 = vpop.permute.xlu1 %607 }
  0xe8   :  { %12146 = vst [vmem:[#allocation23_spill] sm:$0xff] %v6742_v7  ;;  %12147 = vst [vmem:[#allocation24_spill] sm:$0xff] %v6744_v8  ;;  %v6874_v7 = vld [vmem:[#allocation2 + $0x140] sm:$0xff]  ;;  %v6882_v8 = vld [vmem:[#allocation2 + $0x158] sm:$0xff] }
  0xeb   :  { %v6746_v9 = vpop.permute.xlu1 %611 }
  0xec   :  { %12148 = vst [vmem:[#allocation25_spill] sm:$0xff] %v6746_v9  ;;  %v6752_v12 = vpop.permute.xlu0 %1197  ;;  %v6866_v9 = vld [vmem:[#allocation2 + $0x128] sm:$0xff] }
  0xed   :  { %v1229_v13 = vmul.f32 %v6752_v12, %v6750_v11  ;;  %v1228_v14 = vmul.f32 %v6752_v12, %v6748_v10 }
  0xef   :  { %1294 = vrot.lane.b32.xlu0 %v1229_v13, %s6174_s2  ;;  %1292 = vrot.lane.b32.xlu1 %v1228_v14, %s6174_s2  ;;  %v6760_v15 = vpop.permute.xlu1 %619  ;;  %v6798_v14 = vld [vmem:[#allocation2 + $0x60] sm:$0xff] }
  0xf0   :  { %12149 = vst [vmem:[#allocation26_spill] sm:$0xff] %v6760_v15  ;;  %v1210_v33 = vpop.permute.xlu0 %1209  ;;  %12158 = vst [vmem:[#allocation35_spill] sm:$0xff] %v6798_v14  ;;  %v6858_v15 = vld [vmem:[#allocation2 + $0x110] sm:$0xff] }
  0xf1   :  { %v1235_v36 = vmul.f32 %v1210_v33, %v6792_v35  ;;  %v1234_v37 = vmul.f32 %v1210_v33, %v6790_v34 }
  0xf3   :  { %v6762_v16 = vpop.permute.xlu1 %627 }
  0xf4   :  { %12150 = vst [vmem:[#allocation27_spill] sm:$0xff] %v6762_v16  ;;  %v6850_v16 = vld [vmem:[#allocation2 + $0xf8] sm:$0xff] }
  0xf8   :  { %v6764_v17 = vpop.permute.xlu1 %876 }
  0xf9   :  { %12151 = vst [vmem:[#allocation28_spill] sm:$0xff] %v6764_v17  ;;  %v6848_v17 = vld [vmem:[#allocation2 + $0xf0] sm:$0xff] }
  0xfc   :  { %v6766_v18 = vpop.permute.xlu1 %884 }
  0xfd   :  { %12152 = vst [vmem:[#allocation29_spill] sm:$0xff] %v6766_v18  ;;  %v6842_v18 = vld [vmem:[#allocation2 + $0xe0] sm:$0xff] }
 0x100   :  { %v6768_v19 = vpop.permute.xlu1 %888 }
 0x101   :  { %12153 = vst [vmem:[#allocation30_spill] sm:$0xff] %v6768_v19  ;;  %v6840_v19 = vld [vmem:[#allocation2 + $0xd8] sm:$0xff] }
 0x104   :  { %v6770_v20 = vpop.permute.xlu1 %896 }
 0x105   :  { %12154 = vst [vmem:[#allocation31_spill] sm:$0xff] %v6770_v20  ;;  %v6832_v20 = vld [vmem:[#allocation2 + $0xc8] sm:$0xff] }
 0x106   :  { %12163 = vst [vmem:[#allocation40_spill] sm:$0xff] %v6832_v20 }
 0x108   :  { %v6772_v21 = vpop.permute.xlu1 %904 }
 0x109   :  { %12155 = vst [vmem:[#allocation32_spill] sm:$0xff] %v6772_v21  ;;  %v6830_v21 = vld [vmem:[#allocation2 + $0xc0] sm:$0xff] }
 0x10d   :  { %v1202_v24 = vpop.permute.xlu1 %1201 }
 0x10e   :  { %v1231_v25 = vmul.f32 %v1202_v24, %v6776_v23  ;;  %v1230_v26 = vmul.f32 %v1202_v24, %v6774_v22 }
 0x110   :  { %1298 = vrot.lane.b32.xlu0 %v1231_v25, %s6174_s2  ;;  %1296 = vrot.lane.b32.xlu1 %v1230_v26, %s6174_s2  ;;  %v6800_v25 = vld [vmem:[#allocation2 + $0x68] sm:$0xff] }
 0x111   :  { %v1206_v29 = vpop.permute.xlu1 %1205  ;;  %12159 = vst [vmem:[#allocation36_spill] sm:$0xff] %v6800_v25 }
 0x112   :  { %v1233_v30 = vmul.f32 %v1206_v29, %v6784_v28  ;;  %v1232_v31 = vmul.f32 %v1206_v29, %v6782_v27 }
 0x114   :  { %1302 = vrot.lane.b32.xlu0 %v1233_v30, %s6174_s2  ;;  %1300 = vrot.lane.b32.xlu1 %v1232_v31, %s6174_s2  ;;  %v1218_v31 = vpop.permute.xlu0 %1217 }
 0x115   :  { %v1214_v13 = vpop.permute.xlu1 %1213 }
 0x116   :  { %v1237_v26 = vmul.f32 %v1214_v13, %v6800_v25  ;;  %v1236_v30 = vmul.f32 %v1214_v13, %v6798_v14 }
 0x118   :  { %1306 = vrot.lane.b32.xlu0 %v1235_v36, %s6174_s2  ;;  %1304 = vrot.lane.b32.xlu1 %v1234_v37, %s6174_s2  ;;  %v1239_v36 = vmul.f32 %v1218_v31, %v6808_v4  ;;  %v1238_v37 = vmul.f32 %v1218_v31, %v6806_v45  ;;  %v1226_v3 = vpop.permute.xlu0 %1225 }
 0x119   :  { %v1222_v1 = vpop.permute.xlu1 %1221 }
 0x11c   :  { %1310 = vrot.lane.b32.xlu0 %v1237_v26, %s6174_s2  ;;  %1308 = vrot.lane.b32.xlu1 %v1236_v30, %s6174_s2  ;;  %v1241_v26 = vmul.f32 %v1222_v1, %v6816_v2  ;;  %v1240_v30 = vmul.f32 %v1222_v1, %v6814_v59 }
 0x120   :  { %1314 = vrot.lane.b32.xlu0 %v1239_v36, %s6174_s2  ;;  %1312 = vrot.lane.b32.xlu1 %v1238_v37, %s6174_s2  ;;  %v1243_v36 = vmul.f32 %v1226_v3, %v6824_v32  ;;  %v1242_v37 = vmul.f32 %v1226_v3, %v6822_v44 }
 0x124   :  { %1318 = vrot.lane.b32.xlu0 %v1241_v26, %s6174_s2  ;;  %1316 = vrot.lane.b32.xlu1 %v1240_v30, %s6174_s2  ;;  %v1245_v26 = vmul.f32 %v6752_v12, %v6832_v20  ;;  %v1244_v30 = vmul.f32 %v6752_v12, %v6830_v21  ;;  %v1249_v12 = vmul.f32 %v1206_v29, %v6850_v16 }
 0x128   :  { %1322 = vrot.lane.b32.xlu0 %v1243_v36, %s6174_s2  ;;  %1320 = vrot.lane.b32.xlu1 %v1242_v37, %s6174_s2  ;;  %v1247_v36 = vmul.f32 %v1202_v24, %v6842_v18  ;;  %v1246_v37 = vmul.f32 %v1202_v24, %v6840_v19  ;;  %v1251_v24 = vmul.f32 %v1210_v33, %v6858_v15 }
 0x12c   :  { %1326 = vrot.lane.b32.xlu0 %v1245_v26, %s6174_s2  ;;  %1324 = vrot.lane.b32.xlu1 %v1244_v30, %s6174_s2  ;;  %v1248_v26 = vmul.f32 %v1206_v29, %v6848_v17  ;;  %v6856_v30 = vld [vmem:[#allocation2 + $0x108] sm:$0xff]  ;;  %v1253_v29 = vmul.f32 %v1214_v13, %v6866_v9 }
 0x130   :  { %1330 = vrot.lane.b32.xlu0 %v1247_v36, %s6174_s2  ;;  %1328 = vrot.lane.b32.xlu1 %v1246_v37, %s6174_s2  ;;  %v1250_v36 = vmul.f32 %v1210_v33, %v6856_v30  ;;  %v6864_v37 = vld [vmem:[#allocation2 + $0x120] sm:$0xff]  ;;  %v1255_v33 = vmul.f32 %v1218_v31, %v6874_v7 }
 0x134   :  { %1334 = vrot.lane.b32.xlu0 %v1249_v12, %s6174_s2  ;;  %1332 = vrot.lane.b32.xlu1 %v1248_v26, %s6174_s2  ;;  %v1252_v12 = vmul.f32 %v1214_v13, %v6864_v37  ;;  %v6872_v26 = vld [vmem:[#allocation2 + $0x138] sm:$0xff]  ;;  %v1257_v13 = vmul.f32 %v1222_v1, %v6882_v8 }
 0x138   :  { %1338 = vrot.lane.b32.xlu0 %v1251_v24, %s6174_s2  ;;  %1336 = vrot.lane.b32.xlu1 %v1250_v36, %s6174_s2  ;;  %v1254_v24 = vmul.f32 %v1218_v31, %v6872_v26  ;;  %v6880_v36 = vld [vmem:[#allocation2 + $0x150] sm:$0xff]  ;;  %v1259_v31 = vmul.f32 %v1226_v3, %v6890_v6 }
 0x13c   :  { %1342 = vrot.lane.b32.xlu0 %v1253_v29, %s6174_s2  ;;  %1340 = vrot.lane.b32.xlu1 %v1252_v12, %s6174_s2  ;;  %v1256_v29 = vmul.f32 %v1222_v1, %v6880_v36  ;;  %v6888_v12 = vld [vmem:[#allocation2 + $0x168] sm:$0xff] }
 0x140   :  { %1346 = vrot.lane.b32.xlu0 %v1255_v33, %s6174_s2  ;;  %1344 = vrot.lane.b32.xlu1 %v1254_v24, %s6174_s2  ;;  %v1258_v33 = vmul.f32 %v1226_v3, %v6888_v12 }
 0x144   :  { %1350 = vrot.lane.b32.xlu0 %v1257_v13, %s6174_s2  ;;  %1348 = vrot.lane.b32.xlu1 %v1256_v29, %s6174_s2 }
 0x148   :  { %1354 = vrot.lane.b32.xlu0 %v1259_v31, %s6174_s2  ;;  %1352 = vrot.lane.b32.xlu1 %v1258_v33, %s6174_s2 }
 0x14c   :  { %1425 = vperm.xlu0 %6045, %v6604_v49   ;;  %1421 = vperm.xlu1 %6044, %v6623_v56  }
 0x150   :  { %1437 = vperm.xlu0 %6045, %v6613_v53   ;;  %1429 = vperm.xlu1 %6044, %v6610_v52  }
 0x154   :  { %1445 = vperm.xlu0 %6045, %v6618_v55   ;;  %1433 = vperm.xlu1 %6044, %v6629_v60  }
 0x158   :  { %1441 = vperm.xlu1 %6044, %v6636_v62   ;;  %6046 = vset.pattern.permute.xlu0 %v11931_v58 }
 0x15c   :  { %1449 = vperm.xlu1 %6044, %v6641_v0  }
 0x160   :  { %6047 = vset.pattern.permute.xlu1 %v11931_v58 }
 0x161   :  { %v6904_v3 = vpop.permute.xlu0 %1294  ;;  %v6906_v1 = vpop.permute.xlu1 %1292 }
 0x162   :  { %12164 = vst [vmem:[#allocation41_spill] sm:$0xff] %v6904_v3  ;;  %12165 = vst [vmem:[#allocation42_spill] sm:$0xff] %v6906_v1 }
 0x182   :  { %v6908_v24 = vpop.permute.xlu0 %1298  ;;  %v6910_v13 = vpop.permute.xlu1 %1296 }
 0x183   :  { %12166 = vst [vmem:[#allocation43_spill] sm:$0xff] %v6908_v24  ;;  %12167 = vst [vmem:[#allocation44_spill] sm:$0xff] %v6910_v13 }
 0x186   :  { %v6912_v29 = vpop.permute.xlu0 %1302  ;;  %v6914_v31 = vpop.permute.xlu1 %1300 }
 0x187   :  { %12168 = vst [vmem:[#allocation45_spill] sm:$0xff] %v6912_v29  ;;  %12169 = vst [vmem:[#allocation46_spill] sm:$0xff] %v6914_v31 }
 0x18a   :  { %v6916_v33 = vpop.permute.xlu0 %1306  ;;  %v6918_v5 = vpop.permute.xlu1 %1304 }
 0x18b   :  { %12170 = vst [vmem:[#allocation47_spill] sm:$0xff] %v6916_v33  ;;  %12171 = vst [vmem:[#allocation48_spill] sm:$0xff] %v6918_v5 }
 0x18e   :  { %v6920_v63 = vpop.permute.xlu0 %1310  ;;  %v6922_v61 = vpop.permute.xlu1 %1308 }
 0x18f   :  { %12172 = vst [vmem:[#allocation49_spill] sm:$0xff] %v6920_v63  ;;  %12173 = vst [vmem:[#allocation50_spill] sm:$0xff] %v6922_v61 }
 0x192   :  { %v6926_v3 = vpop.permute.xlu0 %1314  ;;  %v6928_v1 = vpop.permute.xlu1 %1312 }
 0x193   :  { %12174 = vst [vmem:[#allocation51_spill] sm:$0xff] %v6926_v3  ;;  %12175 = vst [vmem:[#allocation52_spill] sm:$0xff] %v6928_v1 }
 0x196   :  { %v6930_v29 = vpop.permute.xlu0 %1318  ;;  %v6932_v31 = vpop.permute.xlu1 %1316 }
 0x197   :  { %12176 = vst [vmem:[#allocation53_spill] sm:$0xff] %v6930_v29  ;;  %12177 = vst [vmem:[#allocation54_spill] sm:$0xff] %v6932_v31 }
 0x19a   :  { %v6934_v33 = vpop.permute.xlu0 %1322  ;;  %v6936_v5 = vpop.permute.xlu1 %1320 }
 0x19b   :  { %12178 = vst [vmem:[#allocation55_spill] sm:$0xff] %v6934_v33  ;;  %12179 = vst [vmem:[#allocation56_spill] sm:$0xff] %v6936_v5 }
 0x19e   :  { %v6938_v63 = vpop.permute.xlu0 %1326  ;;  %v6940_v61 = vpop.permute.xlu1 %1324 }
 0x19f   :  { %12180 = vst [vmem:[#allocation57_spill] sm:$0xff] %v6938_v63  ;;  %12181 = vst [vmem:[#allocation58_spill] sm:$0xff] %v6940_v61 }
 0x1a2   :  { %v6942_v13 = vpop.permute.xlu0 %1330  ;;  %v6944_v24 = vpop.permute.xlu1 %1328 }
 0x1a3   :  { %12182 = vst [vmem:[#allocation59_spill] sm:$0xff] %v6942_v13  ;;  %12183 = vst [vmem:[#allocation60_spill] sm:$0xff] %v6944_v24 }
 0x1a6   :  { %v6946_v58 = vpop.permute.xlu0 %1334  ;;  %v6948_v3 = vpop.permute.xlu1 %1332 }
 0x1a7   :  { %12184 = vst [vmem:[#allocation61_spill] sm:$0xff] %v6946_v58  ;;  %12185 = vst [vmem:[#allocation62_spill] sm:$0xff] %v6948_v3 }
 0x1aa   :  { %v6950_v1 = vpop.permute.xlu0 %1338  ;;  %v6952_v29 = vpop.permute.xlu1 %1336 }
 0x1ab   :  { %12186 = vst [vmem:[#allocation63_spill] sm:$0xff] %v6950_v1  ;;  %12187 = vst [vmem:[#allocation64_spill] sm:$0xff] %v6952_v29  ;;  %v6974_v29 = vld [vmem:[#allocation2 + $0x10] sm:$0x3] }
 0x1ae   :  { %v6954_v31 = vpop.permute.xlu0 %1342  ;;  %v6956_v33 = vpop.permute.xlu1 %1340 }
 0x1af   :  { %12188 = vst [vmem:[#allocation65_spill] sm:$0xff] %v6954_v31  ;;  %12189 = vst [vmem:[#allocation66_spill] sm:$0xff] %v6956_v33 }
 0x1b2   :  { %v6958_v5 = vpop.permute.xlu0 %1346  ;;  %v6960_v63 = vpop.permute.xlu1 %1344 }
 0x1b3   :  { %12190 = vst [vmem:[#allocation67_spill] sm:$0xff] %v6958_v5  ;;  %12191 = vst [vmem:[#allocation68_spill] sm:$0xff] %v6960_v63 }
 0x1b6   :  { %v6962_v61 = vpop.permute.xlu0 %1350  ;;  %v6964_v13 = vpop.permute.xlu1 %1348 }
 0x1b7   :  { %12192 = vst [vmem:[#allocation69_spill] sm:$0xff] %v6962_v61  ;;  %12193 = vst [vmem:[#allocation70_spill] sm:$0xff] %v6964_v13  ;;  %v6982_v13 = vld [vmem:[#allocation2 + $0x28] sm:$0x3] }
 0x1ba   :  { %v6966_v24 = vpop.permute.xlu0 %1354  ;;  %v6968_v58 = vpop.permute.xlu1 %1352 }
 0x1bb   :  { %12194 = vst [vmem:[#allocation71_spill] sm:$0xff] %v6966_v24  ;;  %12195 = vst [vmem:[#allocation72_spill] sm:$0xff] %v6968_v58 }
 0x1cb   :  { %v6970_v3 = vpop.permute.xlu0 %1425  ;;  %v6972_v1 = vpop.permute.xlu1 %1421 }
 0x1cc   :  { %v1453_v33 = vmul.f32 %v6972_v1, %v6750_v11  ;;  %v1454_v63 = vmul.f32 %v6972_v1, %v6974_v29  ;;  %v1452_v5 = vmul.f32 %v6972_v1, %v6748_v10  ;;  %v1456_v24 = vmul.f32 %v6970_v3, %v6776_v23 }
 0x1cd   :  { %v1457_v58 = vmul.f32 %v6970_v3, %v6982_v13  ;;  %v1455_v61 = vmul.f32 %v6970_v3, %v6774_v22 }
 0x1ce   :  { %v1549_v31 = vrot.slane %v1453_v33, 1  ;;  %v1551_v57 = vrot.slane %v1454_v63, 1  ;;  %v1548_v40 = vrot.slane %v1452_v5, 1  ;;  %v1554_v51 = vrot.slane %v1456_v24, 1  ;;  %v7008_v24 = vld [vmem:[#allocation2 + $0x58] sm:$0x3] }
 0x1cf   :  { %v6990_v54 = vpop.permute.xlu1 %1429  ;;  %v1556_v50 = vrot.slane %v1457_v58, 1  ;;  %v1553_v48 = vrot.slane %v1455_v61, 1  ;;  %12196 = vst [vmem:[#allocation73_spill] sm:$0xff] %v7008_v24 }
 0x1d0   :  { %v1552_v42 = vsel %vm730_vm6, %v1549_v31, %v1551_v57  ;;  %v1550_v47 = vsel %vm730_vm6, %v1548_v40, %v1549_v31  ;;  %v1459_v43 = vmul.f32 %v6990_v54, %v6784_v28  ;;  %v1460_v33 = vmul.f32 %v6990_v54, %v6992_v46  ;;  %v7010_v31 = vpop.permute.xlu0 %1437 }
 0x1d1   :  { %1630 = vrot.lane.b32.xlu1 %v1552_v42, %s6174_s2  ;;  %1628 = vrot.lane.b32.xlu0 %v1550_v47, %s6174_s2  ;;  %v1458_v58 = vmul.f32 %v6990_v54, %v6782_v27  ;;  %v1557_v63 = vsel %vm730_vm6, %v1554_v51, %v1556_v50  ;;  %v1555_v57 = vsel %vm730_vm6, %v1553_v48, %v1554_v51 }
 0x1d2   :  { %v1559_v40 = vrot.slane %v1459_v43, 1  ;;  %v1561_v5 = vrot.slane %v1460_v33, 1  ;;  %v7020_v43 = vld [vmem:[#allocation2 + $0x70] sm:$0x3]  ;;  %v1465_v50 = vmul.f32 %v7010_v31, %v6800_v25  ;;  %v1464_v33 = vmul.f32 %v7010_v31, %v6798_v14 }
 0x1d3   :  { %v7004_v61 = vpop.permute.xlu1 %1433  ;;  %v1558_v41 = vrot.slane %v1458_v58, 1  ;;  %12197 = vst [vmem:[#allocation74_spill] sm:$0xff] %v7020_v43  ;;  %v1466_v51 = vmul.f32 %v7010_v31, %v7020_v43 }
 0x1d4   :  { %v1462_v42 = vmul.f32 %v7004_v61, %v6792_v35  ;;  %v1463_v47 = vmul.f32 %v7004_v61, %v7008_v24  ;;  %v1461_v39 = vmul.f32 %v7004_v61, %v6790_v34  ;;  %v1562_v48 = vsel %vm730_vm6, %v1559_v40, %v1561_v5  ;;  %v7034_v5 = vld [vmem:[#allocation2 + $0x88] sm:$0x3]  ;;  %v7036_v25 = vpop.permute.xlu0 %1445 }
 0x1d5   :  { %1634 = vrot.lane.b32.xlu1 %v1557_v63, %s6174_s2  ;;  %1632 = vrot.lane.b32.xlu0 %v1555_v57, %s6174_s2  ;;  %v1560_v38 = vsel %vm730_vm6, %v1558_v41, %v1559_v40  ;;  %v1569_v24 = vrot.slane %v1465_v50, 1  ;;  %v1571_v43 = vrot.slane %v1466_v51, 1  ;;  %v1568_v40 = vrot.slane %v1464_v33, 1 }
 0x1d6   :  { %v1564_v63 = vrot.slane %v1462_v42, 1  ;;  %v1566_v34 = vrot.slane %v1463_v47, 1  ;;  %v1563_v57 = vrot.slane %v1461_v39, 1  ;;  %v7048_v42 = vld [vmem:[#allocation2 + $0xa0] sm:$0x3]  ;;  %v1471_v47 = vmul.f32 %v7036_v25, %v6816_v2 }
 0x1d7   :  { %v7029_v58 = vpop.permute.xlu1 %1441  ;;  %12198 = vst [vmem:[#allocation75_spill] sm:$0xff] %v7048_v42  ;;  %v1470_v51 = vmul.f32 %v7036_v25, %v6814_v59  ;;  %v1572_v33 = vsel %vm730_vm6, %v1569_v24, %v1571_v43 }
 0x1d8   :  { %v1468_v14 = vmul.f32 %v7029_v58, %v6808_v4  ;;  %v1469_v35 = vmul.f32 %v7029_v58, %v7034_v5  ;;  %v1567_v41 = vsel %vm730_vm6, %v1564_v63, %v1566_v34  ;;  %v1565_v39 = vsel %vm730_vm6, %v1563_v57, %v1564_v63 }
 0x1d9   :  { %1638 = vrot.lane.b32.xlu1 %v1562_v48, %s6174_s2  ;;  %1636 = vrot.lane.b32.xlu0 %v1560_v38, %s6174_s2  ;;  %v1467_v38 = vmul.f32 %v7029_v58, %v6806_v45  ;;  %v1472_v34 = vmul.f32 %v7036_v25, %v7048_v42  ;;  %v1570_v63 = vsel %vm730_vm6, %v1568_v40, %v1569_v24  ;;  %v1578_v2 = vrot.slane %v1470_v51, 1  ;;  %v7063_v42 = vld [vmem:[#allocation2 + $0xb8] sm:$0x3] }
 0x1da   :  { %v1574_v48 = vrot.slane %v1468_v14, 1  ;;  %v1576_v50 = vrot.slane %v1469_v35, 1  ;;  %v1579_v35 = vrot.slane %v1471_v47, 1 }
 0x1db   :  { %v1573_v57 = vrot.slane %v1467_v38, 1  ;;  %v7074_v38 = vld [vmem:[#allocation2 + $0xd0] sm:$0x3] }
 0x1dc   :  { %v1577_v14 = vsel %vm730_vm6, %v1574_v48, %v1576_v50  ;;  %12199 = vst [vmem:[#allocation76_spill] sm:$0xff] %v7074_v38  ;;  %v1478_v50 = vmul.f32 %v6972_v1, %v7074_v38  ;;  %v1580_v51 = vsel %vm730_vm6, %v1578_v2, %v1579_v35  ;;  %v1480_v38 = vmul.f32 %v6970_v3, %v6842_v18 }
 0x1dd   :  { %1642 = vrot.lane.b32.xlu1 %v1567_v41, %s6174_s2  ;;  %1640 = vrot.lane.b32.xlu0 %v1565_v39, %s6174_s2  ;;  %v7058_v41 = vpop.permute.xlu1 %1449  ;;  %v1581_v39 = vrot.slane %v1472_v34, 1  ;;  %v1575_v59 = vsel %vm730_vm6, %v1573_v57, %v1574_v48  ;;  %v1477_v48 = vmul.f32 %v6972_v1, %v6832_v20  ;;  %v1476_v34 = vmul.f32 %v6972_v1, %v6830_v21 }
 0x1de   :  { %v1474_v43 = vmul.f32 %v7058_v41, %v6824_v32  ;;  %v1475_v24 = vmul.f32 %v7058_v41, %v7063_v42  ;;  %v1473_v40 = vmul.f32 %v7058_v41, %v6822_v44  ;;  %v7086_v44 = vld [vmem:[#allocation2 + $0xe8] sm:$0x3] }
 0x1df   :  { %v1582_v47 = vsel %vm730_vm6, %v1579_v35, %v1581_v39  ;;  %v1588_v39 = vrot.slane %v1476_v34, 1  ;;  %v1481_v2 = vmul.f32 %v6970_v3, %v7086_v44  ;;  %v1479_v35 = vmul.f32 %v6970_v3, %v6840_v19 }
 0x1e0   :  { %v1583_v57 = vrot.slane %v1473_v40, 1  ;;  %v1483_v40 = vmul.f32 %v6990_v54, %v6850_v16  ;;  %v1594_v3 = vrot.slane %v1480_v38, 1 }
 0x1e1   :  { %1646 = vrot.lane.b32.xlu1 %v1572_v33, %s6174_s2  ;;  %1644 = vrot.lane.b32.xlu0 %v1570_v63, %s6174_s2  ;;  %v1584_v33 = vrot.slane %v1474_v43, 1  ;;  %v1586_v63 = vrot.slane %v1475_v24, 1  ;;  %v7098_v43 = vld [vmem:[#allocation2 + $0x100] sm:$0x3]  ;;  %v1596_v34 = vrot.slane %v1481_v2, 1 }
 0x1e3   :  { %v1587_v20 = vsel %vm730_vm6, %v1584_v33, %v1586_v63  ;;  %v1585_v1 = vsel %vm730_vm6, %v1583_v57, %v1584_v33  ;;  %v7110_v57 = vld [vmem:[#allocation2 + $0x118] sm:$0x3] }
 0x1e4   :  { %v1487_v38 = vmul.f32 %v7004_v61, %v7110_v57 }
 0x1e5   :  { %1650 = vrot.lane.b32.xlu1 %v1577_v14, %s6174_s2  ;;  %1648 = vrot.lane.b32.xlu0 %v1575_v59, %s6174_s2  ;;  %v1589_v59 = vrot.slane %v1477_v48, 1  ;;  %v1591_v14 = vrot.slane %v1478_v50, 1  ;;  %v1482_v48 = vmul.f32 %v6990_v54, %v6848_v17 }
 0x1e7   :  { %v1592_v24 = vsel %vm730_vm6, %v1589_v59, %v1591_v14  ;;  %v1590_v50 = vsel %vm730_vm6, %v1588_v39, %v1589_v59  ;;  %v1598_v63 = vrot.slane %v1482_v48, 1  ;;  %v1486_v14 = vmul.f32 %v7004_v61, %v6858_v15 }
 0x1e8   :  { %v1485_v59 = vmul.f32 %v7004_v61, %v6856_v30  ;;  %v1488_v61 = vmul.f32 %v7010_v31, %v6864_v37 }
 0x1e9   :  { %1654 = vrot.lane.b32.xlu1 %v1582_v47, %s6174_s2  ;;  %1652 = vrot.lane.b32.xlu0 %v1580_v51, %s6174_s2  ;;  %v1484_v47 = vmul.f32 %v6990_v54, %v7098_v43  ;;  %v1599_v51 = vrot.slane %v1483_v40, 1  ;;  %v1489_v40 = vmul.f32 %v7010_v31, %v6866_v9 }
 0x1ea   :  { %v1603_v48 = vrot.slane %v1485_v59, 1 }
 0x1eb   :  { %v1601_v33 = vrot.slane %v1484_v47, 1  ;;  %v1600_v2 = vsel %vm730_vm6, %v1598_v63, %v1599_v51  ;;  %v1606_v47 = vrot.slane %v1487_v38, 1 }
 0x1ed   :  { %1658 = vrot.lane.b32.xlu1 %v1587_v20, %s6174_s2  ;;  %1656 = vrot.lane.b32.xlu0 %v1585_v1, %s6174_s2  ;;  %v1593_v20 = vrot.slane %v1479_v35, 1  ;;  %v1597_v1 = vsel %vm730_vm6, %v1594_v3, %v1596_v34  ;;  %v1602_v39 = vsel %vm730_vm6, %v1599_v51, %v1601_v33  ;;  %v1604_v35 = vrot.slane %v1486_v14, 1 }
 0x1ee   :  { %v1609_v34 = vrot.slane %v1489_v40, 1  ;;  %v1491_v33 = vmul.f32 %v7029_v58, %v6872_v26 }
 0x1ef   :  { %v1595_v54 = vsel %vm730_vm6, %v1593_v20, %v1594_v3  ;;  %v7134_v3 = vld [vmem:[#allocation2 + $0x148] sm:$0x3]  ;;  %v1492_v20 = vmul.f32 %v7029_v58, %v6874_v7  ;;  %v1607_v63 = vsel %vm730_vm6, %v1604_v35, %v1606_v47  ;;  %v1494_v47 = vmul.f32 %v7036_v25, %v6880_v36 }
 0x1f0   :  { %v1493_v51 = vmul.f32 %v7029_v58, %v7134_v3  ;;  %v1613_v59 = vrot.slane %v1491_v33, 1 }
 0x1f1   :  { %1662 = vrot.lane.b32.xlu1 %v1592_v24, %s6174_s2  ;;  %1660 = vrot.lane.b32.xlu0 %v1590_v50, %s6174_s2  ;;  %v7124_v24 = vld [vmem:[#allocation2 + $0x130] sm:$0x3]  ;;  %v1618_v33 = vrot.slane %v1494_v47, 1 }
 0x1f2   :  { %v1490_v50 = vmul.f32 %v7010_v31, %v7124_v24  ;;  %v1605_v31 = vsel %vm730_vm6, %v1603_v48, %v1604_v35  ;;  %v1616_v38 = vrot.slane %v1493_v51, 1 }
 0x1f4   :  { %v1611_v14 = vrot.slane %v1490_v50, 1 }
 0x1f5   :  { %1666 = vrot.lane.b32.xlu1 %v1597_v1, %s6174_s2  ;;  %1664 = vrot.lane.b32.xlu0 %v1595_v54, %s6174_s2  ;;  %v1608_v1 = vrot.slane %v1488_v61, 1  ;;  %v1614_v54 = vrot.slane %v1492_v20, 1  ;;  %v7160_v20 = vld [vmem:[#allocation2 + $0x178] sm:$0x3] }
 0x1f6   :  { %v1612_v58 = vsel %vm730_vm6, %v1609_v34, %v1611_v14 }
 0x1f7   :  { %v1610_v40 = vsel %vm730_vm6, %v1608_v1, %v1609_v34  ;;  %v1617_v48 = vsel %vm730_vm6, %v1614_v54, %v1616_v38  ;;  %v1615_v50 = vsel %vm730_vm6, %v1613_v59, %v1614_v54  ;;  %v1498_v34 = vmul.f32 %v7058_v41, %v6890_v6 }
 0x1f9   :  { %1670 = vrot.lane.b32.xlu1 %v1602_v39, %s6174_s2  ;;  %1668 = vrot.lane.b32.xlu0 %v1600_v2, %s6174_s2  ;;  %v7146_v39 = vld [vmem:[#allocation2 + $0x160] sm:$0x3]  ;;  %v1495_v2 = vmul.f32 %v7036_v25, %v6882_v8 }
 0x1fa   :  { %v1496_v35 = vmul.f32 %v7036_v25, %v7146_v39  ;;  %v1497_v25 = vmul.f32 %v7058_v41, %v6888_v12 }
 0x1fb   :  { %v1619_v61 = vrot.slane %v1495_v2, 1 }
 0x1fc   :  { %v1621_v51 = vrot.slane %v1496_v35, 1  ;;  %v1623_v38 = vrot.slane %v1497_v25, 1 }
 0x1fd   :  { %1674 = vrot.lane.b32.xlu1 %v1607_v63, %s6174_s2  ;;  %1672 = vrot.lane.b32.xlu0 %v1605_v31, %s6174_s2  ;;  %v1499_v63 = vmul.f32 %v7058_v41, %v7160_v20  ;;  %v1624_v31 = vrot.slane %v1498_v34, 1  ;;  %v1620_v1 = vsel %vm730_vm6, %v1618_v33, %v1619_v61  ;;  %v11958_v33 = vmov 2  }
 0x1fe   :  { %v1622_v14 = vsel %vm730_vm6, %v1619_v61, %v1621_v51 }
 0x1ff   :  { %v1626_v54 = vrot.slane %v1499_v63, 1  ;;  %v1625_v2 = vsel %vm730_vm6, %v1623_v38, %v1624_v31 }
 0x201   :  { %1678 = vrot.lane.b32.xlu1 %v1612_v58, %s6174_s2  ;;  %1676 = vrot.lane.b32.xlu0 %v1610_v40, %s6174_s2  ;;  %v1627_v59 = vsel %vm730_vm6, %v1624_v31, %v1626_v54 }
 0x205   :  { %1682 = vrot.lane.b32.xlu1 %v1617_v48, %s6174_s2  ;;  %1680 = vrot.lane.b32.xlu0 %v1615_v50, %s6174_s2 }
 0x209   :  { %1686 = vrot.lane.b32.xlu1 %v1622_v14, %s6174_s2  ;;  %1684 = vrot.lane.b32.xlu0 %v1620_v1, %s6174_s2 }
 0x20d   :  { %1690 = vrot.lane.b32.xlu1 %v1627_v59, %s6174_s2  ;;  %1688 = vrot.lane.b32.xlu0 %v1625_v2, %s6174_s2 }
 0x211   :  { %1761 = vperm.xlu1 %6047, %v6604_v49   ;;  %1757 = vperm.xlu0 %6046, %v6623_v56  }
 0x215   :  { %1765 = vperm.xlu1 %6047, %v6610_v52   ;;  %1769 = vperm.xlu0 %6046, %v6629_v60  }
 0x219   :  { %1773 = vperm.xlu1 %6047, %v6613_v53   ;;  %1777 = vperm.xlu0 %6046, %v6636_v62  }
 0x21d   :  { %1781 = vperm.xlu1 %6047, %v6618_v55   ;;  %1785 = vperm.xlu0 %6046, %v6641_v0  }
 0x221   :  { %6048 = vset.pattern.permute.xlu1 %v11958_v33  ;;  %6049 = vset.pattern.permute.xlu0 %v11958_v33 }
 0x243   :  { %v7186_v41 = vpop.permute.xlu0 %1628  ;;  %v7188_v58 = vpop.permute.xlu1 %1630 }
 0x244   :  { %12200 = vst [vmem:[#allocation77_spill] sm:$0xff] %v7186_v41  ;;  %12201 = vst [vmem:[#allocation78_spill] sm:$0xff] %v7188_v58 }
 0x247   :  { %v7190_v40 = vpop.permute.xlu0 %1632  ;;  %v7192_v35 = vpop.permute.xlu1 %1634 }
 0x248   :  { %12202 = vst [vmem:[#allocation79_spill] sm:$0xff] %v7190_v40  ;;  %12203 = vst [vmem:[#allocation80_spill] sm:$0xff] %v7192_v35 }
 0x24b   :  { %v7194_v47 = vpop.permute.xlu0 %1636  ;;  %v7196_v48 = vpop.permute.xlu1 %1638 }
 0x24c   :  { %12204 = vst [vmem:[#allocation81_spill] sm:$0xff] %v7194_v47  ;;  %12205 = vst [vmem:[#allocation82_spill] sm:$0xff] %v7196_v48 }
 0x24f   :  { %v7198_v50 = vpop.permute.xlu0 %1640  ;;  %v7200_v61 = vpop.permute.xlu1 %1642 }
 0x250   :  { %12206 = vst [vmem:[#allocation83_spill] sm:$0xff] %v7198_v50  ;;  %12207 = vst [vmem:[#allocation84_spill] sm:$0xff] %v7200_v61 }
 0x253   :  { %v7202_v34 = vpop.permute.xlu0 %1644  ;;  %v7204_v51 = vpop.permute.xlu1 %1646 }
 0x254   :  { %12208 = vst [vmem:[#allocation85_spill] sm:$0xff] %v7202_v34  ;;  %12209 = vst [vmem:[#allocation86_spill] sm:$0xff] %v7204_v51 }
 0x257   :  { %v7208_v63 = vpop.permute.xlu0 %1648  ;;  %v7210_v25 = vpop.permute.xlu1 %1650 }
 0x258   :  { %12210 = vst [vmem:[#allocation87_spill] sm:$0xff] %v7208_v63  ;;  %12211 = vst [vmem:[#allocation88_spill] sm:$0xff] %v7210_v25 }
 0x25b   :  { %v7212_v31 = vpop.permute.xlu0 %1652  ;;  %v7214_v14 = vpop.permute.xlu1 %1654 }
 0x25c   :  { %12212 = vst [vmem:[#allocation89_spill] sm:$0xff] %v7212_v31  ;;  %12213 = vst [vmem:[#allocation90_spill] sm:$0xff] %v7214_v14 }
 0x25f   :  { %v7216_v1 = vpop.permute.xlu0 %1656  ;;  %v7218_v54 = vpop.permute.xlu1 %1658 }
 0x260   :  { %12214 = vst [vmem:[#allocation91_spill] sm:$0xff] %v7216_v1  ;;  %12215 = vst [vmem:[#allocation92_spill] sm:$0xff] %v7218_v54 }
 0x263   :  { %v7220_v38 = vpop.permute.xlu0 %1660  ;;  %v7222_v59 = vpop.permute.xlu1 %1662 }
 0x264   :  { %12216 = vst [vmem:[#allocation93_spill] sm:$0xff] %v7220_v38  ;;  %12217 = vst [vmem:[#allocation94_spill] sm:$0xff] %v7222_v59 }
 0x267   :  { %v7224_v2 = vpop.permute.xlu0 %1664  ;;  %v7226_v50 = vpop.permute.xlu1 %1666 }
 0x268   :  { %12218 = vst [vmem:[#allocation95_spill] sm:$0xff] %v7224_v2  ;;  %12219 = vst [vmem:[#allocation96_spill] sm:$0xff] %v7226_v50 }
 0x26b   :  { %v7228_v33 = vpop.permute.xlu0 %1668  ;;  %v7230_v63 = vpop.permute.xlu1 %1670 }
 0x26c   :  { %12220 = vst [vmem:[#allocation97_spill] sm:$0xff] %v7228_v33  ;;  %12221 = vst [vmem:[#allocation98_spill] sm:$0xff] %v7230_v63 }
 0x26f   :  { %v7232_v25 = vpop.permute.xlu0 %1672  ;;  %v7234_v61 = vpop.permute.xlu1 %1674 }
 0x270   :  { %12222 = vst [vmem:[#allocation99_spill] sm:$0xff] %v7232_v25  ;;  %12223 = vst [vmem:[#allocation100_spill] sm:$0xff] %v7234_v61 }
 0x273   :  { %v7236_v58 = vpop.permute.xlu0 %1676  ;;  %v7238_v1 = vpop.permute.xlu1 %1678 }
 0x274   :  { %12224 = vst [vmem:[#allocation101_spill] sm:$0xff] %v7236_v58  ;;  %12225 = vst [vmem:[#allocation102_spill] sm:$0xff] %v7238_v1 }
 0x277   :  { %v7240_v54 = vpop.permute.xlu0 %1680  ;;  %v7242_v38 = vpop.permute.xlu1 %1682 }
 0x278   :  { %12226 = vst [vmem:[#allocation103_spill] sm:$0xff] %v7240_v54  ;;  %12227 = vst [vmem:[#allocation104_spill] sm:$0xff] %v7242_v38 }
 0x27b   :  { %v7244_v59 = vpop.permute.xlu0 %1684  ;;  %v7246_v41 = vpop.permute.xlu1 %1686 }
 0x27c   :  { %12228 = vst [vmem:[#allocation105_spill] sm:$0xff] %v7244_v59  ;;  %12229 = vst [vmem:[#allocation106_spill] sm:$0xff] %v7246_v41 }
 0x27f   :  { %v7248_v50 = vpop.permute.xlu0 %1688  ;;  %v7250_v33 = vpop.permute.xlu1 %1690 }
 0x280   :  { %12230 = vst [vmem:[#allocation107_spill] sm:$0xff] %v7248_v50  ;;  %12231 = vst [vmem:[#allocation108_spill] sm:$0xff] %v7250_v33 }
 0x290   :  { %v7252_v63 = vpop.permute.xlu0 %1757  ;;  %v7254_v25 = vpop.permute.xlu1 %1761 }
 0x291   :  { %v1789_v61 = vmul.f32 %v7252_v63, %v6750_v11  ;;  %v1790_v54 = vmul.f32 %v7252_v63, %v6974_v29  ;;  %v1788_v38 = vmul.f32 %v7252_v63, %v6748_v10  ;;  %v1792_v41 = vmul.f32 %v7254_v25, %v6776_v23 }
 0x292   :  { %v1793_v50 = vmul.f32 %v7254_v25, %v6982_v13  ;;  %v1791_v33 = vmul.f32 %v7254_v25, %v6774_v22 }
 0x293   :  { %v1885_v59 = vrot.slane %v1789_v61, 2  ;;  %v1887_v1 = vrot.slane %v1790_v54, 2  ;;  %v1884_v58 = vrot.slane %v1788_v38, 2  ;;  %v1890_v2 = vrot.slane %v1792_v41, 2  ;;  %v12233_v54 = vld [vmem:[#allocation73_spill] sm:$0xff] }
 0x294   :  { %v7268_v11 = vpop.permute.xlu1 %1765  ;;  %v1892_v29 = vrot.slane %v1793_v50, 2  ;;  %v1889_v14 = vrot.slane %v1791_v33, 2  ;;  %v7270_v31 = vpop.permute.xlu0 %1769  ;;  %v12232_v33 = vld [vmem:[#allocation34_spill] sm:$0xff] }
 0x295   :  { %v1888_v10 = vsel %vm1003_vm7, %v1885_v59, %v1887_v1  ;;  %v1886_v23 = vsel %vm1003_vm7, %v1884_v58, %v1885_v59  ;;  %v1795_v13 = vmul.f32 %v7268_v11, %v6784_v28  ;;  %v1796_v22 = vmul.f32 %v7268_v11, %v6992_v46 }
 0x296   :  { %1966 = vrot.lane.b32.xlu0 %v1888_v10, %s6174_s2  ;;  %1964 = vrot.lane.b32.xlu1 %v1886_v23, %s6174_s2  ;;  %v1794_v41 = vmul.f32 %v7268_v11, %v6782_v27  ;;  %v1798_v1 = vmul.f32 %v7270_v31, %v12232_v33  ;;  %v1799_v58 = vmul.f32 %v7270_v31, %v12233_v54  ;;  %v12234_v10 = vld [vmem:[#allocation33_spill] sm:$0xff]  ;;  %v12235_v33 = vld [vmem:[#allocation36_spill] sm:$0xff] }
 0x297   :  { %v1895_v50 = vrot.slane %v1795_v13, 2  ;;  %v1897_v61 = vrot.slane %v1796_v22, 2  ;;  %v1893_v28 = vsel %vm1003_vm7, %v1890_v2, %v1892_v29  ;;  %v1891_v46 = vsel %vm1003_vm7, %v1889_v14, %v1890_v2  ;;  %v12236_v2 = vld [vmem:[#allocation74_spill] sm:$0xff] }
 0x298   :  { %v7286_v38 = vpop.permute.xlu1 %1773  ;;  %v1894_v59 = vrot.slane %v1794_v41, 2  ;;  %v1797_v23 = vmul.f32 %v7270_v31, %v12234_v10  ;;  %v1900_v13 = vrot.slane %v1798_v1, 2  ;;  %v1902_v22 = vrot.slane %v1799_v58, 2  ;;  %v7297_v51 = vpop.permute.xlu0 %1777  ;;  %v12237_v10 = vld [vmem:[#allocation35_spill] sm:$0xff] }
 0x299   :  { %v1898_v27 = vsel %vm1003_vm7, %v1895_v50, %v1897_v61  ;;  %v1801_v54 = vmul.f32 %v7286_v38, %v12235_v33  ;;  %v1802_v41 = vmul.f32 %v7286_v38, %v12236_v2  ;;  %v1804_v58 = vmul.f32 %v7297_v51, %v6808_v4  ;;  %v12239_v2 = vld [vmem:[#allocation75_spill] sm:$0xff] }
 0x29a   :  { %1970 = vrot.lane.b32.xlu0 %v1893_v28, %s6174_s2  ;;  %1968 = vrot.lane.b32.xlu1 %v1891_v46, %s6174_s2  ;;  %v1896_v29 = vsel %vm1003_vm7, %v1894_v59, %v1895_v50  ;;  %v1899_v14 = vrot.slane %v1797_v23, 2  ;;  %v1800_v28 = vmul.f32 %v7286_v38, %v12237_v10  ;;  %v1903_v61 = vsel %vm1003_vm7, %v1900_v13, %v1902_v22 }
 0x29b   :  { %v1905_v1 = vrot.slane %v1801_v54, 2  ;;  %v1805_v50 = vmul.f32 %v7297_v51, %v7034_v5  ;;  %v1907_v23 = vrot.slane %v1802_v41, 2  ;;  %v1910_v22 = vrot.slane %v1804_v58, 2 }
 0x29c   :  { %v7311_v46 = vpop.permute.xlu1 %1781  ;;  %v1901_v59 = vsel %vm1003_vm7, %v1899_v14, %v1900_v13  ;;  %v1904_v33 = vrot.slane %v1800_v28, 2  ;;  %v7322_v10 = vpop.permute.xlu0 %1785 }
 0x29d   :  { %v1912_v54 = vrot.slane %v1805_v50, 2  ;;  %v1808_v5 = vmul.f32 %v7311_v46, %v12239_v2  ;;  %v1908_v13 = vsel %vm1003_vm7, %v1905_v1, %v1907_v23 }
 0x29e   :  { %1974 = vrot.lane.b32.xlu0 %v1898_v27, %s6174_s2  ;;  %1972 = vrot.lane.b32.xlu1 %v1896_v29, %s6174_s2  ;;  %v1803_v27 = vmul.f32 %v7297_v51, %v6806_v45  ;;  %v12238_v29 = vld [vmem:[#allocation38_spill] sm:$0xff]  ;;  %v1906_v14 = vsel %vm1003_vm7, %v1904_v33, %v1905_v1  ;;  %v12240_v45 = vld [vmem:[#allocation37_spill] sm:$0xff]  ;;  %v1811_v1 = vmul.f32 %v7322_v10, %v7063_v42  ;;  %v12241_v33 = vld [vmem:[#allocation39_spill] sm:$0xff] }
 0x29f   :  { %v1807_v4 = vmul.f32 %v7311_v46, %v12238_v29  ;;  %v1806_v28 = vmul.f32 %v7311_v46, %v12240_v45  ;;  %v1917_v50 = vrot.slane %v1808_v5, 2  ;;  %v12243_v5 = vld [vmem:[#allocation76_spill] sm:$0xff] }
 0x2a0   :  { %v1909_v41 = vrot.slane %v1803_v27, 2  ;;  %v1809_v27 = vmul.f32 %v7322_v10, %v12241_v33 }
 0x2a1   :  { %v1915_v58 = vrot.slane %v1807_v4, 2  ;;  %v1914_v23 = vrot.slane %v1806_v28, 2  ;;  %v12242_v4 = vld [vmem:[#allocation40_spill] sm:$0xff] }
 0x2a2   :  { %1978 = vrot.lane.b32.xlu0 %v1903_v61, %s6174_s2  ;;  %1976 = vrot.lane.b32.xlu1 %v1901_v59, %s6174_s2  ;;  %v1913_v61 = vsel %vm1003_vm7, %v1910_v22, %v1912_v54  ;;  %v1810_v59 = vmul.f32 %v7322_v10, %v6824_v32  ;;  %v1911_v29 = vsel %vm1003_vm7, %v1909_v41, %v1910_v22  ;;  %v1919_v41 = vrot.slane %v1809_v27, 2 }
 0x2a3   :  { %v1918_v54 = vsel %vm1003_vm7, %v1915_v58, %v1917_v50  ;;  %v1813_v2 = vmul.f32 %v7252_v63, %v12242_v4  ;;  %v1814_v32 = vmul.f32 %v7252_v63, %v12243_v5  ;;  %v1812_v22 = vmul.f32 %v7252_v63, %v6830_v21 }
 0x2a4   :  { %v1916_v42 = vsel %vm1003_vm7, %v1914_v23, %v1915_v58  ;;  %v1816_v50 = vmul.f32 %v7254_v25, %v6842_v18  ;;  %v1817_v21 = vmul.f32 %v7254_v25, %v7086_v44  ;;  %v1815_v63 = vmul.f32 %v7254_v25, %v6840_v19 }
 0x2a5   :  { %v1925_v45 = vrot.slane %v1813_v2, 2  ;;  %v1927_v28 = vrot.slane %v1814_v32, 2  ;;  %v1819_v18 = vmul.f32 %v7268_v11, %v6850_v16  ;;  %v1820_v23 = vmul.f32 %v7268_v11, %v7098_v43 }
 0x2a6   :  { %1982 = vrot.lane.b32.xlu0 %v1908_v13, %s6174_s2  ;;  %1980 = vrot.lane.b32.xlu1 %v1906_v14, %s6174_s2  ;;  %v1920_v13 = vrot.slane %v1810_v59, 2  ;;  %v1922_v14 = vrot.slane %v1811_v1, 2  ;;  %v1930_v1 = vrot.slane %v1816_v50, 2  ;;  %v1932_v27 = vrot.slane %v1817_v21, 2 }
 0x2a7   :  { %v1928_v58 = vsel %vm1003_vm7, %v1925_v45, %v1927_v28  ;;  %v1929_v44 = vrot.slane %v1815_v63, 2  ;;  %v1818_v19 = vmul.f32 %v7268_v11, %v6848_v17  ;;  %v1935_v25 = vrot.slane %v1819_v18, 2 }
 0x2a8   :  { %v1921_v33 = vsel %vm1003_vm7, %v1919_v41, %v1920_v13  ;;  %v1822_v4 = vmul.f32 %v7270_v31, %v6858_v15  ;;  %v1823_v16 = vmul.f32 %v7270_v31, %v7110_v57  ;;  %v1933_v43 = vsel %vm1003_vm7, %v1930_v1, %v1932_v27 }
 0x2a9   :  { %v1931_v2 = vsel %vm1003_vm7, %v1929_v44, %v1930_v1  ;;  %v1934_v5 = vrot.slane %v1818_v19, 2  ;;  %v1821_v17 = vmul.f32 %v7270_v31, %v6856_v30  ;;  %v1825_v15 = vmul.f32 %v7286_v38, %v6866_v9 }
 0x2aa   :  { %1986 = vrot.lane.b32.xlu0 %v1913_v61, %s6174_s2  ;;  %1984 = vrot.lane.b32.xlu1 %v1911_v29, %s6174_s2  ;;  %v1924_v61 = vrot.slane %v1812_v22, 2  ;;  %v1923_v29 = vsel %vm1003_vm7, %v1920_v13, %v1922_v14  ;;  %v1940_v32 = vrot.slane %v1822_v4, 2  ;;  %v1942_v22 = vrot.slane %v1823_v16, 2 }
 0x2ab   :  { %v1936_v57 = vsel %vm1003_vm7, %v1934_v5, %v1935_v25  ;;  %v1826_v13 = vmul.f32 %v7286_v38, %v7124_v24  ;;  %v1824_v30 = vmul.f32 %v7286_v38, %v6864_v37  ;;  %v1945_v14 = vrot.slane %v1825_v15, 2 }
 0x2ac   :  { %v1926_v59 = vsel %vm1003_vm7, %v1924_v61, %v1925_v45  ;;  %v1943_v31 = vsel %vm1003_vm7, %v1940_v32, %v1942_v22  ;;  %v1828_v41 = vmul.f32 %v7297_v51, %v6874_v7  ;;  %v1829_v9 = vmul.f32 %v7297_v51, %v7134_v3 }
 0x2ad   :  { %v1947_v28 = vrot.slane %v1826_v13, 2  ;;  %v1944_v24 = vrot.slane %v1824_v30, 2  ;;  %v1827_v37 = vmul.f32 %v7297_v51, %v6872_v26  ;;  %v1831_v50 = vmul.f32 %v7311_v46, %v6882_v8 }
 0x2ae   :  { %1990 = vrot.lane.b32.xlu0 %v1918_v54, %s6174_s2  ;;  %1988 = vrot.lane.b32.xlu1 %v1916_v42, %s6174_s2  ;;  %v1937_v54 = vrot.slane %v1820_v23, 2  ;;  %v1939_v42 = vrot.slane %v1821_v17, 2  ;;  %v1950_v38 = vrot.slane %v1828_v41, 2  ;;  %v1952_v61 = vrot.slane %v1829_v9, 2 }
 0x2af   :  { %v1832_v7 = vmul.f32 %v7311_v46, %v7146_v39  ;;  %v1948_v3 = vsel %vm1003_vm7, %v1945_v14, %v1947_v28  ;;  %v1830_v26 = vmul.f32 %v7311_v46, %v6880_v36  ;;  %v1955_v21 = vrot.slane %v1831_v50, 2 }
 0x2b0   :  { %v1938_v11 = vsel %vm1003_vm7, %v1935_v25, %v1937_v54  ;;  %v1941_v45 = vsel %vm1003_vm7, %v1939_v42, %v1940_v32  ;;  %v1953_v51 = vsel %vm1003_vm7, %v1950_v38, %v1952_v61  ;;  %v1834_v8 = vmul.f32 %v7322_v10, %v6890_v6 }
 0x2b1   :  { %v1957_v63 = vrot.slane %v1832_v7, 2  ;;  %v1833_v36 = vmul.f32 %v7322_v10, %v6888_v12 }
 0x2b2   :  { %1994 = vrot.lane.b32.xlu0 %v1923_v29, %s6174_s2  ;;  %1992 = vrot.lane.b32.xlu1 %v1921_v33, %s6174_s2  ;;  %v1946_v29 = vsel %vm1003_vm7, %v1944_v24, %v1945_v14  ;;  %v1949_v33 = vrot.slane %v1827_v37, 2  ;;  %v1960_v46 = vrot.slane %v1834_v8, 2 }
 0x2b3   :  { %v1958_v18 = vsel %vm1003_vm7, %v1955_v21, %v1957_v63  ;;  %v1959_v6 = vrot.slane %v1833_v36, 2 }
 0x2b4   :  { %v1951_v39 = vsel %vm1003_vm7, %v1949_v33, %v1950_v38  ;;  %v7502_v33 = vld [vmem:[#allocation2 + $0x8] sm:$0xff] }
 0x2b5   :  { %v1961_v27 = vsel %vm1003_vm7, %v1959_v6, %v1960_v46 }
 0x2b6   :  { %1998 = vrot.lane.b32.xlu0 %v1928_v58, %s6174_s2  ;;  %1996 = vrot.lane.b32.xlu1 %v1926_v59, %s6174_s2  ;;  %v1954_v58 = vrot.slane %v1830_v26, 2  ;;  %v1835_v59 = vmul.f32 %v7322_v10, %v7160_v20  ;;  %v7504_v26 = vld [vmem:[#allocation2] sm:$0xff] }
 0x2b8   :  { %v1956_v23 = vsel %vm1003_vm7, %v1954_v58, %v1955_v21  ;;  %v1962_v1 = vrot.slane %v1835_v59, 2  ;;  %v7514_v58 = vld [vmem:[#allocation2 + $0x18] sm:$0xff] }
 0x2ba   :  { %2002 = vrot.lane.b32.xlu0 %v1933_v43, %s6174_s2  ;;  %2000 = vrot.lane.b32.xlu1 %v1931_v2, %s6174_s2  ;;  %v1963_v20 = vsel %vm1003_vm7, %v1960_v46, %v1962_v1  ;;  %v11960_v43 = vmov 5   ;;  %v7520_v46 = vld [vmem:[#allocation2 + $0x38] sm:$0xff] }
 0x2be   :  { %2006 = vrot.lane.b32.xlu0 %v1938_v11, %s6174_s2  ;;  %2004 = vrot.lane.b32.xlu1 %v1936_v57, %s6174_s2 }
 0x2c2   :  { %2010 = vrot.lane.b32.xlu0 %v1943_v31, %s6174_s2  ;;  %2008 = vrot.lane.b32.xlu1 %v1941_v45, %s6174_s2 }
 0x2c6   :  { %2014 = vrot.lane.b32.xlu0 %v1948_v3, %s6174_s2  ;;  %2012 = vrot.lane.b32.xlu1 %v1946_v29, %s6174_s2 }
 0x2ca   :  { %2018 = vrot.lane.b32.xlu0 %v1953_v51, %s6174_s2  ;;  %2016 = vrot.lane.b32.xlu1 %v1951_v39, %s6174_s2  ;;  %v7512_v39 = vld [vmem:[#allocation2 + $0x20] sm:$0xff] }
 0x2ce   :  { %2022 = vrot.lane.b32.xlu0 %v1958_v18, %s6174_s2  ;;  %2020 = vrot.lane.b32.xlu1 %v1956_v23, %s6174_s2  ;;  %v7522_v18 = vld [vmem:[#allocation2 + $0x30] sm:$0xff] }
 0x2d2   :  { %2026 = vrot.lane.b32.xlu0 %v1963_v20, %s6174_s2  ;;  %2024 = vrot.lane.b32.xlu1 %v1961_v27, %s6174_s2  ;;  %v7530_v20 = vld [vmem:[#allocation2 + $0x50] sm:$0xff]  ;;  %v7532_v27 = vld [vmem:[#allocation2 + $0x48] sm:$0xff] }
 0x2d3   :  { %12276 = vst [vmem:[#allocation129_spill] sm:$0xff] %v7530_v20 }
 0x2d6   :  { %2145 = vperm.xlu0 %6049, %v6604_v49   ;;  %2141 = vperm.xlu1 %6048, %v6623_v56  }
 0x2da   :  { %2157 = vperm.xlu0 %6049, %v6613_v53   ;;  %2149 = vperm.xlu1 %6048, %v6610_v52  }
 0x2de   :  { %2165 = vperm.xlu0 %6049, %v6618_v55   ;;  %2153 = vperm.xlu1 %6048, %v6629_v60  }
 0x2e2   :  { %2161 = vperm.xlu1 %6048, %v6636_v62   ;;  %6050 = vset.pattern.permute.xlu0 %v11960_v43 }
 0x2e6   :  { %2169 = vperm.xlu1 %6048, %v6641_v0  }
 0x2ea   :  { %6051 = vset.pattern.permute.xlu1 %v11960_v43  ;;  %v7540_v43 = vld [vmem:[#allocation2 + $0x60] sm:$0xff] }
 0x2eb   :  { %12277 = vst [vmem:[#allocation130_spill] sm:$0xff] %v7540_v43 }
 0x308   :  { %v7436_v12 = vpop.permute.xlu0 %1966  ;;  %v7438_v10 = vpop.permute.xlu1 %1964 }
 0x309   :  { %12244 = vst [vmem:[#allocation34_spill] sm:$0xff] %v7436_v12  ;;  %12245 = vst [vmem:[#allocation73_spill] sm:$0xff] %v7438_v10  ;;  %v7606_v12 = vld [vmem:[#allocation2 + $0x120] sm:$0xff]  ;;  %v7614_v10 = vld [vmem:[#allocation2 + $0x138] sm:$0xff] }
 0x30c   :  { %v7440_v44 = vpop.permute.xlu0 %1970  ;;  %v7442_v19 = vpop.permute.xlu1 %1968 }
 0x30d   :  { %12246 = vst [vmem:[#allocation33_spill] sm:$0xff] %v7440_v44  ;;  %12247 = vst [vmem:[#allocation36_spill] sm:$0xff] %v7442_v19  ;;  %v7732_v19 = vld [vmem:[#allocation2 + $0x40] sm:$0x3] }
 0x310   :  { %v7444_v25 = vpop.permute.xlu0 %1974  ;;  %v7446_v54 = vpop.permute.xlu1 %1972 }
 0x311   :  { %12248 = vst [vmem:[#allocation74_spill] sm:$0xff] %v7444_v25  ;;  %12249 = vst [vmem:[#allocation35_spill] sm:$0xff] %v7446_v54 }
 0x314   :  { %v7448_v4 = vpop.permute.xlu0 %1978  ;;  %v7450_v16 = vpop.permute.xlu1 %1976 }
 0x315   :  { %12250 = vst [vmem:[#allocation38_spill] sm:$0xff] %v7448_v4  ;;  %12251 = vst [vmem:[#allocation75_spill] sm:$0xff] %v7450_v16  ;;  %v7588_v16 = vld [vmem:[#allocation2 + $0xf0] sm:$0xff]  ;;  %v7604_v4 = vld [vmem:[#allocation2 + $0x128] sm:$0xff] }
 0x318   :  { %v7454_v2 = vpop.permute.xlu0 %1982  ;;  %v7456_v5 = vpop.permute.xlu1 %1980 }
 0x319   :  { %12252 = vst [vmem:[#allocation37_spill] sm:$0xff] %v7454_v2  ;;  %12253 = vst [vmem:[#allocation39_spill] sm:$0xff] %v7456_v5 }
 0x31c   :  { %v7458_v17 = vpop.permute.xlu0 %1986  ;;  %v7460_v11 = vpop.permute.xlu1 %1984 }
 0x31d   :  { %12254 = vst [vmem:[#allocation40_spill] sm:$0xff] %v7458_v17  ;;  %12255 = vst [vmem:[#allocation76_spill] sm:$0xff] %v7460_v11  ;;  %v7580_v11 = vld [vmem:[#allocation2 + $0xd8] sm:$0xff] }
 0x31e   :  { %v7586_v17 = vld [vmem:[#allocation2 + $0xf8] sm:$0xff] }
 0x320   :  { %v7462_v32 = vpop.permute.xlu0 %1990  ;;  %v7464_v22 = vpop.permute.xlu1 %1988 }
 0x321   :  { %12256 = vst [vmem:[#allocation109_spill] sm:$0xff] %v7462_v32  ;;  %12257 = vst [vmem:[#allocation110_spill] sm:$0xff] %v7464_v22 }
 0x324   :  { %v7466_v15 = vpop.permute.xlu0 %1994  ;;  %v7468_v57 = vpop.permute.xlu1 %1992 }
 0x325   :  { %12258 = vst [vmem:[#allocation111_spill] sm:$0xff] %v7466_v15  ;;  %12259 = vst [vmem:[#allocation112_spill] sm:$0xff] %v7468_v57  ;;  %v7572_v15 = vld [vmem:[#allocation2 + $0xc0] sm:$0xff] }
 0x326   :  { %v7578_v57 = vld [vmem:[#allocation2 + $0xe0] sm:$0xff] }
 0x328   :  { %v7470_v42 = vpop.permute.xlu1 %1996  ;;  %v7472_v13 = vpop.permute.xlu0 %1998 }
 0x329   :  { %12260 = vst [vmem:[#allocation113_spill] sm:$0xff] %v7470_v42  ;;  %12261 = vst [vmem:[#allocation114_spill] sm:$0xff] %v7472_v13  ;;  %v7564_v42 = vld [vmem:[#allocation2 + $0xa8] sm:$0xff] }
 0x32a   :  { %v7570_v13 = vld [vmem:[#allocation2 + $0xc8] sm:$0xff] }
 0x32c   :  { %v7474_v30 = vpop.permute.xlu1 %2000  ;;  %v7476_v31 = vpop.permute.xlu0 %2002 }
 0x32d   :  { %12262 = vst [vmem:[#allocation115_spill] sm:$0xff] %v7474_v30  ;;  %12263 = vst [vmem:[#allocation116_spill] sm:$0xff] %v7476_v31  ;;  %v11962_v31 = vmov 8  }
 0x330   :  { %v7478_v14 = vpop.permute.xlu1 %2004  ;;  %v7480_v41 = vpop.permute.xlu0 %2006 }
 0x331   :  { %12264 = vst [vmem:[#allocation117_spill] sm:$0xff] %v7478_v14  ;;  %12265 = vst [vmem:[#allocation118_spill] sm:$0xff] %v7480_v41 }
 0x334   :  { %v7482_v9 = vpop.permute.xlu1 %2008  ;;  %v7484_v45 = vpop.permute.xlu0 %2010 }
 0x335   :  { %12266 = vst [vmem:[#allocation119_spill] sm:$0xff] %v7482_v9  ;;  %12267 = vst [vmem:[#allocation120_spill] sm:$0xff] %v7484_v45  ;;  %v7562_v45 = vld [vmem:[#allocation2 + $0xb0] sm:$0xff] }
 0x338   :  { %v7486_v28 = vpop.permute.xlu1 %2012  ;;  %v7488_v24 = vpop.permute.xlu0 %2014 }
 0x339   :  { %12268 = vst [vmem:[#allocation121_spill] sm:$0xff] %v7486_v28  ;;  %12269 = vst [vmem:[#allocation122_spill] sm:$0xff] %v7488_v24  ;;  %v7622_v28 = vld [vmem:[#allocation2 + $0x150] sm:$0xff]  ;;  %v7630_v24 = vld [vmem:[#allocation2 + $0x168] sm:$0xff] }
 0x33c   :  { %v7490_v37 = vpop.permute.xlu1 %2016  ;;  %v7492_v38 = vpop.permute.xlu0 %2018 }
 0x33d   :  { %12270 = vst [vmem:[#allocation123_spill] sm:$0xff] %v7490_v37  ;;  %12271 = vst [vmem:[#allocation124_spill] sm:$0xff] %v7492_v38  ;;  %v7554_v37 = vld [vmem:[#allocation2 + $0x98] sm:$0xff]  ;;  %v7556_v38 = vld [vmem:[#allocation2 + $0x90] sm:$0xff] }
 0x340   :  { %v7494_v61 = vpop.permute.xlu1 %2020  ;;  %v7496_v50 = vpop.permute.xlu0 %2022 }
 0x341   :  { %12272 = vst [vmem:[#allocation125_spill] sm:$0xff] %v7494_v61  ;;  %12273 = vst [vmem:[#allocation126_spill] sm:$0xff] %v7496_v50  ;;  %v7548_v61 = vld [vmem:[#allocation2 + $0x78] sm:$0xff] }
 0x344   :  { %v7498_v7 = vpop.permute.xlu1 %2024  ;;  %v7500_v3 = vpop.permute.xlu0 %2026 }
 0x345   :  { %12274 = vst [vmem:[#allocation127_spill] sm:$0xff] %v7498_v7  ;;  %12275 = vst [vmem:[#allocation128_spill] sm:$0xff] %v7500_v3  ;;  %v7546_v3 = vld [vmem:[#allocation2 + $0x80] sm:$0xff] }
 0x355   :  { %v2142_v29 = vpop.permute.xlu1 %2141  ;;  %v2146_v63 = vpop.permute.xlu0 %2145 }
 0x356   :  { %v2173_v51 = vmul.f32 %v2142_v29, %v7502_v33  ;;  %v2172_v21 = vmul.f32 %v2142_v29, %v7504_v26  ;;  %v2175_v59 = vmul.f32 %v2146_v63, %v7512_v39  ;;  %v2174_v36 = vmul.f32 %v2146_v63, %v7514_v58 }
 0x358   :  { %2238 = vrot.lane.b32.xlu1 %v2173_v51, %s6178_s25  ;;  %2236 = vrot.lane.b32.xlu0 %v2172_v21, %s6178_s25 }
 0x359   :  { %v7510_v8 = vpop.permute.xlu1 %2149 }
 0x35a   :  { %v2177_v23 = vmul.f32 %v7510_v8, %v7520_v46  ;;  %v2176_v1 = vmul.f32 %v7510_v8, %v7522_v18 }
 0x35c   :  { %2242 = vrot.lane.b32.xlu1 %v2175_v59, %s6178_s25  ;;  %2240 = vrot.lane.b32.xlu0 %v2174_v36, %s6178_s25  ;;  %v2158_v59 = vpop.permute.xlu0 %2157  ;;  %v7538_v36 = vld [vmem:[#allocation2 + $0x68] sm:$0xff] }
 0x35d   :  { %v2154_v6 = vpop.permute.xlu1 %2153 }
 0x35e   :  { %v2179_v51 = vmul.f32 %v2154_v6, %v7530_v20  ;;  %v2178_v21 = vmul.f32 %v2154_v6, %v7532_v27 }
 0x360   :  { %2246 = vrot.lane.b32.xlu1 %v2177_v23, %s6178_s25  ;;  %2244 = vrot.lane.b32.xlu0 %v2176_v1, %s6178_s25  ;;  %v2181_v23 = vmul.f32 %v2158_v59, %v7538_v36  ;;  %v2180_v1 = vmul.f32 %v2158_v59, %v7540_v43  ;;  %v2166_v50 = vpop.permute.xlu0 %2165 }
 0x361   :  { %v2162_v7 = vpop.permute.xlu1 %2161 }
 0x364   :  { %2250 = vrot.lane.b32.xlu1 %v2179_v51, %s6178_s25  ;;  %2248 = vrot.lane.b32.xlu0 %v2178_v21, %s6178_s25  ;;  %v2183_v51 = vmul.f32 %v2162_v7, %v7546_v3  ;;  %v2182_v21 = vmul.f32 %v2162_v7, %v7548_v61 }
 0x365   :  { %v2170_v9 = vpop.permute.xlu1 %2169 }
 0x368   :  { %2254 = vrot.lane.b32.xlu1 %v2181_v23, %s6178_s25  ;;  %2252 = vrot.lane.b32.xlu0 %v2180_v1, %s6178_s25  ;;  %v2185_v23 = vmul.f32 %v2166_v50, %v7554_v37  ;;  %v2184_v1 = vmul.f32 %v2166_v50, %v7556_v38 }
 0x36c   :  { %2258 = vrot.lane.b32.xlu1 %v2183_v51, %s6178_s25  ;;  %2256 = vrot.lane.b32.xlu0 %v2182_v21, %s6178_s25  ;;  %v2187_v51 = vmul.f32 %v2170_v9, %v7562_v45  ;;  %v2186_v21 = vmul.f32 %v2170_v9, %v7564_v42 }
 0x370   :  { %2262 = vrot.lane.b32.xlu1 %v2185_v23, %s6178_s25  ;;  %2260 = vrot.lane.b32.xlu0 %v2184_v1, %s6178_s25  ;;  %v2189_v23 = vmul.f32 %v2142_v29, %v7570_v13  ;;  %v2188_v1 = vmul.f32 %v2142_v29, %v7572_v15  ;;  %v2193_v29 = vmul.f32 %v7510_v8, %v7586_v17 }
 0x374   :  { %2266 = vrot.lane.b32.xlu1 %v2187_v51, %s6178_s25  ;;  %2264 = vrot.lane.b32.xlu0 %v2186_v21, %s6178_s25  ;;  %v2191_v51 = vmul.f32 %v2146_v63, %v7578_v57  ;;  %v2190_v21 = vmul.f32 %v2146_v63, %v7580_v11  ;;  %v7598_v63 = vld [vmem:[#allocation2 + $0x108] sm:$0xff] }
 0x378   :  { %2270 = vrot.lane.b32.xlu1 %v2189_v23, %s6178_s25  ;;  %2268 = vrot.lane.b32.xlu0 %v2188_v1, %s6178_s25  ;;  %v2192_v23 = vmul.f32 %v7510_v8, %v7588_v16  ;;  %v7596_v1 = vld [vmem:[#allocation2 + $0x110] sm:$0xff]  ;;  %v2197_v8 = vmul.f32 %v2158_v59, %v7604_v4 }
 0x37c   :  { %2274 = vrot.lane.b32.xlu1 %v2191_v51, %s6178_s25  ;;  %2272 = vrot.lane.b32.xlu0 %v2190_v21, %s6178_s25  ;;  %v2195_v51 = vmul.f32 %v2154_v6, %v7596_v1  ;;  %v2194_v21 = vmul.f32 %v2154_v6, %v7598_v63 }
 0x380   :  { %2278 = vrot.lane.b32.xlu1 %v2193_v29, %s6178_s25  ;;  %2276 = vrot.lane.b32.xlu0 %v2192_v23, %s6178_s25  ;;  %v2196_v29 = vmul.f32 %v2158_v59, %v7606_v12  ;;  %v7612_v23 = vld [vmem:[#allocation2 + $0x140] sm:$0xff] }
 0x381   :  { %v2199_v6 = vmul.f32 %v2162_v7, %v7612_v23 }
 0x384   :  { %2282 = vrot.lane.b32.xlu1 %v2195_v51, %s6178_s25  ;;  %2280 = vrot.lane.b32.xlu0 %v2194_v21, %s6178_s25  ;;  %v2198_v51 = vmul.f32 %v2162_v7, %v7614_v10  ;;  %v7620_v21 = vld [vmem:[#allocation2 + $0x158] sm:$0xff] }
 0x385   :  { %v2201_v59 = vmul.f32 %v2166_v50, %v7620_v21 }
 0x388   :  { %2286 = vrot.lane.b32.xlu1 %v2197_v8, %s6178_s25  ;;  %2284 = vrot.lane.b32.xlu0 %v2196_v29, %s6178_s25  ;;  %v2200_v8 = vmul.f32 %v2166_v50, %v7622_v28  ;;  %v7628_v29 = vld [vmem:[#allocation2 + $0x170] sm:$0xff] }
 0x389   :  { %v2203_v7 = vmul.f32 %v2170_v9, %v7628_v29 }
 0x38c   :  { %2290 = vrot.lane.b32.xlu1 %v2199_v6, %s6178_s25  ;;  %2288 = vrot.lane.b32.xlu0 %v2198_v51, %s6178_s25  ;;  %v2202_v6 = vmul.f32 %v2170_v9, %v7630_v24 }
 0x390   :  { %2294 = vrot.lane.b32.xlu1 %v2201_v59, %s6178_s25  ;;  %2292 = vrot.lane.b32.xlu0 %v2200_v8, %s6178_s25 }
 0x394   :  { %2298 = vrot.lane.b32.xlu1 %v2203_v7, %s6178_s25  ;;  %2296 = vrot.lane.b32.xlu0 %v2202_v6, %s6178_s25 }
 0x398   :  { %2369 = vperm.xlu1 %6051, %v6604_v49   ;;  %2365 = vperm.xlu0 %6050, %v6623_v56  }
 0x39c   :  { %2373 = vperm.xlu1 %6051, %v6610_v52   ;;  %2377 = vperm.xlu0 %6050, %v6629_v60  }
 0x3a0   :  { %2381 = vperm.xlu1 %6051, %v6613_v53   ;;  %2385 = vperm.xlu0 %6050, %v6636_v62  }
 0x3a4   :  { %2389 = vperm.xlu1 %6051, %v6618_v55   ;;  %2393 = vperm.xlu0 %6050, %v6641_v0  }
 0x3a8   :  { %6052 = vset.pattern.permute.xlu1 %v11962_v31  ;;  %6053 = vset.pattern.permute.xlu0 %v11962_v31 }
 0x3ca   :  { %v7644_v9 = vpop.permute.xlu0 %2236  ;;  %v7646_v50 = vpop.permute.xlu1 %2238 }
 0x3cb   :  { %12278 = vst [vmem:[#allocation131_spill] sm:$0xff] %v7644_v9  ;;  %12279 = vst [vmem:[#allocation132_spill] sm:$0xff] %v7646_v50 }
 0x3ce   :  { %v7648_v51 = vpop.permute.xlu0 %2240  ;;  %v7650_v59 = vpop.permute.xlu1 %2242 }
 0x3cf   :  { %12280 = vst [vmem:[#allocation133_spill] sm:$0xff] %v7648_v51  ;;  %12281 = vst [vmem:[#allocation134_spill] sm:$0xff] %v7650_v59 }
 0x3d2   :  { %v7652_v8 = vpop.permute.xlu0 %2244  ;;  %v7654_v7 = vpop.permute.xlu1 %2246 }
 0x3d3   :  { %12282 = vst [vmem:[#allocation135_spill] sm:$0xff] %v7652_v8  ;;  %12283 = vst [vmem:[#allocation136_spill] sm:$0xff] %v7654_v7 }
 0x3d6   :  { %v7656_v6 = vpop.permute.xlu0 %2248  ;;  %v7658_v14 = vpop.permute.xlu1 %2250 }
 0x3d7   :  { %12284 = vst [vmem:[#allocation137_spill] sm:$0xff] %v7656_v6  ;;  %12285 = vst [vmem:[#allocation138_spill] sm:$0xff] %v7658_v14 }
 0x3da   :  { %v7660_v41 = vpop.permute.xlu0 %2252  ;;  %v7662_v30 = vpop.permute.xlu1 %2254 }
 0x3db   :  { %12286 = vst [vmem:[#allocation139_spill] sm:$0xff] %v7660_v41  ;;  %12287 = vst [vmem:[#allocation140_spill] sm:$0xff] %v7662_v30 }
 0x3de   :  { %v7666_v50 = vpop.permute.xlu0 %2256  ;;  %v7668_v9 = vpop.permute.xlu1 %2258 }
 0x3df   :  { %12288 = vst [vmem:[#allocation141_spill] sm:$0xff] %v7666_v50  ;;  %12289 = vst [vmem:[#allocation142_spill] sm:$0xff] %v7668_v9 }
 0x3e2   :  { %v7670_v8 = vpop.permute.xlu0 %2260  ;;  %v7672_v7 = vpop.permute.xlu1 %2262 }
 0x3e3   :  { %12290 = vst [vmem:[#allocation143_spill] sm:$0xff] %v7670_v8  ;;  %12291 = vst [vmem:[#allocation144_spill] sm:$0xff] %v7672_v7 }
 0x3e6   :  { %v7674_v6 = vpop.permute.xlu0 %2264  ;;  %v7676_v14 = vpop.permute.xlu1 %2266 }
 0x3e7   :  { %12292 = vst [vmem:[#allocation145_spill] sm:$0xff] %v7674_v6  ;;  %12293 = vst [vmem:[#allocation146_spill] sm:$0xff] %v7676_v14 }
 0x3ea   :  { %v7678_v41 = vpop.permute.xlu0 %2268  ;;  %v7680_v30 = vpop.permute.xlu1 %2270 }
 0x3eb   :  { %12294 = vst [vmem:[#allocation147_spill] sm:$0xff] %v7678_v41  ;;  %12295 = vst [vmem:[#allocation148_spill] sm:$0xff] %v7680_v30 }
 0x3ee   :  { %v7682_v59 = vpop.permute.xlu0 %2272  ;;  %v7684_v51 = vpop.permute.xlu1 %2274 }
 0x3ef   :  { %12296 = vst [vmem:[#allocation149_spill] sm:$0xff] %v7682_v59  ;;  %12297 = vst [vmem:[#allocation150_spill] sm:$0xff] %v7684_v51 }
 0x3f2   :  { %v7686_v31 = vpop.permute.xlu0 %2276  ;;  %v7688_v50 = vpop.permute.xlu1 %2278 }
 0x3f3   :  { %12298 = vst [vmem:[#allocation151_spill] sm:$0xff] %v7686_v31  ;;  %12299 = vst [vmem:[#allocation152_spill] sm:$0xff] %v7688_v50 }
 0x3f6   :  { %v7690_v9 = vpop.permute.xlu0 %2280  ;;  %v7692_v8 = vpop.permute.xlu1 %2282 }
 0x3f7   :  { %12300 = vst [vmem:[#allocation153_spill] sm:$0xff] %v7690_v9  ;;  %12301 = vst [vmem:[#allocation154_spill] sm:$0xff] %v7692_v8  ;;  %v7714_v8 = vld [vmem:[#allocation2 + $0x10] sm:$0x3] }
 0x3fa   :  { %v7694_v7 = vpop.permute.xlu0 %2284  ;;  %v7696_v6 = vpop.permute.xlu1 %2286 }
 0x3fb   :  { %12302 = vst [vmem:[#allocation155_spill] sm:$0xff] %v7694_v7  ;;  %12303 = vst [vmem:[#allocation156_spill] sm:$0xff] %v7696_v6 }
 0x3fe   :  { %v7698_v14 = vpop.permute.xlu0 %2288  ;;  %v7700_v41 = vpop.permute.xlu1 %2290 }
 0x3ff   :  { %12304 = vst [vmem:[#allocation157_spill] sm:$0xff] %v7698_v14  ;;  %12305 = vst [vmem:[#allocation158_spill] sm:$0xff] %v7700_v41 }
 0x402   :  { %v7702_v30 = vpop.permute.xlu0 %2292  ;;  %v7704_v59 = vpop.permute.xlu1 %2294 }
 0x403   :  { %12306 = vst [vmem:[#allocation159_spill] sm:$0xff] %v7702_v30  ;;  %12307 = vst [vmem:[#allocation160_spill] sm:$0xff] %v7704_v59  ;;  %v7722_v59 = vld [vmem:[#allocation2 + $0x28] sm:$0x3] }
 0x406   :  { %v7706_v51 = vpop.permute.xlu0 %2296  ;;  %v7708_v31 = vpop.permute.xlu1 %2298 }
 0x407   :  { %12308 = vst [vmem:[#allocation161_spill] sm:$0xff] %v7706_v51  ;;  %12309 = vst [vmem:[#allocation162_spill] sm:$0xff] %v7708_v31 }
 0x417   :  { %v7710_v50 = vpop.permute.xlu0 %2365  ;;  %v7712_v9 = vpop.permute.xlu1 %2369 }
 0x418   :  { %v2397_v6 = vmul.f32 %v7710_v50, %v7502_v33  ;;  %v2398_v14 = vmul.f32 %v7710_v50, %v7714_v8  ;;  %v2396_v30 = vmul.f32 %v7710_v50, %v7504_v26  ;;  %v2400_v51 = vmul.f32 %v7712_v9, %v7512_v39 }
 0x419   :  { %v2401_v31 = vmul.f32 %v7712_v9, %v7722_v59  ;;  %v2399_v41 = vmul.f32 %v7712_v9, %v7514_v58 }
 0x41a   :  { %v2493_v7 = vrot.slane %v2397_v6, 1  ;;  %v2495_v22 = vrot.slane %v2398_v14, 1  ;;  %v2492_v32 = vrot.slane %v2396_v30, 1  ;;  %v2498_v2 = vrot.slane %v2400_v51, 1 }
 0x41b   :  { %v7730_v5 = vpop.permute.xlu1 %2373  ;;  %v2500_v54 = vrot.slane %v2401_v31, 1  ;;  %v2497_v25 = vrot.slane %v2399_v41, 1  ;;  %v7734_v44 = vpop.permute.xlu0 %2377  ;;  %v7746_v31 = vld [vmem:[#allocation2 + $0x58] sm:$0x3] }
 0x41c   :  { %v2496_v34 = vsel %vm730_vm6, %v2493_v7, %v2495_v22  ;;  %v2494_v48 = vsel %vm730_vm6, %v2492_v32, %v2493_v7  ;;  %v2403_v47 = vmul.f32 %v7730_v5, %v7520_v46  ;;  %v2404_v14 = vmul.f32 %v7730_v5, %v7732_v19  ;;  %12310 = vst [vmem:[#allocation163_spill] sm:$0xff] %v7746_v31 }
 0x41d   :  { %2574 = vrot.lane.b32.xlu0 %v2496_v34, %s6178_s25  ;;  %2572 = vrot.lane.b32.xlu1 %v2494_v48, %s6178_s25  ;;  %v2402_v30 = vmul.f32 %v7730_v5, %v7522_v18  ;;  %v2406_v32 = vmul.f32 %v7734_v44, %v7530_v20  ;;  %v2407_v22 = vmul.f32 %v7734_v44, %v7746_v31  ;;  %v7761_v20 = vld [vmem:[#allocation2 + $0x70] sm:$0x3] }
 0x41e   :  { %v2503_v41 = vrot.slane %v2403_v47, 1  ;;  %v2505_v51 = vrot.slane %v2404_v14, 1  ;;  %v2501_v6 = vsel %vm730_vm6, %v2498_v2, %v2500_v54  ;;  %v2499_v34 = vsel %vm730_vm6, %v2497_v25, %v2498_v2  ;;  %12311 = vst [vmem:[#allocation164_spill] sm:$0xff] %v7761_v20 }
 0x41f   :  { %v7752_v7 = vpop.permute.xlu1 %2381  ;;  %v2502_v48 = vrot.slane %v2402_v30, 1  ;;  %v2405_v35 = vmul.f32 %v7734_v44, %v7532_v27  ;;  %v2508_v14 = vrot.slane %v2406_v32, 1  ;;  %v2510_v40 = vrot.slane %v2407_v22, 1  ;;  %v7765_v54 = vpop.permute.xlu0 %2385 }
 0x420   :  { %v2506_v47 = vsel %vm730_vm6, %v2503_v41, %v2505_v51  ;;  %v2409_v31 = vmul.f32 %v7752_v7, %v7538_v36  ;;  %v2410_v30 = vmul.f32 %v7752_v7, %v7761_v20  ;;  %v7774_v51 = vld [vmem:[#allocation2 + $0x88] sm:$0x3] }
 0x421   :  { %2578 = vrot.lane.b32.xlu0 %v2501_v6, %s6178_s25  ;;  %2576 = vrot.lane.b32.xlu1 %v2499_v34, %s6178_s25  ;;  %v2504_v25 = vsel %vm730_vm6, %v2502_v48, %v2503_v41  ;;  %v2507_v2 = vrot.slane %v2405_v35, 1  ;;  %v2408_v6 = vmul.f32 %v7752_v7, %v7540_v43  ;;  %12312 = vst [vmem:[#allocation165_spill] sm:$0xff] %v7774_v51 }
 0x422   :  { %v2511_v32 = vsel %vm730_vm6, %v2508_v14, %v2510_v40  ;;  %v2513_v22 = vrot.slane %v2409_v31, 1  ;;  %v2412_v34 = vmul.f32 %v7765_v54, %v7546_v3  ;;  %v2413_v35 = vmul.f32 %v7765_v54, %v7774_v51  ;;  %v7788_v40 = vld [vmem:[#allocation2 + $0xa0] sm:$0x3] }
 0x423   :  { %v7781_v41 = vpop.permute.xlu1 %2389  ;;  %v2509_v48 = vsel %vm730_vm6, %v2507_v2, %v2508_v14  ;;  %v2515_v43 = vrot.slane %v2410_v30, 1  ;;  %v2512_v20 = vrot.slane %v2408_v6, 1  ;;  %v7794_v14 = vpop.permute.xlu0 %2393 }
 0x424   :  { %v2518_v31 = vrot.slane %v2412_v34, 1  ;;  %v2520_v3 = vrot.slane %v2413_v35, 1  ;;  %v2416_v51 = vmul.f32 %v7781_v41, %v7788_v40  ;;  %v2414_v6 = vmul.f32 %v7781_v41, %v7556_v38  ;;  %v7803_v35 = vld [vmem:[#allocation2 + $0xb8] sm:$0x3] }
 0x425   :  { %2582 = vrot.lane.b32.xlu0 %v2506_v47, %s6178_s25  ;;  %2580 = vrot.lane.b32.xlu1 %v2504_v25, %s6178_s25  ;;  %v2411_v47 = vmul.f32 %v7765_v54, %v7548_v61  ;;  %v2415_v25 = vmul.f32 %v7781_v41, %v7554_v37  ;;  %v2516_v2 = vsel %vm730_vm6, %v2513_v22, %v2515_v43 }
 0x426   :  { %v2514_v61 = vsel %vm730_vm6, %v2512_v20, %v2513_v22  ;;  %v2525_v34 = vrot.slane %v2416_v51, 1  ;;  %v2522_v20 = vrot.slane %v2414_v6, 1  ;;  %v2419_v22 = vmul.f32 %v7794_v14, %v7803_v35 }
 0x427   :  { %v2517_v30 = vrot.slane %v2411_v47, 1  ;;  %v2523_v37 = vrot.slane %v2415_v25, 1  ;;  %v2417_v38 = vmul.f32 %v7794_v14, %v7564_v42  ;;  %v7814_v47 = vld [vmem:[#allocation2 + $0xd0] sm:$0x3] }
 0x429   :  { %2586 = vrot.lane.b32.xlu0 %v2511_v32, %s6178_s25  ;;  %2584 = vrot.lane.b32.xlu1 %v2509_v48, %s6178_s25  ;;  %v2521_v32 = vsel %vm730_vm6, %v2518_v31, %v2520_v3  ;;  %v2418_v48 = vmul.f32 %v7794_v14, %v7562_v45  ;;  %v2519_v43 = vsel %vm730_vm6, %v2517_v30, %v2518_v31 }
 0x42a   :  { %v2526_v51 = vsel %vm730_vm6, %v2523_v37, %v2525_v34  ;;  %v2421_v45 = vmul.f32 %v7710_v50, %v7570_v13  ;;  %v2422_v31 = vmul.f32 %v7710_v50, %v7814_v47  ;;  %v2420_v3 = vmul.f32 %v7710_v50, %v7572_v15  ;;  %v7826_v34 = vld [vmem:[#allocation2 + $0xe8] sm:$0x3] }
 0x42b   :  { %v2524_v25 = vsel %vm730_vm6, %v2522_v20, %v2523_v37  ;;  %v2528_v42 = vrot.slane %v2418_v48, 1  ;;  %v2424_v13 = vmul.f32 %v7712_v9, %v7578_v57  ;;  %v2425_v50 = vmul.f32 %v7712_v9, %v7826_v34  ;;  %v7838_v48 = vld [vmem:[#allocation2 + $0x100] sm:$0x3] }
 0x42c   :  { %v2533_v30 = vrot.slane %v2421_v45, 1  ;;  %v2535_v6 = vrot.slane %v2422_v31, 1  ;;  %v2423_v37 = vmul.f32 %v7712_v9, %v7580_v11  ;;  %v2426_v11 = vmul.f32 %v7730_v5, %v7588_v16  ;;  %v7850_v9 = vld [vmem:[#allocation2 + $0x118] sm:$0x3] }
 0x42d   :  { %2590 = vrot.lane.b32.xlu0 %v2516_v2, %s6178_s25  ;;  %2588 = vrot.lane.b32.xlu1 %v2514_v61, %s6178_s25  ;;  %v2530_v2 = vrot.slane %v2419_v22, 1  ;;  %v2527_v61 = vrot.slane %v2417_v38, 1  ;;  %v2427_v22 = vmul.f32 %v7730_v5, %v7586_v17  ;;  %v2428_v38 = vmul.f32 %v7730_v5, %v7838_v48 }
 0x42e   :  { %v2536_v20 = vsel %vm730_vm6, %v2533_v30, %v2535_v6  ;;  %v2540_v45 = vrot.slane %v2425_v50, 1  ;;  %v2537_v31 = vrot.slane %v2423_v37, 1  ;;  %v2430_v17 = vmul.f32 %v7734_v44, %v7596_v1  ;;  %v7863_v1 = vld [vmem:[#allocation2 + $0x130] sm:$0x3] }
 0x42f   :  { %v2529_v15 = vsel %vm730_vm6, %v2527_v61, %v2528_v42  ;;  %v2429_v16 = vmul.f32 %v7734_v44, %v7598_v63  ;;  %v2434_v50 = vmul.f32 %v7752_v7, %v7863_v1  ;;  %v7874_v63 = vld [vmem:[#allocation2 + $0x148] sm:$0x3] }
 0x430   :  { %v2548_v6 = vrot.slane %v2430_v17, 1  ;;  %12313 = vst [vmem:[#allocation166_spill] sm:$0xff] %v7874_v63 }
 0x431   :  { %2594 = vrot.lane.b32.xlu0 %v2521_v32, %s6178_s25  ;;  %2592 = vrot.lane.b32.xlu1 %v2519_v43, %s6178_s25  ;;  %v2532_v32 = vrot.slane %v2420_v3, 1  ;;  %v2531_v43 = vsel %vm730_vm6, %v2528_v42, %v2530_v2  ;;  %v2543_v3 = vrot.slane %v2427_v22, 1  ;;  %v2431_v42 = vmul.f32 %v7734_v44, %v7850_v9 }
 0x432   :  { %v2432_v44 = vmul.f32 %v7752_v7, %v7606_v12  ;;  %v2435_v12 = vmul.f32 %v7765_v54, %v7614_v10  ;;  %v2438_v10 = vmul.f32 %v7781_v41, %v7622_v28  ;;  %v2441_v28 = vmul.f32 %v7794_v14, %v7630_v24 }
 0x433   :  { %v2534_v57 = vsel %vm730_vm6, %v2532_v32, %v2533_v30  ;;  %v2542_v30 = vrot.slane %v2426_v11, 1  ;;  %v2550_v32 = vrot.slane %v2431_v42, 1  ;;  %v12316_v24 = vmov 9  }
 0x434   :  { %v2557_v17 = vrot.slane %v2435_v12, 1 }
 0x435   :  { %2598 = vrot.lane.b32.xlu0 %v2526_v51, %s6178_s25  ;;  %2596 = vrot.lane.b32.xlu1 %v2524_v25, %s6178_s25  ;;  %v2538_v51 = vrot.slane %v2424_v13, 1  ;;  %v2545_v25 = vrot.slane %v2428_v38, 1  ;;  %v2433_v13 = vmul.f32 %v7752_v7, %v7604_v4  ;;  %v2551_v37 = vsel %vm730_vm6, %v2548_v6, %v2550_v32  ;;  %v7886_v7 = vld [vmem:[#allocation2 + $0x160] sm:$0x3] }
 0x436   :  { %v2436_v4 = vmul.f32 %v7765_v54, %v7612_v23  ;;  %v2555_v38 = vrot.slane %v2434_v50, 1  ;;  %12314 = vst [vmem:[#allocation167_spill] sm:$0xff] %v7886_v7  ;;  %v2439_v23 = vmul.f32 %v7781_v41, %v7620_v21  ;;  %v2440_v11 = vmul.f32 %v7781_v41, %v7886_v7  ;;  %v7899_v21 = vld [vmem:[#allocation2 + $0x178] sm:$0x3] }
 0x437   :  { %v2541_v2 = vsel %vm730_vm6, %v2538_v51, %v2540_v45  ;;  %v2539_v61 = vsel %vm730_vm6, %v2537_v31, %v2538_v51  ;;  %v2546_v5 = vsel %vm730_vm6, %v2543_v3, %v2545_v25  ;;  %v2552_v51 = vrot.slane %v2432_v44, 1  ;;  %12315 = vst [vmem:[#allocation168_spill] sm:$0xff] %v7899_v21  ;;  %v8158_v7 = vld [vmem:[#allocation2 + $0xf8] sm:$0xff] }
 0x438   :  { %v2558_v45 = vrot.slane %v2436_v4, 1  ;;  %v2563_v42 = vrot.slane %v2439_v23, 1 }
 0x439   :  { %2602 = vrot.lane.b32.xlu0 %v2531_v43, %s6178_s25  ;;  %2600 = vrot.lane.b32.xlu1 %v2529_v15, %s6178_s25  ;;  %v2544_v43 = vsel %vm730_vm6, %v2542_v30, %v2543_v3  ;;  %v2547_v15 = vrot.slane %v2429_v16, 1  ;;  %v2562_v16 = vrot.slane %v2438_v10, 1 }
 0x43a   :  { %v2559_v30 = vsel %vm730_vm6, %v2557_v17, %v2558_v45  ;;  %v12341_v17 = vld [vmem:[#allocation5_spill] sm:$0xff] }
 0x43b   :  { %v2549_v22 = vsel %vm730_vm6, %v2547_v15, %v2548_v6  ;;  %v2564_v32 = vsel %vm730_vm6, %v2562_v16, %v2563_v42 }
 0x43d   :  { %2606 = vrot.lane.b32.xlu0 %v2536_v20, %s6178_s25  ;;  %2604 = vrot.lane.b32.xlu1 %v2534_v57, %s6178_s25  ;;  %v2553_v20 = vrot.slane %v2433_v13, 1  ;;  %v2437_v57 = vmul.f32 %v7765_v54, %v7874_v63  ;;  %v8165_v63 = vld [vmem:[#allocation2 + $0x88] sm:$0x3] }
 0x43e   :  { %12389 = vst [vmem:[#allocation221_spill] sm:$0xff] %v8165_v63 }
 0x43f   :  { %v2560_v31 = vrot.slane %v2437_v57, 1  ;;  %v2556_v3 = vsel %vm730_vm6, %v2553_v20, %v2555_v38  ;;  %v2554_v25 = vsel %vm730_vm6, %v2552_v51, %v2553_v20 }
 0x441   :  { %2610 = vrot.lane.b32.xlu0 %v2541_v2, %s6178_s25  ;;  %2608 = vrot.lane.b32.xlu1 %v2539_v61, %s6178_s25  ;;  %v2561_v54 = vsel %vm730_vm6, %v2558_v45, %v2560_v31  ;;  %v2565_v2 = vrot.slane %v2440_v11, 1  ;;  %v2442_v61 = vmul.f32 %v7794_v14, %v7628_v29  ;;  %v2567_v29 = vrot.slane %v2441_v28, 1 }
 0x443   :  { %v2568_v41 = vrot.slane %v2442_v61, 1  ;;  %v2566_v6 = vsel %vm730_vm6, %v2563_v42, %v2565_v2  ;;  %v7988_v2 = vld [vmem:[#allocation2 + $0xd8] sm:$0xff] }
 0x444   :  { %v556_v61 = vmul.f32 %v7988_v2, %v12341_v17 }
 0x445   :  { %2614 = vrot.lane.b32.xlu0 %v2546_v5, %s6178_s25  ;;  %2612 = vrot.lane.b32.xlu1 %v2544_v43, %s6178_s25  ;;  %v2443_v5 = vmul.f32 %v7794_v14, %v7899_v21  ;;  %v2569_v15 = vsel %vm730_vm6, %v2567_v29, %v2568_v41  ;;  %v12345_v29 = vld [vmem:[#allocation8_spill] sm:$0xff]  ;;  %v8142_v21 = vld [vmem:[#allocation2 + $0x110] sm:$0xff] }
 0x446   :  { %12385 = vst [vmem:[#allocation219_spill] sm:$0xff] %v8142_v21 }
 0x447   :  { %v2570_v13 = vrot.slane %v2443_v5, 1 }
 0x449   :  { %2618 = vrot.lane.b32.xlu0 %v2551_v37, %s6178_s25  ;;  %2616 = vrot.lane.b32.xlu1 %v2549_v22, %s6178_s25  ;;  %v2571_v43 = vsel %vm730_vm6, %v2568_v41, %v2570_v13  ;;  %v12344_v41 = vld [vmem:[#allocation6_spill] sm:$0xff]  ;;  %v8006_v13 = vld [vmem:[#allocation2 + $0x60] sm:$0xff] }
 0x44d   :  { %2622 = vrot.lane.b32.xlu0 %v2556_v3, %s6178_s25  ;;  %2620 = vrot.lane.b32.xlu1 %v2554_v25, %s6178_s25  ;;  %v7980_v25 = vld [vmem:[#allocation2 + $0x18] sm:$0xff] }
 0x44e   :  { %v540_v10 = vmul.f32 %v7980_v25, %v12341_v17 }
 0x451   :  { %2626 = vrot.lane.b32.xlu0 %v2561_v54, %s6178_s25  ;;  %2624 = vrot.lane.b32.xlu1 %v2559_v30, %s6178_s25  ;;  %v7984_v54 = vld [vmem:[#allocation2 + $0x20] sm:$0xff] }
 0x452   :  { %v541_v42 = vmul.f32 %v7984_v54, %v12341_v17  ;;  %v7992_v30 = vld [vmem:[#allocation2 + $0xe0] sm:$0xff] }
 0x453   :  { %v557_v16 = vmul.f32 %v7992_v30, %v12341_v17 }
 0x455   :  { %2630 = vrot.lane.b32.xlu0 %v2566_v6, %s6178_s25  ;;  %2628 = vrot.lane.b32.xlu1 %v2564_v32, %s6178_s25  ;;  %v8001_v6 = vadd.f32 %v541_v42, %v12344_v41  ;;  %v8004_v32 = vadd.f32 %v540_v10, %v12344_v41  ;;  %v8015_v17 = vadd.f32 %v557_v16, %v12344_v41  ;;  %v8020_v42 = vld [vmem:[#allocation2 + $0x68] sm:$0xff]  ;;  %v8032_v16 = vld [vmem:[#allocation2 + $0x150] sm:$0xff] }
 0x456   :  { %v547_v10 = vmul.f32 %v8020_v42, %v12345_v29 }
 0x457   :  { %12347 = vst [vmem:[#allocation8_spill] sm:$0xff] %v8015_v17  ;;  %v8167_v17 = vld [vmem:[#allocation2 + $0x148] sm:$0x3] }
 0x458   :  { %12390 = vst [vmem:[#allocation222_spill] sm:$0xff] %v8167_v17 }
 0x459   :  { %2634 = vrot.lane.b32.xlu0 %v2571_v43, %s6178_s25  ;;  %2632 = vrot.lane.b32.xlu1 %v2569_v15, %s6178_s25  ;;  %v546_v43 = vmul.f32 %v8006_v13, %v12345_v29  ;;  %v8010_v15 = vld [vmem:[#allocation2 + $0x120] sm:$0xff] }
 0x45a   :  { %12346 = vst [vmem:[#allocation6_spill] sm:$0xff] %v8010_v15 }
 0x45d   :  { %2705 = vperm.xlu0 %6053, %v6604_v49   ;;  %2701 = vperm.xlu1 %6052, %v6623_v56  }
 0x461   :  { %2717 = vperm.xlu0 %6053, %v6613_v53   ;;  %2709 = vperm.xlu1 %6052, %v6610_v52  }
 0x465   :  { %2725 = vperm.xlu0 %6053, %v6618_v55   ;;  %2713 = vperm.xlu1 %6052, %v6629_v60  }
 0x469   :  { %6054 = vset.pattern.permute.xlu0 %v12316_v24  ;;  %2721 = vperm.xlu1 %6052, %v6636_v62  }
 0x46a   :  { %427 = vperm.xlu0 %6054, %v6623_v56  }
 0x46d   :  { %2729 = vperm.xlu1 %6052, %v6641_v0  }
 0x46e   :  { %439 = vperm.xlu0 %6054, %v6629_v60  }
 0x471   :  { %6055 = vset.pattern.permute.xlu1 %v12316_v24  ;;  %v562_v24 = vmul.f32 %v8010_v15, %v12345_v29 }
 0x472   :  { %447 = vperm.xlu0 %6054, %v6636_v62  }
 0x476   :  { %455 = vperm.xlu0 %6054, %v6641_v0  }
 0x48f   :  { %v7932_v49 = vpop.permute.xlu0 %2574  ;;  %v7934_v52 = vpop.permute.xlu1 %2572 }
 0x490   :  { %12317 = vst [vmem:[#allocation169_spill] sm:$0xff] %v7932_v49  ;;  %12318 = vst [vmem:[#allocation170_spill] sm:$0xff] %v7934_v52  ;;  %v8071_v49 = vld [vmem:[#allocation2 + $0xc0] sm:$0xff] }
 0x491   :  { %12362 = vst [vmem:[#allocation202_spill] sm:$0xff] %v8071_v49 }
 0x493   :  { %v7936_v53 = vpop.permute.xlu0 %2578  ;;  %v7938_v55 = vpop.permute.xlu1 %2576 }
 0x494   :  { %12319 = vst [vmem:[#allocation171_spill] sm:$0xff] %v7936_v53  ;;  %12320 = vst [vmem:[#allocation172_spill] sm:$0xff] %v7938_v55  ;;  %v8084_v55 = vld [vmem:[#allocation2 + $0xc8] sm:$0xff] }
 0x495   :  { %12366 = vst [vmem:[#allocation206_spill] sm:$0xff] %v8084_v55 }
 0x497   :  { %v7940_v14 = vpop.permute.xlu0 %2582  ;;  %v7942_v56 = vpop.permute.xlu1 %2580 }
 0x498   :  { %12321 = vst [vmem:[#allocation173_spill] sm:$0xff] %v7940_v14  ;;  %12322 = vst [vmem:[#allocation174_spill] sm:$0xff] %v7942_v56 }
 0x49b   :  { %v7944_v50 = vpop.permute.xlu0 %2586  ;;  %v7946_v60 = vpop.permute.xlu1 %2584 }
 0x49c   :  { %12323 = vst [vmem:[#allocation175_spill] sm:$0xff] %v7944_v50  ;;  %12324 = vst [vmem:[#allocation176_spill] sm:$0xff] %v7946_v60  ;;  %v8060_v50 = vld [vmem:[#allocation2 + $0x98] sm:$0xff] }
 0x49f   :  { %v7948_v44 = vpop.permute.xlu0 %2590  ;;  %v7950_v62 = vpop.permute.xlu1 %2588 }
 0x4a0   :  { %12325 = vst [vmem:[#allocation177_spill] sm:$0xff] %v7948_v44  ;;  %12326 = vst [vmem:[#allocation178_spill] sm:$0xff] %v7950_v62 }
 0x4a3   :  { %v7952_v0 = vpop.permute.xlu0 %2594  ;;  %v7954_v37 = vpop.permute.xlu1 %2592 }
 0x4a4   :  { %12327 = vst [vmem:[#allocation179_spill] sm:$0xff] %v7952_v0  ;;  %12328 = vst [vmem:[#allocation180_spill] sm:$0xff] %v7954_v37  ;;  %v8056_v0 = vld [vmem:[#allocation2 + $0x8] sm:$0xff] }
 0x4a5   :  { %12358 = vst [vmem:[#allocation200_spill] sm:$0xff] %v8056_v0 }
 0x4a7   :  { %v7956_v20 = vpop.permute.xlu0 %2598  ;;  %v7958_v4 = vpop.permute.xlu1 %2596 }
 0x4a8   :  { %12329 = vst [vmem:[#allocation181_spill] sm:$0xff] %v7956_v20  ;;  %12330 = vst [vmem:[#allocation182_spill] sm:$0xff] %v7958_v4  ;;  %v8064_v20 = vld [vmem:[#allocation2 + $0x158] sm:$0xff] }
 0x4a9   :  { %12359 = vst [vmem:[#allocation201_spill] sm:$0xff] %v8064_v20 }
 0x4ab   :  { %v7960_v57 = vpop.permute.xlu0 %2602  ;;  %v7962_v22 = vpop.permute.xlu1 %2600 }
 0x4ac   :  { %12331 = vst [vmem:[#allocation183_spill] sm:$0xff] %v7960_v57  ;;  %12332 = vst [vmem:[#allocation184_spill] sm:$0xff] %v7962_v22  ;;  %v8052_v57 = vld [vmem:[#allocation2] sm:$0xff] }
 0x4ad   :  { %12357 = vst [vmem:[#allocation199_spill] sm:$0xff] %v8052_v57 }
 0x4af   :  { %v7964_v38 = vpop.permute.xlu0 %2606  ;;  %v7966_v51 = vpop.permute.xlu1 %2604 }
 0x4b0   :  { %12333 = vst [vmem:[#allocation185_spill] sm:$0xff] %v7964_v38  ;;  %12334 = vst [vmem:[#allocation186_spill] sm:$0xff] %v7966_v51 }
 0x4b3   :  { %v7968_v12 = vpop.permute.xlu0 %2610  ;;  %v7970_v45 = vpop.permute.xlu1 %2608 }
 0x4b4   :  { %12335 = vst [vmem:[#allocation187_spill] sm:$0xff] %v7968_v12  ;;  %12336 = vst [vmem:[#allocation188_spill] sm:$0xff] %v7970_v45  ;;  %v8038_v45 = vld [vmem:[#allocation2 + $0xd0] sm:$0x3]  ;;  %v12354_v12 = vld [vmem:[#allocation12_spill] sm:$0xff] }
 0x4b5   :  { %12353 = vst [vmem:[#allocation197_spill] sm:$0xff] %v8038_v45  ;;  %v634_v37 = vmul.f32 %v8052_v57, %v12354_v12  ;;  %v635_v60 = vmul.f32 %v8056_v0, %v12354_v12  ;;  %v658_v52 = vmul.f32 %v8071_v49, %v12354_v12 }
 0x4b7   :  { %v7972_v31 = vpop.permute.xlu0 %2614  ;;  %v7974_v23 = vpop.permute.xlu1 %2612 }
 0x4b8   :  { %12337 = vst [vmem:[#allocation189_spill] sm:$0xff] %v7972_v31  ;;  %12338 = vst [vmem:[#allocation190_spill] sm:$0xff] %v7974_v23  ;;  %v12350_v23 = vld [vmem:[#allocation10_spill] sm:$0xff] }
 0x4b9   :  { %12351 = vst [vmem:[#allocation10_spill] sm:$0xff] %v8032_v16  ;;  %v551_v4 = vmul.f32 %v8060_v50, %v12350_v23 }
 0x4bb   :  { %v7976_v11 = vpop.permute.xlu0 %2618  ;;  %v7978_v3 = vpop.permute.xlu1 %2616 }
 0x4bc   :  { %12339 = vst [vmem:[#allocation191_spill] sm:$0xff] %v7976_v11  ;;  %12340 = vst [vmem:[#allocation192_spill] sm:$0xff] %v7978_v3  ;;  %v8028_v11 = vld [vmem:[#allocation2 + $0x90] sm:$0xff] }
 0x4bd   :  { %v550_v31 = vmul.f32 %v8028_v11, %v12350_v23 }
 0x4bf   :  { %v7996_v5 = vpop.permute.xlu0 %2622  ;;  %v7998_v28 = vpop.permute.xlu1 %2620 }
 0x4c0   :  { %12342 = vst [vmem:[#allocation5_spill] sm:$0xff] %v7996_v5  ;;  %12343 = vst [vmem:[#allocation193_spill] sm:$0xff] %v7998_v28  ;;  %v8018_v28 = vadd.f32 %v556_v61, %v12344_v41  ;;  %v8024_v5 = vld [vmem:[#allocation2 + $0x128] sm:$0xff]  ;;  %v566_v61 = vmul.f32 %v8032_v16, %v12350_v23  ;;  %v8036_v41 = vld [vmem:[#allocation2 + $0x10] sm:$0x3] }
 0x4c1   :  { %12349 = vst [vmem:[#allocation195_spill] sm:$0xff] %v8024_v5  ;;  %v563_v3 = vmul.f32 %v8024_v5, %v12345_v29  ;;  %12352 = vst [vmem:[#allocation196_spill] sm:$0xff] %v8036_v41  ;;  %v8042_v51 = vmul.f32 %v12354_v12, %v8036_v41  ;;  %v8046_v29 = vmul.f32 %v12354_v12, %v8038_v45 }
 0x4c2   :  { %12348 = vst [vmem:[#allocation194_spill] sm:$0xff] %v8018_v28  ;;  %v771_v28 = vrot.slane %v658_v52, 1 }
 0x4c3   :  { %v8048_v38 = vpop.permute.xlu0 %2626  ;;  %v8050_v22 = vpop.permute.xlu1 %2624 }
 0x4c4   :  { %12355 = vst [vmem:[#allocation12_spill] sm:$0xff] %v8048_v38  ;;  %12356 = vst [vmem:[#allocation198_spill] sm:$0xff] %v8050_v22  ;;  %v567_v22 = vmul.f32 %v8064_v20, %v12350_v23  ;;  %v12360_v38 = vld [vmem:[#allocation9_spill] sm:$0xff]  ;;  %v659_v23 = vmul.f32 %v8084_v55, %v12354_v12  ;;  %v774_v12 = vrot.slane %v8046_v29, 1  ;;  %v8104_v20 = vld [vmem:[#allocation2 + $0x118] sm:$0x3] }
 0x4c5   :  { %v8069_v62 = vadd.f32 %v547_v10, %v12360_v38  ;;  %v8076_v44 = vadd.f32 %v546_v43, %v12360_v38  ;;  %v8079_v56 = vadd.f32 %v563_v3, %v12360_v38  ;;  %v8082_v14 = vadd.f32 %v562_v24, %v12360_v38  ;;  %v12367_v10 = vld [vmem:[#allocation11_spill] sm:$0xff]  ;;  %12373 = vst [vmem:[#allocation211_spill] sm:$0xff] %v8104_v20 }
 0x4c6   :  { %v8089_v53 = vadd.f32 %v551_v4, %v12367_v10  ;;  %v8092_v16 = vadd.f32 %v550_v31, %v12367_v10  ;;  %v8095_v43 = vadd.f32 %v567_v22, %v12367_v10  ;;  %v8098_v3 = vadd.f32 %v566_v61, %v12367_v10  ;;  %v12374_v4 = vld [vmem:[#allocation13_spill] sm:$0xff] }
 0x4c7   :  { %12361 = vst [vmem:[#allocation9_spill] sm:$0xff] %v8069_v62  ;;  %12363 = vst [vmem:[#allocation203_spill] sm:$0xff] %v8076_v44  ;;  %v731_v38 = vrot.slane %v634_v37, 1  ;;  %v732_v24 = vrot.slane %v635_v60, 1  ;;  %v8112_v61 = vld [vmem:[#allocation2 + $0x50] sm:$0xff]  ;;  %v669_v37 = vmul.f32 %v12374_v4, %v8104_v20  ;;  %v8126_v10 = vpop.permute.xlu0 %2630  ;;  %v12397_v62 = vld [vmem:[#allocation7_spill] sm:$0xff] }
 0x4c8   :  { %12364 = vst [vmem:[#allocation204_spill] sm:$0xff] %v8079_v56  ;;  %12365 = vst [vmem:[#allocation205_spill] sm:$0xff] %v8082_v14  ;;  %v8100_v56 = vld [vmem:[#allocation2 + $0x58] sm:$0x3]  ;;  %v734_v14 = vrot.slane %v8042_v51, 1  ;;  %v644_v60 = vmul.f32 %v8112_v61, %v12374_v4 }
 0x4c9   :  { %12368 = vst [vmem:[#allocation11_spill] sm:$0xff] %v8089_v53  ;;  %12369 = vst [vmem:[#allocation207_spill] sm:$0xff] %v8092_v16  ;;  %v645_v31 = vmul.f32 %v12374_v4, %v8100_v56  ;;  %v8108_v16 = vld [vmem:[#allocation2 + $0x48] sm:$0xff]  ;;  %v12377_v51 = vld [vmem:[#allocation14_spill] sm:$0xff]  ;;  %v8163_v45 = vsel %vm730_vm6, %v731_v38, %v732_v24 }
 0x4ca   :  { %12370 = vst [vmem:[#allocation208_spill] sm:$0xff] %v8095_v43  ;;  %12371 = vst [vmem:[#allocation209_spill] sm:$0xff] %v8098_v3  ;;  %v643_v22 = vmul.f32 %v8108_v16, %v12374_v4  ;;  %v8120_v29 = vmul.f32 %v8052_v57, %v12377_v51  ;;  %v8124_v52 = vmul.f32 %v8056_v0, %v12377_v51  ;;  %v8128_v3 = vpop.permute.xlu1 %2628  ;;  %v772_v43 = vrot.slane %v659_v23, 1  ;;  %v8138_v53 = vld [vmem:[#allocation2 + $0x108] sm:$0xff]  ;;  %v12386_v23 = vld [vmem:[#allocation15_spill] sm:$0xff] }
 0x4cb   :  { %12372 = vst [vmem:[#allocation210_spill] sm:$0xff] %v8100_v56  ;;  %12375 = vst [vmem:[#allocation13_spill] sm:$0xff] %v8108_v16  ;;  %v8132_v56 = vmul.f32 %v8071_v49, %v12377_v51  ;;  %v8136_v20 = vmul.f32 %v8084_v55, %v12377_v51  ;;  %v747_v49 = vrot.slane %v644_v60, 1  ;;  %v749_v41 = vrot.slane %v645_v31, 1  ;;  %v12394_v38 = vld [vmem:[#allocation16_spill] sm:$0xff] }
 0x4cc   :  { %12376 = vst [vmem:[#allocation212_spill] sm:$0xff] %v8112_v61  ;;  %12378 = vst [vmem:[#allocation14_spill] sm:$0xff] %v8120_v29  ;;  %v667_v29 = vmul.f32 %v8138_v53, %v12374_v4  ;;  %v746_v55 = vrot.slane %v643_v22, 1  ;;  %v8170_v0 = vsel %vm730_vm6, %v732_v24, %v734_v14  ;;  %v8176_v57 = vsel %vm730_vm6, %v772_v43, %v774_v12  ;;  %v8198_v12 = vpop.permute.xlu0 %2634 }
 0x4cd   :  { %12379 = vst [vmem:[#allocation213_spill] sm:$0xff] %v8124_v52  ;;  %12380 = vst [vmem:[#allocation214_spill] sm:$0xff] %v8126_v10  ;;  %v668_v10 = vmul.f32 %v8142_v21, %v12374_v4  ;;  %v559_v4 = vmul.f32 %v8158_v7, %v12386_v23  ;;  %v8184_v31 = vmul.f32 %v12394_v38, %v8167_v17 }
 0x4ce   :  { %12381 = vst [vmem:[#allocation215_spill] sm:$0xff] %v8128_v3  ;;  %12382 = vst [vmem:[#allocation216_spill] sm:$0xff] %v8132_v56  ;;  %v8146_v3 = vld [vmem:[#allocation2 + $0x30] sm:$0xff]  ;;  %v8150_v56 = vld [vmem:[#allocation2 + $0x38] sm:$0xff]  ;;  %v786_v22 = vrot.slane %v667_v29, 1 }
 0x4cf   :  { %12383 = vst [vmem:[#allocation217_spill] sm:$0xff] %v8136_v20  ;;  %12384 = vst [vmem:[#allocation218_spill] sm:$0xff] %v8138_v53  ;;  %v542_v52 = vmul.f32 %v8146_v3, %v12386_v23  ;;  %v543_v51 = vmul.f32 %v8150_v56, %v12386_v23  ;;  %v8154_v20 = vld [vmem:[#allocation2 + $0xf0] sm:$0xff]  ;;  %v787_v60 = vrot.slane %v668_v10, 1 }
 0x4d0   :  { %12387 = vst [vmem:[#allocation15_spill] sm:$0xff] %v8154_v20  ;;  %v558_v44 = vmul.f32 %v8154_v20, %v12386_v23  ;;  %12388 = vst [vmem:[#allocation220_spill] sm:$0xff] %v8163_v45  ;;  %v8173_v20 = vsel %vm730_vm6, %v771_v28, %v772_v43  ;;  %v789_v23 = vrot.slane %v669_v37, 1  ;;  %v8180_v45 = vmul.f32 %v12394_v38, %v8165_v63  ;;  %v8200_v37 = vpop.permute.xlu1 %2632  ;;  %v12435_v63 = vld [vmem:[#allocation163_spill] sm:$0xff] }
 0x4d1   :  { %12391 = vst [vmem:[#allocation223_spill] sm:$0xff] %v8170_v0  ;;  %12392 = vst [vmem:[#allocation224_spill] sm:$0xff] %v8173_v20  ;;  %v8187_v14 = vadd.f32 %v543_v51, %v12397_v62  ;;  %v8190_v28 = vadd.f32 %v542_v52, %v12397_v62  ;;  %v8193_v43 = vadd.f32 %v559_v4, %v12397_v62  ;;  %v8210_v52 = vld [vmem:[#allocation2 + $0xb8] sm:$0x3] }
 0x4d2   :  { %12393 = vst [vmem:[#allocation225_spill] sm:$0xff] %v8176_v57  ;;  %12395 = vst [vmem:[#allocation16_spill] sm:$0xff] %v8180_v45  ;;  %v8196_v24 = vadd.f32 %v558_v44, %v12397_v62  ;;  %v12402_v57 = vld [vmem:[#allocation17_spill] sm:$0xff]  ;;  %v8212_v51 = vld [vmem:[#allocation2 + $0x178] sm:$0x3]  ;;  %v8215_v4 = vsel %vm730_vm6, %v746_v55, %v747_v49  ;;  %v8218_v44 = vsel %vm730_vm6, %v747_v49, %v749_v41 }
 0x4d3   :  { %12396 = vst [vmem:[#allocation226_spill] sm:$0xff] %v8184_v31  ;;  %12398 = vst [vmem:[#allocation7_spill] sm:$0xff] %v8193_v43  ;;  %v8204_v29 = vmul.f32 %v8108_v16, %v12402_v57  ;;  %v8208_v10 = vmul.f32 %v8112_v61, %v12402_v57  ;;  %v8222_v62 = vmul.f32 %v8138_v53, %v12402_v57  ;;  %v8242_v41 = vld [vmem:[#allocation2 + $0x78] sm:$0xff]  ;;  %v6115_v61 = vld [vmem:[#allocation2 + $0xc0] sm:$0xff] }
 0x4d4   :  { %12399 = vst [vmem:[#allocation227_spill] sm:$0xff] %v8196_v24  ;;  %12400 = vst [vmem:[#allocation228_spill] sm:$0xff] %v8198_v12  ;;  %v12411_v12 = vld [vmem:[#allocation18_spill] sm:$0xff]  ;;  %v8237_v55 = vsel %vm730_vm6, %v786_v22, %v787_v60  ;;  %v8240_v49 = vsel %vm730_vm6, %v787_v60, %v789_v23  ;;  %v8264_v60 = vld [vmem:[#allocation2 + $0x140] sm:$0xff] }
 0x4d5   :  { %12401 = vst [vmem:[#allocation229_spill] sm:$0xff] %v8200_v37  ;;  %12403 = vst [vmem:[#allocation17_spill] sm:$0xff] %v8204_v29  ;;  %v8226_v37 = vmul.f32 %v8142_v21, %v12402_v57  ;;  %v8230_v20 = vmul.f32 %v12411_v12, %v8210_v52  ;;  %v8234_v29 = vmul.f32 %v12411_v12, %v8212_v51  ;;  %v8258_v22 = vld [vmem:[#allocation2 + $0x138] sm:$0xff] }
 0x4d6   :  { %12404 = vst [vmem:[#allocation230_spill] sm:$0xff] %v8208_v10  ;;  %12405 = vst [vmem:[#allocation231_spill] sm:$0xff] %v8210_v52  ;;  %v8246_v57 = vmul.f32 %v8242_v41, %v12394_v38  ;;  %v8262_v23 = vmul.f32 %v8258_v22, %v12394_v38  ;;  %v8271_v10 = vld [vmem:[#allocation2 + $0xa8] sm:$0xff] }
 0x4d7   :  { %12406 = vst [vmem:[#allocation232_spill] sm:$0xff] %v8212_v51  ;;  %12407 = vst [vmem:[#allocation233_spill] sm:$0xff] %v8215_v4  ;;  %v8275_v0 = vmul.f32 %v8271_v10, %v12411_v12 }
 0x4d8   :  { %12408 = vst [vmem:[#allocation234_spill] sm:$0xff] %v8218_v44  ;;  %12409 = vst [vmem:[#allocation235_spill] sm:$0xff] %v8222_v62 }
 0x4d9   :  { %12410 = vst [vmem:[#allocation236_spill] sm:$0xff] %v8226_v37  ;;  %12412 = vst [vmem:[#allocation237_spill] sm:$0xff] %v8230_v20  ;;  %v8248_v37 = vld [vmem:[#allocation2 + $0x80] sm:$0xff] }
 0x4da   :  { %12413 = vst [vmem:[#allocation238_spill] sm:$0xff] %v8234_v29  ;;  %12414 = vst [vmem:[#allocation239_spill] sm:$0xff] %v8237_v55  ;;  %v8252_v62 = vmul.f32 %v8248_v37, %v12394_v38 }
 0x4db   :  { %12415 = vst [vmem:[#allocation240_spill] sm:$0xff] %v8240_v49  ;;  %12416 = vst [vmem:[#allocation241_spill] sm:$0xff] %v8242_v41  ;;  %v8268_v49 = vmul.f32 %v8264_v60, %v12394_v38 }
 0x4dc   :  { %12417 = vst [vmem:[#allocation242_spill] sm:$0xff] %v8246_v57  ;;  %12418 = vst [vmem:[#allocation243_spill] sm:$0xff] %v8248_v37  ;;  %v8254_v4 = vpop.permute.xlu0 %2705  ;;  %v8256_v44 = vpop.permute.xlu1 %2701 }
 0x4dd   :  { %12419 = vst [vmem:[#allocation244_spill] sm:$0xff] %v8252_v62  ;;  %12420 = vst [vmem:[#allocation245_spill] sm:$0xff] %v8258_v22  ;;  %v2733_v29 = vmul.f32 %v8256_v44, %v7502_v33  ;;  %v2734_v20 = vmul.f32 %v8256_v44, %v7714_v8  ;;  %v2736_v38 = vmul.f32 %v8254_v4, %v7512_v39  ;;  %v8293_v33 = vld [vmem:[#allocation2 + $0xb0] sm:$0xff]  ;;  %v12444_v62 = vld [vmem:[#allocation22_spill] sm:$0xff] }
 0x4de   :  { %12421 = vst [vmem:[#allocation246_spill] sm:$0xff] %v8262_v23  ;;  %12422 = vst [vmem:[#allocation247_spill] sm:$0xff] %v8264_v60  ;;  %v2732_v23 = vmul.f32 %v8256_v44, %v7504_v26  ;;  %v2737_v45 = vmul.f32 %v8254_v4, %v7722_v59  ;;  %v8297_v8 = vmul.f32 %v8293_v33, %v12411_v12 }
 0x4df   :  { %12423 = vst [vmem:[#allocation248_spill] sm:$0xff] %v8268_v49  ;;  %12424 = vst [vmem:[#allocation249_spill] sm:$0xff] %v8271_v10  ;;  %v12426_v49 = vld [vmem:[#allocation19_spill] sm:$0xff]  ;;  %v2829_v39 = vrot.slane %v2733_v29, 2  ;;  %v2831_v24 = vrot.slane %v2734_v20, 2 }
 0x4e0   :  { %12425 = vst [vmem:[#allocation250_spill] sm:$0xff] %v8275_v0  ;;  %v8287_v55 = vmul.f32 %v8242_v41, %v12426_v49  ;;  %v2735_v0 = vmul.f32 %v8254_v4, %v7514_v58  ;;  %12428 = vst [vmem:[#allocation251_spill] sm:$0xff] %v8293_v33  ;;  %v8301_v26 = vmul.f32 %v8248_v37, %v12426_v49  ;;  %v2828_v43 = vrot.slane %v2732_v23, 2  ;;  %v8307_v59 = vpop.permute.xlu1 %2709  ;;  %v8319_v23 = vld [vmem:[#allocation2 + $0x28] sm:$0x3] }
 0x4e1   :  { %12429 = vst [vmem:[#allocation252_spill] sm:$0xff] %v8297_v8  ;;  %v2834_v58 = vrot.slane %v2736_v38, 2  ;;  %v2836_v51 = vrot.slane %v2737_v45, 2  ;;  %v2832_v17 = vsel %vm1003_vm7, %v2829_v39, %v2831_v24  ;;  %v2739_v12 = vmul.f32 %v8307_v59, %v7520_v46 }
 0x4e2   :  { %12427 = vst [vmem:[#allocation19_spill] sm:$0xff] %v8287_v55  ;;  %12430 = vst [vmem:[#allocation253_spill] sm:$0xff] %v8301_v26  ;;  %v8305_v55 = vmul.f32 %v8258_v22, %v12426_v49  ;;  %v2833_v52 = vrot.slane %v2735_v0, 2  ;;  %v2830_v8 = vsel %vm1003_vm7, %v2828_v43, %v2829_v39  ;;  %v2740_v20 = vmul.f32 %v8307_v59, %v7732_v19  ;;  %v8323_v0 = vld [vmem:[#allocation2 + $0xe8] sm:$0x3]  ;;  %v12436_v19 = vld [vmem:[#allocation21_spill] sm:$0xff] }
 0x4e3   :  { %v8317_v29 = vmul.f32 %v8264_v60, %v12426_v49  ;;  %2910 = vrot.lane.b32.xlu1 %v2832_v17, %s6178_s25  ;;  %2908 = vrot.lane.b32.xlu0 %v2830_v8, %s6178_s25  ;;  %v2738_v46 = vmul.f32 %v8307_v59, %v7522_v18  ;;  %v2837_v8 = vsel %vm1003_vm7, %v2834_v58, %v2836_v51  ;;  %v2839_v26 = vrot.slane %v2739_v12, 2  ;;  %v12434_v60 = vld [vmem:[#allocation129_spill] sm:$0xff] }
 0x4e4   :  { %12431 = vst [vmem:[#allocation254_spill] sm:$0xff] %v8305_v55  ;;  %v12433_v55 = vld [vmem:[#allocation20_spill] sm:$0xff]  ;;  %v8346_v18 = vpop.permute.xlu1 %2713  ;;  %v2835_v39 = vsel %vm1003_vm7, %v2833_v52, %v2834_v58  ;;  %v2841_v31 = vrot.slane %v2740_v20, 2  ;;  %v8364_v12 = vmul.f32 %v8271_v10, %v12436_v19  ;;  %v12447_v10 = vld [vmem:[#allocation165_spill] sm:$0xff] }
 0x4e5   :  { %12432 = vst [vmem:[#allocation255_spill] sm:$0xff] %v8317_v29  ;;  %v911_v45 = vmul.f32 %v7984_v54, %v12433_v55  ;;  %v912_v43 = vmul.f32 %v12433_v55, %v8319_v23  ;;  %v910_v24 = vmul.f32 %v7980_v25, %v12433_v55  ;;  %v8336_v49 = vmul.f32 %v7992_v30, %v12433_v55  ;;  %v8351_v29 = vpop.permute.xlu0 %2717  ;;  %v12443_v58 = vld [vmem:[#allocation164_spill] sm:$0xff] }
 0x4e6   :  { %v8340_v17 = vmul.f32 %v12433_v55, %v8323_v0  ;;  %v8344_v38 = vmul.f32 %v7988_v2, %v12433_v55  ;;  %v2742_v22 = vmul.f32 %v8346_v18, %v12434_v60  ;;  %v2743_v37 = vmul.f32 %v8346_v18, %v12435_v63  ;;  %12437 = vst [vmem:[#allocation20_spill] sm:$0xff] %v8364_v12  ;;  %v8388_v12 = vld [vmem:[#allocation2 + $0x70] sm:$0x3] }
 0x4e7   :  { %v1010_v55 = vrot.slane %v911_v45, 2  ;;  %2914 = vrot.lane.b32.xlu1 %v2837_v8, %s6178_s25  ;;  %2912 = vrot.lane.b32.xlu0 %v2835_v39, %s6178_s25  ;;  %v2838_v51 = vrot.slane %v2738_v46, 2  ;;  %v2741_v52 = vmul.f32 %v8346_v18, %v7532_v27  ;;  %v1012_v20 = vrot.slane %v912_v43, 2  ;;  %v8371_v45 = vld [vmem:[#allocation2 + $0x168] sm:$0xff]  ;;  %v8377_v27 = vld [vmem:[#allocation2 + $0x170] sm:$0xff] }
 0x4e8   :  { %v1009_v60 = vrot.slane %v910_v24, 2  ;;  %v1050_v57 = vrot.slane %v8336_v49, 2  ;;  %v8369_v63 = vmul.f32 %v8293_v33, %v12436_v19  ;;  %12439 = vst [vmem:[#allocation163_spill] sm:$0xff] %v8371_v45  ;;  %v8375_v46 = vmul.f32 %v8371_v45, %v12436_v19  ;;  %12441 = vst [vmem:[#allocation256_spill] sm:$0xff] %v8377_v27  ;;  %v8392_v45 = vpop.permute.xlu1 %2721 }
 0x4e9   :  { %v8381_v8 = vmul.f32 %v8377_v27, %v12436_v19  ;;  %v2745_v43 = vmul.f32 %v8351_v29, %v7538_v36  ;;  %v2842_v24 = vsel %vm1003_vm7, %v2839_v26, %v2841_v31  ;;  %v2844_v49 = vrot.slane %v2742_v22, 2  ;;  %v12445_v36 = vld [vmem:[#allocation130_spill] sm:$0xff] }
 0x4ea   :  { %12438 = vst [vmem:[#allocation129_spill] sm:$0xff] %v8369_v63  ;;  %12440 = vst [vmem:[#allocation21_spill] sm:$0xff] %v8375_v46  ;;  %v2846_v39 = vrot.slane %v2743_v37, 2  ;;  %v2746_v63 = vmul.f32 %v8351_v29, %v12443_v58  ;;  %v920_v46 = vmul.f32 %v8020_v42, %v12444_v62  ;;  %v2840_v19 = vsel %vm1003_vm7, %v2838_v51, %v2839_v26 }
 0x4eb   :  { %12442 = vst [vmem:[#allocation257_spill] sm:$0xff] %v8381_v8  ;;  %2918 = vrot.lane.b32.xlu1 %v2842_v24, %s6178_s25  ;;  %v2843_v8 = vrot.slane %v2741_v52, 2  ;;  %v2744_v31 = vmul.f32 %v8351_v29, %v12445_v36  ;;  %v8399_v37 = vsel %vm1003_vm7, %v1010_v55, %v1012_v20  ;;  %v8402_v22 = vsel %vm1003_vm7, %v1009_v60, %v1010_v55  ;;  %v8415_v24 = vpop.permute.xlu0 %2725  ;;  %v6108_v36 = vld [vmem:[#allocation2 + $0x80] sm:$0xff] }
 0x4ec   :  { %v921_v58 = vmul.f32 %v12444_v62, %v8388_v12  ;;  %v919_v27 = vmul.f32 %v8006_v13, %v12444_v62  ;;  %2916 = vrot.lane.b32.xlu0 %v2840_v19, %s6178_s25  ;;  %v1052_v26 = vrot.slane %v8340_v17, 2  ;;  %v1049_v51 = vrot.slane %v8344_v38, 2  ;;  %v8421_v17 = vld [vmem:[#allocation2 + $0x130] sm:$0x3] }
 0x4ed   :  { %v8413_v52 = vmul.f32 %v8024_v5, %v12444_v62  ;;  %v2849_v20 = vrot.slane %v2745_v43, 2  ;;  %v2847_v55 = vsel %vm1003_vm7, %v2844_v49, %v2846_v39  ;;  %v2851_v60 = vrot.slane %v2746_v63, 2  ;;  %12448 = vst [vmem:[#allocation22_spill] sm:$0xff] %v8421_v17  ;;  %v6109_v43 = vld [vmem:[#allocation2 + $0x78] sm:$0xff] }
 0x4ee   :  { %v2748_v33 = vmul.f32 %v6108_v36, %v8392_v45  ;;  %v2749_v19 = vmul.f32 %v8392_v45, %v12447_v10  ;;  %v1025_v41 = vrot.slane %v920_v46, 2  ;;  %v2845_v38 = vsel %vm1003_vm7, %v2843_v8, %v2844_v49  ;;  %v12451_v46 = vld [vmem:[#allocation24_spill] sm:$0xff] }
 0x4ef   :  { %12446 = vst [vmem:[#allocation164_spill] sm:$0xff] %v8413_v52  ;;  %2922 = vrot.lane.b32.xlu1 %v2847_v55, %s6178_s25  ;;  %v2848_v5 = vrot.slane %v2744_v31, 2  ;;  %v2747_v21 = vmul.f32 %v6109_v43, %v8392_v45  ;;  %v1027_v53 = vrot.slane %v921_v58, 2  ;;  %v1024_v39 = vrot.slane %v919_v27, 2  ;;  %v6110_v27 = vld [vmem:[#allocation2 + $0x98] sm:$0xff]  ;;  %v6113_v52 = vld [vmem:[#allocation2 + $0xa8] sm:$0xff] }
 0x4f0   :  { %v8428_v63 = vmul.f32 %v12444_v62, %v8421_v17  ;;  %v8432_v10 = vmul.f32 %v8010_v15, %v12444_v62  ;;  %2920 = vrot.lane.b32.xlu0 %v2845_v38, %s6178_s25  ;;  %v638_v55 = vmul.f32 %v7984_v54, %v12451_v46  ;;  %v8438_v8 = vsel %vm1003_vm7, %v1050_v57, %v1052_v26  ;;  %v8449_v54 = vpop.permute.xlu1 %2729 }
 0x4f1   :  { %v8441_v49 = vsel %vm1003_vm7, %v1049_v51, %v1050_v57  ;;  %v2751_v31 = vmul.f32 %v6110_v27, %v8415_v24  ;;  %v2852_v58 = vsel %vm1003_vm7, %v2849_v20, %v2851_v60  ;;  %v2854_v36 = vrot.slane %v2748_v33, 2  ;;  %v6111_v51 = vld [vmem:[#allocation2 + $0x90] sm:$0xff] }
 0x4f2   :  { %12449 = vst [vmem:[#allocation130_spill] sm:$0xff] %v8428_v63  ;;  %12450 = vst [vmem:[#allocation165_spill] sm:$0xff] %v8432_v10  ;;  %v2856_v43 = vrot.slane %v2749_v19, 2  ;;  %v2752_v62 = vmul.f32 %v8415_v24, %v7788_v40  ;;  %v639_v38 = vmul.f32 %v12451_v46, %v8319_v23  ;;  %v2850_v57 = vsel %vm1003_vm7, %v2848_v5, %v2849_v20  ;;  %v8462_v23 = vld [vmem:[#allocation2 + $0xa0] sm:$0x3]  ;;  %v6112_v10 = vld [vmem:[#allocation2 + $0xb0] sm:$0xff] }
 0x4f3   :  { %12452 = vst [vmem:[#allocation24_spill] sm:$0xff] %v8441_v49  ;;  %2926 = vrot.lane.b32.xlu1 %v2852_v58, %s6178_s25  ;;  %v2853_v26 = vrot.slane %v2747_v21, 2  ;;  %v2750_v27 = vmul.f32 %v6111_v51, %v8415_v24  ;;  %v637_v33 = vmul.f32 %v7980_v25, %v12451_v46  ;;  %v8457_v60 = vsel %vm1003_vm7, %v1025_v41, %v1027_v53  ;;  %v12453_v21 = vld [vmem:[#allocation23_spill] sm:$0xff] }
 0x4f4   :  { %v8460_v40 = vsel %vm1003_vm7, %v1024_v39, %v1025_v41  ;;  %2924 = vrot.lane.b32.xlu0 %v2850_v57, %s6178_s25  ;;  %v737_v5 = vrot.slane %v638_v55, 1  ;;  %v926_v20 = vmul.f32 %v8060_v50, %v12453_v21  ;;  %v927_v58 = vmul.f32 %v12453_v21, %v8462_v23 }
 0x4f5   :  { %v2859_v25 = vrot.slane %v2751_v31, 2  ;;  %v2857_v53 = vsel %vm1003_vm7, %v2854_v36, %v2856_v43  ;;  %v2861_v51 = vrot.slane %v2752_v62, 2  ;;  %v2754_v41 = vmul.f32 %v6112_v10, %v8449_v54  ;;  %v8477_v31 = vld [vmem:[#allocation2 + $0x40] sm:$0x3]  ;;  %v12454_v43 = vld [vmem:[#allocation25_spill] sm:$0xff] }
 0x4f6   :  { %v2755_v39 = vmul.f32 %v8449_v54, %v7803_v35  ;;  %v739_v19 = vrot.slane %v639_v38, 1  ;;  %v2855_v55 = vsel %vm1003_vm7, %v2853_v26, %v2854_v36  ;;  %v2858_v57 = vrot.slane %v2750_v27, 2  ;;  %v6114_v38 = vld [vmem:[#allocation2 + $0xc8] sm:$0xff] }
 0x4f7   :  { %2930 = vrot.lane.b32.xlu1 %v2857_v53, %s6178_s25  ;;  %v2753_v63 = vmul.f32 %v6113_v52, %v8449_v54  ;;  %v736_v49 = vrot.slane %v637_v33, 1  ;;  %v8481_v62 = vmul.f32 %v8150_v56, %v12454_v43  ;;  %v925_v10 = vmul.f32 %v8028_v11, %v12453_v21 }
 0x4f8   :  { %v8487_v35 = vmul.f32 %v7992_v30, %v12451_v46  ;;  %2928 = vrot.lane.b32.xlu0 %v2855_v55, %s6178_s25  ;;  %v642_v36 = vmul.f32 %v12454_v43, %v8477_v31  ;;  %v1035_v52 = vrot.slane %v926_v20, 2  ;;  %v2757_v26 = vmul.f32 %v6114_v38, %v8256_v44 }
 0x4f9   :  { %v2758_v27 = vmul.f32 %v8256_v44, %v7814_v47  ;;  %v1037_v33 = vrot.slane %v927_v58, 2  ;;  %v2862_v53 = vsel %vm1003_vm7, %v2859_v25, %v2861_v51  ;;  %v2864_v21 = vrot.slane %v2754_v41, 2 }
 0x4fa   :  { %v2866_v15 = vrot.slane %v2755_v39, 2  ;;  %v740_v30 = vsel %vm730_vm6, %v737_v5, %v739_v19  ;;  %v2860_v55 = vsel %vm1003_vm7, %v2858_v57, %v2859_v25  ;;  %v2863_v17 = vrot.slane %v2753_v63, 2 }
 0x4fb   :  { %2934 = vrot.lane.b32.xlu1 %v2862_v53, %s6178_s25  ;;  %v2756_v20 = vmul.f32 %v6115_v61, %v8256_v44  ;;  %v738_v38 = vsel %vm730_vm6, %v736_v49, %v737_v5  ;;  %v742_v16 = vrot.slane %v8481_v62, 1  ;;  %v1034_v47 = vrot.slane %v925_v10, 2  ;;  %v6116_v44 = vld [vmem:[#allocation2 + $0xe0] sm:$0xff]  ;;  %v6117_v62 = vld [vmem:[#allocation2 + $0xd8] sm:$0xff] }
 0x4fc   :  { %v8504_v58 = vmul.f32 %v12451_v46, %v8323_v0  ;;  %2932 = vrot.lane.b32.xlu0 %v2860_v55, %s6178_s25  ;;  %v744_v19 = vrot.slane %v642_v36, 1  ;;  %v640_v51 = vmul.f32 %v8146_v3, %v12454_v43  ;;  %v2869_v25 = vrot.slane %v2757_v26, 2  ;;  %v12455_v36 = vld [vmem:[#allocation26_spill] sm:$0xff] }
 0x4fd   :  { %v2871_v63 = vrot.slane %v2758_v27, 2  ;;  %v846_v41 = vadd.f32 %v740_v30, %v8001_v6  ;;  %v2867_v61 = vsel %vm1003_vm7, %v2864_v21, %v2866_v15  ;;  %v2760_v49 = vmul.f32 %v6116_v44, %v8254_v4  ;;  %v6118_v53 = vld [vmem:[#allocation2 + $0xf8] sm:$0xff] }
 0x4fe   :  { %v2761_v5 = vmul.f32 %v8254_v4, %v7826_v34  ;;  %v845_v0 = vadd.f32 %v738_v38, %v8004_v32  ;;  %v2865_v39 = vsel %vm1003_vm7, %v2863_v17, %v2864_v21  ;;  %v2868_v57 = vrot.slane %v2756_v20, 2  ;;  %v6119_v38 = vld [vmem:[#allocation2 + $0xf0] sm:$0xff] }
 0x4ff   :  { %2938 = vrot.lane.b32.xlu1 %v2867_v61, %s6178_s25  ;;  %v2759_v10 = vmul.f32 %v6117_v62, %v8254_v4  ;;  %v8520_v6 = vmul.f32 %v8020_v42, %v12455_v36  ;;  %v8523_v15 = vsel %vm1003_vm7, %v1035_v52, %v1037_v33  ;;  %v8526_v26 = vsel %vm1003_vm7, %v1034_v47, %v1035_v52 }
 0x500   :  { %v777_v34 = vrot.slane %v8487_v35, 1  ;;  %2936 = vrot.lane.b32.xlu0 %v2865_v39, %s6178_s25  ;;  %v745_v32 = vsel %vm730_vm6, %v742_v16, %v744_v19  ;;  %v741_v17 = vrot.slane %v640_v51, 1  ;;  %v648_v4 = vmul.f32 %v12455_v36, %v8388_v12 }
 0x501   :  { %v2872_v21 = vsel %vm1003_vm7, %v2869_v25, %v2871_v63  ;;  %v2874_v42 = vrot.slane %v2760_v49, 2  ;;  %v2876_v27 = vrot.slane %v2761_v5, 2  ;;  %v2763_v33 = vmul.f32 %v6118_v53, %v8307_v59  ;;  %v6120_v63 = vld [vmem:[#allocation2 + $0x110] sm:$0xff]  ;;  %v12456_v49 = vld [vmem:[#allocation27_spill] sm:$0xff] }
 0x502   :  { %v2764_v52 = vmul.f32 %v8307_v59, %v7838_v48  ;;  %v8538_v30 = vadd.f32 %v8399_v37, %v846_v41  ;;  %v2870_v55 = vsel %vm1003_vm7, %v2868_v57, %v2869_v25  ;;  %v2873_v20 = vrot.slane %v2759_v10, 2  ;;  %v12457_v53 = vld [vmem:[#allocation9_spill] sm:$0xff] }
 0x503   :  { %2942 = vrot.lane.b32.xlu1 %v2872_v21, %s6178_s25  ;;  %v2762_v12 = vmul.f32 %v6119_v38, %v8307_v59  ;;  %v8544_v47 = vadd.f32 %v8402_v22, %v845_v0  ;;  %v8547_v19 = vadd.f32 %v745_v32, %v8187_v14  ;;  %v752_v51 = vrot.slane %v8520_v6, 1  ;;  %v6121_v0 = vld [vmem:[#allocation2 + $0x108] sm:$0xff]  ;;  %v12459_v38 = vld [vmem:[#allocation199_spill] sm:$0xff] }
 0x504   :  { %v646_v48 = vmul.f32 %v8006_v13, %v12455_v36  ;;  %2940 = vrot.lane.b32.xlu0 %v2870_v55, %s6178_s25  ;;  %v754_v37 = vrot.slane %v648_v4, 1  ;;  %v779_v25 = vrot.slane %v8504_v58, 1  ;;  %v2766_v41 = vmul.f32 %v6120_v63, %v8346_v18 }
 0x505   :  { %v2767_v59 = vmul.f32 %v8346_v18, %v7850_v9  ;;  %v743_v22 = vsel %vm730_vm6, %v741_v17, %v742_v16  ;;  %v2877_v14 = vsel %vm1003_vm7, %v2874_v42, %v2876_v27  ;;  %v2879_v61 = vrot.slane %v2763_v33, 2 }
 0x506   :  { %v2881_v44 = vrot.slane %v2764_v52, 2  ;;  %v8561_v13 = vmul.f32 %v8060_v50, %v12456_v49  ;;  %v2875_v58 = vsel %vm1003_vm7, %v2873_v20, %v2874_v42  ;;  %v2878_v5 = vrot.slane %v2762_v12, 2  ;;  %v6123_v42 = vld [vmem:[#allocation2 + $0x120] sm:$0xff]  ;;  %v12458_v20 = vld [vmem:[#allocation28_spill] sm:$0xff] }
 0x507   :  { %2946 = vrot.lane.b32.xlu1 %v2877_v14, %s6178_s25  ;;  %v2765_v39 = vmul.f32 %v6121_v0, %v8346_v18  ;;  %v751_v57 = vrot.slane %v646_v48, 1  ;;  %v8568_v9 = vmul.f32 %v12456_v49, %v8462_v23  ;;  %v8572_v16 = vmul.f32 %v7988_v2, %v12451_v46  ;;  %v6122_v46 = vld [vmem:[#allocation2 + $0x128] sm:$0xff] }
 0x508   :  { %v8576_v50 = vmul.f32 %v8158_v7, %v12454_v43  ;;  %2944 = vrot.lane.b32.xlu0 %v2875_v58, %s6178_s25  ;;  %v8580_v62 = vadd.f32 %v743_v22, %v8190_v28  ;;  %v755_v18 = vsel %vm730_vm6, %v752_v51, %v754_v37  ;;  %v2884_v10 = vrot.slane %v2766_v41, 2  ;;  %v12460_v48 = vld [vmem:[#allocation200_spill] sm:$0xff]  ;;  %v12462_v22 = vld [vmem:[#allocation166_spill] sm:$0xff]  ;;  %v8621_v58 = vld [vmem:[#allocation2 + $0x100] sm:$0x3] }
 0x509   :  { %v2886_v6 = vrot.slane %v2767_v59, 2  ;;  %v780_v23 = vsel %vm730_vm6, %v777_v34, %v779_v25  ;;  %v2882_v2 = vsel %vm1003_vm7, %v2879_v61, %v2881_v44  ;;  %v2769_v32 = vmul.f32 %v6122_v46, %v8351_v29  ;;  %v12461_v37 = vld [vmem:[#allocation8_spill] sm:$0xff]  ;;  %v6124_v59 = vld [vmem:[#allocation2 + $0x140] sm:$0xff] }
 0x50a   :  { %v2770_v17 = vmul.f32 %v8351_v29, %v7863_v1  ;;  %v762_v4 = vrot.slane %v8561_v13, 1  ;;  %v2880_v28 = vsel %vm1003_vm7, %v2878_v5, %v2879_v61  ;;  %v2883_v21 = vrot.slane %v2765_v39, 2  ;;  %v12463_v61 = vld [vmem:[#allocation196_spill] sm:$0xff]  ;;  %v6125_v39 = vld [vmem:[#allocation2 + $0x138] sm:$0xff] }
 0x50b   :  { %2950 = vrot.lane.b32.xlu1 %v2882_v2, %s6178_s25  ;;  %v2768_v27 = vmul.f32 %v6123_v42, %v8351_v29  ;;  %v8595_v33 = vadd.f32 %v755_v18, %v12457_v53  ;;  %v753_v52 = vsel %vm730_vm6, %v751_v57, %v752_v51  ;;  %v764_v55 = vrot.slane %v8568_v9, 1  ;;  %v12464_v9 = vld [vmem:[#allocation202_spill] sm:$0xff]  ;;  %v12467_v53 = vld [vmem:[#allocation167_spill] sm:$0xff] }
 0x50c   :  { %v8601_v1 = vmul.f32 %v8028_v11, %v12456_v49  ;;  %2948 = vrot.lane.b32.xlu0 %v2880_v28, %s6178_s25  ;;  %v8606_v12 = vmul.f32 %v12459_v38, %v12458_v20  ;;  %v8610_v29 = vmul.f32 %v12460_v48, %v12458_v20  ;;  %v862_v25 = vadd.f32 %v780_v23, %v12461_v37  ;;  %v6126_v28 = vld [vmem:[#allocation2 + $0x158] sm:$0xff] }
 0x50d   :  { %v2887_v51 = vsel %vm1003_vm7, %v2884_v10, %v2886_v6  ;;  %v2889_v63 = vrot.slane %v2769_v32, 2  ;;  %v2891_v41 = vrot.slane %v2770_v17, 2  ;;  %v2772_v11 = vmul.f32 %v6124_v59, %v8392_v45  ;;  %v12465_v6 = vld [vmem:[#allocation206_spill] sm:$0xff] }
 0x50e   :  { %v2773_v14 = vmul.f32 %v8392_v45, %v12462_v22  ;;  %v8619_v44 = vmul.f32 %v12458_v20, %v12463_v61  ;;  %v2885_v5 = vsel %vm1003_vm7, %v2883_v21, %v2884_v10  ;;  %v2888_v0 = vrot.slane %v2768_v27, 2  ;;  %v12466_v10 = vld [vmem:[#allocation197_spill] sm:$0xff] }
 0x50f   :  { %2954 = vrot.lane.b32.xlu1 %v2887_v51, %s6178_s25  ;;  %v2771_v57 = vmul.f32 %v6125_v39, %v8392_v45  ;;  %v8628_v18 = vmul.f32 %v12464_v9, %v12458_v20  ;;  %v8632_v23 = vmul.f32 %v12465_v6, %v12458_v20  ;;  %v776_v2 = vrot.slane %v8572_v16, 1  ;;  %v6127_v51 = vld [vmem:[#allocation2 + $0x150] sm:$0xff]  ;;  %v12470_v6 = vld [vmem:[#allocation168_spill] sm:$0xff] }
 0x510   :  { %v8637_v46 = vmul.f32 %v12454_v43, %v8621_v58  ;;  %2952 = vrot.lane.b32.xlu0 %v2885_v5, %s6178_s25  ;;  %v8642_v32 = vmul.f32 %v12458_v20, %v12466_v10  ;;  %v2775_v21 = vmul.f32 %v6126_v28, %v8415_v24  ;;  %v2892_v42 = vsel %vm1003_vm7, %v2889_v63, %v2891_v41  ;;  %v12468_v61 = vld [vmem:[#allocation29_spill] sm:$0xff]  ;;  %v12469_v5 = vld [vmem:[#allocation203_spill] sm:$0xff] }
 0x511   :  { %v2894_v16 = vrot.slane %v2772_v11, 2  ;;  %v2896_v27 = vrot.slane %v2773_v14, 2  ;;  %v2776_v38 = vmul.f32 %v8415_v24, %v12467_v53  ;;  %v2890_v20 = vsel %vm1003_vm7, %v2888_v0, %v2889_v63  ;;  %v6128_v9 = vld [vmem:[#allocation2 + $0x170] sm:$0xff] }
 0x512   :  { %v2893_v37 = vrot.slane %v2771_v57, 2  ;;  %v2774_v59 = vmul.f32 %v6127_v51, %v8415_v24  ;;  %v914_v41 = vmul.f32 %v8150_v56, %v12468_v61  ;;  %v915_v11 = vmul.f32 %v12468_v61, %v8477_v31 }
 0x513   :  { %2958 = vrot.lane.b32.xlu1 %v2892_v42, %s6178_s25  ;;  %v913_v14 = vmul.f32 %v8146_v3, %v12468_v61  ;;  %v851_v39 = vadd.f32 %v753_v52, %v12469_v5  ;;  %v765_v63 = vsel %vm730_vm6, %v762_v4, %v764_v55  ;;  %v761_v24 = vrot.slane %v8601_v1, 1  ;;  %v6129_v55 = vld [vmem:[#allocation2 + $0x168] sm:$0xff] }
 0x514   :  { %2956 = vrot.lane.b32.xlu0 %v2890_v20, %s6178_s25  ;;  %v2899_v0 = vrot.slane %v2775_v21, 2  ;;  %v2897_v57 = vsel %vm1003_vm7, %v2894_v16, %v2896_v27  ;;  %v2901_v56 = vrot.slane %v2776_v38, 2  ;;  %v2778_v31 = vmul.f32 %v6128_v9, %v8449_v54 }
 0x515   :  { %v2779_v3 = vmul.f32 %v8449_v54, %v12470_v6  ;;  %v2895_v52 = vsel %vm1003_vm7, %v2893_v37, %v2894_v16  ;;  %v2898_v28 = vrot.slane %v2774_v59, 2  ;;  %v2777_v1 = vmul.f32 %v6129_v55, %v8449_v54  ;;  %v12472_v37 = vld [vmem:[#allocation11_spill] sm:$0xff]  ;;  %v12481_v6 = vld [vmem:[#allocation241_spill] sm:$0xff] }
 0x516   :  { %v1015_v42 = vrot.slane %v914_v41, 2  ;;  %v8678_v27 = vadd.f32 %v8457_v60, %v8595_v33  ;;  %v8681_v53 = vadd.f32 %v8438_v8, %v862_v25  ;;  %v1017_v38 = vrot.slane %v915_v11, 2  ;;  %v12473_v11 = vld [vmem:[#allocation30_spill] sm:$0xff]  ;;  %v12483_v55 = vld [vmem:[#allocation221_spill] sm:$0xff] }
 0x517   :  { %2962 = vrot.lane.b32.xlu1 %v2897_v57, %s6178_s25  ;;  %v1014_v20 = vrot.slane %v913_v14, 2  ;;  %v8685_v16 = vadd.f32 %v8460_v40, %v851_v39  ;;  %v856_v51 = vadd.f32 %v765_v63, %v12472_v37  ;;  %v763_v54 = vsel %vm730_vm6, %v761_v24, %v762_v4  ;;  %v12474_v14 = vld [vmem:[#allocation13_spill] sm:$0xff]  ;;  %v12475_v4 = vld [vmem:[#allocation212_spill] sm:$0xff]  ;;  %v12476_v39 = vld [vmem:[#allocation210_spill] sm:$0xff] }
 0x518   :  { %12471 = vst [vmem:[#allocation25_spill] sm:$0xff] %v8681_v53  ;;  %2960 = vrot.lane.b32.xlu0 %v2895_v52, %s6178_s25  ;;  %v2902_v59 = vsel %vm1003_vm7, %v2899_v0, %v2901_v56  ;;  %v2904_v60 = vrot.slane %v2778_v31, 2  ;;  %v2906_v33 = vrot.slane %v2779_v3, 2  ;;  %v778_v8 = vsel %vm730_vm6, %v776_v2, %v777_v34  ;;  %v12477_v34 = vld [vmem:[#allocation218_spill] sm:$0xff]  ;;  %v12478_v63 = vld [vmem:[#allocation219_spill] sm:$0xff] }
 0x519   :  { %v782_v25 = vrot.slane %v8576_v50, 1  ;;  %v2900_v40 = vsel %vm1003_vm7, %v2898_v28, %v2899_v0  ;;  %v2903_v41 = vrot.slane %v2777_v1, 2  ;;  %v8700_v13 = vmul.f32 %v12474_v14, %v12473_v11  ;;  %v12479_v0 = vld [vmem:[#allocation211_spill] sm:$0xff] }
 0x51a   :  { %v8704_v5 = vmul.f32 %v12475_v4, %v12473_v11  ;;  %v8708_v35 = vmul.f32 %v12473_v11, %v12476_v39  ;;  %v8712_v2 = vmul.f32 %v12477_v34, %v12473_v11  ;;  %v8717_v24 = vmul.f32 %v12478_v63, %v12473_v11  ;;  %v12480_v31 = vld [vmem:[#allocation31_spill] sm:$0xff]  ;;  %v12500_v39 = vld [vmem:[#allocation232_spill] sm:$0xff] }
 0x51b   :  { %2966 = vrot.lane.b32.xlu1 %v2902_v59, %s6178_s25  ;;  %v8721_v57 = vmul.f32 %v12473_v11, %v12479_v0  ;;  %v1018_v56 = vsel %vm1003_vm7, %v1015_v42, %v1017_v38  ;;  %v1016_v9 = vsel %vm1003_vm7, %v1014_v20, %v1015_v42  ;;  %v8727_v3 = vmul.f32 %v12481_v6, %v12480_v31  ;;  %v12482_v52 = vld [vmem:[#allocation243_spill] sm:$0xff]  ;;  %v12484_v59 = vld [vmem:[#allocation245_spill] sm:$0xff]  ;;  %v12486_v20 = vld [vmem:[#allocation222_spill] sm:$0xff] }
 0x51c   :  { %2964 = vrot.lane.b32.xlu0 %v2900_v40, %s6178_s25  ;;  %v8731_v28 = vmul.f32 %v12482_v52, %v12480_v31  ;;  %v8735_v1 = vmul.f32 %v12480_v31, %v12483_v55  ;;  %v2907_v37 = vsel %vm1003_vm7, %v2904_v60, %v2906_v33  ;;  %v8740_v40 = vmul.f32 %v12484_v59, %v12480_v31  ;;  %v12485_v42 = vld [vmem:[#allocation247_spill] sm:$0xff]  ;;  %v12499_v0 = vld [vmem:[#allocation256_spill] sm:$0xff] }
 0x51d   :  { %v8744_v38 = vmul.f32 %v12485_v42, %v12480_v31  ;;  %v8748_v11 = vmul.f32 %v12480_v31, %v12486_v20  ;;  %v2905_v14 = vsel %vm1003_vm7, %v2903_v41, %v2904_v60  ;;  %v12487_v34 = vld [vmem:[#allocation207_spill] sm:$0xff]  ;;  %v8761_v52 = vadd.f32 %v1018_v56, %v8547_v19  ;;  %v12494_v20 = vld [vmem:[#allocation194_spill] sm:$0xff]  ;;  %v12501_v33 = vld [vmem:[#allocation24_spill] sm:$0xff] }
 0x51e   :  { %v855_v63 = vadd.f32 %v763_v54, %v12487_v34  ;;  %v8766_v55 = vadd.f32 %v1016_v9, %v8580_v62  ;;  %v8769_v54 = vadd.f32 %v8523_v15, %v856_v51  ;;  %v12488_v56 = vld [vmem:[#allocation195_spill] sm:$0xff]  ;;  %v12489_v34 = vld [vmem:[#allocation22_spill] sm:$0xff]  ;;  %v12491_v9 = vld [vmem:[#allocation32_spill] sm:$0xff] }
 0x51f   :  { %2970 = vrot.lane.b32.xlu1 %v2907_v37, %s6178_s25  ;;  %v672_v62 = vmul.f32 %v12455_v36, %v12489_v34  ;;  %v12490_v15 = vld [vmem:[#allocation6_spill] sm:$0xff]  ;;  %v12492_v37 = vld [vmem:[#allocation249_spill] sm:$0xff]  ;;  %v12493_v59 = vld [vmem:[#allocation251_spill] sm:$0xff]  ;;  %v938_v34 = vmul.f32 %v8158_v7, %v12468_v61 }
 0x520   :  { %2968 = vrot.lane.b32.xlu0 %v2905_v14, %s6178_s25  ;;  %v8776_v19 = vadd.f32 %v8526_v26, %v855_v63  ;;  %v671_v14 = vmul.f32 %v12488_v56, %v12455_v36  ;;  %v670_v51 = vmul.f32 %v12490_v15, %v12455_v36  ;;  %v8786_v60 = vmul.f32 %v12492_v37, %v12491_v9  ;;  %v12495_v63 = vld [vmem:[#allocation15_spill] sm:$0xff] }
 0x521   :  { %v8790_v42 = vmul.f32 %v12493_v59, %v12491_v9  ;;  %v861_v26 = vadd.f32 %v778_v8, %v12494_v20  ;;  %v664_v41 = vmul.f32 %v12495_v63, %v12454_v43  ;;  %v784_v56 = vrot.slane %v8637_v46, 1  ;;  %v502_v15 = vld [vmem:[#allocation2 + $0x160] sm:$0x3]  ;;  %v12498_v43 = vld [vmem:[#allocation201_spill] sm:$0xff] }
 0x522   :  { %v939_v36 = vmul.f32 %v12468_v61, %v8621_v58  ;;  %v937_v37 = vmul.f32 %v12495_v63, %v12468_v61  ;;  %v12496_v31 = vld [vmem:[#allocation231_spill] sm:$0xff]  ;;  %v677_v46 = vmul.f32 %v12498_v43, %v12456_v49  ;;  %v678_v7 = vmul.f32 %v12456_v49, %v502_v15 }
 0x523   :  { %v8804_v59 = vmul.f32 %v12491_v9, %v12496_v31  ;;  %v12497_v8 = vld [vmem:[#allocation163_spill] sm:$0xff]  ;;  %v8815_v58 = vmul.f32 %v12499_v0, %v12491_v9  ;;  %v792_v6 = vrot.slane %v671_v14, 1  ;;  %v794_v61 = vrot.slane %v672_v62, 1 }
 0x524   :  { %v8808_v20 = vmul.f32 %v12497_v8, %v12491_v9  ;;  %v791_v63 = vrot.slane %v670_v51, 1  ;;  %v8819_v31 = vmul.f32 %v12491_v9, %v12500_v39  ;;  %v8823_v21 = vadd.f32 %v12501_v33, %v861_v26  ;;  %v12503_v39 = vld [vmem:[#allocation10_spill] sm:$0xff]  ;;  %v12504_v26 = vld [vmem:[#allocation23_spill] sm:$0xff] }
 0x525   :  { %v781_v22 = vrot.slane %v664_v41, 1  ;;  %v785_v10 = vsel %vm730_vm6, %v782_v25, %v784_v56  ;;  %v1055_v48 = vrot.slane %v938_v34, 2  ;;  %v1057_v45 = vrot.slane %v939_v36, 2  ;;  %v12505_v34 = vld [vmem:[#allocation7_spill] sm:$0xff]  ;;  %v12509_v56 = vld [vmem:[#allocation205_spill] sm:$0xff] }
 0x526   :  { %12502 = vst [vmem:[#allocation26_spill] sm:$0xff] %v8823_v21  ;;  %v1054_v17 = vrot.slane %v937_v37, 2  ;;  %v802_v62 = vrot.slane %v677_v46, 1  ;;  %v804_v51 = vrot.slane %v678_v7, 1  ;;  %v676_v9 = vmul.f32 %v12503_v39, %v12456_v49  ;;  %v12506_v46 = vld [vmem:[#allocation130_spill] sm:$0xff] }
 0x527   :  { %v795_v4 = vsel %vm730_vm6, %v792_v6, %v794_v61  ;;  %v793_v33 = vsel %vm730_vm6, %v791_v63, %v792_v6  ;;  %v950_v41 = vmul.f32 %v12498_v43, %v12504_v26  ;;  %v951_v21 = vmul.f32 %v12504_v26, %v502_v15  ;;  %v12507_v6 = vld [vmem:[#allocation165_spill] sm:$0xff]  ;;  %v12508_v15 = vld [vmem:[#allocation204_spill] sm:$0xff] }
 0x528   :  { %v864_v36 = vadd.f32 %v785_v10, %v12505_v34  ;;  %v783_v37 = vsel %vm730_vm6, %v781_v22, %v782_v25  ;;  %v1067_v7 = vrot.slane %v12506_v46, 2  ;;  %v1058_v49 = vsel %vm1003_vm7, %v1055_v48, %v1057_v45  ;;  %v12510_v25 = vld [vmem:[#allocation227_spill] sm:$0xff] }
 0x529   :  { %v1056_v61 = vsel %vm1003_vm7, %v1054_v17, %v1055_v48  ;;  %v1064_v63 = vrot.slane %v12507_v6, 2  ;;  %v949_v43 = vmul.f32 %v12503_v39, %v12504_v26  ;;  %v868_v14 = vadd.f32 %v795_v4, %v12508_v15  ;;  %v12511_v39 = vld [vmem:[#allocation164_spill] sm:$0xff] }
 0x52a   :  { %v867_v53 = vadd.f32 %v793_v33, %v12509_v56  ;;  %v805_v10 = vsel %vm730_vm6, %v802_v62, %v804_v51  ;;  %v801_v50 = vrot.slane %v676_v9, 1  ;;  %v1079_v22 = vrot.slane %v8808_v20, 2  ;;  %v12514_v9 = vld [vmem:[#allocation208_spill] sm:$0xff] }
 0x52b   :  { %v863_v34 = vadd.f32 %v783_v37, %v12510_v25  ;;  %v1075_v46 = vrot.slane %v950_v41, 2  ;;  %v1077_v45 = vrot.slane %v951_v21, 2  ;;  %v1080_v17 = vrot.slane %v8815_v58, 2 }
 0x52c   :  { %v1082_v48 = vrot.slane %v8819_v31, 2  ;;  %v8854_v6 = vadd.f32 %v1058_v49, %v864_v36  ;;  %v12512_v26 = vrot.slane %v12511_v39, 2  ;;  %v872_v56 = vadd.f32 %v805_v10, %v12514_v9 }
 0x52d   :  { %v8859_v33 = vadd.f32 %v1056_v61, %v863_v34  ;;  %v1074_v41 = vrot.slane %v949_v43, 2  ;;  %v803_v58 = vsel %vm730_vm6, %v801_v50, %v802_v62  ;;  %v12515_v31 = vrot.slane %v8610_v29, 2  ;;  %v8891_v50 = vpop.permute.xlu0 %427 }
 0x52e   :  { %v1068_v4 = vsel %vm1003_vm7, %v12512_v26, %v1067_v7  ;;  %v12513_v51 = vmov %v12512_v26  ;;  %v12516_v36 = vrot.slane %v8606_v12, 2  ;;  %v1078_v7 = vsel %vm1003_vm7, %v1075_v46, %v1077_v45 }
 0x52f   :  { %v1066_v20 = vsel %vm1003_vm7, %v1064_v63, %v12513_v51  ;;  %v1141_v21 = vadd.f32 %v1068_v4, %v868_v14  ;;  %v12517_v61 = vrot.slane %v8619_v44, 2  ;;  %v12518_v15 = vmov %v12515_v31  ;;  %v12528_v4 = vld [vmem:[#allocation209_spill] sm:$0xff] }
 0x530   :  { %v1140_v37 = vadd.f32 %v1066_v20, %v867_v53  ;;  %v1006_v49 = vsel %vm1003_vm7, %v12516_v36, %v12515_v31  ;;  %v12519_v43 = vrot.slane %v8632_v23, 2  ;;  %v12520_v53 = vrot.slane %v8628_v18, 2  ;;  %v12527_v23 = vld [vmem:[#allocation18_spill] sm:$0xff] }
 0x531   :  { %v1008_v63 = vsel %vm1003_vm7, %v12518_v15, %v12517_v61  ;;  %v12521_v62 = vrot.slane %v8642_v32, 2  ;;  %v12523_v29 = vrot.slane %v8704_v5, 2  ;;  %v12524_v44 = vrot.slane %v8700_v13, 2  ;;  %v12535_v36 = vld [vmem:[#allocation242_spill] sm:$0xff] }
 0x532   :  { %v8882_v14 = vsel %vm1003_vm7, %v12520_v53, %v12519_v43  ;;  %v12522_v12 = vmov %v12519_v43  ;;  %v12525_v18 = vrot.slane %v8708_v35, 2  ;;  %v679_v45 = vmul.f32 %v12497_v8, %v12527_v23  ;;  %v12539_v15 = vld [vmem:[#allocation14_spill] sm:$0xff] }
 0x533   :  { %v8889_v10 = vsel %vm1003_vm7, %v12522_v12, %v12521_v62  ;;  %v8898_v25 = vsel %vm1003_vm7, %v12524_v44, %v12523_v29  ;;  %v12526_v34 = vmov %v12523_v29  ;;  %v680_v39 = vmul.f32 %v12499_v0, %v12527_v23  ;;  %v12533_v0 = vld [vmem:[#allocation244_spill] sm:$0xff]  ;;  %v12541_v53 = vld [vmem:[#allocation250_spill] sm:$0xff]  ;;  %v12543_v44 = vld [vmem:[#allocation237_spill] sm:$0xff] }
 0x534   :  { %v8905_v32 = vsel %vm1003_vm7, %v12526_v34, %v12525_v18  ;;  %v1145_v26 = vadd.f32 %v1078_v7, %v872_v56  ;;  %v871_v51 = vadd.f32 %v803_v58, %v12528_v4  ;;  %v1076_v13 = vsel %vm1003_vm7, %v1074_v41, %v1075_v46  ;;  %v12537_v41 = vld [vmem:[#allocation246_spill] sm:$0xff]  ;;  %v12542_v12 = vld [vmem:[#allocation252_spill] sm:$0xff] }
 0x535   :  { %v12529_v20 = vrot.slane %v8717_v24, 2  ;;  %v12530_v35 = vrot.slane %v8712_v2, 2  ;;  %v12531_v9 = vrot.slane %v8721_v57, 2  ;;  %v12534_v56 = vrot.slane %v12533_v0, 1  ;;  %v12538_v2 = vld [vmem:[#allocation248_spill] sm:$0xff]  ;;  %v12540_v57 = vld [vmem:[#allocation213_spill] sm:$0xff] }
 0x536   :  { %v12536_v58 = vrot.slane %v12535_v36, 1  ;;  %v796_v7 = vrot.slane %v12537_v41, 1  ;;  %v797_v61 = vrot.slane %v12538_v2, 1  ;;  %v570_v43 = vadd.f32 %v12539_v15, %v8891_v50  ;;  %v12544_v4 = vld [vmem:[#allocation238_spill] sm:$0xff] }
 0x537   :  { %v8918_v5 = vsel %vm1003_vm7, %v12530_v35, %v12529_v20  ;;  %v12532_v31 = vmov %v12529_v20  ;;  %v571_v24 = vadd.f32 %v12540_v57, %v8891_v50  ;;  %v766_v62 = vrot.slane %v12541_v53, 1  ;;  %v12551_v0 = vld [vmem:[#allocation226_spill] sm:$0xff] }
 0x538   :  { %v8925_v8 = vsel %vm1003_vm7, %v12532_v31, %v12531_v9  ;;  %v8932_v46 = vsel %vm730_vm6, %v12536_v58, %v12534_v56  ;;  %v767_v29 = vrot.slane %v12542_v12, 1  ;;  %v769_v18 = vrot.slane %v12543_v44, 1  ;;  %v12545_v9 = vld [vmem:[#allocation16_spill] sm:$0xff] }
 0x539   :  { %v806_v34 = vrot.slane %v679_v45, 1  ;;  %v807_v23 = vrot.slane %v680_v39, 1  ;;  %v809_v20 = vrot.slane %v12544_v4, 1  ;;  %v1144_v35 = vadd.f32 %v1076_v13, %v871_v51 }
 0x53a   :  { %v12546_v31 = vrot.slane %v12545_v9, 1  ;;  %v12547_v58 = vrot.slane %v8731_v28, 2  ;;  %v12548_v41 = vrot.slane %v8727_v3, 2  ;;  %v12549_v45 = vrot.slane %v8735_v1, 2  ;;  %v12558_v9 = vld [vmem:[#allocation223_spill] sm:$0xff] }
 0x53b   :  { %v8966_v13 = vsel %vm730_vm6, %v796_v7, %v797_v61  ;;  %v12552_v15 = vrot.slane %v12551_v0, 1  ;;  %v12553_v3 = vrot.slane %v8744_v38, 2  ;;  %v12554_v53 = vrot.slane %v8740_v40, 2  ;;  %v12557_v7 = vld [vmem:[#allocation220_spill] sm:$0xff]  ;;  %v12567_v0 = vld [vmem:[#allocation49_spill] sm:$0xff] }
 0x53c   :  { %v8949_v36 = vsel %vm730_vm6, %v12534_v56, %v12546_v31  ;;  %v8956_v2 = vsel %vm1003_vm7, %v12548_v41, %v12547_v58  ;;  %v12550_v39 = vmov %v12547_v58  ;;  %v12555_v28 = vrot.slane %v8748_v11, 2 }
 0x53d   :  { %v8963_v51 = vsel %vm1003_vm7, %v12550_v39, %v12549_v45  ;;  %v8971_v57 = vsel %vm730_vm6, %v797_v61, %v12552_v15  ;;  %v8978_v12 = vsel %vm1003_vm7, %v12554_v53, %v12553_v3  ;;  %v12556_v1 = vmov %v12553_v3  ;;  %v12564_v39 = vld [vmem:[#allocation44_spill] sm:$0xff] }
 0x53e   :  { %v8985_v44 = vsel %vm1003_vm7, %v12556_v1, %v12555_v28  ;;  %v843_v4 = vadd.f32 %v12557_v7, %v570_v43  ;;  %v844_v31 = vadd.f32 %v12558_v9, %v571_v24  ;;  %v8990_v61 = vsel %vm730_vm6, %v766_v62, %v767_v29  ;;  %v9037_v1 = vpop.permute.xlu0 %439  ;;  %v12572_v7 = vld [vmem:[#allocation59_spill] sm:$0xff] }
 0x53f   :  { %v12559_v56 = vrot.slane %v8790_v42, 2  ;;  %v12560_v40 = vrot.slane %v8786_v60, 2  ;;  %v9000_v11 = vsel %vm730_vm6, %v767_v29, %v769_v18  ;;  %v9003_v38 = vsel %vm730_vm6, %v806_v34, %v807_v23  ;;  %v12563_v60 = vld [vmem:[#allocation43_spill] sm:$0xff]  ;;  %v12566_v42 = vld [vmem:[#allocation46_spill] sm:$0xff] }
 0x540   :  { %v9006_v43 = vsel %vm730_vm6, %v807_v23, %v809_v20  ;;  %v12561_v24 = vrot.slane %v8804_v59, 2  ;;  %v1391_v45 = vadd.f32 %v12563_v60, %v8538_v30  ;;  %v1390_v29 = vadd.f32 %v12564_v39, %v8544_v47  ;;  %v12565_v23 = vld [vmem:[#allocation45_spill] sm:$0xff]  ;;  %v12568_v30 = vld [vmem:[#allocation50_spill] sm:$0xff] }
 0x541   :  { %v8997_v58 = vsel %vm1003_vm7, %v12560_v40, %v12559_v56  ;;  %v12562_v62 = vmov %v12559_v56  ;;  %v9020_v18 = vsel %vm1003_vm7, %v1079_v22, %v1080_v17  ;;  %v9023_v34 = vsel %vm1003_vm7, %v1080_v17, %v1082_v48  ;;  %v12569_v47 = vld [vmem:[#allocation53_spill] sm:$0xff]  ;;  %v12570_v22 = vld [vmem:[#allocation54_spill] sm:$0xff]  ;;  %v12574_v56 = vld [vmem:[#allocation60_spill] sm:$0xff] }
 0x542   :  { %v9013_v41 = vsel %vm1003_vm7, %v12562_v62, %v12561_v24  ;;  %v1393_v59 = vadd.f32 %v12565_v23, %v8761_v52  ;;  %v1392_v20 = vadd.f32 %v12566_v42, %v8766_v55  ;;  %v1397_v15 = vadd.f32 %v12567_v0, %v8678_v27  ;;  %v12571_v52 = vld [vmem:[#allocation25_spill] sm:$0xff]  ;;  %v12573_v55 = vld [vmem:[#allocation26_spill] sm:$0xff]  ;;  %v12583_v23 = vld [vmem:[#allocation79_spill] sm:$0xff] }
 0x543   :  { %v1396_v3 = vadd.f32 %v12568_v30, %v8685_v16  ;;  %v1401_v53 = vadd.f32 %v12569_v47, %v8769_v54  ;;  %v1400_v28 = vadd.f32 %v12570_v22, %v8776_v19  ;;  %v1116_v17 = vadd.f32 %v1006_v49, %v843_v4  ;;  %v12575_v27 = vld [vmem:[#allocation61_spill] sm:$0xff]  ;;  %v12576_v16 = vld [vmem:[#allocation62_spill] sm:$0xff]  ;;  %v12584_v0 = vld [vmem:[#allocation80_spill] sm:$0xff] }
 0x544   :  { %v1117_v48 = vadd.f32 %v1008_v63, %v844_v31  ;;  %v1407_v9 = vadd.f32 %v12572_v7, %v12571_v52  ;;  %v1406_v40 = vadd.f32 %v12574_v56, %v12573_v55  ;;  %v1409_v24 = vadd.f32 %v12575_v27, %v8854_v6  ;;  %v12577_v54 = vld [vmem:[#allocation65_spill] sm:$0xff]  ;;  %v12578_v39 = vld [vmem:[#allocation66_spill] sm:$0xff] }
 0x545   :  { %v1408_v62 = vadd.f32 %v12576_v16, %v8859_v33  ;;  %v1413_v60 = vadd.f32 %v12577_v54, %v1141_v21  ;;  %v1412_v19 = vadd.f32 %v12578_v39, %v1140_v37  ;;  %v12579_v49 = vld [vmem:[#allocation69_spill] sm:$0xff]  ;;  %v12581_v4 = vld [vmem:[#allocation70_spill] sm:$0xff]  ;;  %v1726_v42 = vadd.f32 %v12583_v23, %v1390_v29 }
 0x546   :  { %v9050_v63 = vadd.f32 %v12579_v49, %v1145_v26  ;;  %v9053_v31 = vadd.f32 %v12581_v4, %v1144_v35  ;;  %v1727_v30 = vadd.f32 %v12584_v0, %v1391_v45  ;;  %v12585_v47 = vld [vmem:[#allocation81_spill] sm:$0xff]  ;;  %v12586_v6 = vld [vmem:[#allocation230_spill] sm:$0xff]  ;;  %v12595_v4 = vld [vmem:[#allocation95_spill] sm:$0xff] }
 0x547   :  { %v1728_v22 = vadd.f32 %v12585_v47, %v1392_v20  ;;  %v577_v52 = vadd.f32 %v12586_v6, %v9037_v1  ;;  %v12587_v33 = vld [vmem:[#allocation82_spill] sm:$0xff]  ;;  %v12588_v21 = vld [vmem:[#allocation85_spill] sm:$0xff]  ;;  %v1742_v23 = vadd.f32 %v12595_v4, %v1406_v40  ;;  %v12596_v0 = vld [vmem:[#allocation96_spill] sm:$0xff] }
 0x548   :  { %12580 = vst [vmem:[#allocation27_spill] sm:$0xff] %v9050_v63  ;;  %12582 = vst [vmem:[#allocation9_spill] sm:$0xff] %v9053_v31  ;;  %v1729_v7 = vadd.f32 %v12587_v33, %v1393_v59  ;;  %v1732_v55 = vadd.f32 %v12588_v21, %v1396_v3  ;;  %v12589_v37 = vld [vmem:[#allocation42_spill] sm:$0xff]  ;;  %v12590_v26 = vld [vmem:[#allocation41_spill] sm:$0xff]  ;;  %v1743_v47 = vadd.f32 %v12596_v0, %v1407_v9  ;;  %v9079_v63 = vpop.permute.xlu0 %447 }
 0x549   :  { %v1388_v56 = vadd.f32 %v12589_v37, %v1116_v17  ;;  %v1389_v27 = vadd.f32 %v12590_v26, %v1117_v48  ;;  %v12591_v16 = vld [vmem:[#allocation86_spill] sm:$0xff]  ;;  %v12592_v54 = vld [vmem:[#allocation89_spill] sm:$0xff]  ;;  %v12607_v0 = vld [vmem:[#allocation35_spill] sm:$0xff] }
 0x54a   :  { %v1733_v35 = vadd.f32 %v12591_v16, %v1397_v15  ;;  %v1736_v39 = vadd.f32 %v12592_v54, %v1400_v28  ;;  %v12593_v29 = vld [vmem:[#allocation90_spill] sm:$0xff]  ;;  %v12594_v45 = vld [vmem:[#allocation17_spill] sm:$0xff] }
 0x54b   :  { %v1737_v49 = vadd.f32 %v12593_v29, %v1401_v53  ;;  %v576_v20 = vadd.f32 %v12594_v45, %v9037_v1  ;;  %v12597_v59 = vld [vmem:[#allocation97_spill] sm:$0xff]  ;;  %v12598_v3 = vld [vmem:[#allocation98_spill] sm:$0xff]  ;;  %v12603_v53 = vld [vmem:[#allocation36_spill] sm:$0xff] }
 0x54c   :  { %v1744_v6 = vadd.f32 %v12597_v59, %v1408_v62  ;;  %v1745_v33 = vadd.f32 %v12598_v3, %v1409_v24  ;;  %v12599_v17 = vld [vmem:[#allocation101_spill] sm:$0xff]  ;;  %v12600_v48 = vld [vmem:[#allocation102_spill] sm:$0xff]  ;;  %v2062_v54 = vadd.f32 %v12603_v53, %v1726_v42  ;;  %v2064_v24 = vadd.f32 %v12607_v0, %v1728_v22  ;;  %v12609_v3 = vld [vmem:[#allocation39_spill] sm:$0xff] }
 0x54d   :  { %v1748_v21 = vadd.f32 %v12599_v17, %v1412_v19  ;;  %v1749_v37 = vadd.f32 %v12600_v48, %v1413_v60  ;;  %v12601_v15 = vld [vmem:[#allocation33_spill] sm:$0xff]  ;;  %v12602_v28 = vld [vmem:[#allocation234_spill] sm:$0xff]  ;;  %v2068_v60 = vadd.f32 %v12609_v3, %v1732_v55  ;;  %v12614_v53 = vld [vmem:[#allocation115_spill] sm:$0xff] }
 0x54e   :  { %v2063_v26 = vadd.f32 %v12601_v15, %v1727_v30  ;;  %v850_v16 = vadd.f32 %v12602_v28, %v577_v52  ;;  %v12604_v29 = vld [vmem:[#allocation74_spill] sm:$0xff]  ;;  %v12605_v40 = vld [vmem:[#allocation77_spill] sm:$0xff]  ;;  %v12613_v28 = vld [vmem:[#allocation116_spill] sm:$0xff] }
 0x54f   :  { %v2065_v45 = vadd.f32 %v12604_v29, %v1729_v7  ;;  %v1724_v9 = vadd.f32 %v12605_v40, %v1388_v56  ;;  %v12606_v4 = vld [vmem:[#allocation78_spill] sm:$0xff]  ;;  %v12608_v59 = vld [vmem:[#allocation37_spill] sm:$0xff]  ;;  %v2079_v7 = vadd.f32 %v12613_v28, %v1743_v47  ;;  %v2078_v29 = vadd.f32 %v12614_v53, %v1742_v23  ;;  %v12627_v53 = vld [vmem:[#allocation139_spill] sm:$0xff] }
 0x550   :  { %v1725_v62 = vadd.f32 %v12606_v4, %v1389_v27  ;;  %v2069_v19 = vadd.f32 %v12608_v59, %v1733_v35  ;;  %v12610_v17 = vld [vmem:[#allocation233_spill] sm:$0xff]  ;;  %v12612_v15 = vld [vmem:[#allocation110_spill] sm:$0xff]  ;;  %v1123_v22 = vadd.f32 %v8905_v32, %v850_v16  ;;  %v12624_v32 = vld [vmem:[#allocation19_spill] sm:$0xff] }
 0x551   :  { %v849_v30 = vadd.f32 %v12610_v17, %v576_v20  ;;  %v12611_v48 = vld [vmem:[#allocation109_spill] sm:$0xff]  ;;  %v2072_v42 = vadd.f32 %v12612_v15, %v1736_v39  ;;  %v12615_v31 = vld [vmem:[#allocation118_spill] sm:$0xff]  ;;  %v580_v16 = vadd.f32 %v12624_v32, %v9079_v63  ;;  %v12636_v32 = vld [vmem:[#allocation151_spill] sm:$0xff] }
 0x552   :  { %v2073_v52 = vadd.f32 %v12611_v48, %v1737_v49  ;;  %v2081_v56 = vadd.f32 %v12615_v31, %v1745_v33  ;;  %v12616_v40 = vld [vmem:[#allocation117_spill] sm:$0xff]  ;;  %v12618_v55 = vld [vmem:[#allocation122_spill] sm:$0xff]  ;;  %v12625_v48 = vld [vmem:[#allocation135_spill] sm:$0xff] }
 0x553   :  { %v2080_v27 = vadd.f32 %v12616_v40, %v1744_v6  ;;  %v12617_v35 = vld [vmem:[#allocation253_spill] sm:$0xff]  ;;  %v9097_v0 = vadd.f32 %v12618_v55, %v1749_v37  ;;  %v12621_v47 = vld [vmem:[#allocation34_spill] sm:$0xff]  ;;  %v1122_v6 = vadd.f32 %v8898_v25, %v849_v30  ;;  %v2336_v15 = vadd.f32 %v12625_v48, %v2064_v24  ;;  %v12626_v37 = vld [vmem:[#allocation136_spill] sm:$0xff] }
 0x554   :  { %v581_v4 = vadd.f32 %v12617_v35, %v9079_v63  ;;  %v12619_v20 = vld [vmem:[#allocation121_spill] sm:$0xff]  ;;  %v2061_v3 = vadd.f32 %v12621_v47, %v1725_v62  ;;  %v12623_v31 = vld [vmem:[#allocation134_spill] sm:$0xff]  ;;  %v2337_v28 = vadd.f32 %v12626_v37, %v2065_v45  ;;  %v12628_v40 = vld [vmem:[#allocation140_spill] sm:$0xff] }
 0x555   :  { %v9100_v49 = vadd.f32 %v12619_v20, %v1748_v21  ;;  %v12620_v39 = vld [vmem:[#allocation73_spill] sm:$0xff]  ;;  %v2335_v33 = vadd.f32 %v12623_v31, %v2063_v26  ;;  %v2340_v21 = vadd.f32 %v12627_v53, %v2068_v60  ;;  %v2341_v35 = vadd.f32 %v12628_v40, %v2069_v19  ;;  %v12629_v62 = vld [vmem:[#allocation143_spill] sm:$0xff]  ;;  %v12633_v24 = vld [vmem:[#allocation150_spill] sm:$0xff] }
 0x556   :  { %v2060_v59 = vadd.f32 %v12620_v39, %v1724_v9  ;;  %v12622_v23 = vld [vmem:[#allocation133_spill] sm:$0xff]  ;;  %v9113_v9 = vpop.permute.xlu0 %455  ;;  %v2344_v55 = vadd.f32 %v12629_v62, %v2072_v42  ;;  %v854_v26 = vadd.f32 %v8949_v36, %v581_v4  ;;  %v12631_v25 = vld [vmem:[#allocation47_spill] sm:$0xff]  ;;  %v12635_v31 = vld [vmem:[#allocation132_spill] sm:$0xff]  ;;  %v9128_v48 = vadd.f32 %v12636_v32, %v2080_v27 }
 0x557   :  { %v2334_v17 = vadd.f32 %v12622_v23, %v2062_v54  ;;  %v12630_v54 = vld [vmem:[#allocation144_spill] sm:$0xff]  ;;  %v1395_v30 = vadd.f32 %v12631_v25, %v1123_v22  ;;  %v12632_v39 = vld [vmem:[#allocation149_spill] sm:$0xff]  ;;  %v9123_v23 = vadd.f32 %v12633_v24, %v2079_v7  ;;  %v12634_v45 = vld [vmem:[#allocation131_spill] sm:$0xff]  ;;  %v2333_v19 = vadd.f32 %v12635_v31, %v2061_v3 }
 0x558   :  { %v2345_v20 = vadd.f32 %v12630_v54, %v2073_v52  ;;  %v9120_v47 = vadd.f32 %v12632_v39, %v2078_v29  ;;  %v2332_v60 = vadd.f32 %v12634_v45, %v2060_v59  ;;  %v853_v42 = vadd.f32 %v8932_v46, %v580_v16  ;;  %v12637_v52 = vld [vmem:[#allocation20_spill] sm:$0xff]  ;;  %v12640_v53 = vld [vmem:[#allocation171_spill] sm:$0xff]  ;;  %v12642_v59 = vld [vmem:[#allocation173_spill] sm:$0xff] }
 0x559   :  { %v584_v36 = vadd.f32 %v12637_v52, %v9113_v9  ;;  %v12638_v4 = vld [vmem:[#allocation48_spill] sm:$0xff]  ;;  %v2671_v7 = vadd.f32 %v12640_v53, %v2335_v33  ;;  %v2673_v54 = vadd.f32 %v12642_v59, %v2337_v28  ;;  %v1127_v25 = vadd.f32 %v8963_v51, %v854_v26  ;;  %v12644_v46 = vld [vmem:[#allocation129_spill] sm:$0xff]  ;;  %v12648_v33 = vld [vmem:[#allocation170_spill] sm:$0xff]  ;;  %v2911_v53 = vpop.permute.xlu1 %2910 }
 0x55a   :  { %v1394_v22 = vadd.f32 %v12638_v4, %v1122_v6  ;;  %v12639_v37 = vld [vmem:[#allocation152_spill] sm:$0xff]  ;;  %v585_v16 = vadd.f32 %v12644_v46, %v9113_v9  ;;  %v12646_v6 = vld [vmem:[#allocation174_spill] sm:$0xff]  ;;  %v2668_v32 = vadd.f32 %v12648_v33, %v2332_v60  ;;  %v12650_v28 = vld [vmem:[#allocation217_spill] sm:$0xff]  ;;  %v2909_v26 = vpop.permute.xlu0 %2908 }
 0x55b   :  { %v9135_v29 = vadd.f32 %v12639_v37, %v2081_v56  ;;  %v12641_v40 = vld [vmem:[#allocation172_spill] sm:$0xff]  ;;  %v2672_v45 = vadd.f32 %v12646_v6, %v2336_v15  ;;  %v12647_v56 = vld [vmem:[#allocation177_spill] sm:$0xff]  ;;  %v587_v4 = vadd.f32 %v12650_v28, %v8891_v50  ;;  %v1126_v37 = vadd.f32 %v8956_v2, %v853_v42  ;;  %v12652_v59 = vld [vmem:[#allocation178_spill] sm:$0xff] }
 0x55c   :  { %v2670_v62 = vadd.f32 %v12641_v40, %v2334_v17  ;;  %v12643_v3 = vld [vmem:[#allocation216_spill] sm:$0xff]  ;;  %v9148_v31 = vadd.f32 %v12647_v56, %v2341_v35  ;;  %v12649_v17 = vld [vmem:[#allocation169_spill] sm:$0xff]  ;;  %v857_v51 = vadd.f32 %v8990_v61, %v584_v36  ;;  %v12651_v40 = vld [vmem:[#allocation83_spill] sm:$0xff]  ;;  %v9158_v15 = vadd.f32 %v12652_v59, %v2340_v21 }
 0x55d   :  { %v586_v27 = vadd.f32 %v12643_v3, %v8891_v50  ;;  %v12645_v39 = vld [vmem:[#allocation84_spill] sm:$0xff]  ;;  %v2669_v52 = vadd.f32 %v12649_v17, %v2333_v19  ;;  %v12653_v35 = vld [vmem:[#allocation181_spill] sm:$0xff]  ;;  %v3004_v60 = vadd.f32 %v2909_v26, %v2668_v32  ;;  %v858_v50 = vadd.f32 %v9000_v11, %v585_v16  ;;  %v12655_v6 = vld [vmem:[#allocation38_spill] sm:$0xff]  ;;  %v2915_v17 = vpop.permute.xlu1 %2914 }
 0x55e   :  { %v1731_v24 = vadd.f32 %v12645_v39, %v1395_v30  ;;  %v1730_v30 = vadd.f32 %v12651_v40, %v1394_v22  ;;  %v9161_v3 = vadd.f32 %v12653_v35, %v2345_v20  ;;  %v12654_v19 = vld [vmem:[#allocation224_spill] sm:$0xff]  ;;  %v12656_v42 = vld [vmem:[#allocation51_spill] sm:$0xff]  ;;  %v12657_v22 = vld [vmem:[#allocation225_spill] sm:$0xff]  ;;  %v1130_v33 = vadd.f32 %v8997_v58, %v857_v51  ;;  %v2913_v20 = vpop.permute.xlu0 %2912 }
 0x55f   :  { %v3005_v46 = vadd.f32 %v2911_v53, %v2669_v52  ;;  %v859_v39 = vadd.f32 %v12654_v19, %v586_v27  ;;  %v1399_v61 = vadd.f32 %v12656_v42, %v1127_v25  ;;  %v3068_v36 = vmul.f32 0.1, %v3004_v60  ;;  %v12658_v32 = vld [vmem:[#allocation75_spill] sm:$0xff]  ;;  %v12659_v28 = vld [vmem:[#allocation52_spill] sm:$0xff]  ;;  %v12660_v53 = vld [vmem:[#allocation138_spill] sm:$0xff] }
 0x560   :  { %v2067_v2 = vadd.f32 %v12655_v6, %v1731_v24  ;;  %vm3036_vm8 = vcmp.ge.f32.partialorder %v3004_v60, 0.0  ;;  %v860_v21 = vadd.f32 %v12657_v22, %v587_v4  ;;  %v2066_v52 = vadd.f32 %v12658_v32, %v1730_v30  ;;  %v12661_v40 = vld [vmem:[#allocation88_spill] sm:$0xff]  ;;  %v12662_v30 = vld [vmem:[#allocation182_spill] sm:$0xff]  ;;  %v12663_v35 = vld [vmem:[#allocation137_spill] sm:$0xff] }
 0x561   :  { %v3069_v56 = vmul.f32 0.1, %v3005_v46  ;;  %vm3037_vm9 = vcmp.ge.f32.partialorder %v3005_v46, 0.0  ;;  %v1398_v27 = vadd.f32 %v12659_v28, %v1126_v37  ;;  %v3006_v26 = vadd.f32 %v2913_v20, %v2670_v62  ;;  %v2919_v62 = vpop.permute.xlu1 %2918  ;;  %v12667_v22 = vld [vmem:[#allocation175_spill] sm:$0xff] }
 0x562   :  { %v3007_v11 = vadd.f32 %v2915_v17, %v2671_v7  ;;  %v3100_v16 = vsel %vm3036_vm8, %v3004_v60, %v3068_v36  ;;  %v1131_v25 = vadd.f32 %v9013_v41, %v858_v50  ;;  %v2339_v4 = vadd.f32 %v12660_v53, %v2067_v2  ;;  %v12664_v60 = vld [vmem:[#allocation87_spill] sm:$0xff]  ;;  %v2917_v50 = vpop.permute.xlu0 %2916  ;;  %v12668_v17 = vld [vmem:[#allocation40_spill] sm:$0xff] }
 0x563   :  { %v3101_v24 = vsel %vm3037_vm9, %v3005_v46, %v3069_v56  ;;  %3164 = vrot.lane.b32.xlu0 %v3100_v16, %s6167_s16  ;;  %v1735_v58 = vadd.f32 %v12661_v40, %v1399_v61  ;;  %v3070_v51 = vmul.f32 0.1, %v3006_v26  ;;  %vm3038_vm10 = vcmp.ge.f32.partialorder %v3006_v26, 0.0  ;;  %v12666_v56 = vld [vmem:[#allocation55_spill] sm:$0xff] }
 0x564   :  { %3166 = vrot.lane.b32.xlu1 %v3101_v24, %s6167_s16  ;;  %v3071_v59 = vmul.f32 0.1, %v3007_v11  ;;  %vm3039_vm11 = vcmp.ge.f32.partialorder %v3007_v11, 0.0  ;;  %v9177_v37 = vadd.f32 %v12662_v30, %v2344_v55  ;;  %v1132_v7 = vadd.f32 %v8882_v14, %v859_v39  ;;  %v12665_v55 = vld [vmem:[#allocation56_spill] sm:$0xff]  ;;  %v12673_v40 = vld [vmem:[#allocation91_spill] sm:$0xff] }
 0x565   :  { %v2338_v41 = vadd.f32 %v12663_v35, %v2066_v52  ;;  %v1734_v46 = vadd.f32 %v12664_v60, %v1398_v27  ;;  %v1133_v19 = vadd.f32 %v8889_v10, %v860_v21  ;;  %v3009_v6 = vadd.f32 %v2919_v62, %v2673_v54  ;;  %v12669_v21 = vld [vmem:[#allocation176_spill] sm:$0xff]  ;;  %v2923_v52 = vpop.permute.xlu1 %2922  ;;  %v12671_v27 = vld [vmem:[#allocation235_spill] sm:$0xff]  ;;  %v12675_v62 = vld [vmem:[#allocation142_spill] sm:$0xff] }
 0x566   :  { %v3102_v2 = vsel %vm3038_vm10, %v3006_v26, %v3070_v51  ;;  %v3103_v42 = vsel %vm3039_vm11, %v3007_v11, %v3071_v59  ;;  %v3008_v61 = vadd.f32 %v2917_v50, %v2672_v45  ;;  %v1402_v36 = vadd.f32 %v12665_v55, %v1130_v33  ;;  %v12670_v45 = vld [vmem:[#allocation76_spill] sm:$0xff]  ;;  %v2921_v16 = vpop.permute.xlu0 %2920  ;;  %v12677_v50 = vld [vmem:[#allocation141_spill] sm:$0xff] }
 0x567   :  { %3168 = vrot.lane.b32.xlu0 %v3102_v2, %s6167_s16  ;;  %v1403_v14 = vadd.f32 %v12666_v56, %v1131_v25  ;;  %v3073_v39 = vmul.f32 0.1, %v3009_v6  ;;  %v2675_v20 = vadd.f32 %v12667_v22, %v2339_v4  ;;  %vm3041_vm12 = vcmp.ge.f32.partialorder %v3009_v6, 0.0  ;;  %v12672_v33 = vld [vmem:[#allocation236_spill] sm:$0xff]  ;;  %v12678_v2 = vld [vmem:[#allocation58_spill] sm:$0xff] }
 0x568   :  { %3170 = vrot.lane.b32.xlu1 %v3103_v42, %s6167_s16  ;;  %v2071_v32 = vadd.f32 %v12668_v17, %v1735_v58  ;;  %v3072_v10 = vmul.f32 0.1, %v3008_v61  ;;  %v2674_v54 = vadd.f32 %v12669_v21, %v2338_v41  ;;  %vm3040_vm13 = vcmp.ge.f32.partialorder %v3008_v61, 0.0  ;;  %v12674_v51 = vld [vmem:[#allocation92_spill] sm:$0xff]  ;;  %v12676_v41 = vld [vmem:[#allocation57_spill] sm:$0xff] }
 0x569   :  { %v2070_v28 = vadd.f32 %v12670_v45, %v1734_v46  ;;  %v592_v26 = vadd.f32 %v12671_v27, %v9037_v1  ;;  %v593_v11 = vadd.f32 %v12672_v33, %v9037_v1  ;;  %v3011_v24 = vadd.f32 %v2923_v52, %v2675_v20  ;;  %v2927_v46 = vpop.permute.xlu1 %2926  ;;  %v12684_v45 = vld [vmem:[#allocation94_spill] sm:$0xff] }
 0x56a   :  { %v3105_v25 = vsel %vm3041_vm12, %v3009_v6, %v3073_v39  ;;  %v3010_v53 = vadd.f32 %v2921_v16, %v2674_v54  ;;  %v3104_v4 = vsel %vm3040_vm13, %v3008_v61, %v3072_v10  ;;  %v1738_v58 = vadd.f32 %v12673_v40, %v1402_v36  ;;  %v12679_v61 = vld [vmem:[#allocation239_spill] sm:$0xff]  ;;  %v12680_v36 = vld [vmem:[#allocation240_spill] sm:$0xff]  ;;  %v12687_v16 = vld [vmem:[#allocation254_spill] sm:$0xff] }
 0x56b   :  { %v1739_v59 = vadd.f32 %v12674_v51, %v1403_v14  ;;  %v3075_v30 = vmul.f32 0.1, %v3011_v24  ;;  %3172 = vrot.lane.b32.xlu0 %v3104_v4, %s6167_s16  ;;  %vm3043_vm14 = vcmp.ge.f32.partialorder %v3011_v24, 0.0  ;;  %v2343_v35 = vadd.f32 %v12675_v62, %v2071_v32  ;;  %v2925_v14 = vpop.permute.xlu0 %2924  ;;  %v12682_v10 = vld [vmem:[#allocation111_spill] sm:$0xff] }
 0x56c   :  { %3174 = vrot.lane.b32.xlu1 %v3105_v25, %s6167_s16  ;;  %v1405_v60 = vadd.f32 %v12676_v41, %v1133_v19  ;;  %v3074_v1 = vmul.f32 0.1, %v3010_v53  ;;  %vm3042_vm15 = vcmp.ge.f32.partialorder %v3010_v53, 0.0  ;;  %v2342_v6 = vadd.f32 %v12677_v50, %v2070_v28  ;;  %v12681_v19 = vld [vmem:[#allocation112_spill] sm:$0xff]  ;;  %v12688_v25 = vld [vmem:[#allocation255_spill] sm:$0xff]  ;;  %v12689_v41 = vld [vmem:[#allocation146_spill] sm:$0xff] }
 0x56d   :  { %v1404_v42 = vadd.f32 %v12678_v2, %v1132_v7  ;;  %v865_v55 = vadd.f32 %v12679_v61, %v592_v26  ;;  %v866_v56 = vadd.f32 %v12680_v36, %v593_v11  ;;  %v3013_v39 = vadd.f32 %v2927_v46, %v9148_v31  ;;  %v12683_v7 = vld [vmem:[#allocation179_spill] sm:$0xff]  ;;  %v12685_v31 = vld [vmem:[#allocation180_spill] sm:$0xff]  ;;  %v2931_v33 = vpop.permute.xlu1 %2930 }
 0x56e   :  { %v3107_v22 = vsel %vm3043_vm14, %v3011_v24, %v3075_v30  ;;  %v3012_v20 = vadd.f32 %v2925_v14, %v9158_v15  ;;  %v3106_v17 = vsel %vm3042_vm15, %v3010_v53, %v3074_v1  ;;  %v2074_v32 = vadd.f32 %v12681_v19, %v1738_v58  ;;  %v12686_v15 = vld [vmem:[#allocation93_spill] sm:$0xff]  ;;  %v12690_v1 = vld [vmem:[#allocation114_spill] sm:$0xff] }
 0x56f   :  { %v2075_v21 = vadd.f32 %v12682_v10, %v1739_v59  ;;  %v3077_v54 = vmul.f32 0.1, %v3013_v39  ;;  %3176 = vrot.lane.b32.xlu0 %v3106_v17, %s6167_s16  ;;  %v2679_v52 = vadd.f32 %v12683_v7, %v2343_v35  ;;  %vm3045_vm0 = vcmp.ge.f32.partialorder %v3013_v39, 0.0  ;;  %v2929_v4 = vpop.permute.xlu0 %2928  ;;  %v12694_v17 = vld [vmem:[#allocation63_spill] sm:$0xff] }
 0x570   :  { %3178 = vrot.lane.b32.xlu1 %v3107_v22, %s6167_s16  ;;  %v1741_v28 = vadd.f32 %v12684_v45, %v1405_v60  ;;  %v3076_v27 = vmul.f32 0.1, %v3012_v20  ;;  %v2678_v26 = vadd.f32 %v12685_v31, %v2342_v6  ;;  %vm3044_vm1 = vcmp.ge.f32.partialorder %v3012_v20, 0.0  ;;  %v12691_v6 = vld [vmem:[#allocation145_spill] sm:$0xff]  ;;  %v12693_v22 = vld [vmem:[#allocation64_spill] sm:$0xff]  ;;  %v12695_v10 = vld [vmem:[#allocation183_spill] sm:$0xff] }
 0x571   :  { %v1740_v11 = vadd.f32 %v12686_v15, %v1404_v42  ;;  %v596_v24 = vadd.f32 %v12687_v16, %v9079_v63  ;;  %v597_v53 = vadd.f32 %v12688_v25, %v9079_v63  ;;  %v3015_v40 = vadd.f32 %v2931_v33, %v2679_v52  ;;  %v2935_v50 = vpop.permute.xlu1 %2934  ;;  %v12699_v15 = vld [vmem:[#allocation21_spill] sm:$0xff] }
 0x572   :  { %v3109_v58 = vsel %vm3045_vm0, %v3013_v39, %v3077_v54  ;;  %v1138_v51 = vadd.f32 %v8918_v5, %v865_v55  ;;  %v1139_v59 = vadd.f32 %v8925_v8, %v866_v56  ;;  %v3014_v30 = vadd.f32 %v2929_v4, %v2678_v26  ;;  %v12692_v5 = vld [vmem:[#allocation113_spill] sm:$0xff] }
 0x573   :  { %v3108_v62 = vsel %vm3044_vm1, %v3012_v20, %v3076_v27  ;;  %v3079_v35 = vmul.f32 0.1, %v3015_v40  ;;  %vm3047_vm2 = vcmp.ge.f32.partialorder %v3015_v40, 0.0  ;;  %v2347_v60 = vadd.f32 %v12689_v41, %v2075_v21  ;;  %v2933_v55 = vpop.permute.xlu0 %2932  ;;  %v12700_v16 = vld [vmem:[#allocation257_spill] sm:$0xff] }
 0x574   :  { %3182 = vrot.lane.b32.xlu1 %v3109_v58, %s6167_s16  ;;  %3180 = vrot.lane.b32.xlu0 %v3108_v62, %s6167_s16  ;;  %v2077_v46 = vadd.f32 %v12690_v1, %v1741_v28  ;;  %v3078_v63 = vmul.f32 0.1, %v3014_v30  ;;  %vm3046_vm3 = vcmp.ge.f32.partialorder %v3014_v30, 0.0  ;;  %v2346_v2 = vadd.f32 %v12691_v6, %v2074_v32  ;;  %v12706_v1 = vld [vmem:[#allocation188_spill] sm:$0xff] }
 0x575   :  { %v2076_v42 = vadd.f32 %v12692_v5, %v1740_v11  ;;  %v869_v8 = vadd.f32 %v8966_v13, %v596_v24  ;;  %v870_v61 = vadd.f32 %v8971_v57, %v597_v53  ;;  %v3017_v36 = vadd.f32 %v2935_v50, %v9161_v3  ;;  %v12696_v57 = vld [vmem:[#allocation148_spill] sm:$0xff]  ;;  %v2939_v52 = vpop.permute.xlu1 %2938 }
 0x576   :  { %v3111_v56 = vsel %vm3047_vm2, %v3015_v40, %v3079_v35  ;;  %v3016_v14 = vadd.f32 %v2933_v55, %v9177_v37  ;;  %v3110_v39 = vsel %vm3046_vm3, %v3014_v30, %v3078_v63  ;;  %v1410_v20 = vadd.f32 %v12693_v22, %v1138_v51  ;;  %v12697_v3 = vld [vmem:[#allocation184_spill] sm:$0xff]  ;;  %v12698_v37 = vld [vmem:[#allocation147_spill] sm:$0xff]  ;;  %v12701_v40 = vld [vmem:[#allocation185_spill] sm:$0xff] }
 0x577   :  { %v1411_v19 = vadd.f32 %v12694_v17, %v1139_v59  ;;  %v3081_v32 = vmul.f32 0.1, %v3017_v36  ;;  %v2683_v13 = vadd.f32 %v12695_v10, %v2347_v60  ;;  %vm3049_vm4 = vcmp.ge.f32.partialorder %v3017_v36, 0.0  ;;  %v2937_v31 = vpop.permute.xlu0 %2936  ;;  %v12703_v59 = vld [vmem:[#allocation186_spill] sm:$0xff]  ;;  %v12704_v35 = vld [vmem:[#allocation99_spill] sm:$0xff]  ;;  %v12707_v55 = vld [vmem:[#allocation120_spill] sm:$0xff] }
 0x578   :  { %3186 = vrot.lane.b32.xlu1 %v3111_v56, %s6167_s16  ;;  %3184 = vrot.lane.b32.xlu0 %v3110_v39, %s6167_s16  ;;  %v2349_v21 = vadd.f32 %v12696_v57, %v2077_v46  ;;  %v3080_v54 = vmul.f32 0.1, %v3016_v14  ;;  %v2682_v7 = vadd.f32 %v12697_v3, %v2346_v2  ;;  %vm3048_vm8 = vcmp.ge.f32.partialorder %v3016_v14, 0.0  ;;  %v12709_v39 = vld [vmem:[#allocation119_spill] sm:$0xff] }
 0x579   :  { %v2348_v45 = vadd.f32 %v12698_v37, %v2076_v42  ;;  %v1142_v28 = vadd.f32 %v8978_v12, %v869_v8  ;;  %v1143_v27 = vadd.f32 %v8985_v44, %v870_v61  ;;  %v3019_v26 = vadd.f32 %v2939_v52, %v2683_v13  ;;  %v12702_v44 = vld [vmem:[#allocation100_spill] sm:$0xff]  ;;  %v2943_v62 = vpop.permute.xlu1 %2942  ;;  %v12713_v37 = vld [vmem:[#allocation154_spill] sm:$0xff] }
 0x57a   :  { %v3113_v33 = vsel %vm3049_vm4, %v3017_v36, %v3081_v32  ;;  %v600_v11 = vadd.f32 %v12699_v15, %v9113_v9  ;;  %v601_v24 = vadd.f32 %v12700_v16, %v9113_v9  ;;  %v3018_v25 = vadd.f32 %v2937_v31, %v2682_v7  ;;  %v12705_v9 = vld [vmem:[#allocation187_spill] sm:$0xff]  ;;  %v12715_v31 = vld [vmem:[#allocation153_spill] sm:$0xff] }
 0x57b   :  { %v3112_v53 = vsel %vm3048_vm8, %v3016_v14, %v3080_v54  ;;  %v3083_v4 = vmul.f32 0.1, %v3019_v26  ;;  %v2685_v12 = vadd.f32 %v12701_v40, %v2349_v21  ;;  %vm3051_vm9 = vcmp.ge.f32.partialorder %v3019_v26, 0.0  ;;  %v2941_v63 = vpop.permute.xlu0 %2940  ;;  %v12708_v36 = vld [vmem:[#allocation67_spill] sm:$0xff] }
 0x57c   :  { %3190 = vrot.lane.b32.xlu1 %v3113_v33, %s6167_s16  ;;  %3188 = vrot.lane.b32.xlu0 %v3112_v53, %s6167_s16  ;;  %v1747_v58 = vadd.f32 %v12702_v44, %v1411_v19  ;;  %v3082_v51 = vmul.f32 0.1, %v3018_v25  ;;  %v2684_v30 = vadd.f32 %v12703_v59, %v2348_v45  ;;  %vm3050_vm10 = vcmp.ge.f32.partialorder %v3018_v25, 0.0  ;;  %v12712_v19 = vld [vmem:[#allocation190_spill] sm:$0xff]  ;;  %v12714_v45 = vld [vmem:[#allocation104_spill] sm:$0xff] }
 0x57d   :  { %v1746_v41 = vadd.f32 %v12704_v35, %v1410_v20  ;;  %v2687_v60 = vadd.f32 %v12705_v9, %v9123_v23  ;;  %v2686_v46 = vadd.f32 %v12706_v1, %v9120_v47  ;;  %v3021_v50 = vadd.f32 %v2943_v62, %v2685_v12  ;;  %v2947_v14 = vpop.permute.xlu1 %2946  ;;  %v12719_v12 = vld [vmem:[#allocation72_spill] sm:$0xff]  ;;  %v12724_v1 = vld [vmem:[#allocation123_spill] sm:$0xff] }
 0x57e   :  { %v3115_v6 = vsel %vm3051_vm9, %v3019_v26, %v3083_v4  ;;  %v873_v2 = vadd.f32 %v9003_v38, %v600_v11  ;;  %v874_v5 = vadd.f32 %v9006_v43, %v601_v24  ;;  %v3020_v42 = vadd.f32 %v2941_v63, %v2684_v30  ;;  %v12710_v38 = vld [vmem:[#allocation68_spill] sm:$0xff]  ;;  %v12711_v43 = vld [vmem:[#allocation189_spill] sm:$0xff]  ;;  %v12721_v30 = vld [vmem:[#allocation191_spill] sm:$0xff] }
 0x57f   :  { %v3114_v8 = vsel %vm3050_vm10, %v3018_v25, %v3082_v51  ;;  %v3085_v61 = vmul.f32 0.1, %v3021_v50  ;;  %vm3053_vm11 = vcmp.ge.f32.partialorder %v3021_v50, 0.0  ;;  %v2083_v23 = vadd.f32 %v12707_v55, %v1747_v58  ;;  %v2945_v10 = vpop.permute.xlu0 %2944  ;;  %v12718_v11 = vld [vmem:[#allocation156_spill] sm:$0xff]  ;;  %v12720_v58 = vld [vmem:[#allocation71_spill] sm:$0xff]  ;;  %v12725_v63 = vld [vmem:[#allocation9_spill] sm:$0xff] }
 0x580   :  { %3194 = vrot.lane.b32.xlu1 %v3115_v6, %s6167_s16  ;;  %3192 = vrot.lane.b32.xlu0 %v3114_v8, %s6167_s16  ;;  %v1415_v56 = vadd.f32 %v12708_v36, %v1143_v27  ;;  %v3084_v47 = vmul.f32 0.1, %v3020_v42  ;;  %vm3052_vm12 = vcmp.ge.f32.partialorder %v3020_v42, 0.0  ;;  %v2082_v22 = vadd.f32 %v12709_v39, %v1746_v41  ;;  %v12723_v41 = vld [vmem:[#allocation192_spill] sm:$0xff] }
 0x581   :  { %v1414_v20 = vadd.f32 %v12710_v38, %v1142_v28  ;;  %v2689_v17 = vadd.f32 %v12711_v43, %v9135_v29  ;;  %v2688_v32 = vadd.f32 %v12712_v19, %v9128_v48  ;;  %v3023_v13 = vadd.f32 %v2947_v14, %v2687_v60  ;;  %v2951_v27 = vpop.permute.xlu1 %2950  ;;  %v12731_v38 = vld [vmem:[#allocation158_spill] sm:$0xff]  ;;  %v12732_v43 = vld [vmem:[#allocation108_spill] sm:$0xff] }
 0x582   :  { %v3117_v57 = vsel %vm3053_vm11, %v3021_v50, %v3085_v61  ;;  %v1146_v21 = vadd.f32 %v9020_v18, %v873_v2  ;;  %v1147_v54 = vadd.f32 %v9023_v34, %v874_v5  ;;  %v3022_v3 = vadd.f32 %v2945_v10, %v2686_v46  ;;  %v12716_v18 = vld [vmem:[#allocation103_spill] sm:$0xff]  ;;  %v12726_v50 = vld [vmem:[#allocation105_spill] sm:$0xff]  ;;  %v12728_v5 = vld [vmem:[#allocation106_spill] sm:$0xff] }
 0x583   :  { %v3116_v7 = vsel %vm3052_vm12, %v3020_v42, %v3084_v47  ;;  %v3087_v52 = vmul.f32 0.1, %v3023_v13  ;;  %vm3055_vm13 = vcmp.ge.f32.partialorder %v3023_v13, 0.0  ;;  %v2355_v29 = vadd.f32 %v12713_v37, %v2083_v23  ;;  %v12717_v34 = vld [vmem:[#allocation155_spill] sm:$0xff]  ;;  %v2949_v24 = vpop.permute.xlu0 %2948  ;;  %v12729_v23 = vld [vmem:[#allocation5_spill] sm:$0xff] }
 0x584   :  { %3198 = vrot.lane.b32.xlu1 %v3117_v57, %s6167_s16  ;;  %3196 = vrot.lane.b32.xlu0 %v3116_v7, %s6167_s16  ;;  %v1751_v28 = vadd.f32 %v12714_v45, %v1415_v56  ;;  %v3086_v48 = vmul.f32 0.1, %v3022_v3  ;;  %vm3054_vm14 = vcmp.ge.f32.partialorder %v3022_v3, 0.0  ;;  %v2354_v26 = vadd.f32 %v12715_v31, %v2082_v22  ;;  %v12727_v2 = vld [vmem:[#allocation27_spill] sm:$0xff]  ;;  %v12730_v56 = vld [vmem:[#allocation193_spill] sm:$0xff]  ;;  %v12737_v31 = vld [vmem:[#allocation12_spill] sm:$0xff] }
 0x585   :  { %v1750_v33 = vadd.f32 %v12716_v18, %v1414_v20  ;;  %v2356_v15 = vadd.f32 %v12717_v34, %v9100_v49  ;;  %v2357_v16 = vadd.f32 %v12718_v11, %v9097_v0  ;;  %v3025_v25 = vadd.f32 %v2951_v27, %v2689_v17  ;;  %v12722_v49 = vld [vmem:[#allocation124_spill] sm:$0xff]  ;;  %v2955_v60 = vpop.permute.xlu1 %2954  ;;  %v12733_v10 = vld [vmem:[#allocation157_spill] sm:$0xff]  ;;  %v12734_v57 = vld [vmem:[#allocation107_spill] sm:$0xff] }
 0x586   :  { %v3119_v53 = vsel %vm3055_vm13, %v3023_v13, %v3087_v52  ;;  %v3024_v4 = vadd.f32 %v2949_v24, %v2688_v32  ;;  %v3118_v40 = vsel %vm3054_vm14, %v3022_v3, %v3086_v48  ;;  %v1418_v44 = vadd.f32 %v12719_v12, %v1146_v21  ;;  %v12735_v52 = vld [vmem:[#allocation126_spill] sm:$0xff]  ;;  %v12738_v18 = vld [vmem:[#allocation128_spill] sm:$0xff] }
 0x587   :  { %v1419_v51 = vadd.f32 %v12720_v58, %v1147_v54  ;;  %v3089_v59 = vmul.f32 0.1, %v3025_v25  ;;  %v2691_v62 = vadd.f32 %v12721_v30, %v2355_v29  ;;  %vm3057_vm15 = vcmp.ge.f32.partialorder %v3025_v25, 0.0  ;;  %v2953_v8 = vpop.permute.xlu0 %2952  ;;  %v12736_v29 = vld [vmem:[#allocation125_spill] sm:$0xff]  ;;  %v6019_v34 = vld [vmem:[%s11898_s0 + $0x8] sm:$0xff]  ;;  %v12739_v11 = vld [vmem:[#allocation198_spill] sm:$0xff] }
 0x588   :  { %3202 = vrot.lane.b32.xlu1 %v3119_v53, %s6167_s16  ;;  %3200 = vrot.lane.b32.xlu0 %v3118_v40, %s6167_s16  ;;  %v2087_v35 = vadd.f32 %v12722_v49, %v1751_v28  ;;  %v3088_v0 = vmul.f32 0.1, %v3024_v4  ;;  %v2690_v9 = vadd.f32 %v12723_v41, %v2354_v26  ;;  %vm3056_vm0 = vcmp.ge.f32.partialorder %v3024_v4, 0.0  ;;  %v12743_v49 = vld [vmem:[#allocation3_spill] sm:$0xff] }
 0x589   :  { %v2086_v46 = vadd.f32 %v12724_v1, %v1750_v33  ;;  %v1752_v6 = vadd.f32 %v12726_v50, %v12725_v63  ;;  %v1753_v42 = vadd.f32 %v12728_v5, %v12727_v2  ;;  %v3027_v61 = vadd.f32 %v2955_v60, %v2691_v62  ;;  %v2959_v32 = vpop.permute.xlu1 %2958  ;;  %v12745_v60 = vld [vmem:[#allocation162_spill] sm:$0xff]  ;;  %v12747_v2 = vld [vmem:[#allocation161_spill] sm:$0xff] }
 0x58a   :  { %v3121_v55 = vsel %vm3057_vm15, %v3025_v25, %v3089_v59  ;;  %v2693_v36 = vadd.f32 %v12729_v23, %v2357_v16  ;;  %v2692_v47 = vadd.f32 %v12730_v56, %v2356_v15  ;;  %v3026_v14 = vadd.f32 %v2953_v8, %v2690_v9  ;;  %v12740_v25 = vld [vmem:[#allocation127_spill] sm:$0xff] }
 0x58b   :  { %v3120_v39 = vsel %vm3056_vm0, %v3024_v4, %v3088_v0  ;;  %v3091_v22 = vmul.f32 0.1, %v3027_v61  ;;  %vm3059_vm1 = vcmp.ge.f32.partialorder %v3027_v61, 0.0  ;;  %v2359_v20 = vadd.f32 %v12731_v38, %v2087_v35  ;;  %v2957_v54 = vpop.permute.xlu0 %2956  ;;  %v12741_v4 = vld [vmem:[#allocation160_spill] sm:$0xff]  ;;  %v12744_v0 = vld [vmem:[#allocation214_spill] sm:$0xff]  ;;  %v12749_v38 = vld [vmem:[#allocation229_spill] sm:$0xff] }
 0x58c   :  { %3206 = vrot.lane.b32.xlu1 %v3121_v55, %s6167_s16  ;;  %3204 = vrot.lane.b32.xlu0 %v3120_v39, %s6167_s16  ;;  %v1755_v17 = vadd.f32 %v12732_v43, %v1419_v51  ;;  %v3090_v19 = vmul.f32 0.1, %v3026_v14  ;;  %vm3058_vm2 = vcmp.ge.f32.partialorder %v3026_v14, 0.0  ;;  %v2358_v13 = vadd.f32 %v12733_v10, %v2086_v46  ;;  %v12742_v51 = vld [vmem:[#allocation159_spill] sm:$0xff] }
 0x58d   :  { %v1754_v21 = vadd.f32 %v12734_v57, %v1418_v44  ;;  %v3029_v3 = vadd.f32 %v2959_v32, %v2693_v36  ;;  %v3123_v7 = vsel %vm3059_vm1, %v3027_v61, %v3091_v22  ;;  %v2089_v37 = vadd.f32 %v12735_v52, %v1753_v42  ;;  %v2963_v24 = vpop.permute.xlu1 %2962  ;;  %v12746_v46 = vld [vmem:[#allocation215_spill] sm:$0xff] }
 0x58e   :  { %v2088_v45 = vadd.f32 %v12736_v29, %v1752_v6  ;;  %v3028_v28 = vadd.f32 %v2957_v54, %v2692_v47  ;;  %v3122_v48 = vsel %vm3058_vm2, %v3026_v14, %v3090_v19  ;;  %v2695_v26 = vadd.f32 %v12737_v31, %v2359_v20  ;;  %v12748_v47 = vld [vmem:[#allocation228_spill] sm:$0xff] }
 0x58f   :  { %v3093_v27 = vmul.f32 0.1, %v3029_v3  ;;  %vm3061_vm3 = vcmp.ge.f32.partialorder %v3029_v3, 0.0  ;;  %v2091_v33 = vadd.f32 %v12738_v18, %v1755_v17  ;;  %v2694_v16 = vadd.f32 %v12739_v11, %v2358_v13  ;;  %v2961_v12 = vpop.permute.xlu0 %2960  ;;  %v12750_v29 = vld [vmem:[#allocation4_spill] sm:$0xff] }
 0x590   :  { %3210 = vrot.lane.b32.xlu1 %v3123_v7, %s6167_s16  ;;  %3208 = vrot.lane.b32.xlu0 %v3122_v48, %s6167_s16  ;;  %v3092_v15 = vmul.f32 0.1, %v3028_v28  ;;  %vm3060_vm4 = vcmp.ge.f32.partialorder %v3028_v28, 0.0  ;;  %v2090_v53 = vadd.f32 %v12740_v25, %v1754_v21  ;;  %v2361_v40 = vadd.f32 %v12741_v4, %v2089_v37 }
 0x591   :  { %v3031_v44 = vadd.f32 %v2963_v24, %v2695_v26  ;;  %v3125_v58 = vsel %vm3061_vm3, %v3029_v3, %v3093_v27  ;;  %v2360_v59 = vadd.f32 %v12742_v51, %v2088_v45  ;;  %v3030_v30 = vadd.f32 %v2961_v12, %v2694_v16  ;;  %v2967_v6 = vpop.permute.xlu1 %2966 }
 0x592   :  { %v3124_v62 = vsel %vm3060_vm4, %v3028_v28, %v3092_v15  ;;  %v3300_v35 = vrot.slane %v6019_v34, %v12743_v49  ;;  %v2697_v41 = vadd.f32 %v12744_v0, %v2361_v40  ;;  %v2363_v1 = vadd.f32 %v12745_v60, %v2091_v33 }
 0x593   :  { %v3095_v9 = vmul.f32 0.1, %v3031_v44  ;;  %vm3063_vm8 = vcmp.ge.f32.partialorder %v3031_v44, 0.0  ;;  %v2696_v63 = vadd.f32 %v12746_v46, %v2360_v59  ;;  %v3094_v50 = vmul.f32 0.1, %v3030_v30  ;;  %v2965_v42 = vpop.permute.xlu0 %2964 }
 0x594   :  { %3214 = vrot.lane.b32.xlu1 %v3125_v58, %s6167_s16  ;;  %3212 = vrot.lane.b32.xlu0 %v3124_v62, %s6167_s16  ;;  %vm3062_vm9 = vcmp.ge.f32.partialorder %v3030_v30, 0.0  ;;  %v2362_v5 = vadd.f32 %v12747_v2, %v2090_v53  ;;  %v3033_v8 = vadd.f32 %v2967_v6, %v2697_v41  ;;  %v3308_v36 = vcombine.high %v3300_v35, %v3300_v35 }
 0x595   :  { %v3127_v61 = vsel %vm3063_vm8, %v3031_v44, %v3095_v9  ;;  %v3032_v55 = vadd.f32 %v2965_v42, %v2696_v63  ;;  %v3126_v23 = vsel %vm3062_vm9, %v3030_v30, %v3094_v50  ;;  %v2699_v14 = vadd.f32 %v12748_v47, %v2363_v1  ;;  %v2971_v43 = vpop.permute.xlu1 %2970 }
 0x596   :  { %v3097_v56 = vmul.f32 0.1, %v3033_v8  ;;  %vm3065_vm10 = vcmp.ge.f32.partialorder %v3033_v8, 0.0  ;;  %v3293_v39 = vcombine.high %v6019_v34, %v6019_v34  ;;  %v2698_v20 = vadd.f32 %v12749_v38, %v2362_v5 }
 0x597   :  { %v3096_v22 = vmul.f32 0.1, %v3032_v55  ;;  %vm3064_vm11 = vcmp.ge.f32.partialorder %v3032_v55, 0.0  ;;  %v2969_v17 = vpop.permute.xlu0 %2968  ;;  %v3035_v19 = vadd.f32 %v2971_v43, %v2699_v14  ;;  %v3330_v57 = vrot.slane %v3308_v36, %v12743_v49 }
 0x598   :  { %3218 = vrot.lane.b32.xlu1 %v3127_v61, %s6167_s16  ;;  %3216 = vrot.lane.b32.xlu0 %v3126_v23, %s6167_s16  ;;  %v3129_v32 = vsel %vm3065_vm10, %v3033_v8, %v3097_v56  ;;  %v3034_v10 = vadd.f32 %v2969_v17, %v2698_v20  ;;  %v3316_v54 = vrot.slane %v3300_v35, %v12743_v49  ;;  %v12751_v4 = vmov 0  }
 0x599   :  { %v3128_v13 = vsel %vm3064_vm11, %v3032_v55, %v3096_v22  ;;  %v3099_v21 = vmul.f32 0.1, %v3035_v19  ;;  %vm3067_vm12 = vcmp.ge.f32.partialorder %v3035_v19, 0.0  ;;  %v3307_v3 = vrot.slane %v3293_v39, %v12743_v49 }
 0x59a   :  { %v3098_v7 = vmul.f32 0.1, %v3034_v10  ;;  %vm3066_vm13 = vcmp.ge.f32.partialorder %v3034_v10, 0.0  ;;  %v9330_v45 = vrot.slane %v3330_v57, %v12750_v29  ;;  %v3338_v28 = vcombine.high %v3316_v54, %v3316_v54 }
 0x59b   :  { %v3131_v52 = vsel %vm3067_vm12, %v3035_v19, %v3099_v21  ;;  %v9334_v48 = vrot.slane %v3316_v54, %v12750_v29  ;;  %v3340_v27 = vcombine.high %v3330_v57, %v3330_v57  ;;  %v3309_v31 = vcombine.high %v3307_v3, %v3307_v3 }
 0x59c   :  { %3222 = vrot.lane.b32.xlu1 %v3129_v32, %s6167_s16  ;;  %3220 = vrot.lane.b32.xlu0 %v3128_v13, %s6167_s16  ;;  %v3130_v37 = vsel %vm3066_vm13, %v3034_v10, %v3098_v7  ;;  %v9338_v26 = vrot.slane %v3338_v28, %v12750_v29  ;;  %v3323_v18 = vrot.slane %v3307_v3, %v12743_v49  ;;  %v12752_v40 = vmov 3  }
 0x59d   :  { %v9343_v33 = vrot.slane %v3340_v27, %v12750_v29  ;;  %v3337_v34 = vrot.slane %v3309_v31, %v12743_v49  ;;  %v12753_v12 = vmov 6   ;;  %v12754_v49 = vmov 1  }
 0x59e   :  { %v9348_v15 = vrot.slane %v3323_v18, %v12750_v29  ;;  %v3339_v11 = vcombine.high %v3323_v18, %v3323_v18  ;;  %v12755_v50 = vmov 4  }
 0x59f   :  { %v9352_v16 = vrot.slane %v3337_v34, %v12750_v29  ;;  %v3341_v24 = vcombine.high %v3337_v34, %v3337_v34 }
 0x5a0   :  { %3226 = vrot.lane.b32.xlu1 %v3131_v52, %s6167_s16  ;;  %3224 = vrot.lane.b32.xlu0 %v3130_v37, %s6167_s16  ;;  %v9356_v25 = vrot.slane %v3339_v11, %v12750_v29 }
 0x5a1   :  { %v9360_v53 = vrot.slane %v3341_v24, %v12750_v29 }
 0x5a4   :  { %3379 = vperm.xlu1 %6055, %v9330_v45   ;;  %3375 = vperm.xlu0 %6054, %v9334_v48  }
 0x5a8   :  { %3383 = vperm.xlu1 %6055, %v9338_v26   ;;  %3387 = vperm.xlu0 %6054, %v9343_v33  }
 0x5ac   :  { %3391 = vperm.xlu1 %6055, %v9348_v15   ;;  %3395 = vperm.xlu0 %6054, %v9352_v16  }
 0x5b0   :  { %3399 = vperm.xlu1 %6055, %v9356_v25   ;;  %3403 = vperm.xlu0 %6054, %v9360_v53  }
 0x5b4   :  { %6056 = vset.pattern.permute.xlu1 %v12751_v4  ;;  %6057 = vset.pattern.permute.xlu0 %v12751_v4 }
 0x5b5   :  { %3455 = vperm.xlu1 %6056, %v9334_v48   ;;  %3459 = vperm.xlu0 %6057, %v9330_v45  }
 0x5b9   :  { %3463 = vperm.xlu1 %6056, %v9338_v26   ;;  %3471 = vperm.xlu0 %6057, %v9348_v15  }
 0x5bd   :  { %3467 = vperm.xlu1 %6056, %v9343_v33   ;;  %3479 = vperm.xlu0 %6057, %v9356_v25  }
 0x5c1   :  { %3475 = vperm.xlu1 %6056, %v9352_v16   ;;  %6058 = vset.pattern.permute.xlu0 %v12752_v40 }
 0x5c2   :  { %3551 = vperm.xlu0 %6058, %v9334_v48  }
 0x5c5   :  { %3483 = vperm.xlu1 %6056, %v9360_v53  }
 0x5c6   :  { %3563 = vperm.xlu0 %6058, %v9343_v33  }
 0x5c9   :  { %6059 = vset.pattern.permute.xlu1 %v12752_v40 }
 0x5ca   :  { %3555 = vperm.xlu1 %6059, %v9330_v45   ;;  %3571 = vperm.xlu0 %6058, %v9352_v16  }
 0x5ce   :  { %3559 = vperm.xlu1 %6059, %v9338_v26   ;;  %3579 = vperm.xlu0 %6058, %v9360_v53  }
 0x5d2   :  { %3567 = vperm.xlu1 %6059, %v9348_v15   ;;  %6061 = vset.pattern.permute.xlu0 %v12753_v12 }
 0x5d3   :  { %3827 = vperm.xlu0 %6061, %v9330_v45  }
 0x5d5   :  { %v3165_v44 = vpop.permute.xlu0 %3164 }
 0x5d6   :  { %3575 = vperm.xlu1 %6059, %v9356_v25   ;;  %v3167_v58 = vpop.permute.xlu1 %3166  ;;  %3260 = vst.msk [vmem:[#allocation2 + $0x1] sm:$0xff] %vm230_vm5, %v3165_v44 }
 0x5d7   :  { %3261 = vst.msk [vmem:[#allocation2 + $0x9] sm:$0xff] %vm230_vm5, %v3167_v58  ;;  %3839 = vperm.xlu0 %6061, %v9348_v15  }
 0x5d9   :  { %v3169_v51 = vpop.permute.xlu0 %3168 }
 0x5da   :  { %6060 = vset.pattern.permute.xlu1 %v12753_v12  ;;  %v3171_v59 = vpop.permute.xlu1 %3170  ;;  %3262 = vst.msk [vmem:[#allocation2 + $0x19] sm:$0xff] %vm230_vm5, %v3169_v51 }
 0x5db   :  { %3263 = vst.msk [vmem:[#allocation2 + $0x21] sm:$0xff] %vm230_vm5, %v3171_v59  ;;  %3823 = vperm.xlu1 %6060, %v9334_v48   ;;  %3847 = vperm.xlu0 %6061, %v9356_v25  }
 0x5dd   :  { %v3173_v62 = vpop.permute.xlu0 %3172 }
 0x5de   :  { %v3175_v30 = vpop.permute.xlu1 %3174  ;;  %3264 = vst.msk [vmem:[#allocation2 + $0x31] sm:$0xff] %vm230_vm5, %v3173_v62 }
 0x5df   :  { %3265 = vst.msk [vmem:[#allocation2 + $0x39] sm:$0xff] %vm230_vm5, %v3175_v30  ;;  %3831 = vperm.xlu1 %6060, %v9338_v26   ;;  %6062 = vset.pattern.permute.xlu0 %v12754_v49 }
 0x5e0   :  { %4143 = vperm.xlu0 %6062, %v9334_v48  }
 0x5e1   :  { %v3177_v0 = vpop.permute.xlu0 %3176 }
 0x5e2   :  { %v3179_v35 = vpop.permute.xlu1 %3178  ;;  %3266 = vst.msk [vmem:[#allocation2 + $0x49] sm:$0xff] %vm230_vm5, %v3177_v0  ;;  %v9498_v0 = vld [vmem:[#allocation2 + $0x8] sm:$0xff] }
 0x5e3   :  { %3267 = vst.msk [vmem:[#allocation2 + $0x51] sm:$0xff] %vm230_vm5, %v3179_v35  ;;  %3835 = vperm.xlu1 %6060, %v9343_v33   ;;  %v9496_v35 = vld [vmem:[#allocation2] sm:$0xff] }
 0x5e4   :  { %4155 = vperm.xlu0 %6062, %v9343_v33  }
 0x5e6   :  { %v3183_v41 = vpop.permute.xlu1 %3182  ;;  %v3181_v9 = vpop.permute.xlu0 %3180 }
 0x5e7   :  { %3269 = vst.msk [vmem:[#allocation2 + $0x69] sm:$0xff] %vm230_vm5, %v3183_v41  ;;  %3843 = vperm.xlu1 %6060, %v9352_v16   ;;  %3268 = vst.msk [vmem:[#allocation2 + $0x61] sm:$0xff] %vm230_vm5, %v3181_v9 }
 0x5e8   :  { %4163 = vperm.xlu0 %6062, %v9352_v16  }
 0x5ea   :  { %v3187_v60 = vpop.permute.xlu1 %3186  ;;  %v3185_v1 = vpop.permute.xlu0 %3184 }
 0x5eb   :  { %3271 = vst.msk [vmem:[#allocation2 + $0x81] sm:$0xff] %vm230_vm5, %v3187_v60  ;;  %3851 = vperm.xlu1 %6060, %v9360_v53   ;;  %3270 = vst.msk [vmem:[#allocation2 + $0x79] sm:$0xff] %vm230_vm5, %v3185_v1 }
 0x5ec   :  { %4171 = vperm.xlu0 %6062, %v9360_v53  }
 0x5ee   :  { %v3191_v46 = vpop.permute.xlu1 %3190  ;;  %v3189_v63 = vpop.permute.xlu0 %3188 }
 0x5ef   :  { %3273 = vst.msk [vmem:[#allocation2 + $0x99] sm:$0xff] %vm230_vm5, %v3191_v46  ;;  %6063 = vset.pattern.permute.xlu1 %v12754_v49  ;;  %3272 = vst.msk [vmem:[#allocation2 + $0x91] sm:$0xff] %vm230_vm5, %v3189_v63 }
 0x5f0   :  { %4147 = vperm.xlu1 %6063, %v9330_v45   ;;  %6065 = vset.pattern.permute.xlu0 %v12755_v50 }
 0x5f2   :  { %v3195_v6 = vpop.permute.xlu1 %3194  ;;  %v3193_v2 = vpop.permute.xlu0 %3192 }
 0x5f3   :  { %3275 = vst.msk [vmem:[#allocation2 + $0xb1] sm:$0xff] %vm230_vm5, %v3195_v6  ;;  %3274 = vst.msk [vmem:[#allocation2 + $0xa9] sm:$0xff] %vm230_vm5, %v3193_v2  ;;  %v9512_v6 = vld [vmem:[#allocation2 + $0x20] sm:$0xff] }
 0x5f4   :  { %4151 = vperm.xlu1 %6063, %v9338_v26  }
 0x5f6   :  { %v3199_v5 = vpop.permute.xlu1 %3198  ;;  %v3197_v42 = vpop.permute.xlu0 %3196 }
 0x5f7   :  { %3277 = vst.msk [vmem:[#allocation2 + $0xc9] sm:$0xff] %vm230_vm5, %v3199_v5  ;;  %3276 = vst.msk [vmem:[#allocation2 + $0xc1] sm:$0xff] %vm230_vm5, %v3197_v42 }
 0x5f8   :  { %4159 = vperm.xlu1 %6063, %v9348_v15  }
 0x5fa   :  { %v3203_v8 = vpop.permute.xlu1 %3202  ;;  %v3201_v61 = vpop.permute.xlu0 %3200 }
 0x5fb   :  { %3279 = vst.msk [vmem:[#allocation2 + $0xe1] sm:$0xff] %vm230_vm5, %v3203_v8  ;;  %3278 = vst.msk [vmem:[#allocation2 + $0xd9] sm:$0xff] %vm230_vm5, %v3201_v61  ;;  %v9518_v8 = vld [vmem:[#allocation2 + $0x30] sm:$0xff]  ;;  %v9520_v61 = vld [vmem:[#allocation2 + $0x38] sm:$0xff] }
 0x5fc   :  { %4167 = vperm.xlu1 %6063, %v9356_v25  }
 0x5fe   :  { %v3207_v55 = vpop.permute.xlu1 %3206  ;;  %v3205_v23 = vpop.permute.xlu0 %3204 }
 0x5ff   :  { %3281 = vst.msk [vmem:[#allocation2 + $0xf9] sm:$0xff] %vm230_vm5, %v3207_v55  ;;  %3280 = vst.msk [vmem:[#allocation2 + $0xf1] sm:$0xff] %vm230_vm5, %v3205_v23 }
 0x600   :  { %6064 = vset.pattern.permute.xlu1 %v12755_v50  ;;  %v9510_v50 = vld [vmem:[#allocation2 + $0x18] sm:$0xff] }
 0x602   :  { %v3211_v36 = vpop.permute.xlu1 %3210  ;;  %v3209_v56 = vpop.permute.xlu0 %3208 }
 0x603   :  { %3283 = vst.msk [vmem:[#allocation2 + $0x111] sm:$0xff] %vm230_vm5, %v3211_v36  ;;  %3282 = vst.msk [vmem:[#allocation2 + $0x109] sm:$0xff] %vm230_vm5, %v3209_v56 }
 0x606   :  { %v3215_v47 = vpop.permute.xlu1 %3214  ;;  %v3213_v14 = vpop.permute.xlu0 %3212 }
 0x607   :  { %3285 = vst.msk [vmem:[#allocation2 + $0x129] sm:$0xff] %vm230_vm5, %v3215_v47  ;;  %3284 = vst.msk [vmem:[#allocation2 + $0x121] sm:$0xff] %vm230_vm5, %v3213_v14  ;;  %v9526_v47 = vld [vmem:[#allocation2 + $0x48] sm:$0xff]  ;;  %v9528_v14 = vld [vmem:[#allocation2 + $0x50] sm:$0xff] }
 0x608   :  { %12788 = vst [vmem:[#allocation32_spill] sm:$0xff] %v9526_v47  ;;  %12789 = vst [vmem:[#allocation249_spill] sm:$0xff] %v9528_v14 }
 0x60a   :  { %v3219_v39 = vpop.permute.xlu1 %3218  ;;  %v3217_v22 = vpop.permute.xlu0 %3216 }
 0x60b   :  { %3287 = vst.msk [vmem:[#allocation2 + $0x141] sm:$0xff] %vm230_vm5, %v3219_v39  ;;  %3286 = vst.msk [vmem:[#allocation2 + $0x139] sm:$0xff] %vm230_vm5, %v3217_v22 }
 0x60e   :  { %v3223_v38 = vpop.permute.xlu1 %3222  ;;  %v3221_v20 = vpop.permute.xlu0 %3220 }
 0x60f   :  { %3289 = vst.msk [vmem:[#allocation2 + $0x159] sm:$0xff] %vm230_vm5, %v3223_v38  ;;  %3288 = vst.msk [vmem:[#allocation2 + $0x151] sm:$0xff] %vm230_vm5, %v3221_v20  ;;  %v9534_v20 = vld [vmem:[#allocation2 + $0x60] sm:$0xff] }
 0x610   :  { %12790 = vst [vmem:[#allocation251_spill] sm:$0xff] %v9534_v20 }
 0x612   :  { %v3227_v43 = vpop.permute.xlu1 %3226  ;;  %v3225_v17 = vpop.permute.xlu0 %3224 }
 0x613   :  { %3291 = vst.msk [vmem:[#allocation2 + $0x171] sm:$0xff] %vm230_vm5, %v3227_v43  ;;  %3290 = vst.msk [vmem:[#allocation2 + $0x169] sm:$0xff] %vm230_vm5, %v3225_v17  ;;  %v9536_v43 = vld [vmem:[#allocation2 + $0x68] sm:$0xff]  ;;  %vm5982_vm5 = vcmask 130048  }
 0x614   :  { %12791 = vst [vmem:[#allocation194_spill] sm:$0xff] %v9536_v43 }
 0x623   :  { %v9438_v19 = vpop.permute.xlu1 %3379  ;;  %v9440_v32 = vpop.permute.xlu0 %3375 }
 0x624   :  { %12756 = vst [vmem:[#allocation28_spill] sm:$0xff] %v9438_v19  ;;  %12757 = vst [vmem:[#allocation199_spill] sm:$0xff] %v9440_v32 }
 0x627   :  { %v9442_v10 = vpop.permute.xlu1 %3383  ;;  %v9444_v13 = vpop.permute.xlu0 %3387 }
 0x628   :  { %12758 = vst [vmem:[#allocation200_spill] sm:$0xff] %v9442_v10  ;;  %12759 = vst [vmem:[#allocation8_spill] sm:$0xff] %v9444_v13  ;;  %v9624_v13 = vld [vmem:[#allocation2 + $0x170] sm:$0xff] }
 0x62b   :  { %v9446_v57 = vpop.permute.xlu1 %3391  ;;  %v9448_v21 = vpop.permute.xlu0 %3395 }
 0x62c   :  { %12760 = vst [vmem:[#allocation166_spill] sm:$0xff] %v9446_v57  ;;  %12761 = vst [vmem:[#allocation196_spill] sm:$0xff] %v9448_v21  ;;  %v9600_v21 = vld [vmem:[#allocation2 + $0x128] sm:$0xff] }
 0x62f   :  { %v9450_v54 = vpop.permute.xlu1 %3399  ;;  %v9452_v3 = vpop.permute.xlu0 %3403 }
 0x630   :  { %12762 = vst [vmem:[#allocation202_spill] sm:$0xff] %v9450_v54  ;;  %12763 = vst [vmem:[#allocation206_spill] sm:$0xff] %v9452_v3  ;;  %v9726_v54 = vld [vmem:[#allocation2 + $0x40] sm:$0x3] }
 0x634   :  { %v9454_v7 = vpop.permute.xlu1 %3455  ;;  %v9456_v52 = vpop.permute.xlu0 %3459 }
 0x635   :  { %12764 = vst [vmem:[#allocation197_spill] sm:$0xff] %v9454_v7  ;;  %12765 = vst [vmem:[#allocation167_spill] sm:$0xff] %v9456_v52 }
 0x638   :  { %v9458_v37 = vpop.permute.xlu1 %3463  ;;  %v9460_v29 = vpop.permute.xlu0 %3471 }
 0x639   :  { %12766 = vst [vmem:[#allocation29_spill] sm:$0xff] %v9458_v37  ;;  %12767 = vst [vmem:[#allocation203_spill] sm:$0xff] %v9460_v29 }
 0x63c   :  { %v9462_v28 = vpop.permute.xlu1 %3467  ;;  %v9464_v27 = vpop.permute.xlu0 %3479 }
 0x63d   :  { %12768 = vst [vmem:[#allocation168_spill] sm:$0xff] %v9462_v28  ;;  %12769 = vst [vmem:[#allocation11_spill] sm:$0xff] %v9464_v27 }
 0x640   :  { %v9466_v31 = vpop.permute.xlu1 %3475 }
 0x641   :  { %12770 = vst [vmem:[#allocation30_spill] sm:$0xff] %v9466_v31  ;;  %v9468_v18 = vpop.permute.xlu0 %3551  ;;  %v9616_v31 = vld [vmem:[#allocation2 + $0x158] sm:$0xff] }
 0x642   :  { %12771 = vst [vmem:[#allocation13_spill] sm:$0xff] %v9468_v18  ;;  %v9608_v18 = vld [vmem:[#allocation2 + $0x140] sm:$0xff] }
 0x644   :  { %v9470_v34 = vpop.permute.xlu1 %3483 }
 0x645   :  { %12772 = vst [vmem:[#allocation212_spill] sm:$0xff] %v9470_v34  ;;  %v9472_v11 = vpop.permute.xlu0 %3563 }
 0x646   :  { %12773 = vst [vmem:[#allocation210_spill] sm:$0xff] %v9472_v11  ;;  %v9592_v11 = vld [vmem:[#allocation2 + $0x110] sm:$0xff] }
 0x649   :  { %v9474_v24 = vpop.permute.xlu1 %3555  ;;  %v9476_v4 = vpop.permute.xlu0 %3571 }
 0x64a   :  { %12774 = vst [vmem:[#allocation218_spill] sm:$0xff] %v9474_v24  ;;  %12775 = vst [vmem:[#allocation219_spill] sm:$0xff] %v9476_v4  ;;  %v9582_v4 = vld [vmem:[#allocation2 + $0xf0] sm:$0xff]  ;;  %v9584_v24 = vld [vmem:[#allocation2 + $0xf8] sm:$0xff] }
 0x64d   :  { %v9478_v40 = vpop.permute.xlu1 %3559  ;;  %v9480_v12 = vpop.permute.xlu0 %3579 }
 0x64e   :  { %12776 = vst [vmem:[#allocation211_spill] sm:$0xff] %v9478_v40  ;;  %12777 = vst [vmem:[#allocation31_spill] sm:$0xff] %v9480_v12  ;;  %v9576_v40 = vld [vmem:[#allocation2 + $0xe0] sm:$0xff] }
 0x651   :  { %v9482_v44 = vpop.permute.xlu1 %3567 }
 0x652   :  { %12778 = vst [vmem:[#allocation241_spill] sm:$0xff] %v9482_v44  ;;  %v9484_v58 = vpop.permute.xlu0 %3827  ;;  %v9574_v44 = vld [vmem:[#allocation2 + $0xd8] sm:$0xff] }
 0x653   :  { %12779 = vst [vmem:[#allocation243_spill] sm:$0xff] %v9484_v58  ;;  %v9568_v58 = vld [vmem:[#allocation2 + $0xc8] sm:$0xff] }
 0x654   :  { %12795 = vst [vmem:[#allocation201_spill] sm:$0xff] %v9568_v58 }
 0x655   :  { %v9486_v51 = vpop.permute.xlu1 %3575 }
 0x656   :  { %12780 = vst [vmem:[#allocation221_spill] sm:$0xff] %v9486_v51  ;;  %v9488_v59 = vpop.permute.xlu0 %3839 }
 0x657   :  { %12781 = vst [vmem:[#allocation245_spill] sm:$0xff] %v9488_v59  ;;  %v9566_v59 = vld [vmem:[#allocation2 + $0xc0] sm:$0xff] }
 0x65a   :  { %v9490_v30 = vpop.permute.xlu1 %3823  ;;  %v9492_v62 = vpop.permute.xlu0 %3847 }
 0x65b   :  { %12782 = vst [vmem:[#allocation247_spill] sm:$0xff] %v9490_v30  ;;  %12783 = vst [vmem:[#allocation222_spill] sm:$0xff] %v9492_v62  ;;  %v9560_v30 = vld [vmem:[#allocation2 + $0xb0] sm:$0xff] }
 0x65e   :  { %v9494_v49 = vpop.permute.xlu1 %3831 }
 0x65f   :  { %12784 = vst [vmem:[#allocation207_spill] sm:$0xff] %v9494_v49  ;;  %v4144_v41 = vpop.permute.xlu0 %4143  ;;  %v9558_v49 = vld [vmem:[#allocation2 + $0xa8] sm:$0xff] }
 0x660   :  { %v4174_v9 = vmul.f32 %v4144_v41, %v9496_v35  ;;  %v4175_v60 = vmul.f32 %v4144_v41, %v9498_v0  ;;  %12794 = vst [vmem:[#allocation163_spill] sm:$0xff] %v9558_v49 }
 0x662   :  { %v9502_v1 = vpop.permute.xlu1 %3835  ;;  %4238 = vrot.lane.b32.xlu1 %v4174_v9, %s6174_s2  ;;  %4240 = vrot.lane.b32.xlu0 %v4175_v60, %s6174_s2 }
 0x663   :  { %12785 = vst [vmem:[#allocation195_spill] sm:$0xff] %v9502_v1  ;;  %v4156_v56 = vpop.permute.xlu0 %4155 }
 0x664   :  { %v4181_v39 = vmul.f32 %v4156_v56, %v9528_v14  ;;  %v4180_v22 = vmul.f32 %v4156_v56, %v9526_v47 }
 0x666   :  { %v9506_v46 = vpop.permute.xlu1 %3843 }
 0x667   :  { %12786 = vst [vmem:[#allocation22_spill] sm:$0xff] %v9506_v46  ;;  %v4164_v60 = vpop.permute.xlu0 %4163  ;;  %v9552_v46 = vld [vmem:[#allocation2 + $0x98] sm:$0xff] }
 0x668   :  { %12793 = vst [vmem:[#allocation231_spill] sm:$0xff] %v9552_v46 }
 0x66a   :  { %v9508_v63 = vpop.permute.xlu1 %3851 }
 0x66b   :  { %12787 = vst [vmem:[#allocation6_spill] sm:$0xff] %v9508_v63  ;;  %v4172_v1 = vpop.permute.xlu0 %4171 }
 0x66f   :  { %v4148_v2 = vpop.permute.xlu1 %4147 }
 0x670   :  { %v4177_v5 = vmul.f32 %v4148_v2, %v9512_v6  ;;  %v4176_v42 = vmul.f32 %v4148_v2, %v9510_v50 }
 0x672   :  { %4244 = vrot.lane.b32.xlu0 %v4177_v5, %s6174_s2  ;;  %4242 = vrot.lane.b32.xlu1 %v4176_v42, %s6174_s2  ;;  %v9542_v5 = vld [vmem:[#allocation2 + $0x78] sm:$0xff]  ;;  %v9544_v42 = vld [vmem:[#allocation2 + $0x80] sm:$0xff] }
 0x673   :  { %v4152_v55 = vpop.permute.xlu1 %4151 }
 0x674   :  { %v4179_v23 = vmul.f32 %v4152_v55, %v9520_v61  ;;  %v4178_v36 = vmul.f32 %v4152_v55, %v9518_v8 }
 0x676   :  { %4248 = vrot.lane.b32.xlu0 %v4179_v23, %s6174_s2  ;;  %4246 = vrot.lane.b32.xlu1 %v4178_v36, %s6174_s2  ;;  %v4185_v23 = vmul.f32 %v4164_v60, %v9544_v42  ;;  %v4184_v36 = vmul.f32 %v4164_v60, %v9542_v5 }
 0x677   :  { %v4160_v38 = vpop.permute.xlu1 %4159 }
 0x678   :  { %v4183_v17 = vmul.f32 %v4160_v38, %v9536_v43  ;;  %v4182_v9 = vmul.f32 %v4160_v38, %v9534_v20 }
 0x67a   :  { %4252 = vrot.lane.b32.xlu0 %v4181_v39, %s6174_s2  ;;  %4250 = vrot.lane.b32.xlu1 %v4180_v22, %s6174_s2  ;;  %v9550_v22 = vld [vmem:[#allocation2 + $0x90] sm:$0xff] }
 0x67b   :  { %v4168_v39 = vpop.permute.xlu1 %4167  ;;  %12792 = vst [vmem:[#allocation15_spill] sm:$0xff] %v9550_v22 }
 0x67e   :  { %4256 = vrot.lane.b32.xlu0 %v4183_v17, %s6174_s2  ;;  %4254 = vrot.lane.b32.xlu1 %v4182_v9, %s6174_s2  ;;  %v4187_v17 = vmul.f32 %v4168_v39, %v9552_v46  ;;  %v4186_v9 = vmul.f32 %v4168_v39, %v9550_v22 }
 0x682   :  { %4260 = vrot.lane.b32.xlu0 %v4185_v23, %s6174_s2  ;;  %4258 = vrot.lane.b32.xlu1 %v4184_v36, %s6174_s2  ;;  %v4189_v23 = vmul.f32 %v4172_v1, %v9560_v30  ;;  %v4188_v36 = vmul.f32 %v4172_v1, %v9558_v49 }
 0x686   :  { %4264 = vrot.lane.b32.xlu0 %v4187_v17, %s6174_s2  ;;  %4262 = vrot.lane.b32.xlu1 %v4186_v9, %s6174_s2  ;;  %v4191_v17 = vmul.f32 %v4144_v41, %v9568_v58  ;;  %v4190_v9 = vmul.f32 %v4144_v41, %v9566_v59  ;;  %v4195_v41 = vmul.f32 %v4152_v55, %v9584_v24 }
 0x68a   :  { %4268 = vrot.lane.b32.xlu0 %v4189_v23, %s6174_s2  ;;  %4266 = vrot.lane.b32.xlu1 %v4188_v36, %s6174_s2  ;;  %v4193_v23 = vmul.f32 %v4148_v2, %v9576_v40  ;;  %v4192_v36 = vmul.f32 %v4148_v2, %v9574_v44  ;;  %v4197_v2 = vmul.f32 %v4156_v56, %v9592_v11 }
 0x68e   :  { %4272 = vrot.lane.b32.xlu0 %v4191_v17, %s6174_s2  ;;  %4270 = vrot.lane.b32.xlu1 %v4190_v9, %s6174_s2  ;;  %v4194_v17 = vmul.f32 %v4152_v55, %v9582_v4  ;;  %v9590_v9 = vld [vmem:[#allocation2 + $0x108] sm:$0xff]  ;;  %v4199_v55 = vmul.f32 %v4160_v38, %v9600_v21 }
 0x692   :  { %4276 = vrot.lane.b32.xlu0 %v4193_v23, %s6174_s2  ;;  %4274 = vrot.lane.b32.xlu1 %v4192_v36, %s6174_s2  ;;  %v4196_v23 = vmul.f32 %v4156_v56, %v9590_v9  ;;  %v9598_v36 = vld [vmem:[#allocation2 + $0x120] sm:$0xff]  ;;  %v4201_v56 = vmul.f32 %v4164_v60, %v9608_v18 }
 0x696   :  { %4280 = vrot.lane.b32.xlu0 %v4195_v41, %s6174_s2  ;;  %4278 = vrot.lane.b32.xlu1 %v4194_v17, %s6174_s2  ;;  %v4198_v41 = vmul.f32 %v4160_v38, %v9598_v36  ;;  %v9606_v17 = vld [vmem:[#allocation2 + $0x138] sm:$0xff]  ;;  %v4203_v38 = vmul.f32 %v4168_v39, %v9616_v31 }
 0x69a   :  { %4284 = vrot.lane.b32.xlu0 %v4197_v2, %s6174_s2  ;;  %4282 = vrot.lane.b32.xlu1 %v4196_v23, %s6174_s2  ;;  %v4200_v2 = vmul.f32 %v4164_v60, %v9606_v17  ;;  %v9614_v23 = vld [vmem:[#allocation2 + $0x150] sm:$0xff]  ;;  %v4205_v60 = vmul.f32 %v4172_v1, %v9624_v13 }
 0x69e   :  { %4288 = vrot.lane.b32.xlu0 %v4199_v55, %s6174_s2  ;;  %4286 = vrot.lane.b32.xlu1 %v4198_v41, %s6174_s2  ;;  %v4202_v55 = vmul.f32 %v4168_v39, %v9614_v23  ;;  %v9622_v41 = vld [vmem:[#allocation2 + $0x168] sm:$0xff]  ;;  %v12796_v39 = vmov 7  }
 0x6a2   :  { %4292 = vrot.lane.b32.xlu0 %v4201_v56, %s6174_s2  ;;  %4290 = vrot.lane.b32.xlu1 %v4200_v2, %s6174_s2  ;;  %v4204_v56 = vmul.f32 %v4172_v1, %v9622_v41 }
 0x6a6   :  { %4296 = vrot.lane.b32.xlu0 %v4203_v38, %s6174_s2  ;;  %4294 = vrot.lane.b32.xlu1 %v4202_v55, %s6174_s2 }
 0x6aa   :  { %4300 = vrot.lane.b32.xlu0 %v4205_v60, %s6174_s2  ;;  %4298 = vrot.lane.b32.xlu1 %v4204_v56, %s6174_s2 }
 0x6ae   :  { %4371 = vperm.xlu0 %6065, %v9330_v45   ;;  %4367 = vperm.xlu1 %6064, %v9334_v48  }
 0x6b2   :  { %4383 = vperm.xlu0 %6065, %v9348_v15   ;;  %4375 = vperm.xlu1 %6064, %v9338_v26  }
 0x6b6   :  { %4391 = vperm.xlu0 %6065, %v9356_v25   ;;  %4379 = vperm.xlu1 %6064, %v9343_v33  }
 0x6ba   :  { %4387 = vperm.xlu1 %6064, %v9352_v16   ;;  %6066 = vset.pattern.permute.xlu0 %v12796_v39 }
 0x6be   :  { %4395 = vperm.xlu1 %6064, %v9360_v53  }
 0x6c2   :  { %6067 = vset.pattern.permute.xlu1 %v12796_v39 }
 0x6d4   :  { %v9640_v1 = vpop.permute.xlu0 %4240  ;;  %v9642_v2 = vpop.permute.xlu1 %4238 }
 0x6d5   :  { %12797 = vst [vmem:[#allocation256_spill] sm:$0xff] %v9640_v1  ;;  %12798 = vst [vmem:[#allocation232_spill] sm:$0xff] %v9642_v2 }
 0x6e4   :  { %v9644_v38 = vpop.permute.xlu0 %4244  ;;  %v9646_v55 = vpop.permute.xlu1 %4242 }
 0x6e5   :  { %12799 = vst [vmem:[#allocation24_spill] sm:$0xff] %v9644_v38  ;;  %12800 = vst [vmem:[#allocation10_spill] sm:$0xff] %v9646_v55 }
 0x6e8   :  { %v9648_v60 = vpop.permute.xlu0 %4248  ;;  %v9650_v56 = vpop.permute.xlu1 %4246 }
 0x6e9   :  { %12801 = vst [vmem:[#allocation23_spill] sm:$0xff] %v9648_v60  ;;  %12802 = vst [vmem:[#allocation7_spill] sm:$0xff] %v9650_v56 }
 0x6ec   :  { %v9652_v28 = vpop.permute.xlu0 %4252  ;;  %v9654_v57 = vpop.permute.xlu1 %4250 }
 0x6ed   :  { %12803 = vst [vmem:[#allocation130_spill] sm:$0xff] %v9652_v28  ;;  %12804 = vst [vmem:[#allocation165_spill] sm:$0xff] %v9654_v57 }
 0x6f0   :  { %v9656_v10 = vpop.permute.xlu0 %4256  ;;  %v9658_v29 = vpop.permute.xlu1 %4254 }
 0x6f1   :  { %12805 = vst [vmem:[#allocation204_spill] sm:$0xff] %v9656_v10  ;;  %12806 = vst [vmem:[#allocation205_spill] sm:$0xff] %v9658_v29 }
 0x6f4   :  { %v9660_v39 = vpop.permute.xlu0 %4260  ;;  %v9662_v1 = vpop.permute.xlu1 %4258 }
 0x6f5   :  { %12807 = vst [vmem:[#allocation227_spill] sm:$0xff] %v9660_v39  ;;  %12808 = vst [vmem:[#allocation164_spill] sm:$0xff] %v9662_v1 }
 0x6f8   :  { %v9664_v2 = vpop.permute.xlu0 %4264  ;;  %v9666_v38 = vpop.permute.xlu1 %4262 }
 0x6f9   :  { %12809 = vst [vmem:[#allocation208_spill] sm:$0xff] %v9664_v2  ;;  %12810 = vst [vmem:[#allocation18_spill] sm:$0xff] %v9666_v38 }
 0x6fc   :  { %v9668_v55 = vpop.permute.xlu0 %4268  ;;  %v9670_v60 = vpop.permute.xlu1 %4266 }
 0x6fd   :  { %12811 = vst [vmem:[#allocation209_spill] sm:$0xff] %v9668_v55  ;;  %12812 = vst [vmem:[#allocation244_spill] sm:$0xff] %v9670_v60 }
 0x700   :  { %v9672_v56 = vpop.permute.xlu0 %4272  ;;  %v9674_v28 = vpop.permute.xlu1 %4270 }
 0x701   :  { %12813 = vst [vmem:[#allocation242_spill] sm:$0xff] %v9672_v56  ;;  %12814 = vst [vmem:[#allocation246_spill] sm:$0xff] %v9674_v28 }
 0x704   :  { %v9676_v57 = vpop.permute.xlu0 %4276  ;;  %v9678_v10 = vpop.permute.xlu1 %4274 }
 0x705   :  { %12815 = vst [vmem:[#allocation248_spill] sm:$0xff] %v9676_v57  ;;  %12816 = vst [vmem:[#allocation14_spill] sm:$0xff] %v9678_v10 }
 0x708   :  { %v9680_v29 = vpop.permute.xlu0 %4280  ;;  %v9682_v39 = vpop.permute.xlu1 %4278 }
 0x709   :  { %12817 = vst [vmem:[#allocation213_spill] sm:$0xff] %v9680_v29  ;;  %12818 = vst [vmem:[#allocation250_spill] sm:$0xff] %v9682_v39 }
 0x70c   :  { %v9684_v1 = vpop.permute.xlu0 %4284  ;;  %v9686_v2 = vpop.permute.xlu1 %4282 }
 0x70d   :  { %12819 = vst [vmem:[#allocation252_spill] sm:$0xff] %v9684_v1  ;;  %12820 = vst [vmem:[#allocation237_spill] sm:$0xff] %v9686_v2  ;;  %v9708_v2 = vld [vmem:[#allocation2 + $0x10] sm:$0x3] }
 0x710   :  { %v9688_v37 = vpop.permute.xlu0 %4288  ;;  %v9690_v55 = vpop.permute.xlu1 %4286 }
 0x711   :  { %12821 = vst [vmem:[#allocation238_spill] sm:$0xff] %v9688_v37  ;;  %12822 = vst [vmem:[#allocation16_spill] sm:$0xff] %v9690_v55 }
 0x714   :  { %v9692_v19 = vpop.permute.xlu0 %4292  ;;  %v9694_v56 = vpop.permute.xlu1 %4290 }
 0x715   :  { %12823 = vst [vmem:[#allocation226_spill] sm:$0xff] %v9692_v19  ;;  %12824 = vst [vmem:[#allocation220_spill] sm:$0xff] %v9694_v56 }
 0x718   :  { %v9696_v28 = vpop.permute.xlu0 %4296  ;;  %v9698_v57 = vpop.permute.xlu1 %4294 }
 0x719   :  { %12825 = vst [vmem:[#allocation223_spill] sm:$0xff] %v9696_v28  ;;  %12826 = vst [vmem:[#allocation43_spill] sm:$0xff] %v9698_v57  ;;  %v9716_v57 = vld [vmem:[#allocation2 + $0x28] sm:$0x3] }
 0x71c   :  { %v9700_v10 = vpop.permute.xlu0 %4300  ;;  %v9702_v29 = vpop.permute.xlu1 %4298 }
 0x71d   :  { %12827 = vst [vmem:[#allocation44_spill] sm:$0xff] %v9700_v10  ;;  %12828 = vst [vmem:[#allocation45_spill] sm:$0xff] %v9702_v29 }
 0x72d   :  { %v9704_v39 = vpop.permute.xlu0 %4371  ;;  %v9706_v1 = vpop.permute.xlu1 %4367 }
 0x72e   :  { %v4399_v55 = vmul.f32 %v9706_v1, %v9498_v0  ;;  %v4400_v56 = vmul.f32 %v9706_v1, %v9708_v2  ;;  %v4398_v28 = vmul.f32 %v9706_v1, %v9496_v35  ;;  %v4402_v29 = vmul.f32 %v9704_v39, %v9512_v6 }
 0x72f   :  { %v4403_v10 = vmul.f32 %v9704_v39, %v9716_v57  ;;  %v4401_v19 = vmul.f32 %v9704_v39, %v9510_v50 }
 0x730   :  { %v4495_v37 = vrot.slane %v4399_v55, 1  ;;  %v4497_v32 = vrot.slane %v4400_v56, 1  ;;  %v4494_v52 = vrot.slane %v4398_v28, 1  ;;  %v4500_v60 = vrot.slane %v4402_v29, 1  ;;  %v9742_v28 = vld [vmem:[#allocation2 + $0x58] sm:$0x3] }
 0x731   :  { %v9724_v7 = vpop.permute.xlu1 %4375  ;;  %v4502_v38 = vrot.slane %v4403_v10, 1  ;;  %v4499_v3 = vrot.slane %v4401_v19, 1  ;;  %12829 = vst [vmem:[#allocation46_spill] sm:$0xff] %v9742_v28  ;;  %v9744_v55 = vpop.permute.xlu0 %4383 }
 0x732   :  { %v4498_v34 = vsel %vm730_vm6, %v4495_v37, %v4497_v32  ;;  %v4496_v63 = vsel %vm730_vm6, %v4494_v52, %v4495_v37  ;;  %v4405_v27 = vmul.f32 %v9724_v7, %v9520_v61  ;;  %v4406_v12 = vmul.f32 %v9724_v7, %v9726_v54 }
 0x733   :  { %4576 = vrot.lane.b32.xlu1 %v4498_v34, %s6174_s2  ;;  %4574 = vrot.lane.b32.xlu0 %v4496_v63, %s6174_s2  ;;  %v4404_v10 = vmul.f32 %v9724_v7, %v9518_v8  ;;  %v4503_v29 = vsel %vm730_vm6, %v4500_v60, %v4502_v38  ;;  %v4501_v32 = vsel %vm730_vm6, %v4499_v3, %v4500_v60  ;;  %v9754_v3 = vld [vmem:[#allocation2 + $0x70] sm:$0x3] }
 0x734   :  { %v4505_v52 = vrot.slane %v4405_v27, 1  ;;  %v4507_v37 = vrot.slane %v4406_v12, 1  ;;  %12830 = vst [vmem:[#allocation49_spill] sm:$0xff] %v9754_v3  ;;  %v4411_v12 = vmul.f32 %v9744_v55, %v9536_v43  ;;  %v4412_v38 = vmul.f32 %v9744_v55, %v9754_v3 }
 0x735   :  { %v9738_v19 = vpop.permute.xlu1 %4379  ;;  %v4504_v56 = vrot.slane %v4404_v10, 1  ;;  %v4410_v60 = vmul.f32 %v9744_v55, %v9534_v20  ;;  %v9770_v43 = vpop.permute.xlu0 %4391 }
 0x736   :  { %v4408_v34 = vmul.f32 %v9738_v19, %v9528_v14  ;;  %v4409_v63 = vmul.f32 %v9738_v19, %v9742_v28  ;;  %v4407_v62 = vmul.f32 %v9738_v19, %v9526_v47  ;;  %v4508_v27 = vsel %vm730_vm6, %v4505_v52, %v4507_v37  ;;  %v9768_v37 = vld [vmem:[#allocation2 + $0x88] sm:$0x3] }
 0x737   :  { %4580 = vrot.lane.b32.xlu1 %v4503_v29, %s6174_s2  ;;  %4578 = vrot.lane.b32.xlu0 %v4501_v32, %s6174_s2  ;;  %v4506_v51 = vsel %vm730_vm6, %v4504_v56, %v4505_v52  ;;  %v4515_v28 = vrot.slane %v4411_v12, 1  ;;  %v4517_v3 = vrot.slane %v4412_v38, 1  ;;  %v4514_v56 = vrot.slane %v4410_v60, 1 }
 0x738   :  { %v4510_v29 = vrot.slane %v4408_v34, 1  ;;  %v4512_v47 = vrot.slane %v4409_v63, 1  ;;  %v4509_v32 = vrot.slane %v4407_v62, 1  ;;  %v9782_v34 = vld [vmem:[#allocation2 + $0xa0] sm:$0x3]  ;;  %v4417_v63 = vmul.f32 %v9770_v43, %v9552_v46 }
 0x739   :  { %v9763_v10 = vpop.permute.xlu1 %4387  ;;  %12831 = vst [vmem:[#allocation50_spill] sm:$0xff] %v9782_v34  ;;  %v4416_v38 = vmul.f32 %v9770_v43, %v9550_v22  ;;  %v4518_v60 = vsel %vm730_vm6, %v4515_v28, %v4517_v3 }
 0x73a   :  { %v4414_v20 = vmul.f32 %v9763_v10, %v9544_v42  ;;  %v4415_v14 = vmul.f32 %v9763_v10, %v9768_v37  ;;  %v4513_v52 = vsel %vm730_vm6, %v4510_v29, %v4512_v47  ;;  %v4511_v62 = vsel %vm730_vm6, %v4509_v32, %v4510_v29 }
 0x73b   :  { %4584 = vrot.lane.b32.xlu1 %v4508_v27, %s6174_s2  ;;  %4582 = vrot.lane.b32.xlu0 %v4506_v51, %s6174_s2  ;;  %v4413_v51 = vmul.f32 %v9763_v10, %v9542_v5  ;;  %v4418_v47 = vmul.f32 %v9770_v43, %v9782_v34  ;;  %v4516_v29 = vsel %vm730_vm6, %v4514_v56, %v4515_v28  ;;  %v4524_v46 = vrot.slane %v4416_v38, 1  ;;  %v9797_v34 = vld [vmem:[#allocation2 + $0xb8] sm:$0x3] }
 0x73c   :  { %v4520_v27 = vrot.slane %v4414_v20, 1  ;;  %v4522_v12 = vrot.slane %v4415_v14, 1  ;;  %v4525_v14 = vrot.slane %v4417_v63, 1 }
 0x73d   :  { %v4519_v32 = vrot.slane %v4413_v51, 1  ;;  %v9808_v51 = vld [vmem:[#allocation2 + $0xd0] sm:$0x3] }
 0x73e   :  { %v4523_v20 = vsel %vm730_vm6, %v4520_v27, %v4522_v12  ;;  %12832 = vst [vmem:[#allocation53_spill] sm:$0xff] %v9808_v51  ;;  %v4424_v12 = vmul.f32 %v9706_v1, %v9808_v51  ;;  %v4526_v38 = vsel %vm730_vm6, %v4524_v46, %v4525_v14  ;;  %v4426_v51 = vmul.f32 %v9704_v39, %v9576_v40 }
 0x73f   :  { %4588 = vrot.lane.b32.xlu1 %v4513_v52, %s6174_s2  ;;  %4586 = vrot.lane.b32.xlu0 %v4511_v62, %s6174_s2  ;;  %v9792_v52 = vpop.permute.xlu1 %4395  ;;  %v4527_v62 = vrot.slane %v4418_v47, 1  ;;  %v4521_v22 = vsel %vm730_vm6, %v4519_v32, %v4520_v27  ;;  %v4423_v27 = vmul.f32 %v9706_v1, %v9568_v58  ;;  %v4422_v47 = vmul.f32 %v9706_v1, %v9566_v59 }
 0x740   :  { %v4420_v3 = vmul.f32 %v9792_v52, %v9560_v30  ;;  %v4421_v28 = vmul.f32 %v9792_v52, %v9797_v34  ;;  %v4419_v56 = vmul.f32 %v9792_v52, %v9558_v49  ;;  %v9820_v49 = vld [vmem:[#allocation2 + $0xe8] sm:$0x3] }
 0x741   :  { %v4528_v63 = vsel %vm730_vm6, %v4525_v14, %v4527_v62  ;;  %v4534_v62 = vrot.slane %v4422_v47, 1  ;;  %v4427_v46 = vmul.f32 %v9704_v39, %v9820_v49  ;;  %v4425_v14 = vmul.f32 %v9704_v39, %v9574_v44 }
 0x742   :  { %v4529_v32 = vrot.slane %v4419_v56, 1  ;;  %v4429_v56 = vmul.f32 %v9724_v7, %v9584_v24  ;;  %v4540_v39 = vrot.slane %v4426_v51, 1 }
 0x743   :  { %4592 = vrot.lane.b32.xlu1 %v4518_v60, %s6174_s2  ;;  %4590 = vrot.lane.b32.xlu0 %v4516_v29, %s6174_s2  ;;  %v4530_v60 = vrot.slane %v4420_v3, 1  ;;  %v4532_v29 = vrot.slane %v4421_v28, 1  ;;  %v9832_v3 = vld [vmem:[#allocation2 + $0x100] sm:$0x3]  ;;  %v4542_v47 = vrot.slane %v4427_v46, 1 }
 0x745   :  { %v4533_v58 = vsel %vm730_vm6, %v4530_v60, %v4532_v29  ;;  %v4531_v1 = vsel %vm730_vm6, %v4529_v32, %v4530_v60  ;;  %v9844_v32 = vld [vmem:[#allocation2 + $0x118] sm:$0x3] }
 0x746   :  { %v4433_v51 = vmul.f32 %v9738_v19, %v9844_v32 }
 0x747   :  { %4596 = vrot.lane.b32.xlu1 %v4523_v20, %s6174_s2  ;;  %4594 = vrot.lane.b32.xlu0 %v4521_v22, %s6174_s2  ;;  %v4535_v22 = vrot.slane %v4423_v27, 1  ;;  %v4537_v20 = vrot.slane %v4424_v12, 1  ;;  %v4428_v27 = vmul.f32 %v9724_v7, %v9582_v4 }
 0x749   :  { %v4538_v28 = vsel %vm730_vm6, %v4535_v22, %v4537_v20  ;;  %v4536_v12 = vsel %vm730_vm6, %v4534_v62, %v4535_v22  ;;  %v4544_v29 = vrot.slane %v4428_v27, 1  ;;  %v4432_v20 = vmul.f32 %v9738_v19, %v9592_v11 }
 0x74a   :  { %v4431_v22 = vmul.f32 %v9738_v19, %v9590_v9  ;;  %v4434_v19 = vmul.f32 %v9744_v55, %v9598_v36 }
 0x74b   :  { %4600 = vrot.lane.b32.xlu1 %v4528_v63, %s6174_s2  ;;  %4598 = vrot.lane.b32.xlu0 %v4526_v38, %s6174_s2  ;;  %v4430_v63 = vmul.f32 %v9724_v7, %v9832_v3  ;;  %v4545_v38 = vrot.slane %v4429_v56, 1  ;;  %v4435_v56 = vmul.f32 %v9744_v55, %v9600_v21 }
 0x74c   :  { %v4549_v27 = vrot.slane %v4431_v22, 1 }
 0x74d   :  { %v4547_v60 = vrot.slane %v4430_v63, 1  ;;  %v4546_v46 = vsel %vm730_vm6, %v4544_v29, %v4545_v38  ;;  %v4552_v63 = vrot.slane %v4433_v51, 1 }
 0x74f   :  { %4604 = vrot.lane.b32.xlu1 %v4533_v58, %s6174_s2  ;;  %4602 = vrot.lane.b32.xlu0 %v4531_v1, %s6174_s2  ;;  %v4539_v58 = vrot.slane %v4425_v14, 1  ;;  %v4543_v1 = vsel %vm730_vm6, %v4540_v39, %v4542_v47  ;;  %v4548_v62 = vsel %vm730_vm6, %v4545_v38, %v4547_v60  ;;  %v4550_v14 = vrot.slane %v4432_v20, 1 }
 0x750   :  { %v4555_v47 = vrot.slane %v4435_v56, 1  ;;  %v4437_v60 = vmul.f32 %v9763_v10, %v9606_v17 }
 0x751   :  { %v4541_v7 = vsel %vm730_vm6, %v4539_v58, %v4540_v39  ;;  %v9868_v39 = vld [vmem:[#allocation2 + $0x148] sm:$0x3]  ;;  %v4438_v58 = vmul.f32 %v9763_v10, %v9608_v18  ;;  %v4553_v29 = vsel %vm730_vm6, %v4550_v14, %v4552_v63  ;;  %v4440_v63 = vmul.f32 %v9770_v43, %v9614_v23 }
 0x752   :  { %v4439_v38 = vmul.f32 %v9763_v10, %v9868_v39  ;;  %v4559_v22 = vrot.slane %v4437_v60, 1 }
 0x753   :  { %4608 = vrot.lane.b32.xlu1 %v4538_v28, %s6174_s2  ;;  %4606 = vrot.lane.b32.xlu0 %v4536_v12, %s6174_s2  ;;  %v9858_v28 = vld [vmem:[#allocation2 + $0x130] sm:$0x3]  ;;  %v4564_v60 = vrot.slane %v4440_v63, 1 }
 0x754   :  { %v4436_v12 = vmul.f32 %v9744_v55, %v9858_v28  ;;  %v4551_v55 = vsel %vm730_vm6, %v4549_v27, %v4550_v14  ;;  %v4562_v51 = vrot.slane %v4439_v38, 1 }
 0x756   :  { %v4557_v20 = vrot.slane %v4436_v12, 1 }
 0x757   :  { %4612 = vrot.lane.b32.xlu1 %v4543_v1, %s6174_s2  ;;  %4610 = vrot.lane.b32.xlu0 %v4541_v7, %s6174_s2  ;;  %v4554_v1 = vrot.slane %v4434_v19, 1  ;;  %v4560_v7 = vrot.slane %v4438_v58, 1  ;;  %v9894_v58 = vld [vmem:[#allocation2 + $0x178] sm:$0x3] }
 0x758   :  { %v4558_v10 = vsel %vm730_vm6, %v4555_v47, %v4557_v20 }
 0x759   :  { %v4556_v56 = vsel %vm730_vm6, %v4554_v1, %v4555_v47  ;;  %v4563_v27 = vsel %vm730_vm6, %v4560_v7, %v4562_v51  ;;  %v4561_v12 = vsel %vm730_vm6, %v4559_v22, %v4560_v7  ;;  %v4444_v47 = vmul.f32 %v9792_v52, %v9624_v13 }
 0x75b   :  { %4616 = vrot.lane.b32.xlu1 %v4548_v62, %s6174_s2  ;;  %4614 = vrot.lane.b32.xlu0 %v4546_v46, %s6174_s2  ;;  %v9880_v62 = vld [vmem:[#allocation2 + $0x160] sm:$0x3]  ;;  %v4441_v46 = vmul.f32 %v9770_v43, %v9616_v31 }
 0x75c   :  { %v4442_v14 = vmul.f32 %v9770_v43, %v9880_v62  ;;  %v4443_v43 = vmul.f32 %v9792_v52, %v9622_v41 }
 0x75d   :  { %v4565_v19 = vrot.slane %v4441_v46, 1 }
 0x75e   :  { %v4567_v38 = vrot.slane %v4442_v14, 1  ;;  %v4569_v51 = vrot.slane %v4443_v43, 1 }
 0x75f   :  { %4620 = vrot.lane.b32.xlu1 %v4553_v29, %s6174_s2  ;;  %4618 = vrot.lane.b32.xlu0 %v4551_v55, %s6174_s2  ;;  %v4445_v29 = vmul.f32 %v9792_v52, %v9894_v58  ;;  %v4570_v55 = vrot.slane %v4444_v47, 1  ;;  %v4566_v1 = vsel %vm730_vm6, %v4564_v60, %v4565_v19  ;;  %v12833_v52 = vmov 2  }
 0x760   :  { %v4568_v20 = vsel %vm730_vm6, %v4565_v19, %v4567_v38 }
 0x761   :  { %v4572_v7 = vrot.slane %v4445_v29, 1  ;;  %v4571_v46 = vsel %vm730_vm6, %v4569_v51, %v4570_v55 }
 0x763   :  { %4624 = vrot.lane.b32.xlu1 %v4558_v10, %s6174_s2  ;;  %4622 = vrot.lane.b32.xlu0 %v4556_v56, %s6174_s2  ;;  %v4573_v22 = vsel %vm730_vm6, %v4570_v55, %v4572_v7 }
 0x767   :  { %4628 = vrot.lane.b32.xlu1 %v4563_v27, %s6174_s2  ;;  %4626 = vrot.lane.b32.xlu0 %v4561_v12, %s6174_s2 }
 0x76b   :  { %4632 = vrot.lane.b32.xlu1 %v4568_v20, %s6174_s2  ;;  %4630 = vrot.lane.b32.xlu0 %v4566_v1, %s6174_s2 }
 0x76f   :  { %4636 = vrot.lane.b32.xlu1 %v4573_v22, %s6174_s2  ;;  %4634 = vrot.lane.b32.xlu0 %v4571_v46, %s6174_s2 }
 0x773   :  { %4707 = vperm.xlu1 %6067, %v9330_v45   ;;  %4703 = vperm.xlu0 %6066, %v9334_v48  }
 0x777   :  { %4711 = vperm.xlu1 %6067, %v9338_v26   ;;  %4715 = vperm.xlu0 %6066, %v9343_v33  }
 0x77b   :  { %4719 = vperm.xlu1 %6067, %v9348_v15   ;;  %4723 = vperm.xlu0 %6066, %v9352_v16  }
 0x77f   :  { %4727 = vperm.xlu1 %6067, %v9356_v25   ;;  %4731 = vperm.xlu0 %6066, %v9360_v53  }
 0x783   :  { %6068 = vset.pattern.permute.xlu1 %v12833_v52  ;;  %6069 = vset.pattern.permute.xlu0 %v12833_v52 }
 0x7a5   :  { %v9922_v10 = vpop.permute.xlu0 %4574  ;;  %v9924_v56 = vpop.permute.xlu1 %4576 }
 0x7a6   :  { %12834 = vst [vmem:[#allocation54_spill] sm:$0xff] %v9922_v10  ;;  %12835 = vst [vmem:[#allocation25_spill] sm:$0xff] %v9924_v56  ;;  %v10466_v10 = vld [vmem:[#allocation2 + $0x40] sm:$0x3] }
 0x7a7   :  { %12947 = vst [vmem:[#allocation235_spill] sm:$0xff] %v10466_v10 }
 0x7a9   :  { %v9926_v14 = vpop.permute.xlu0 %4578  ;;  %v9928_v63 = vpop.permute.xlu1 %4580 }
 0x7aa   :  { %12836 = vst [vmem:[#allocation59_spill] sm:$0xff] %v9926_v14  ;;  %12837 = vst [vmem:[#allocation26_spill] sm:$0xff] %v9928_v63 }
 0x7ad   :  { %v9930_v27 = vpop.permute.xlu0 %4582  ;;  %v9932_v12 = vpop.permute.xlu1 %4584 }
 0x7ae   :  { %12838 = vst [vmem:[#allocation60_spill] sm:$0xff] %v9930_v27  ;;  %12839 = vst [vmem:[#allocation61_spill] sm:$0xff] %v9932_v12 }
 0x7b1   :  { %v9934_v19 = vpop.permute.xlu0 %4586  ;;  %v9936_v47 = vpop.permute.xlu1 %4588 }
 0x7b2   :  { %12840 = vst [vmem:[#allocation62_spill] sm:$0xff] %v9934_v19  ;;  %12841 = vst [vmem:[#allocation65_spill] sm:$0xff] %v9936_v47 }
 0x7b5   :  { %v9938_v38 = vpop.permute.xlu0 %4590  ;;  %v9940_v60 = vpop.permute.xlu1 %4592 }
 0x7b6   :  { %12842 = vst [vmem:[#allocation66_spill] sm:$0xff] %v9938_v38  ;;  %12843 = vst [vmem:[#allocation69_spill] sm:$0xff] %v9940_v60 }
 0x7b9   :  { %v9942_v29 = vpop.permute.xlu0 %4594  ;;  %v9944_v43 = vpop.permute.xlu1 %4596 }
 0x7ba   :  { %12844 = vst [vmem:[#allocation70_spill] sm:$0xff] %v9942_v29  ;;  %12845 = vst [vmem:[#allocation79_spill] sm:$0xff] %v9944_v43 }
 0x7bd   :  { %v9946_v55 = vpop.permute.xlu0 %4598  ;;  %v9948_v20 = vpop.permute.xlu1 %4600 }
 0x7be   :  { %12846 = vst [vmem:[#allocation80_spill] sm:$0xff] %v9948_v20 }
 0x7c1   :  { %v9950_v1 = vpop.permute.xlu0 %4602  ;;  %v9952_v7 = vpop.permute.xlu1 %4604 }
 0x7c2   :  { %12847 = vst [vmem:[#allocation81_spill] sm:$0xff] %v9952_v7 }
 0x7c5   :  { %v9954_v51 = vpop.permute.xlu0 %4606  ;;  %v9956_v22 = vpop.permute.xlu1 %4608 }
 0x7c6   :  { %12848 = vst [vmem:[#allocation230_spill] sm:$0xff] %v9954_v51  ;;  %12849 = vst [vmem:[#allocation82_spill] sm:$0xff] %v9956_v22 }
 0x7c9   :  { %v9958_v46 = vpop.permute.xlu0 %4610  ;;  %v9960_v52 = vpop.permute.xlu1 %4612 }
 0x7ca   :  { %12850 = vst [vmem:[#allocation85_spill] sm:$0xff] %v9958_v46  ;;  %12851 = vst [vmem:[#allocation42_spill] sm:$0xff] %v9960_v52 }
 0x7cd   :  { %v9962_v38 = vpop.permute.xlu0 %4614  ;;  %v9964_v29 = vpop.permute.xlu1 %4616 }
 0x7ce   :  { %12852 = vst [vmem:[#allocation41_spill] sm:$0xff] %v9962_v38  ;;  %12853 = vst [vmem:[#allocation86_spill] sm:$0xff] %v9964_v29 }
 0x7d1   :  { %v9966_v43 = vpop.permute.xlu0 %4618  ;;  %v9968_v60 = vpop.permute.xlu1 %4620 }
 0x7d2   :  { %12854 = vst [vmem:[#allocation89_spill] sm:$0xff] %v9966_v43  ;;  %12855 = vst [vmem:[#allocation90_spill] sm:$0xff] %v9968_v60 }
 0x7d5   :  { %v9970_v20 = vpop.permute.xlu0 %4622  ;;  %v9972_v19 = vpop.permute.xlu1 %4624 }
 0x7d6   :  { %12856 = vst [vmem:[#allocation17_spill] sm:$0xff] %v9970_v20  ;;  %12857 = vst [vmem:[#allocation95_spill] sm:$0xff] %v9972_v19 }
 0x7d9   :  { %v9974_v7 = vpop.permute.xlu0 %4626  ;;  %v9976_v51 = vpop.permute.xlu1 %4628 }
 0x7da   :  { %12858 = vst [vmem:[#allocation96_spill] sm:$0xff] %v9974_v7  ;;  %12859 = vst [vmem:[#allocation97_spill] sm:$0xff] %v9976_v51 }
 0x7dd   :  { %v9978_v22 = vpop.permute.xlu0 %4630  ;;  %v9980_v46 = vpop.permute.xlu1 %4632 }
 0x7de   :  { %12860 = vst [vmem:[#allocation98_spill] sm:$0xff] %v9978_v22  ;;  %12861 = vst [vmem:[#allocation101_spill] sm:$0xff] %v9980_v46 }
 0x7e1   :  { %v9982_v52 = vpop.permute.xlu0 %4634  ;;  %v9984_v38 = vpop.permute.xlu1 %4636 }
 0x7e2   :  { %12862 = vst [vmem:[#allocation102_spill] sm:$0xff] %v9982_v52  ;;  %12863 = vst [vmem:[#allocation33_spill] sm:$0xff] %v9984_v38 }
 0x7f2   :  { %v9986_v29 = vpop.permute.xlu0 %4703  ;;  %v9988_v43 = vpop.permute.xlu1 %4707 }
 0x7f3   :  { %v4735_v20 = vmul.f32 %v9986_v29, %v9498_v0  ;;  %v4736_v7 = vmul.f32 %v9986_v29, %v9708_v2  ;;  %v4734_v51 = vmul.f32 %v9986_v29, %v9496_v35  ;;  %v4738_v22 = vmul.f32 %v9988_v43, %v9512_v6 }
 0x7f4   :  { %v4739_v52 = vmul.f32 %v9988_v43, %v9716_v57  ;;  %v4737_v38 = vmul.f32 %v9988_v43, %v9510_v50 }
 0x7f5   :  { %v4831_v46 = vrot.slane %v4735_v20, 2  ;;  %v4833_v19 = vrot.slane %v4736_v7, 2  ;;  %v4830_v60 = vrot.slane %v4734_v51, 2  ;;  %v4836_v0 = vrot.slane %v4738_v22, 2  ;;  %v12864_v51 = vld [vmem:[#allocation249_spill] sm:$0xff]  ;;  %v12865_v22 = vld [vmem:[#allocation46_spill] sm:$0xff] }
 0x7f6   :  { %v10002_v47 = vpop.permute.xlu1 %4711  ;;  %v4838_v27 = vrot.slane %v4739_v52, 2  ;;  %v4835_v2 = vrot.slane %v4737_v38, 2  ;;  %v10004_v12 = vpop.permute.xlu0 %4715 }
 0x7f7   :  { %v4834_v35 = vsel %vm1003_vm7, %v4831_v46, %v4833_v19  ;;  %v4832_v6 = vsel %vm1003_vm7, %v4830_v60, %v4831_v46  ;;  %v4741_v57 = vmul.f32 %v10002_v47, %v9520_v61  ;;  %v4742_v50 = vmul.f32 %v10002_v47, %v9726_v54 }
 0x7f8   :  { %4912 = vrot.lane.b32.xlu0 %v4834_v35, %s6174_s2  ;;  %4910 = vrot.lane.b32.xlu1 %v4832_v6, %s6174_s2  ;;  %v4740_v20 = vmul.f32 %v10002_v47, %v9518_v8  ;;  %v4744_v19 = vmul.f32 %v10004_v12, %v12864_v51  ;;  %v4745_v60 = vmul.f32 %v10004_v12, %v12865_v22  ;;  %v12866_v35 = vld [vmem:[#allocation32_spill] sm:$0xff]  ;;  %v12867_v51 = vld [vmem:[#allocation194_spill] sm:$0xff] }
 0x7f9   :  { %v4841_v38 = vrot.slane %v4741_v57, 2  ;;  %v4843_v7 = vrot.slane %v4742_v50, 2  ;;  %v4839_v61 = vsel %vm1003_vm7, %v4836_v0, %v4838_v27  ;;  %v4837_v54 = vsel %vm1003_vm7, %v4835_v2, %v4836_v0  ;;  %v12868_v2 = vld [vmem:[#allocation49_spill] sm:$0xff] }
 0x7fa   :  { %v10020_v46 = vpop.permute.xlu1 %4719  ;;  %v4840_v52 = vrot.slane %v4740_v20, 2  ;;  %v4743_v6 = vmul.f32 %v10004_v12, %v12866_v35  ;;  %v4846_v57 = vrot.slane %v4744_v19, 2  ;;  %v4848_v50 = vrot.slane %v4745_v60, 2  ;;  %v10031_v14 = vpop.permute.xlu0 %4723  ;;  %v12869_v35 = vld [vmem:[#allocation251_spill] sm:$0xff] }
 0x7fb   :  { %v4844_v8 = vsel %vm1003_vm7, %v4841_v38, %v4843_v7  ;;  %v4747_v22 = vmul.f32 %v10020_v46, %v12867_v51  ;;  %v4748_v20 = vmul.f32 %v10020_v46, %v12868_v2  ;;  %v4750_v60 = vmul.f32 %v10031_v14, %v9544_v42  ;;  %v12871_v2 = vld [vmem:[#allocation50_spill] sm:$0xff] }
 0x7fc   :  { %4916 = vrot.lane.b32.xlu0 %v4839_v61, %s6174_s2  ;;  %4914 = vrot.lane.b32.xlu1 %v4837_v54, %s6174_s2  ;;  %v4842_v27 = vsel %vm1003_vm7, %v4840_v52, %v4841_v38  ;;  %v4845_v0 = vrot.slane %v4743_v6, 2  ;;  %v4746_v61 = vmul.f32 %v10020_v46, %v12869_v35  ;;  %v4849_v7 = vsel %vm1003_vm7, %v4846_v57, %v4848_v50 }
 0x7fd   :  { %v4851_v19 = vrot.slane %v4747_v22, 2  ;;  %v4751_v38 = vmul.f32 %v10031_v14, %v9768_v37  ;;  %v4853_v6 = vrot.slane %v4748_v20, 2  ;;  %v4856_v50 = vrot.slane %v4750_v60, 2 }
 0x7fe   :  { %v10045_v54 = vpop.permute.xlu1 %4727  ;;  %v4847_v52 = vsel %vm1003_vm7, %v4845_v0, %v4846_v57  ;;  %v4850_v51 = vrot.slane %v4746_v61, 2  ;;  %v10056_v35 = vpop.permute.xlu0 %4731 }
 0x7ff   :  { %v4858_v22 = vrot.slane %v4751_v38, 2  ;;  %v4754_v37 = vmul.f32 %v10045_v54, %v12871_v2  ;;  %v4854_v57 = vsel %vm1003_vm7, %v4851_v19, %v4853_v6 }
 0x800   :  { %4920 = vrot.lane.b32.xlu0 %v4844_v8, %s6174_s2  ;;  %4918 = vrot.lane.b32.xlu1 %v4842_v27, %s6174_s2  ;;  %v4749_v8 = vmul.f32 %v10031_v14, %v9542_v5  ;;  %v12870_v27 = vld [vmem:[#allocation231_spill] sm:$0xff]  ;;  %v4852_v0 = vsel %vm1003_vm7, %v4850_v51, %v4851_v19  ;;  %v4757_v19 = vmul.f32 %v10056_v35, %v9797_v34 }
 0x801   :  { %v4753_v42 = vmul.f32 %v10045_v54, %v12870_v27  ;;  %v12872_v5 = vld [vmem:[#allocation15_spill] sm:$0xff]  ;;  %v4863_v38 = vrot.slane %v4754_v37, 2  ;;  %v12875_v37 = vld [vmem:[#allocation53_spill] sm:$0xff] }
 0x802   :  { %v4855_v20 = vrot.slane %v4749_v8, 2  ;;  %v4752_v61 = vmul.f32 %v10045_v54, %v12872_v5  ;;  %v12873_v51 = vld [vmem:[#allocation163_spill] sm:$0xff] }
 0x803   :  { %v4861_v60 = vrot.slane %v4753_v42, 2  ;;  %v4755_v8 = vmul.f32 %v10056_v35, %v12873_v51  ;;  %v12874_v42 = vld [vmem:[#allocation201_spill] sm:$0xff] }
 0x804   :  { %4924 = vrot.lane.b32.xlu0 %v4849_v7, %s6174_s2  ;;  %4922 = vrot.lane.b32.xlu1 %v4847_v52, %s6174_s2  ;;  %v4859_v7 = vsel %vm1003_vm7, %v4856_v50, %v4858_v22  ;;  %v4756_v52 = vmul.f32 %v10056_v35, %v9560_v30  ;;  %v4857_v27 = vsel %vm1003_vm7, %v4855_v20, %v4856_v50  ;;  %v4860_v6 = vrot.slane %v4752_v61, 2 }
 0x805   :  { %v4864_v22 = vsel %vm1003_vm7, %v4861_v60, %v4863_v38  ;;  %v4759_v2 = vmul.f32 %v9986_v29, %v12874_v42  ;;  %v4760_v30 = vmul.f32 %v9986_v29, %v12875_v37  ;;  %v4758_v50 = vmul.f32 %v9986_v29, %v9566_v59 }
 0x806   :  { %v4862_v34 = vsel %vm1003_vm7, %v4860_v6, %v4861_v60  ;;  %v4865_v20 = vrot.slane %v4755_v8, 2  ;;  %v4762_v38 = vmul.f32 %v9988_v43, %v9576_v40  ;;  %v4763_v59 = vmul.f32 %v9988_v43, %v9820_v49 }
 0x807   :  { %v4871_v5 = vrot.slane %v4759_v2, 2  ;;  %v4873_v61 = vrot.slane %v4760_v30, 2  ;;  %v4761_v29 = vmul.f32 %v9988_v43, %v9574_v44  ;;  %v4765_v40 = vmul.f32 %v10002_v47, %v9584_v24 }
 0x808   :  { %4928 = vrot.lane.b32.xlu0 %v4854_v57, %s6174_s2  ;;  %4926 = vrot.lane.b32.xlu1 %v4852_v0, %s6174_s2  ;;  %v4866_v57 = vrot.slane %v4756_v52, 2  ;;  %v4868_v0 = vrot.slane %v4757_v19, 2  ;;  %v4766_v6 = vmul.f32 %v10002_v47, %v9832_v3  ;;  %v4876_v19 = vrot.slane %v4762_v38, 2 }
 0x809   :  { %v4874_v60 = vsel %vm1003_vm7, %v4871_v5, %v4873_v61  ;;  %v4878_v8 = vrot.slane %v4763_v59, 2  ;;  %v4875_v49 = vrot.slane %v4761_v29, 2  ;;  %v4764_v44 = vmul.f32 %v10002_v47, %v9582_v4 }
 0x80a   :  { %v4867_v51 = vsel %vm1003_vm7, %v4865_v20, %v4866_v57  ;;  %v4881_v43 = vrot.slane %v4765_v40, 2  ;;  %v4768_v42 = vmul.f32 %v10004_v12, %v9592_v11  ;;  %v4769_v24 = vmul.f32 %v10004_v12, %v9844_v32 }
 0x80b   :  { %v4879_v3 = vsel %vm1003_vm7, %v4876_v19, %v4878_v8  ;;  %v4877_v2 = vsel %vm1003_vm7, %v4875_v49, %v4876_v19  ;;  %v4880_v37 = vrot.slane %v4764_v44, 2  ;;  %v4767_v4 = vmul.f32 %v10004_v12, %v9590_v9 }
 0x80c   :  { %4932 = vrot.lane.b32.xlu0 %v4859_v7, %s6174_s2  ;;  %4930 = vrot.lane.b32.xlu1 %v4857_v27, %s6174_s2  ;;  %v4870_v7 = vrot.slane %v4758_v50, 2  ;;  %v4869_v27 = vsel %vm1003_vm7, %v4866_v57, %v4868_v0  ;;  %v4886_v30 = vrot.slane %v4768_v42, 2  ;;  %v4888_v50 = vrot.slane %v4769_v24, 2 }
 0x80d   :  { %v4771_v11 = vmul.f32 %v10020_v46, %v9600_v21  ;;  %v4882_v32 = vsel %vm1003_vm7, %v4880_v37, %v4881_v43  ;;  %v4772_v57 = vmul.f32 %v10020_v46, %v9858_v28  ;;  %v4770_v9 = vmul.f32 %v10020_v46, %v9598_v36 }
 0x80e   :  { %v4872_v52 = vsel %vm1003_vm7, %v4870_v7, %v4871_v5  ;;  %v4889_v12 = vsel %vm1003_vm7, %v4886_v30, %v4888_v50  ;;  %v4774_v20 = vmul.f32 %v10031_v14, %v9608_v18  ;;  %v4775_v21 = vmul.f32 %v10031_v14, %v9868_v39 }
 0x80f   :  { %v4891_v0 = vrot.slane %v4771_v11, 2  ;;  %v4893_v61 = vrot.slane %v4772_v57, 2  ;;  %v4890_v28 = vrot.slane %v4770_v9, 2  ;;  %v4773_v36 = vmul.f32 %v10031_v14, %v9606_v17 }
 0x810   :  { %4936 = vrot.lane.b32.xlu0 %v4864_v22, %s6174_s2  ;;  %4934 = vrot.lane.b32.xlu1 %v4862_v34, %s6174_s2  ;;  %v4883_v22 = vrot.slane %v4766_v6, 2  ;;  %v4885_v34 = vrot.slane %v4767_v4, 2  ;;  %v4896_v46 = vrot.slane %v4774_v20, 2  ;;  %v4898_v7 = vrot.slane %v4775_v21, 2 }
 0x811   :  { %v4777_v38 = vmul.f32 %v10045_v54, %v9616_v31  ;;  %v4778_v18 = vmul.f32 %v10045_v54, %v9880_v62  ;;  %v4894_v39 = vsel %vm1003_vm7, %v4891_v0, %v4893_v61  ;;  %v4776_v17 = vmul.f32 %v10045_v54, %v9614_v23 }
 0x812   :  { %v4884_v47 = vsel %vm1003_vm7, %v4881_v43, %v4883_v22  ;;  %v4887_v5 = vsel %vm1003_vm7, %v4885_v34, %v4886_v30  ;;  %v4899_v14 = vsel %vm1003_vm7, %v4896_v46, %v4898_v7  ;;  %v4780_v31 = vmul.f32 %v10056_v35, %v9624_v13 }
 0x813   :  { %v4901_v59 = vrot.slane %v4777_v38, 2  ;;  %v4903_v29 = vrot.slane %v4778_v18, 2  ;;  %v4779_v23 = vmul.f32 %v10056_v35, %v9622_v41  ;;  %v12876_v41 = vmov 5  }
 0x814   :  { %4940 = vrot.lane.b32.xlu0 %v4869_v27, %s6174_s2  ;;  %4938 = vrot.lane.b32.xlu1 %v4867_v51, %s6174_s2  ;;  %v4892_v27 = vsel %vm1003_vm7, %v4890_v28, %v4891_v0  ;;  %v4895_v51 = vrot.slane %v4773_v36, 2  ;;  %v4906_v54 = vrot.slane %v4780_v31, 2 }
 0x815   :  { %v4904_v40 = vsel %vm1003_vm7, %v4901_v59, %v4903_v29  ;;  %v4905_v13 = vrot.slane %v4779_v23, 2 }
 0x816   :  { %v4897_v62 = vsel %vm1003_vm7, %v4895_v51, %v4896_v46  ;;  %v10236_v51 = vld [vmem:[#allocation2 + $0x8] sm:$0xff] }
 0x817   :  { %v4907_v8 = vsel %vm1003_vm7, %v4905_v13, %v4906_v54  ;;  %12907 = vst [vmem:[#allocation149_spill] sm:$0xff] %v10236_v51 }
 0x818   :  { %4944 = vrot.lane.b32.xlu0 %v4874_v60, %s6174_s2  ;;  %4942 = vrot.lane.b32.xlu1 %v4872_v52, %s6174_s2  ;;  %v4900_v60 = vrot.slane %v4776_v17, 2  ;;  %v4781_v52 = vmul.f32 %v10056_v35, %v9894_v58  ;;  %v10238_v17 = vld [vmem:[#allocation2] sm:$0xff] }
 0x81a   :  { %v4902_v6 = vsel %vm1003_vm7, %v4900_v60, %v4901_v59  ;;  %v4908_v19 = vrot.slane %v4781_v52, 2  ;;  %v10248_v60 = vld [vmem:[#allocation2 + $0x18] sm:$0xff] }
 0x81c   :  { %4948 = vrot.lane.b32.xlu0 %v4879_v3, %s6174_s2  ;;  %4946 = vrot.lane.b32.xlu1 %v4877_v2, %s6174_s2  ;;  %v4909_v58 = vsel %vm1003_vm7, %v4906_v54, %v4908_v19  ;;  %v10254_v54 = vld [vmem:[#allocation2 + $0x38] sm:$0xff] }
 0x81d   :  { %12909 = vst [vmem:[#allocation131_spill] sm:$0xff] %v10254_v54 }
 0x820   :  { %4952 = vrot.lane.b32.xlu0 %v4884_v47, %s6174_s2  ;;  %4950 = vrot.lane.b32.xlu1 %v4882_v32, %s6174_s2 }
 0x824   :  { %4956 = vrot.lane.b32.xlu0 %v4889_v12, %s6174_s2  ;;  %4954 = vrot.lane.b32.xlu1 %v4887_v5, %s6174_s2 }
 0x828   :  { %4960 = vrot.lane.b32.xlu0 %v4894_v39, %s6174_s2  ;;  %4958 = vrot.lane.b32.xlu1 %v4892_v27, %s6174_s2 }
 0x82c   :  { %4964 = vrot.lane.b32.xlu0 %v4899_v14, %s6174_s2  ;;  %4962 = vrot.lane.b32.xlu1 %v4897_v62, %s6174_s2  ;;  %v10246_v62 = vld [vmem:[#allocation2 + $0x20] sm:$0xff] }
 0x82d   :  { %12908 = vst [vmem:[#allocation150_spill] sm:$0xff] %v10246_v62 }
 0x830   :  { %4968 = vrot.lane.b32.xlu0 %v4904_v40, %s6174_s2  ;;  %4966 = vrot.lane.b32.xlu1 %v4902_v6, %s6174_s2  ;;  %v10256_v40 = vld [vmem:[#allocation2 + $0x30] sm:$0xff] }
 0x831   :  { %12910 = vst [vmem:[#allocation132_spill] sm:$0xff] %v10256_v40 }
 0x834   :  { %4972 = vrot.lane.b32.xlu0 %v4909_v58, %s6174_s2  ;;  %4970 = vrot.lane.b32.xlu1 %v4907_v8, %s6174_s2  ;;  %v10264_v58 = vld [vmem:[#allocation2 + $0x50] sm:$0xff]  ;;  %v10266_v8 = vld [vmem:[#allocation2 + $0x48] sm:$0xff] }
 0x838   :  { %5091 = vperm.xlu0 %6069, %v9330_v45   ;;  %5087 = vperm.xlu1 %6068, %v9334_v48  }
 0x83c   :  { %5103 = vperm.xlu0 %6069, %v9348_v15   ;;  %5095 = vperm.xlu1 %6068, %v9338_v26  }
 0x840   :  { %5111 = vperm.xlu0 %6069, %v9356_v25   ;;  %5099 = vperm.xlu1 %6068, %v9343_v33  }
 0x844   :  { %5107 = vperm.xlu1 %6068, %v9352_v16   ;;  %6070 = vset.pattern.permute.xlu0 %v12876_v41 }
 0x848   :  { %5115 = vperm.xlu1 %6068, %v9360_v53  }
 0x84c   :  { %6071 = vset.pattern.permute.xlu1 %v12876_v41 }
 0x86a   :  { %v10172_v35 = vpop.permute.xlu0 %4912  ;;  %v10174_v49 = vpop.permute.xlu1 %4910 }
 0x86b   :  { %12877 = vst [vmem:[#allocation234_spill] sm:$0xff] %v10172_v35  ;;  %12878 = vst [vmem:[#allocation36_spill] sm:$0xff] %v10174_v49 }
 0x86e   :  { %v10176_v44 = vpop.permute.xlu0 %4916  ;;  %v10178_v43 = vpop.permute.xlu1 %4914 }
 0x86f   :  { %12879 = vst [vmem:[#allocation74_spill] sm:$0xff] %v10176_v44  ;;  %12880 = vst [vmem:[#allocation77_spill] sm:$0xff] %v10178_v43 }
 0x872   :  { %v10180_v22 = vpop.permute.xlu0 %4920  ;;  %v10182_v42 = vpop.permute.xlu1 %4918 }
 0x873   :  { %12881 = vst [vmem:[#allocation78_spill] sm:$0xff] %v10180_v22  ;;  %12882 = vst [vmem:[#allocation35_spill] sm:$0xff] %v10182_v42 }
 0x876   :  { %v10184_v24 = vpop.permute.xlu0 %4924  ;;  %v10186_v3 = vpop.permute.xlu1 %4922 }
 0x877   :  { %12883 = vst [vmem:[#allocation37_spill] sm:$0xff] %v10184_v24  ;;  %12884 = vst [vmem:[#allocation39_spill] sm:$0xff] %v10186_v3 }
 0x87a   :  { %v10188_v2 = vpop.permute.xlu0 %4928  ;;  %v10190_v37 = vpop.permute.xlu1 %4926 }
 0x87b   :  { %12885 = vst [vmem:[#allocation233_spill] sm:$0xff] %v10188_v2  ;;  %12886 = vst [vmem:[#allocation109_spill] sm:$0xff] %v10190_v37 }
 0x87e   :  { %v10192_v4 = vpop.permute.xlu0 %4932  ;;  %v10194_v47 = vpop.permute.xlu1 %4930 }
 0x87f   :  { %12887 = vst [vmem:[#allocation110_spill] sm:$0xff] %v10192_v4  ;;  %12888 = vst [vmem:[#allocation116_spill] sm:$0xff] %v10194_v47  ;;  %v10356_v47 = vld [vmem:[#allocation2 + $0x150] sm:$0xff]  ;;  %v10364_v4 = vld [vmem:[#allocation2 + $0x168] sm:$0xff] }
 0x882   :  { %v10196_v30 = vpop.permute.xlu0 %4936  ;;  %v10198_v50 = vpop.permute.xlu1 %4934 }
 0x883   :  { %12889 = vst [vmem:[#allocation115_spill] sm:$0xff] %v10196_v30  ;;  %v10348_v30 = vld [vmem:[#allocation2 + $0x138] sm:$0xff] }
 0x886   :  { %v10200_v11 = vpop.permute.xlu0 %4940  ;;  %v10202_v32 = vpop.permute.xlu1 %4938 }
 0x887   :  { %12890 = vst [vmem:[#allocation118_spill] sm:$0xff] %v10200_v11  ;;  %v10340_v11 = vld [vmem:[#allocation2 + $0x120] sm:$0xff] }
 0x88a   :  { %v10204_v34 = vpop.permute.xlu1 %4942  ;;  %v10206_v57 = vpop.permute.xlu0 %4944 }
 0x88b   :  { %12891 = vst [vmem:[#allocation117_spill] sm:$0xff] %v10204_v34  ;;  %12892 = vst [vmem:[#allocation253_spill] sm:$0xff] %v10206_v57  ;;  %v10322_v34 = vld [vmem:[#allocation2 + $0xf0] sm:$0xff]  ;;  %v10338_v57 = vld [vmem:[#allocation2 + $0x128] sm:$0xff] }
 0x88e   :  { %v10208_v9 = vpop.permute.xlu1 %4946  ;;  %v10210_v12 = vpop.permute.xlu0 %4948 }
 0x88f   :  { %12893 = vst [vmem:[#allocation122_spill] sm:$0xff] %v10208_v9  ;;  %12894 = vst [vmem:[#allocation121_spill] sm:$0xff] %v10210_v12  ;;  %v10314_v9 = vld [vmem:[#allocation2 + $0xd8] sm:$0xff] }
 0x890   :  { %v10320_v12 = vld [vmem:[#allocation2 + $0xf8] sm:$0xff] }
 0x892   :  { %v10212_v0 = vpop.permute.xlu1 %4950  ;;  %v10214_v20 = vpop.permute.xlu0 %4952 }
 0x893   :  { %12895 = vst [vmem:[#allocation73_spill] sm:$0xff] %v10212_v0  ;;  %12896 = vst [vmem:[#allocation34_spill] sm:$0xff] %v10214_v20  ;;  %v10306_v0 = vld [vmem:[#allocation2 + $0xc0] sm:$0xff] }
 0x894   :  { %v10312_v20 = vld [vmem:[#allocation2 + $0xe0] sm:$0xff] }
 0x896   :  { %v10216_v21 = vpop.permute.xlu1 %4954  ;;  %v10218_v5 = vpop.permute.xlu0 %4956 }
 0x897   :  { %12897 = vst [vmem:[#allocation133_spill] sm:$0xff] %v10216_v21  ;;  %12898 = vst [vmem:[#allocation134_spill] sm:$0xff] %v10218_v5  ;;  %v10298_v21 = vld [vmem:[#allocation2 + $0xa8] sm:$0xff] }
 0x898   :  { %v10304_v5 = vld [vmem:[#allocation2 + $0xc8] sm:$0xff] }
 0x89a   :  { %v10220_v61 = vpop.permute.xlu1 %4958  ;;  %v10222_v28 = vpop.permute.xlu0 %4960 }
 0x89b   :  { %12899 = vst [vmem:[#allocation19_spill] sm:$0xff] %v10220_v61  ;;  %12900 = vst [vmem:[#allocation135_spill] sm:$0xff] %v10222_v28  ;;  %v10296_v28 = vld [vmem:[#allocation2 + $0xb0] sm:$0xff] }
 0x89e   :  { %v10224_v36 = vpop.permute.xlu1 %4962  ;;  %v10226_v46 = vpop.permute.xlu0 %4964 }
 0x89f   :  { %12901 = vst [vmem:[#allocation136_spill] sm:$0xff] %v10224_v36  ;;  %12902 = vst [vmem:[#allocation139_spill] sm:$0xff] %v10226_v46  ;;  %v10288_v36 = vld [vmem:[#allocation2 + $0x98] sm:$0xff]  ;;  %v10290_v46 = vld [vmem:[#allocation2 + $0x90] sm:$0xff] }
 0x8a0   :  { %12913 = vst [vmem:[#allocation48_spill] sm:$0xff] %v10288_v36 }
 0x8a2   :  { %v10228_v7 = vpop.permute.xlu1 %4966  ;;  %v10230_v38 = vpop.permute.xlu0 %4968 }
 0x8a3   :  { %12903 = vst [vmem:[#allocation140_spill] sm:$0xff] %v10228_v7  ;;  %12904 = vst [vmem:[#allocation143_spill] sm:$0xff] %v10230_v38  ;;  %v10282_v7 = vld [vmem:[#allocation2 + $0x78] sm:$0xff] }
 0x8a6   :  { %v10232_v18 = vpop.permute.xlu1 %4970  ;;  %v10234_v39 = vpop.permute.xlu0 %4972 }
 0x8a7   :  { %12905 = vst [vmem:[#allocation144_spill] sm:$0xff] %v10232_v18  ;;  %12906 = vst [vmem:[#allocation47_spill] sm:$0xff] %v10234_v39  ;;  %v10280_v39 = vld [vmem:[#allocation2 + $0x80] sm:$0xff] }
 0x8a8   :  { %12912 = vst [vmem:[#allocation20_spill] sm:$0xff] %v10280_v39 }
 0x8b7   :  { %v5088_v27 = vpop.permute.xlu1 %5087  ;;  %v5092_v29 = vpop.permute.xlu0 %5091 }
 0x8b8   :  { %v5119_v14 = vmul.f32 %v5088_v27, %v10236_v51  ;;  %v5118_v59 = vmul.f32 %v5088_v27, %v10238_v17  ;;  %v5121_v52 = vmul.f32 %v5092_v29, %v10246_v62  ;;  %v5120_v23 = vmul.f32 %v5092_v29, %v10248_v60 }
 0x8ba   :  { %5184 = vrot.lane.b32.xlu1 %v5119_v14, %s6178_s25  ;;  %5182 = vrot.lane.b32.xlu0 %v5118_v59, %s6178_s25 }
 0x8bb   :  { %v10244_v31 = vpop.permute.xlu1 %5095  ;;  %v5104_v59 = vpop.permute.xlu0 %5103 }
 0x8bc   :  { %v5123_v6 = vmul.f32 %v10244_v31, %v10254_v54  ;;  %v5122_v19 = vmul.f32 %v10244_v31, %v10256_v40 }
 0x8be   :  { %5188 = vrot.lane.b32.xlu1 %v5121_v52, %s6178_s25  ;;  %5186 = vrot.lane.b32.xlu0 %v5120_v23, %s6178_s25  ;;  %v10272_v52 = vld [vmem:[#allocation2 + $0x68] sm:$0xff]  ;;  %v10274_v23 = vld [vmem:[#allocation2 + $0x60] sm:$0xff] }
 0x8bf   :  { %v5100_v13 = vpop.permute.xlu1 %5099  ;;  %12911 = vst [vmem:[#allocation151_spill] sm:$0xff] %v10274_v23  ;;  %v5112_v38 = vpop.permute.xlu0 %5111 }
 0x8c0   :  { %v5125_v41 = vmul.f32 %v5100_v13, %v10264_v58  ;;  %v5124_v14 = vmul.f32 %v5100_v13, %v10266_v8 }
 0x8c2   :  { %5192 = vrot.lane.b32.xlu1 %v5123_v6, %s6178_s25  ;;  %5190 = vrot.lane.b32.xlu0 %v5122_v19, %s6178_s25  ;;  %v5127_v6 = vmul.f32 %v5104_v59, %v10272_v52  ;;  %v5126_v19 = vmul.f32 %v5104_v59, %v10274_v23 }
 0x8c3   :  { %v5108_v18 = vpop.permute.xlu1 %5107 }
 0x8c6   :  { %5196 = vrot.lane.b32.xlu1 %v5125_v41, %s6178_s25  ;;  %5194 = vrot.lane.b32.xlu0 %v5124_v14, %s6178_s25  ;;  %v5129_v41 = vmul.f32 %v5108_v18, %v10280_v39  ;;  %v5128_v14 = vmul.f32 %v5108_v18, %v10282_v7 }
 0x8c7   :  { %v5116_v61 = vpop.permute.xlu1 %5115 }
 0x8ca   :  { %5200 = vrot.lane.b32.xlu1 %v5127_v6, %s6178_s25  ;;  %5198 = vrot.lane.b32.xlu0 %v5126_v19, %s6178_s25  ;;  %v5131_v6 = vmul.f32 %v5112_v38, %v10288_v36  ;;  %v5130_v19 = vmul.f32 %v5112_v38, %v10290_v46 }
 0x8ce   :  { %5204 = vrot.lane.b32.xlu1 %v5129_v41, %s6178_s25  ;;  %5202 = vrot.lane.b32.xlu0 %v5128_v14, %s6178_s25  ;;  %v5133_v41 = vmul.f32 %v5116_v61, %v10296_v28  ;;  %v5132_v14 = vmul.f32 %v5116_v61, %v10298_v21 }
 0x8d2   :  { %5208 = vrot.lane.b32.xlu1 %v5131_v6, %s6178_s25  ;;  %5206 = vrot.lane.b32.xlu0 %v5130_v19, %s6178_s25  ;;  %v5135_v6 = vmul.f32 %v5088_v27, %v10304_v5  ;;  %v5134_v19 = vmul.f32 %v5088_v27, %v10306_v0  ;;  %v5139_v27 = vmul.f32 %v10244_v31, %v10320_v12 }
 0x8d6   :  { %5212 = vrot.lane.b32.xlu1 %v5133_v41, %s6178_s25  ;;  %5210 = vrot.lane.b32.xlu0 %v5132_v14, %s6178_s25  ;;  %v5137_v41 = vmul.f32 %v5092_v29, %v10312_v20  ;;  %v5136_v14 = vmul.f32 %v5092_v29, %v10314_v9  ;;  %v10332_v29 = vld [vmem:[#allocation2 + $0x108] sm:$0xff] }
 0x8da   :  { %5216 = vrot.lane.b32.xlu1 %v5135_v6, %s6178_s25  ;;  %5214 = vrot.lane.b32.xlu0 %v5134_v19, %s6178_s25  ;;  %v5138_v6 = vmul.f32 %v10244_v31, %v10322_v34  ;;  %v10330_v19 = vld [vmem:[#allocation2 + $0x110] sm:$0xff]  ;;  %v5143_v31 = vmul.f32 %v5104_v59, %v10338_v57 }
 0x8de   :  { %5220 = vrot.lane.b32.xlu1 %v5137_v41, %s6178_s25  ;;  %5218 = vrot.lane.b32.xlu0 %v5136_v14, %s6178_s25  ;;  %v5141_v41 = vmul.f32 %v5100_v13, %v10330_v19  ;;  %v5140_v14 = vmul.f32 %v5100_v13, %v10332_v29 }
 0x8e2   :  { %5224 = vrot.lane.b32.xlu1 %v5139_v27, %s6178_s25  ;;  %5222 = vrot.lane.b32.xlu0 %v5138_v6, %s6178_s25  ;;  %v5142_v27 = vmul.f32 %v5104_v59, %v10340_v11  ;;  %v10346_v6 = vld [vmem:[#allocation2 + $0x140] sm:$0xff] }
 0x8e3   :  { %v5145_v13 = vmul.f32 %v5108_v18, %v10346_v6 }
 0x8e6   :  { %5228 = vrot.lane.b32.xlu1 %v5141_v41, %s6178_s25  ;;  %5226 = vrot.lane.b32.xlu0 %v5140_v14, %s6178_s25  ;;  %v5144_v41 = vmul.f32 %v5108_v18, %v10348_v30  ;;  %v10354_v14 = vld [vmem:[#allocation2 + $0x158] sm:$0xff] }
 0x8e7   :  { %v5147_v59 = vmul.f32 %v5112_v38, %v10354_v14 }
 0x8ea   :  { %5232 = vrot.lane.b32.xlu1 %v5143_v31, %s6178_s25  ;;  %5230 = vrot.lane.b32.xlu0 %v5142_v27, %s6178_s25  ;;  %v5146_v31 = vmul.f32 %v5112_v38, %v10356_v47  ;;  %v10362_v27 = vld [vmem:[#allocation2 + $0x170] sm:$0xff] }
 0x8eb   :  { %v5149_v18 = vmul.f32 %v5116_v61, %v10362_v27 }
 0x8ee   :  { %5236 = vrot.lane.b32.xlu1 %v5145_v13, %s6178_s25  ;;  %5234 = vrot.lane.b32.xlu0 %v5144_v41, %s6178_s25  ;;  %v5148_v13 = vmul.f32 %v5116_v61, %v10364_v4  ;;  %v12914_v61 = vmov 8  }
 0x8f2   :  { %5240 = vrot.lane.b32.xlu1 %v5147_v59, %s6178_s25  ;;  %5238 = vrot.lane.b32.xlu0 %v5146_v31, %s6178_s25 }
 0x8f6   :  { %5244 = vrot.lane.b32.xlu1 %v5149_v18, %s6178_s25  ;;  %5242 = vrot.lane.b32.xlu0 %v5148_v13, %s6178_s25 }
 0x8fa   :  { %5315 = vperm.xlu1 %6071, %v9330_v45   ;;  %5311 = vperm.xlu0 %6070, %v9334_v48  }
 0x8fe   :  { %5319 = vperm.xlu1 %6071, %v9338_v26   ;;  %5323 = vperm.xlu0 %6070, %v9343_v33  }
 0x902   :  { %5327 = vperm.xlu1 %6071, %v9348_v15   ;;  %5331 = vperm.xlu0 %6070, %v9352_v16  }
 0x906   :  { %5335 = vperm.xlu1 %6071, %v9356_v25   ;;  %5339 = vperm.xlu0 %6070, %v9360_v53  }
 0x90a   :  { %6072 = vset.pattern.permute.xlu0 %v12914_v61  ;;  %6073 = vset.pattern.permute.xlu1 %v12914_v61 }
 0x92c   :  { %v10380_v38 = vpop.permute.xlu0 %5182  ;;  %v10382_v41 = vpop.permute.xlu1 %5184 }
 0x92d   :  { %12915 = vst [vmem:[#allocation152_spill] sm:$0xff] %v10380_v38  ;;  %12916 = vst [vmem:[#allocation171_spill] sm:$0xff] %v10382_v41 }
 0x930   :  { %v10384_v59 = vpop.permute.xlu0 %5186  ;;  %v10386_v31 = vpop.permute.xlu1 %5188 }
 0x931   :  { %12917 = vst [vmem:[#allocation172_spill] sm:$0xff] %v10384_v59  ;;  %12918 = vst [vmem:[#allocation173_spill] sm:$0xff] %v10386_v31 }
 0x934   :  { %v10388_v18 = vpop.permute.xlu0 %5190  ;;  %v10390_v13 = vpop.permute.xlu1 %5192 }
 0x935   :  { %12919 = vst [vmem:[#allocation216_spill] sm:$0xff] %v10388_v18  ;;  %12920 = vst [vmem:[#allocation129_spill] sm:$0xff] %v10390_v13 }
 0x938   :  { %v10392_v37 = vpop.permute.xlu0 %5194  ;;  %v10394_v2 = vpop.permute.xlu1 %5196 }
 0x939   :  { %12921 = vst [vmem:[#allocation84_spill] sm:$0xff] %v10392_v37  ;;  %12922 = vst [vmem:[#allocation174_spill] sm:$0xff] %v10394_v2 }
 0x93c   :  { %v10396_v3 = vpop.permute.xlu0 %5198  ;;  %v10398_v24 = vpop.permute.xlu1 %5200 }
 0x93d   :  { %12923 = vst [vmem:[#allocation177_spill] sm:$0xff] %v10396_v3  ;;  %12924 = vst [vmem:[#allocation170_spill] sm:$0xff] %v10398_v24 }
 0x940   :  { %v10400_v61 = vpop.permute.xlu0 %5202  ;;  %v10402_v42 = vpop.permute.xlu1 %5204 }
 0x941   :  { %12925 = vst [vmem:[#allocation169_spill] sm:$0xff] %v10400_v61  ;;  %12926 = vst [vmem:[#allocation217_spill] sm:$0xff] %v10402_v42 }
 0x944   :  { %v10404_v22 = vpop.permute.xlu0 %5206  ;;  %v10406_v59 = vpop.permute.xlu1 %5208 }
 0x945   :  { %12927 = vst [vmem:[#allocation83_spill] sm:$0xff] %v10406_v59 }
 0x948   :  { %v10408_v31 = vpop.permute.xlu0 %5210  ;;  %v10410_v18 = vpop.permute.xlu1 %5212 }
 0x949   :  { %12928 = vst [vmem:[#allocation178_spill] sm:$0xff] %v10410_v18 }
 0x94c   :  { %v10412_v13 = vpop.permute.xlu0 %5214  ;;  %v10414_v37 = vpop.permute.xlu1 %5216 }
 0x94d   :  { %12929 = vst [vmem:[#allocation181_spill] sm:$0xff] %v10412_v13  ;;  %12930 = vst [vmem:[#allocation224_spill] sm:$0xff] %v10414_v37 }
 0x950   :  { %v10416_v2 = vpop.permute.xlu0 %5218  ;;  %v10418_v3 = vpop.permute.xlu1 %5220 }
 0x951   :  { %12931 = vst [vmem:[#allocation38_spill] sm:$0xff] %v10416_v2  ;;  %12932 = vst [vmem:[#allocation51_spill] sm:$0xff] %v10418_v3 }
 0x954   :  { %v10420_v24 = vpop.permute.xlu0 %5222  ;;  %v10422_v61 = vpop.permute.xlu1 %5224 }
 0x955   :  { %12933 = vst [vmem:[#allocation225_spill] sm:$0xff] %v10420_v24  ;;  %12934 = vst [vmem:[#allocation75_spill] sm:$0xff] %v10422_v61 }
 0x958   :  { %v10424_v42 = vpop.permute.xlu0 %5226  ;;  %v10426_v43 = vpop.permute.xlu1 %5228 }
 0x959   :  { %12935 = vst [vmem:[#allocation52_spill] sm:$0xff] %v10424_v42  ;;  %12936 = vst [vmem:[#allocation138_spill] sm:$0xff] %v10426_v43  ;;  %v10448_v43 = vld [vmem:[#allocation2 + $0x10] sm:$0x3] }
 0x95a   :  { %12945 = vst [vmem:[#allocation176_spill] sm:$0xff] %v10448_v43 }
 0x95c   :  { %v10428_v59 = vpop.permute.xlu0 %5230  ;;  %v10430_v44 = vpop.permute.xlu1 %5232 }
 0x95d   :  { %12937 = vst [vmem:[#allocation88_spill] sm:$0xff] %v10428_v59  ;;  %12938 = vst [vmem:[#allocation182_spill] sm:$0xff] %v10430_v44 }
 0x960   :  { %v10432_v18 = vpop.permute.xlu0 %5234  ;;  %v10434_v13 = vpop.permute.xlu1 %5236 }
 0x961   :  { %12939 = vst [vmem:[#allocation137_spill] sm:$0xff] %v10432_v18  ;;  %12940 = vst [vmem:[#allocation87_spill] sm:$0xff] %v10434_v13 }
 0x964   :  { %v10436_v37 = vpop.permute.xlu0 %5238  ;;  %v10438_v2 = vpop.permute.xlu1 %5240 }
 0x965   :  { %12941 = vst [vmem:[#allocation56_spill] sm:$0xff] %v10436_v37  ;;  %12942 = vst [vmem:[#allocation55_spill] sm:$0xff] %v10438_v2  ;;  %v10456_v2 = vld [vmem:[#allocation2 + $0x28] sm:$0x3] }
 0x966   :  { %12946 = vst [vmem:[#allocation76_spill] sm:$0xff] %v10456_v2 }
 0x968   :  { %v10440_v3 = vpop.permute.xlu0 %5242  ;;  %v10442_v24 = vpop.permute.xlu1 %5244 }
 0x969   :  { %12943 = vst [vmem:[#allocation175_spill] sm:$0xff] %v10440_v3  ;;  %12944 = vst [vmem:[#allocation40_spill] sm:$0xff] %v10442_v24 }
 0x979   :  { %v10444_v61 = vpop.permute.xlu0 %5311  ;;  %v10446_v42 = vpop.permute.xlu1 %5315 }
 0x97a   :  { %v5343_v59 = vmul.f32 %v10444_v61, %v10236_v51  ;;  %v5344_v18 = vmul.f32 %v10444_v61, %v10448_v43  ;;  %v5342_v37 = vmul.f32 %v10444_v61, %v10238_v17  ;;  %v5346_v3 = vmul.f32 %v10446_v42, %v10246_v62 }
 0x97b   :  { %v5347_v24 = vmul.f32 %v10446_v42, %v10456_v2  ;;  %v5345_v13 = vmul.f32 %v10446_v42, %v10248_v60 }
 0x97c   :  { %v5439_v44 = vrot.slane %v5343_v59, 1  ;;  %v5441_v41 = vrot.slane %v5344_v18, 1  ;;  %v5438_v38 = vrot.slane %v5342_v37, 1  ;;  %v5444_v49 = vrot.slane %v5346_v3, 1  ;;  %v10480_v3 = vld [vmem:[#allocation2 + $0x58] sm:$0x3] }
 0x97d   :  { %v10464_v63 = vpop.permute.xlu1 %5319  ;;  %v5446_v35 = vrot.slane %v5347_v24, 1  ;;  %v5443_v56 = vrot.slane %v5345_v13, 1  ;;  %v10468_v43 = vpop.permute.xlu0 %5323  ;;  %12948 = vst [vmem:[#allocation236_spill] sm:$0xff] %v10480_v3 }
 0x97e   :  { %v5442_v62 = vsel %vm730_vm6, %v5439_v44, %v5441_v41  ;;  %v5440_v51 = vsel %vm730_vm6, %v5438_v38, %v5439_v44  ;;  %v5349_v2 = vmul.f32 %v10464_v63, %v10254_v54  ;;  %v5350_v59 = vmul.f32 %v10464_v63, %v10466_v10  ;;  %v10495_v54 = vld [vmem:[#allocation2 + $0x70] sm:$0x3] }
 0x97f   :  { %5520 = vrot.lane.b32.xlu0 %v5442_v62, %s6178_s25  ;;  %5518 = vrot.lane.b32.xlu1 %v5440_v51, %s6178_s25  ;;  %v5348_v24 = vmul.f32 %v10464_v63, %v10256_v40  ;;  %v5352_v44 = vmul.f32 %v10468_v43, %v10264_v58  ;;  %v5353_v38 = vmul.f32 %v10468_v43, %v10480_v3 }
 0x980   :  { %v5449_v37 = vrot.slane %v5349_v2, 1  ;;  %v5451_v18 = vrot.slane %v5350_v59, 1  ;;  %v5447_v13 = vsel %vm730_vm6, %v5444_v49, %v5446_v35  ;;  %v5445_v62 = vsel %vm730_vm6, %v5443_v56, %v5444_v49  ;;  %12949 = vst [vmem:[#allocation91_spill] sm:$0xff] %v10495_v54 }
 0x981   :  { %v10486_v41 = vpop.permute.xlu1 %5327  ;;  %v5448_v51 = vrot.slane %v5348_v24, 1  ;;  %v5351_v40 = vmul.f32 %v10468_v43, %v10266_v8  ;;  %v5454_v59 = vrot.slane %v5352_v44, 1  ;;  %v5456_v10 = vrot.slane %v5353_v38, 1  ;;  %v10499_v35 = vpop.permute.xlu0 %5331 }
 0x982   :  { %v5452_v2 = vsel %vm730_vm6, %v5449_v37, %v5451_v18  ;;  %v5355_v3 = vmul.f32 %v10486_v41, %v10272_v52  ;;  %v5356_v24 = vmul.f32 %v10486_v41, %v10495_v54  ;;  %v10508_v18 = vld [vmem:[#allocation2 + $0x88] sm:$0x3] }
 0x983   :  { %5524 = vrot.lane.b32.xlu0 %v5447_v13, %s6178_s25  ;;  %5522 = vrot.lane.b32.xlu1 %v5445_v62, %s6178_s25  ;;  %v5450_v56 = vsel %vm730_vm6, %v5448_v51, %v5449_v37  ;;  %v5453_v49 = vrot.slane %v5351_v40, 1  ;;  %v5354_v13 = vmul.f32 %v10486_v41, %v10274_v23  ;;  %12950 = vst [vmem:[#allocation92_spill] sm:$0xff] %v10508_v18 }
 0x984   :  { %v5457_v44 = vsel %vm730_vm6, %v5454_v59, %v5456_v10  ;;  %v5459_v38 = vrot.slane %v5355_v3, 1  ;;  %v5358_v62 = vmul.f32 %v10499_v35, %v10280_v39  ;;  %v5359_v40 = vmul.f32 %v10499_v35, %v10508_v18  ;;  %v10522_v10 = vld [vmem:[#allocation2 + $0xa0] sm:$0x3] }
 0x985   :  { %v10515_v37 = vpop.permute.xlu1 %5335  ;;  %v5455_v51 = vsel %vm730_vm6, %v5453_v49, %v5454_v59  ;;  %v5461_v23 = vrot.slane %v5356_v24, 1  ;;  %v5458_v54 = vrot.slane %v5354_v13, 1  ;;  %12951 = vst [vmem:[#allocation142_spill] sm:$0xff] %v10522_v10 }
 0x986   :  { %v5464_v3 = vrot.slane %v5358_v62, 1  ;;  %v5361_v18 = vmul.f32 %v10515_v37, %v10288_v36  ;;  %v5362_v39 = vmul.f32 %v10515_v37, %v10522_v10  ;;  %v5360_v13 = vmul.f32 %v10515_v37, %v10290_v46 }
 0x987   :  { %5528 = vrot.lane.b32.xlu0 %v5452_v2, %s6178_s25  ;;  %5526 = vrot.lane.b32.xlu1 %v5450_v56, %s6178_s25  ;;  %v5357_v2 = vmul.f32 %v10499_v35, %v10282_v7  ;;  %v5466_v56 = vrot.slane %v5359_v40, 1  ;;  %v5462_v59 = vsel %vm730_vm6, %v5459_v38, %v5461_v23  ;;  %v5460_v49 = vsel %vm730_vm6, %v5458_v54, %v5459_v38 }
 0x988   :  { %v5469_v40 = vrot.slane %v5361_v18, 1  ;;  %v5468_v36 = vrot.slane %v5360_v13, 1  ;;  %v10571_v13 = vld [vmem:[#allocation2 + $0xd0] sm:$0x3] }
 0x989   :  { %v5463_v24 = vrot.slane %v5357_v2, 1  ;;  %v5467_v62 = vsel %vm730_vm6, %v5464_v3, %v5466_v56 }
 0x98a   :  { %v5470_v2 = vsel %vm730_vm6, %v5468_v36, %v5469_v40  ;;  %v5367_v36 = vmul.f32 %v10444_v61, %v10304_v5 }
 0x98b   :  { %5532 = vrot.lane.b32.xlu0 %v5457_v44, %s6178_s25  ;;  %5530 = vrot.lane.b32.xlu1 %v5455_v51, %s6178_s25  ;;  %v10532_v44 = vpop.permute.xlu0 %5339  ;;  %v5471_v51 = vrot.slane %v5362_v39, 1  ;;  %v5465_v10 = vsel %vm730_vm6, %v5463_v24, %v5464_v3  ;;  %v5369_v3 = vmul.f32 %v10446_v42, %v10314_v9 }
 0x98c   :  { %v5363_v54 = vmul.f32 %v10532_v44, %v10298_v21  ;;  %v5364_v23 = vmul.f32 %v10532_v44, %v10296_v28 }
 0x98d   :  { %v5472_v38 = vsel %vm730_vm6, %v5469_v40, %v5471_v51  ;;  %v5373_v51 = vmul.f32 %v10464_v63, %v10320_v12 }
 0x98e   :  { %v5473_v56 = vrot.slane %v5363_v54, 1  ;;  %v5474_v18 = vrot.slane %v5364_v23, 1  ;;  %v5368_v54 = vmul.f32 %v10444_v61, %v10571_v13  ;;  %v5375_v23 = vmul.f32 %v10468_v43, %v10332_v29 }
 0x98f   :  { %5536 = vrot.lane.b32.xlu0 %v5462_v59, %s6178_s25  ;;  %5534 = vrot.lane.b32.xlu1 %v5460_v49, %s6178_s25  ;;  %v10563_v59 = vld [vmem:[#allocation2 + $0xb8] sm:$0x3] }
 0x990   :  { %v5475_v39 = vsel %vm730_vm6, %v5473_v56, %v5474_v18  ;;  %v5365_v49 = vmul.f32 %v10532_v44, %v10563_v59 }
 0x992   :  { %v5476_v40 = vrot.slane %v5365_v49, 1 }
 0x993   :  { %5540 = vrot.lane.b32.xlu0 %v5467_v62, %s6178_s25  ;;  %5538 = vrot.lane.b32.xlu1 %v5465_v10, %s6178_s25  ;;  %v5366_v10 = vmul.f32 %v10444_v61, %v10306_v0 }
 0x994   :  { %v5477_v56 = vsel %vm730_vm6, %v5474_v18, %v5476_v40  ;;  %v5381_v40 = vmul.f32 %v10499_v35, %v10348_v30 }
 0x997   :  { %5544 = vrot.lane.b32.xlu0 %v5472_v38, %s6178_s25  ;;  %5542 = vrot.lane.b32.xlu1 %v5470_v2, %s6178_s25  ;;  %v5376_v38 = vmul.f32 %v10468_v43, %v10330_v19  ;;  %v10585_v2 = vld [vmem:[#allocation2 + $0xe8] sm:$0x3] }
 0x998   :  { %v5371_v61 = vmul.f32 %v10446_v42, %v10585_v2 }
 0x99b   :  { %5647 = vperm.xlu0 %6072, %v9334_v48   ;;  %5546 = vrot.lane.b32.xlu1 %v5475_v39, %s6178_s25  ;;  %v5370_v48 = vmul.f32 %v10446_v42, %v10312_v20  ;;  %v5489_v39 = vrot.slane %v5373_v51, 1  ;;  %v5382_v51 = vmul.f32 %v10499_v35, %v10346_v6 }
 0x99d   :  { %v5484_v24 = vrot.slane %v5370_v48, 1  ;;  %v5379_v48 = vmul.f32 %v10486_v41, %v10338_v57 }
 0x99f   :  { %5659 = vperm.xlu0 %6072, %v9343_v33   ;;  %5651 = vperm.xlu1 %6073, %v9330_v45   ;;  %v5478_v33 = vrot.slane %v5366_v10, 1  ;;  %v5479_v45 = vrot.slane %v5367_v36, 1  ;;  %v5481_v10 = vrot.slane %v5368_v54, 1  ;;  %v5494_v36 = vrot.slane %v5376_v38, 1  ;;  %v10608_v54 = vld [vmem:[#allocation2 + $0x118] sm:$0x3] }
 0x9a0   :  { %v5503_v38 = vrot.slane %v5381_v40, 1 }
 0x9a1   :  { %v5480_v62 = vsel %vm730_vm6, %v5478_v33, %v5479_v45  ;;  %v10596_v33 = vld [vmem:[#allocation2 + $0x100] sm:$0x3]  ;;  %v5482_v49 = vsel %vm730_vm6, %v5479_v45, %v5481_v10  ;;  %v5384_v10 = vmul.f32 %v10515_v37, %v10356_v47  ;;  %v5387_v47 = vmul.f32 %v10532_v44, %v10364_v4 }
 0x9a2   :  { %v5374_v42 = vmul.f32 %v10464_v63, %v10596_v33 }
 0x9a3   :  { %5667 = vperm.xlu0 %6072, %v9352_v16   ;;  %5655 = vperm.xlu1 %6073, %v9338_v26   ;;  %v5483_v16 = vrot.slane %v5369_v3, 1  ;;  %v5372_v26 = vmul.f32 %v10464_v63, %v10322_v34  ;;  %v5378_v3 = vmul.f32 %v10486_v41, %v10340_v11  ;;  %v5377_v63 = vmul.f32 %v10468_v43, %v10608_v54 }
 0x9a4   :  { %v5513_v40 = vrot.slane %v5387_v47, 1 }
 0x9a7   :  { %5675 = vperm.xlu0 %6072, %v9360_v53   ;;  %5663 = vperm.xlu1 %6073, %v9348_v15   ;;  %v5485_v15 = vsel %vm730_vm6, %v5483_v16, %v5484_v24  ;;  %v5488_v53 = vrot.slane %v5372_v26, 1  ;;  %v5486_v16 = vrot.slane %v5371_v61, 1  ;;  %v5498_v26 = vrot.slane %v5378_v3, 1  ;;  %v10619_v61 = vld [vmem:[#allocation2 + $0x130] sm:$0x3] }
 0x9a8   :  { %v5385_v3 = vmul.f32 %v10515_v37, %v10354_v14  ;;  %v5380_v43 = vmul.f32 %v10486_v41, %v10619_v61 }
 0x9a9   :  { %v5490_v18 = vsel %vm730_vm6, %v5488_v53, %v5489_v39  ;;  %v5491_v53 = vrot.slane %v5374_v42, 1 }
 0x9aa   :  { %v5509_v42 = vrot.slane %v5385_v3, 1 }
 0x9ab   :  { %5550 = vrot.lane.b32.xlu0 %v5480_v62, %s6178_s25  ;;  %5671 = vperm.xlu1 %6073, %v9356_v25   ;;  %v5493_v25 = vrot.slane %v5375_v23, 1  ;;  %v5499_v62 = vrot.slane %v5379_v48, 1 }
 0x9ad   :  { %v5495_v45 = vsel %vm730_vm6, %v5493_v25, %v5494_v36  ;;  %v5500_v23 = vsel %vm730_vm6, %v5498_v26, %v5499_v62  ;;  %v5492_v25 = vsel %vm730_vm6, %v5489_v39, %v5491_v53  ;;  %v5388_v39 = vmul.f32 %v10532_v44, %v10362_v27 }
 0x9ae   :  { %v5501_v26 = vrot.slane %v5380_v43, 1  ;;  %v6131_v43 = vld [vmem:[#allocation2 + $0x90] sm:$0xff] }
 0x9af   :  { %5554 = vrot.lane.b32.xlu0 %v5485_v15, %s6178_s25  ;;  %5548 = vrot.lane.b32.xlu1 %v5477_v56, %s6178_s25  ;;  %v5487_v15 = vsel %vm730_vm6, %v5484_v24, %v5486_v16  ;;  %v5504_v56 = vrot.slane %v5382_v51, 1  ;;  %v5496_v24 = vrot.slane %v5377_v63, 1  ;;  %v5514_v51 = vrot.slane %v5388_v39, 1 }
 0x9b0   :  { %v5502_v27 = vsel %vm730_vm6, %v5499_v62, %v5501_v26 }
 0x9b1   :  { %v5505_v48 = vsel %vm730_vm6, %v5503_v38, %v5504_v56  ;;  %v5497_v16 = vsel %vm730_vm6, %v5494_v36, %v5496_v24  ;;  %v5515_v53 = vsel %vm730_vm6, %v5513_v40, %v5514_v51  ;;  %v10664_v24 = vld [vmem:[#allocation2 + $0x98] sm:$0xff]  ;;  %v12960_v40 = vld [vmem:[#allocation31_spill] sm:$0xff] }
 0x9b3   :  { %5558 = vrot.lane.b32.xlu0 %v5490_v18, %s6178_s25  ;;  %5552 = vrot.lane.b32.xlu1 %v5482_v49, %s6178_s25  ;;  %v5508_v18 = vrot.slane %v5384_v10, 1  ;;  %v10633_v49 = vld [vmem:[#allocation2 + $0x148] sm:$0x3] }
 0x9b4   :  { %v5383_v41 = vmul.f32 %v10499_v35, %v10633_v49  ;;  %v10648_v35 = vld [vmem:[#allocation2 + $0x178] sm:$0x3] }
 0x9b5   :  { %v5510_v4 = vsel %vm730_vm6, %v5508_v18, %v5509_v42  ;;  %12952 = vst [vmem:[#allocation57_spill] sm:$0xff] %v10648_v35  ;;  %v5389_v38 = vmul.f32 %v10532_v44, %v10648_v35  ;;  %v12955_v44 = vld [vmem:[#allocation221_spill] sm:$0xff]  ;;  %v12957_v18 = vld [vmem:[#allocation222_spill] sm:$0xff] }
 0x9b6   :  { %v10668_v3 = vmul.f32 %v10664_v24, %v12955_v44  ;;  %v10673_v47 = vmul.f32 %v10664_v24, %v12957_v18  ;;  %v3872_v39 = vmul.f32 %v6131_v43, %v12957_v18 }
 0x9b7   :  { %5562 = vrot.lane.b32.xlu0 %v5495_v45, %s6178_s25  ;;  %5556 = vrot.lane.b32.xlu1 %v5487_v15, %s6178_s25  ;;  %v10640_v45 = vld [vmem:[#allocation2 + $0x160] sm:$0x3]  ;;  %v5506_v15 = vrot.slane %v5383_v41, 1  ;;  %v5516_v62 = vrot.slane %v5389_v38, 1  ;;  %v10679_v41 = vld [vmem:[#allocation2 + $0xb0] sm:$0xff]  ;;  %v12964_v38 = vld [vmem:[#allocation6_spill] sm:$0xff] }
 0x9b8   :  { %v5386_v36 = vmul.f32 %v10515_v37, %v10640_v45  ;;  %12956 = vst [vmem:[#allocation239_spill] sm:$0xff] %v10668_v3  ;;  %12958 = vst [vmem:[#allocation240_spill] sm:$0xff] %v10673_v47 }
 0x9b9   :  { %v5507_v63 = vsel %vm730_vm6, %v5504_v56, %v5506_v15  ;;  %v5517_v10 = vsel %vm730_vm6, %v5514_v51, %v5516_v62  ;;  %v10683_v51 = vmul.f32 %v10679_v41, %v12960_v40  ;;  %v12962_v15 = vld [vmem:[#allocation11_spill] sm:$0xff] }
 0x9bb   :  { %5566 = vrot.lane.b32.xlu0 %v5500_v23, %s6178_s25  ;;  %5560 = vrot.lane.b32.xlu1 %v5492_v25, %s6178_s25  ;;  %v5511_v23 = vrot.slane %v5386_v36, 1  ;;  %12961 = vst [vmem:[#allocation111_spill] sm:$0xff] %v10683_v51  ;;  %v3498_v36 = vmul.f32 %v6131_v43, %v12962_v15 }
 0x9bd   :  { %v5512_v37 = vsel %vm730_vm6, %v5509_v42, %v5511_v23  ;;  %v12079_v42 = vrot.slane %v10668_v3, 1  ;;  %v3980_v23 = vrot.slane %v3872_v39, 2  ;;  %v12969_v39 = vrot.slane %v10673_v47, 2 }
 0x9bf   :  { %5570 = vrot.lane.b32.xlu0 %v5505_v48, %s6178_s25  ;;  %5564 = vrot.lane.b32.xlu1 %v5497_v16, %s6178_s25  ;;  %v3600_v48 = vmul.f32 %v6131_v43, %v12955_v44  ;;  %v3982_v18 = vsel %vm1003_vm7, %v3980_v23, %v12969_v39  ;;  %v12974_v39 = vld [vmem:[#allocation18_spill] sm:$0xff] }
 0x9c1   :  { %v3708_v26 = vrot.slane %v3600_v48, 1 }
 0x9c3   :  { %5574 = vrot.lane.b32.xlu0 %v5510_v4, %s6178_s25  ;;  %5568 = vrot.lane.b32.xlu1 %v5502_v27, %s6178_s25  ;;  %v6133_v4 = vld [vmem:[#allocation2 + $0xa8] sm:$0xff]  ;;  %v3710_v48 = vsel %vm730_vm6, %v3708_v26, %v12079_v42 }
 0x9c4   :  { %v3603_v27 = vmul.f32 %v6133_v4, %v12960_v40  ;;  %v3875_v62 = vmul.f32 %v6133_v4, %v12964_v38 }
 0x9c6   :  { %v3713_v43 = vrot.slane %v3603_v27, 1 }
 0x9c7   :  { %5578 = vrot.lane.b32.xlu0 %v5515_v53, %s6178_s25  ;;  %5572 = vrot.lane.b32.xlu1 %v5507_v63, %s6178_s25 }
 0x9cb   :  { %5576 = vrot.lane.b32.xlu1 %v5512_v37, %s6178_s25  ;;  %v10692_v37 = vmul.f32 %v10679_v41, %v12964_v38  ;;  %v3985_v38 = vrot.slane %v3875_v62, 2 }
 0x9cd   :  { %12965 = vst [vmem:[#allocation94_spill] sm:$0xff] %v10692_v37  ;;  %v12081_v40 = vrot.slane %v10692_v37, 2 }
 0x9cf   :  { %5580 = vrot.lane.b32.xlu1 %v5517_v10, %s6178_s25 }
 0x9f1   :  { %v10660_v25 = vpop.permute.xlu1 %5518  ;;  %v10662_v56 = vpop.permute.xlu0 %5520 }
 0x9f2   :  { %12953 = vst [vmem:[#allocation141_spill] sm:$0xff] %v10660_v25  ;;  %12954 = vst [vmem:[#allocation58_spill] sm:$0xff] %v10662_v56  ;;  %v12967_v25 = vld [vmem:[#allocation212_spill] sm:$0xff]  ;;  %v12968_v56 = vld [vmem:[#allocation202_spill] sm:$0xff] }
 0x9f3   :  { %v3530_v63 = vadd.f32 %v3498_v36, %v12968_v56  ;;  %v3987_v36 = vsel %vm1003_vm7, %v3985_v38, %v12081_v40 }
 0x9f5   :  { %v10676_v16 = vpop.permute.xlu1 %5522  ;;  %v10687_v53 = vpop.permute.xlu0 %5524 }
 0x9f6   :  { %12959 = vst [vmem:[#allocation112_spill] sm:$0xff] %v10676_v16  ;;  %12963 = vst [vmem:[#allocation179_spill] sm:$0xff] %v10687_v53  ;;  %v12082_v16 = vrot.slane %v10683_v51, 1  ;;  %v3500_v53 = vmul.f32 %v6133_v4, %v12967_v25  ;;  %v12972_v4 = vld [vmem:[#allocation206_spill] sm:$0xff]  ;;  %v13004_v51 = vld [vmem:[#allocation199_spill] sm:$0xff] }
 0x9f8   :  { %v3715_v26 = vsel %vm730_vm6, %v3713_v43, %v12082_v16  ;;  %v3532_v42 = vadd.f32 %v3500_v53, %v12972_v4  ;;  %v12977_v43 = vld [vmem:[#allocation244_spill] sm:$0xff] }
 0x9f9   :  { %v10695_v10 = vpop.permute.xlu1 %5526  ;;  %v10709_v3 = vpop.permute.xlu0 %5528 }
 0x9fa   :  { %12966 = vst [vmem:[#allocation180_spill] sm:$0xff] %v10695_v10  ;;  %v3802_v10 = vadd.f32 %v3710_v48, %v3530_v63  ;;  %12971 = vst [vmem:[#allocation254_spill] sm:$0xff] %v10709_v3  ;;  %v3804_v47 = vadd.f32 %v3715_v26, %v3532_v42 }
 0x9fc   :  { %v4074_v27 = vadd.f32 %v3982_v18, %v3802_v10 }
 0x9fd   :  { %v10707_v44 = vpop.permute.xlu1 %5530  ;;  %v10722_v48 = vpop.permute.xlu0 %5532 }
 0x9fe   :  { %12970 = vst [vmem:[#allocation93_spill] sm:$0xff] %v10707_v44  ;;  %v4346_v62 = vadd.f32 %v12974_v39, %v4074_v27  ;;  %v4076_v44 = vadd.f32 %v3987_v36, %v3804_v47  ;;  %12975 = vst [vmem:[#allocation146_spill] sm:$0xff] %v10722_v48  ;;  %v12984_v39 = vld [vmem:[#allocation176_spill] sm:$0xff]  ;;  %v10848_v48 = vld [vmem:[#allocation2 + $0xe0] sm:$0xff] }
 0x9ff   :  { %13003 = vst [vmem:[#allocation257_spill] sm:$0xff] %v10848_v48 }
 0xa00   :  { %v4682_v63 = vadd.f32 %v9946_v55, %v4346_v62  ;;  %v4348_v18 = vadd.f32 %v12977_v43, %v4076_v44 }
 0xa01   :  { %v10718_v23 = vpop.permute.xlu1 %5534  ;;  %v10731_v27 = vpop.permute.xlu0 %5536 }
 0xa02   :  { %12973 = vst [vmem:[#allocation255_spill] sm:$0xff] %v10718_v23  ;;  %v5018_v53 = vadd.f32 %v10198_v50, %v4682_v63  ;;  %v4684_v10 = vadd.f32 %v9950_v1, %v4348_v18  ;;  %12978 = vst [vmem:[#allocation145_spill] sm:$0xff] %v10731_v27  ;;  %v10831_v23 = vld [vmem:[#allocation2 + $0x20] sm:$0xff] }
 0xa03   :  { %13000 = vst [vmem:[#allocation184_spill] sm:$0xff] %v10831_v23  ;;  %v10835_v27 = vld [vmem:[#allocation2 + $0xc0] sm:$0xff] }
 0xa04   :  { %v5290_v38 = vadd.f32 %v10404_v22, %v5018_v53  ;;  %v5020_v16 = vadd.f32 %v10202_v32, %v4684_v10  ;;  %v12983_v22 = vld [vmem:[#allocation149_spill] sm:$0xff]  ;;  %v12985_v10 = vld [vmem:[#allocation150_spill] sm:$0xff]  ;;  %13001 = vst [vmem:[#allocation147_spill] sm:$0xff] %v10835_v27 }
 0xa05   :  { %v10724_v3 = vpop.permute.xlu1 %5538  ;;  %v10738_v36 = vpop.permute.xlu0 %5540 }
 0xa06   :  { %12976 = vst [vmem:[#allocation114_spill] sm:$0xff] %v10724_v3  ;;  %v5292_v55 = vadd.f32 %v10408_v31, %v5020_v16  ;;  %12981 = vst [vmem:[#allocation63_spill] sm:$0xff] %v10738_v36  ;;  %v12999_v36 = vld [vmem:[#allocation167_spill] sm:$0xff] }
 0xa07   :  { %v3505_v37 = vmul.f32 %v10848_v48, %v12999_v36 }
 0xa09   :  { %v5543_v40 = vpop.permute.xlu1 %5542  ;;  %v10740_v44 = vpop.permute.xlu0 %5544 }
 0xa0a   :  { %v10733_v47 = vadd.f32 %v5543_v40, %v5290_v38  ;;  %12982 = vst [vmem:[#allocation183_spill] sm:$0xff] %v10740_v44  ;;  %v12986_v38 = vld [vmem:[#allocation76_spill] sm:$0xff] }
 0xa0c   :  { %12979 = vst [vmem:[#allocation113_spill] sm:$0xff] %v10733_v47 }
 0xa0d   :  { %v5547_v42 = vpop.permute.xlu1 %5546 }
 0xa0e   :  { %v10736_v26 = vadd.f32 %v5547_v42, %v5292_v55 }
 0xa10   :  { %12980 = vst [vmem:[#allocation64_spill] sm:$0xff] %v10736_v26 }
 0xa1a   :  { %v10742_v50 = vpop.permute.xlu0 %5647 }
 0xa1b   :  { %v5678_v1 = vmul.f32 %v10742_v50, %v10238_v17  ;;  %v5679_v32 = vmul.f32 %v10742_v50, %v12983_v22  ;;  %v5680_v40 = vmul.f32 %v10742_v50, %v12984_v39 }
 0xa1d   :  { %v5774_v62 = vrot.slane %v5678_v1, 2  ;;  %v5775_v31 = vrot.slane %v5679_v32, 2  ;;  %v5777_v16 = vrot.slane %v5680_v40, 2 }
 0xa1e   :  { %v10750_v63 = vpop.permute.xlu1 %5651  ;;  %v10752_v43 = vpop.permute.xlu0 %5659 }
 0xa1f   :  { %v5776_v18 = vsel %vm1003_vm7, %v5774_v62, %v5775_v31  ;;  %v5778_v53 = vsel %vm1003_vm7, %v5775_v31, %v5777_v16  ;;  %v5682_v17 = vmul.f32 %v10750_v63, %v12985_v10  ;;  %v5683_v55 = vmul.f32 %v10750_v63, %v12986_v38  ;;  %v12987_v62 = vld [vmem:[#allocation236_spill] sm:$0xff]  ;;  %v12988_v10 = vld [vmem:[#allocation131_spill] sm:$0xff] }
 0xa20   :  { %5854 = vrot.lane.b32.xlu0 %v5776_v18, %s6178_s25  ;;  %5856 = vrot.lane.b32.xlu1 %v5778_v53, %s6178_s25  ;;  %v5681_v42 = vmul.f32 %v10750_v63, %v10248_v60  ;;  %v5688_v40 = vmul.f32 %v10752_v43, %v10264_v58  ;;  %v5689_v31 = vmul.f32 %v10752_v43, %v12987_v62  ;;  %v12989_v53 = vld [vmem:[#allocation235_spill] sm:$0xff]  ;;  %v12990_v60 = vld [vmem:[#allocation132_spill] sm:$0xff] }
 0xa21   :  { %v5780_v1 = vrot.slane %v5682_v17, 2  ;;  %v5782_v22 = vrot.slane %v5683_v55, 2  ;;  %v5687_v58 = vmul.f32 %v10752_v43, %v10266_v8 }
 0xa22   :  { %v10764_v32 = vpop.permute.xlu1 %5655  ;;  %v5779_v39 = vrot.slane %v5681_v42, 2  ;;  %v5792_v47 = vrot.slane %v5689_v31, 2 }
 0xa23   :  { %v5783_v16 = vsel %vm1003_vm7, %v5780_v1, %v5782_v22  ;;  %v5685_v18 = vmul.f32 %v10764_v32, %v12988_v10  ;;  %v5686_v38 = vmul.f32 %v10764_v32, %v12989_v53  ;;  %v5684_v17 = vmul.f32 %v10764_v32, %v12990_v60  ;;  %v10784_v53 = vpop.permute.xlu0 %5667 }
 0xa24   :  { %5860 = vrot.lane.b32.xlu1 %v5783_v16, %s6178_s25  ;;  %v5781_v55 = vsel %vm1003_vm7, %v5779_v39, %v5780_v1  ;;  %v5790_v10 = vrot.slane %v5688_v40, 2  ;;  %v12991_v39 = vld [vmem:[#allocation91_spill] sm:$0xff]  ;;  %v12993_v40 = vld [vmem:[#allocation20_spill] sm:$0xff] }
 0xa25   :  { %5858 = vrot.lane.b32.xlu0 %v5781_v55, %s6178_s25  ;;  %v5785_v42 = vrot.slane %v5685_v18, 2  ;;  %v5787_v22 = vrot.slane %v5686_v38, 2  ;;  %v5784_v62 = vrot.slane %v5684_v17, 2  ;;  %v5789_v18 = vrot.slane %v5687_v58, 2  ;;  %v12992_v38 = vld [vmem:[#allocation151_spill] sm:$0xff] }
 0xa26   :  { %v10782_v26 = vpop.permute.xlu1 %5663  ;;  %v5694_v31 = vmul.f32 %v10784_v53, %v12993_v40  ;;  %v5793_v55 = vsel %vm1003_vm7, %v5790_v10, %v5792_v47  ;;  %v12995_v47 = vld [vmem:[#allocation197_spill] sm:$0xff] }
 0xa27   :  { %v5788_v60 = vsel %vm1003_vm7, %v5785_v42, %v5787_v22  ;;  %v5786_v16 = vsel %vm1003_vm7, %v5784_v62, %v5785_v42  ;;  %v5691_v1 = vmul.f32 %v10782_v26, %v10272_v52  ;;  %v5692_v8 = vmul.f32 %v10782_v26, %v12991_v39  ;;  %v12994_v62 = vld [vmem:[#allocation92_spill] sm:$0xff] }
 0xa28   :  { %5864 = vrot.lane.b32.xlu1 %v5788_v60, %s6178_s25  ;;  %v5690_v17 = vmul.f32 %v10782_v26, %v12992_v38  ;;  %v5695_v52 = vmul.f32 %v10784_v53, %v12994_v62  ;;  %v5791_v58 = vsel %vm1003_vm7, %v5789_v18, %v5790_v10  ;;  %v10808_v39 = vld [vmem:[#allocation2 + $0x8] sm:$0xff]  ;;  %v10812_v38 = vpop.permute.xlu0 %5675  ;;  %v12997_v18 = vld [vmem:[#allocation142_spill] sm:$0xff] }
 0xa29   :  { %5862 = vrot.lane.b32.xlu0 %v5786_v16, %s6178_s25  ;;  %v5795_v42 = vrot.slane %v5691_v1, 2  ;;  %v5797_v22 = vrot.slane %v5692_v8, 2  ;;  %v5693_v16 = vmul.f32 %v10784_v53, %v10282_v7  ;;  %v3487_v1 = vmul.f32 %v10808_v39, %v12995_v47  ;;  %v10819_v7 = vld [vmem:[#allocation2] sm:$0xff] }
 0xa2a   :  { %v10801_v44 = vpop.permute.xlu1 %5671  ;;  %v5794_v60 = vrot.slane %v5690_v17, 2  ;;  %v5800_v8 = vrot.slane %v5694_v31, 2  ;;  %v5802_v62 = vrot.slane %v5695_v52, 2  ;;  %v10827_v52 = vld [vmem:[#allocation2 + $0x18] sm:$0xff] }
 0xa2b   :  { %v5798_v40 = vsel %vm1003_vm7, %v5795_v42, %v5797_v22  ;;  %v5698_v17 = vmul.f32 %v10801_v44, %v12997_v18  ;;  %v5799_v3 = vrot.slane %v5693_v16, 2  ;;  %v5696_v22 = vmul.f32 %v10801_v44, %v10290_v46  ;;  %12998 = vst [vmem:[#allocation148_spill] sm:$0xff] %v10827_v52 }
 0xa2c   :  { %5868 = vrot.lane.b32.xlu1 %v5793_v55, %s6178_s25  ;;  %v12996_v55 = vld [vmem:[#allocation48_spill] sm:$0xff]  ;;  %v5796_v31 = vsel %vm1003_vm7, %v5794_v60, %v5795_v42  ;;  %v3489_v18 = vmul.f32 %v10831_v23, %v12999_v36  ;;  %v10844_v60 = vld [vmem:[#allocation2 + $0xd8] sm:$0xff]  ;;  %v10853_v35 = vadd.f32 %v3487_v1, %v13004_v51  ;;  %v5701_v23 = vmul.f32 %v10812_v38, %v10563_v59 }
 0xa2d   :  { %5866 = vrot.lane.b32.xlu0 %v5791_v58, %s6178_s25  ;;  %v5697_v10 = vmul.f32 %v10801_v44, %v12996_v55  ;;  %v3486_v58 = vmul.f32 %v10819_v7, %v12995_v47  ;;  %v3488_v55 = vmul.f32 %v10827_v52, %v12999_v36  ;;  %v10839_v42 = vld [vmem:[#allocation2 + $0xc8] sm:$0xff]  ;;  %13002 = vst [vmem:[#allocation21_spill] sm:$0xff] %v10844_v60  ;;  %v5804_v48 = vrot.slane %v5696_v22, 2  ;;  %v13012_v22 = vld [vmem:[#allocation29_spill] sm:$0xff] }
 0xa2e   :  { %v3503_v46 = vmul.f32 %v10839_v42, %v12995_v47  ;;  %v3504_v16 = vmul.f32 %v10844_v60, %v12999_v36  ;;  %13005 = vst [vmem:[#allocation185_spill] sm:$0xff] %v10853_v35  ;;  %v5700_v52 = vmul.f32 %v10812_v38, %v10296_v28  ;;  %v5801_v36 = vsel %vm1003_vm7, %v5799_v3, %v5800_v8  ;;  %v13006_v35 = vld [vmem:[#allocation28_spill] sm:$0xff] }
 0xa2f   :  { %v5805_v4 = vrot.slane %v5697_v10, 2  ;;  %v10861_v60 = vadd.f32 %v3486_v58, %v13004_v51  ;;  %v5699_v1 = vmul.f32 %v10812_v38, %v10298_v21  ;;  %v10868_v28 = vadd.f32 %v3489_v18, %v13006_v35  ;;  %v10890_v58 = vld [vmem:[#allocation2 + $0x38] sm:$0xff] }
 0xa30   :  { %5872 = vrot.lane.b32.xlu1 %v5798_v40, %s6178_s25  ;;  %v3502_v40 = vmul.f32 %v10835_v27, %v12995_v47  ;;  %v5803_v47 = vsel %vm1003_vm7, %v5800_v8, %v5802_v62  ;;  %v10871_v62 = vadd.f32 %v3488_v55, %v13006_v35  ;;  %v10874_v10 = vadd.f32 %v3503_v46, %v13004_v51 }
 0xa31   :  { %5870 = vrot.lane.b32.xlu0 %v5796_v31, %s6178_s25  ;;  %v5807_v31 = vrot.slane %v5698_v17, 2  ;;  %v10881_v3 = vadd.f32 %v3505_v37, %v13006_v35  ;;  %v10884_v8 = vadd.f32 %v3504_v16, %v13006_v35  ;;  %v5703_v21 = vmul.f32 %v10742_v50, %v10304_v5  ;;  %v10895_v37 = vld [vmem:[#allocation2 + $0x30] sm:$0xff]  ;;  %v10903_v16 = vld [vmem:[#allocation2 + $0x60] sm:$0xff] }
 0xa32   :  { %13007 = vst [vmem:[#allocation100_spill] sm:$0xff] %v10871_v62  ;;  %13008 = vst [vmem:[#allocation186_spill] sm:$0xff] %v10874_v10  ;;  %v10877_v59 = vadd.f32 %v3502_v40, %v13004_v51  ;;  %v5704_v17 = vmul.f32 %v10742_v50, %v10571_v13  ;;  %v3491_v51 = vmul.f32 %v10890_v58, %v13012_v22  ;;  %v5810_v18 = vrot.slane %v5700_v52, 2  ;;  %v10907_v52 = vld [vmem:[#allocation2 + $0x68] sm:$0xff] }
 0xa33   :  { %13010 = vst [vmem:[#allocation187_spill] sm:$0xff] %v10881_v3  ;;  %13011 = vst [vmem:[#allocation188_spill] sm:$0xff] %v10884_v8  ;;  %v5808_v55 = vsel %vm1003_vm7, %v5805_v4, %v5807_v31  ;;  %v5812_v40 = vrot.slane %v5701_v23, 2  ;;  %v3490_v35 = vmul.f32 %v10895_v37, %v13012_v22  ;;  %v5806_v5 = vsel %vm1003_vm7, %v5804_v48, %v5805_v4  ;;  %v10915_v4 = vld [vmem:[#allocation2 + $0xf8] sm:$0xff]  ;;  %v10920_v48 = vld [vmem:[#allocation2 + $0x120] sm:$0xff] }
 0xa34   :  { %5876 = vrot.lane.b32.xlu1 %v5803_v47, %s6178_s25  ;;  %13009 = vst [vmem:[#allocation99_spill] sm:$0xff] %v10877_v59  ;;  %v5809_v46 = vrot.slane %v5699_v1, 2  ;;  %v5702_v13 = vmul.f32 %v10742_v50, %v10306_v0  ;;  %v13013_v47 = vld [vmem:[#allocation203_spill] sm:$0xff]  ;;  %13015 = vst [vmem:[#allocation67_spill] sm:$0xff] %v10915_v4  ;;  %v3507_v0 = vmul.f32 %v10915_v4, %v13012_v22  ;;  %v10924_v1 = vld [vmem:[#allocation2 + $0x128] sm:$0xff]  ;;  %v5815_v3 = vrot.slane %v5703_v21, 2 }
 0xa35   :  { %5874 = vrot.lane.b32.xlu0 %v5801_v36, %s6178_s25  ;;  %v3494_v31 = vmul.f32 %v10903_v16, %v13013_v47  ;;  %v3495_v23 = vmul.f32 %v10907_v52, %v13013_v47  ;;  %v10911_v36 = vld [vmem:[#allocation2 + $0xf0] sm:$0xff]  ;;  %13016 = vst [vmem:[#allocation119_spill] sm:$0xff] %v10920_v48  ;;  %v3510_v50 = vmul.f32 %v10920_v48, %v13013_v47  ;;  %13017 = vst [vmem:[#allocation68_spill] sm:$0xff] %v10924_v1 }
 0xa36   :  { %13014 = vst [vmem:[#allocation120_spill] sm:$0xff] %v10911_v36  ;;  %v3511_v8 = vmul.f32 %v10924_v1, %v13013_v47  ;;  %v5817_v59 = vrot.slane %v5704_v17, 2  ;;  %v5813_v62 = vsel %vm1003_vm7, %v5810_v18, %v5812_v40  ;;  %v5811_v47 = vsel %vm1003_vm7, %v5809_v46, %v5810_v18  ;;  %v13022_v18 = vld [vmem:[#allocation168_spill] sm:$0xff] }
 0xa37   :  { %v5814_v21 = vrot.slane %v5702_v13, 2  ;;  %v5705_v17 = vmul.f32 %v10750_v63, %v10314_v9  ;;  %v10960_v9 = vld [vmem:[#allocation2 + $0x50] sm:$0xff] }
 0xa38   :  { %5880 = vrot.lane.b32.xlu1 %v5808_v55, %s6178_s25  ;;  %v3506_v55 = vmul.f32 %v10911_v36, %v13012_v22  ;;  %v13018_v36 = vld [vmem:[#allocation200_spill] sm:$0xff]  ;;  %v5706_v22 = vmul.f32 %v10750_v63, %v10312_v20  ;;  %v5818_v13 = vsel %vm1003_vm7, %v5815_v3, %v5817_v59  ;;  %v5708_v59 = vmul.f32 %v10764_v32, %v10322_v34 }
 0xa39   :  { %5878 = vrot.lane.b32.xlu0 %v5806_v5, %s6178_s25  ;;  %v10929_v10 = vadd.f32 %v3491_v51, %v13018_v36  ;;  %v5707_v5 = vmul.f32 %v10750_v63, %v10585_v2  ;;  %v10937_v48 = vadd.f32 %v3490_v35, %v13018_v36  ;;  %v13019_v51 = vld [vmem:[#allocation166_spill] sm:$0xff]  ;;  %v10950_v20 = vadd.f32 %v3507_v0, %v13018_v36  ;;  %v10972_v0 = vld [vmem:[#allocation2 + $0x110] sm:$0xff] }
 0xa3a   :  { %v10944_v1 = vadd.f32 %v3495_v23, %v13019_v51  ;;  %v10947_v40 = vadd.f32 %v3494_v31, %v13019_v51  ;;  %v10953_v2 = vadd.f32 %v3506_v55, %v13018_v36  ;;  %v3493_v63 = vmul.f32 %v10960_v9, %v13022_v18  ;;  %13024 = vst [vmem:[#allocation104_spill] sm:$0xff] %v10972_v0 }
 0xa3b   :  { %13020 = vst [vmem:[#allocation189_spill] sm:$0xff] %v10950_v20  ;;  %v10965_v46 = vadd.f32 %v3511_v8, %v13019_v51  ;;  %v5820_v31 = vrot.slane %v5706_v22, 2  ;;  %v5822_v23 = vrot.slane %v5707_v5, 2  ;;  %v5709_v36 = vmul.f32 %v10764_v32, %v10320_v12  ;;  %v10982_v12 = vld [vmem:[#allocation2 + $0x158] sm:$0xff]  ;;  %v10986_v5 = vld [vmem:[#allocation2 + $0x108] sm:$0xff] }
 0xa3c   :  { %5884 = vrot.lane.b32.xlu1 %v5813_v62, %s6178_s25  ;;  %13021 = vst [vmem:[#allocation190_spill] sm:$0xff] %v10953_v2  ;;  %v10956_v62 = vld [vmem:[#allocation2 + $0x48] sm:$0xff]  ;;  %v5710_v55 = vmul.f32 %v10764_v32, %v10596_v33  ;;  %v5816_v8 = vsel %vm1003_vm7, %v5814_v21, %v5815_v3  ;;  %v3499_v22 = vmul.f32 %v10664_v24, %v12962_v15  ;;  %13025 = vst [vmem:[#allocation153_spill] sm:$0xff] %v10982_v12  ;;  %v10994_v3 = vld [vmem:[#allocation2 + $0x150] sm:$0xff] }
 0xa3d   :  { %5882 = vrot.lane.b32.xlu0 %v5811_v47, %s6178_s25  ;;  %v3492_v35 = vmul.f32 %v10956_v62, %v13022_v18  ;;  %13023 = vst [vmem:[#allocation154_spill] sm:$0xff] %v10965_v46  ;;  %v3509_v47 = vmul.f32 %v10972_v0, %v13022_v18  ;;  %v5819_v46 = vrot.slane %v5705_v17, 2  ;;  %v3515_v33 = vmul.f32 %v10982_v12, %v12962_v15  ;;  %v13029_v24 = vld [vmem:[#allocation8_spill] sm:$0xff] }
 0xa3e   :  { %13026 = vst [vmem:[#allocation103_spill] sm:$0xff] %v10986_v5  ;;  %v3508_v2 = vmul.f32 %v10986_v5, %v13022_v18  ;;  %13028 = vst [vmem:[#allocation156_spill] sm:$0xff] %v10994_v3  ;;  %v3514_v34 = vmul.f32 %v10994_v3, %v12962_v15  ;;  %v10999_v32 = vadd.f32 %v3493_v63, %v13029_v24  ;;  %v5824_v63 = vrot.slane %v5708_v59, 2  ;;  %v11016_v3 = vld [vmem:[#allocation2 + $0x80] sm:$0xff]  ;;  %v11155_v5 = vld [vmem:[#allocation2 + $0x88] sm:$0x3] }
 0xa3f   :  { %v11002_v21 = vadd.f32 %v3492_v35, %v13029_v24  ;;  %v5712_v17 = vmul.f32 %v10752_v43, %v10330_v19  ;;  %v5823_v18 = vsel %vm1003_vm7, %v5820_v31, %v5822_v23  ;;  %v11010_v12 = vadd.f32 %v3509_v47, %v13029_v24  ;;  %v13031_v19 = vld [vmem:[#allocation30_spill] sm:$0xff] }
 0xa40   :  { %5888 = vrot.lane.b32.xlu1 %v5818_v13, %s6178_s25  ;;  %v10991_v13 = vadd.f32 %v3510_v50, %v13019_v51  ;;  %v5825_v50 = vrot.slane %v5709_v36, 2  ;;  %v5827_v51 = vrot.slane %v5710_v55, 2  ;;  %v5821_v15 = vsel %vm1003_vm7, %v5819_v46, %v5820_v31  ;;  %v11030_v46 = vld [vmem:[#allocation2 + $0x78] sm:$0xff] }
 0xa41   :  { %5886 = vrot.lane.b32.xlu0 %v5816_v8, %s6178_s25  ;;  %v5713_v8 = vmul.f32 %v10752_v43, %v10608_v54  ;;  %13030 = vst [vmem:[#allocation72_spill] sm:$0xff] %v11010_v12  ;;  %v5711_v35 = vmul.f32 %v10752_v43, %v10332_v29  ;;  %v3497_v23 = vmul.f32 %v11016_v3, %v13031_v19  ;;  %v11034_v43 = vld [vmem:[#allocation2 + $0x138] sm:$0xff]  ;;  %v6163_v12 = vld [vmem:[#allocation2 + $0x170] sm:$0xff] }
 0xa42   :  { %13027 = vst [vmem:[#allocation155_spill] sm:$0xff] %v10991_v13  ;;  %v11021_v36 = vadd.f32 %v3499_v22, %v12968_v56  ;;  %v11024_v54 = vadd.f32 %v3508_v2, %v13029_v24  ;;  %v11027_v55 = vadd.f32 %v3515_v33, %v12968_v56  ;;  %v3496_v29 = vmul.f32 %v11030_v46, %v13031_v19 }
 0xa43   :  { %13034 = vst [vmem:[#allocation124_spill] sm:$0xff] %v11034_v43  ;;  %v11038_v31 = vmul.f32 %v11034_v43, %v13031_v19  ;;  %v11041_v47 = vadd.f32 %v3514_v34, %v12968_v56  ;;  %v5830_v2 = vrot.slane %v5712_v17, 2  ;;  %v5828_v59 = vsel %vm1003_vm7, %v5825_v50, %v5827_v51 }
 0xa44   :  { %5892 = vrot.lane.b32.xlu1 %v5823_v18, %s6178_s25  ;;  %13032 = vst [vmem:[#allocation71_spill] sm:$0xff] %v11024_v54  ;;  %13033 = vst [vmem:[#allocation191_spill] sm:$0xff] %v11027_v55  ;;  %v5832_v22 = vrot.slane %v5713_v8, 2  ;;  %v5715_v33 = vmul.f32 %v10782_v26, %v10338_v57  ;;  %v5716_v24 = vmul.f32 %v10782_v26, %v10619_v61  ;;  %v11048_v18 = vld [vmem:[#allocation2 + $0x140] sm:$0xff]  ;;  %v11054_v55 = vld [vmem:[#allocation2 + $0x10] sm:$0x3] }
 0xa45   :  { %5890 = vrot.lane.b32.xlu0 %v5821_v15, %s6178_s25  ;;  %13035 = vst [vmem:[#allocation192_spill] sm:$0xff] %v11038_v31  ;;  %13036 = vst [vmem:[#allocation123_spill] sm:$0xff] %v11041_v47  ;;  %v11052_v15 = vmul.f32 %v11048_v18, %v13031_v19  ;;  %v5826_v56 = vsel %vm1003_vm7, %v5824_v63, %v5825_v50  ;;  %v5829_v34 = vrot.slane %v5711_v35, 2  ;;  %v13039_v57 = vld [vmem:[#allocation13_spill] sm:$0xff]  ;;  %v13040_v19 = vld [vmem:[#allocation196_spill] sm:$0xff] }
 0xa46   :  { %13037 = vst [vmem:[#allocation9_spill] sm:$0xff] %v11048_v18  ;;  %v5714_v17 = vmul.f32 %v10782_v26, %v10340_v11  ;;  %v11062_v51 = vmul.f32 %v10808_v39, %v13039_v57  ;;  %v11066_v61 = vmul.f32 %v13039_v57, %v11054_v55  ;;  %v11070_v8 = vmul.f32 %v10819_v7, %v13039_v57  ;;  %v11079_v11 = vld [vmem:[#allocation2 + $0xd0] sm:$0x3]  ;;  %v11104_v18 = vld [vmem:[#allocation2 + $0x168] sm:$0xff] }
 0xa47   :  { %13038 = vst [vmem:[#allocation105_spill] sm:$0xff] %v11052_v15  ;;  %v11077_v50 = vadd.f32 %v3496_v29, %v13040_v19  ;;  %v11083_v26 = vmul.f32 %v10839_v42, %v13039_v57  ;;  %v5718_v63 = vmul.f32 %v10784_v53, %v10346_v6  ;;  %v5719_v35 = vmul.f32 %v10784_v53, %v10633_v49 }
 0xa48   :  { %5896 = vrot.lane.b32.xlu1 %v5828_v59, %s6178_s25  ;;  %v11073_v59 = vadd.f32 %v3497_v23, %v13040_v19  ;;  %v11091_v23 = vmul.f32 %v13039_v57, %v11079_v11  ;;  %v5835_v29 = vrot.slane %v5715_v33, 2  ;;  %v5837_v47 = vrot.slane %v5716_v24, 2  ;;  %13042 = vst [vmem:[#allocation106_spill] sm:$0xff] %v11104_v18  ;;  %v11110_v33 = vld [vmem:[#allocation2 + $0x170] sm:$0xff] }
 0xa49   :  { %5894 = vrot.lane.b32.xlu0 %v5826_v56, %s6178_s25  ;;  %13041 = vst [vmem:[#allocation27_spill] sm:$0xff] %v11083_v26  ;;  %v5833_v56 = vsel %vm1003_vm7, %v5830_v2, %v5832_v22  ;;  %v11096_v43 = vmul.f32 %v10835_v27, %v13039_v57  ;;  %v5831_v31 = vsel %vm1003_vm7, %v5829_v34, %v5830_v2  ;;  %v5834_v6 = vrot.slane %v5714_v17, 2 }
 0xa4a   :  { %v5717_v49 = vmul.f32 %v10784_v53, %v10348_v30  ;;  %v3501_v13 = vmul.f32 %v10679_v41, %v12967_v25  ;;  %v11108_v22 = vmul.f32 %v11104_v18, %v12967_v25  ;;  %13044 = vst [vmem:[#allocation193_spill] sm:$0xff] %v11110_v33  ;;  %v11114_v24 = vmul.f32 %v11110_v33, %v12967_v25  ;;  %v13046_v53 = vld [vmem:[#allocation210_spill] sm:$0xff] }
 0xa4b   :  { %v3679_v2 = vrot.slane %v11062_v51, 1  ;;  %v3681_v30 = vrot.slane %v11066_v61, 1  ;;  %v11121_v41 = vmul.f32 %v10960_v9, %v13046_v53  ;;  %v5840_v34 = vrot.slane %v5718_v63, 2  ;;  %v13047_v33 = vld [vmem:[#allocation218_spill] sm:$0xff] }
 0xa4c   :  { %5900 = vrot.lane.b32.xlu1 %v5833_v56, %s6178_s25  ;;  %13043 = vst [vmem:[#allocation5_spill] sm:$0xff] %v11108_v22  ;;  %13045 = vst [vmem:[#allocation158_spill] sm:$0xff] %v11114_v24  ;;  %v5842_v17 = vrot.slane %v5719_v35, 2  ;;  %v3678_v57 = vrot.slane %v11070_v8, 1  ;;  %v11124_v56 = vld [vmem:[#allocation2 + $0x58] sm:$0x3]  ;;  %v5838_v18 = vsel %vm1003_vm7, %v5835_v29, %v5837_v47  ;;  %v5721_v25 = vmul.f32 %v10801_v44, %v10354_v14 }
 0xa4d   :  { %5898 = vrot.lane.b32.xlu0 %v5831_v31, %s6178_s25  ;;  %v5722_v31 = vmul.f32 %v10801_v44, %v10640_v45  ;;  %v3593_v51 = vmul.f32 %v13046_v53, %v11124_v56  ;;  %v5836_v61 = vsel %vm1003_vm7, %v5834_v6, %v5835_v29  ;;  %v5839_v63 = vrot.slane %v5717_v49, 2  ;;  %v6162_v35 = vld [vmem:[#allocation2 + $0x150] sm:$0xff]  ;;  %v3411_v22 = vld [vmem:[#allocation2 + $0x28] sm:$0x3]  ;;  %v13049_v45 = vld [vmem:[#allocation206_spill] sm:$0xff] }
 0xa4e   :  { %v5720_v8 = vmul.f32 %v6162_v35, %v10801_v44  ;;  %v13048_v47 = vld [vmem:[#allocation184_spill] sm:$0xff]  ;;  %v11140_v14 = vmul.f32 %v10956_v62, %v13046_v53  ;;  %v11143_v15 = vadd.f32 %v3501_v13, %v13049_v45  ;;  %v3694_v6 = vrot.slane %v11121_v41, 1  ;;  %v13052_v13 = vld [vmem:[#allocation57_spill] sm:$0xff] }
 0xa4f   :  { %v3586_v24 = vmul.f32 %v13048_v47, %v13047_v33  ;;  %v13051_v29 = vld [vmem:[#allocation148_spill] sm:$0xff]  ;;  %v5843_v49 = vsel %vm1003_vm7, %v5840_v34, %v5842_v17  ;;  %v5845_v35 = vrot.slane %v5721_v25, 2  ;;  %v5847_v54 = vrot.slane %v5722_v31, 2  ;;  %v11160_v25 = vld [vmem:[#allocation2 + $0x40] sm:$0x3] }
 0xa50   :  { %5904 = vrot.lane.b32.xlu1 %v5838_v18, %s6178_s25  ;;  %13050 = vst [vmem:[#allocation108_spill] sm:$0xff] %v11143_v15  ;;  %v3587_v18 = vmul.f32 %v13047_v33, %v3411_v22  ;;  %v3585_v44 = vmul.f32 %v13051_v29, %v13047_v33  ;;  %v5724_v20 = vmul.f32 %v6163_v12, %v10812_v38  ;;  %v3696_v19 = vrot.slane %v3593_v51, 1  ;;  %v6164_v53 = vld [vmem:[#allocation2 + $0x168] sm:$0xff]  ;;  %v13053_v31 = vld [vmem:[#allocation219_spill] sm:$0xff] }
 0xa51   :  { %5902 = vrot.lane.b32.xlu0 %v5836_v61, %s6178_s25  ;;  %v5725_v45 = vmul.f32 %v10812_v38, %v13052_v13  ;;  %v5841_v61 = vsel %vm1003_vm7, %v5839_v63, %v5840_v34  ;;  %v5844_v0 = vrot.slane %v5720_v8, 2  ;;  %v5723_v41 = vmul.f32 %v6164_v53, %v10812_v38  ;;  %v13054_v63 = vld [vmem:[#allocation211_spill] sm:$0xff] }
 0xa52   :  { %v3684_v17 = vrot.slane %v3586_v24, 1  ;;  %v3598_v12 = vmul.f32 %v11016_v3, %v13053_v31  ;;  %v3599_v13 = vmul.f32 %v13053_v31, %v11155_v5  ;;  %v3597_v51 = vmul.f32 %v11030_v46, %v13053_v31 }
 0xa53   :  { %v3683_v34 = vrot.slane %v3585_v44, 1  ;;  %v3589_v8 = vmul.f32 %v10890_v58, %v13054_v63  ;;  %v3590_v38 = vmul.f32 %v13054_v63, %v11160_v25  ;;  %v3588_v24 = vmul.f32 %v10895_v37, %v13054_v63  ;;  %v13060_v63 = vld [vmem:[#allocation247_spill] sm:$0xff] }
 0xa54   :  { %5908 = vrot.lane.b32.xlu1 %v5843_v49, %s6178_s25  ;;  %v3686_v49 = vrot.slane %v3587_v18, 1  ;;  %v5848_v53 = vsel %vm1003_vm7, %v5845_v35, %v5847_v54  ;;  %v5850_v15 = vrot.slane %v5724_v20, 2  ;;  %v5852_v4 = vrot.slane %v5725_v45, 2 }
 0xa55   :  { %5906 = vrot.lane.b32.xlu0 %v5841_v61, %s6178_s25  ;;  %v3682_v26 = vsel %vm730_vm6, %v3679_v2, %v3681_v30  ;;  %v3680_v31 = vsel %vm730_vm6, %v3678_v57, %v3679_v2  ;;  %v5846_v18 = vsel %vm1003_vm7, %v5844_v0, %v5845_v35  ;;  %v5849_v44 = vrot.slane %v5723_v41, 2  ;;  %v3420_v0 = vld [vmem:[#allocation2 + $0x70] sm:$0x3] }
 0xa56   :  { %v3697_v61 = vsel %vm730_vm6, %v3694_v6, %v3696_v19  ;;  %v3693_v33 = vrot.slane %v11140_v14, 1  ;;  %v3704_v27 = vrot.slane %v3598_v12, 1  ;;  %v3687_v20 = vsel %vm730_vm6, %v3684_v17, %v3686_v49  ;;  %v13055_v19 = vld [vmem:[#allocation241_spill] sm:$0xff]  ;;  %v13057_v49 = vld [vmem:[#allocation243_spill] sm:$0xff] }
 0xa57   :  { %v3685_v54 = vsel %vm730_vm6, %v3683_v34, %v3684_v17  ;;  %v3706_v30 = vrot.slane %v3599_v13, 1  ;;  %v3703_v2 = vrot.slane %v3597_v51, 1  ;;  %v3689_v57 = vrot.slane %v3589_v8, 1  ;;  %v13056_v13 = vld [vmem:[#allocation185_spill] sm:$0xff] }
 0xa58   :  { %5912 = vrot.lane.b32.xlu1 %v5848_v53, %s6178_s25  ;;  %v3691_v45 = vrot.slane %v3590_v38, 1  ;;  %v3688_v53 = vrot.slane %v3588_v24, 1  ;;  %v5853_v35 = vsel %vm1003_vm7, %v5850_v15, %v5852_v4  ;;  %v3595_v14 = vmul.f32 %v10907_v52, %v13055_v19 }
 0xa59   :  { %5910 = vrot.lane.b32.xlu0 %v5846_v18, %s6178_s25  ;;  %v3596_v41 = vmul.f32 %v13055_v19, %v3420_v0  ;;  %v3594_v12 = vmul.f32 %v10903_v16, %v13055_v19  ;;  %v5851_v17 = vsel %vm1003_vm7, %v5849_v44, %v5850_v15  ;;  %v11195_v51 = vadd.f32 %v3682_v26, %v13056_v13  ;;  %v11211_v18 = vpop.permute.xlu1 %5548  ;;  %v13059_v13 = vld [vmem:[#allocation245_spill] sm:$0xff] }
 0xa5a   :  { %v3858_v34 = vmul.f32 %v13048_v47, %v13057_v49  ;;  %v3859_v4 = vmul.f32 %v13057_v49, %v3411_v22  ;;  %v3857_v8 = vmul.f32 %v13051_v29, %v13057_v49  ;;  %v11204_v38 = vadd.f32 %v3680_v31, %v10861_v60  ;;  %v13058_v47 = vld [vmem:[#allocation100_spill] sm:$0xff] }
 0xa5b   :  { %v3793_v24 = vadd.f32 %v3687_v20, %v10868_v28  ;;  %v11208_v15 = vadd.f32 %v3697_v61, %v10999_v32  ;;  %v3695_v26 = vsel %vm730_vm6, %v3693_v33, %v3694_v6  ;;  %v3792_v44 = vadd.f32 %v3685_v54, %v13058_v47  ;;  %v3426_v6 = vld [vmem:[#allocation2 + $0xa0] sm:$0x3] }
 0xa5c   :  { %5916 = vrot.lane.b32.xlu1 %v5853_v35, %s6178_s25  ;;  %v3692_v22 = vsel %vm730_vm6, %v3689_v57, %v3691_v45  ;;  %v3707_v29 = vsel %vm730_vm6, %v3704_v27, %v3706_v30  ;;  %v3705_v35 = vsel %vm730_vm6, %v3703_v2, %v3704_v27  ;;  %v3690_v60 = vsel %vm730_vm6, %v3688_v53, %v3689_v57  ;;  %v13061_v30 = vld [vmem:[#allocation221_spill] sm:$0xff] }
 0xa5d   :  { %5914 = vrot.lane.b32.xlu0 %v5851_v17, %s6178_s25  ;;  %v3699_v31 = vrot.slane %v3595_v14, 1  ;;  %v3701_v17 = vrot.slane %v3596_v41, 1  ;;  %v3698_v28 = vrot.slane %v3594_v12, 1  ;;  %v3956_v20 = vrot.slane %v3858_v34, 2  ;;  %v13062_v12 = vld [vmem:[#allocation31_spill] sm:$0xff] }
 0xa5e   :  { %v3958_v32 = vrot.slane %v3859_v4, 2  ;;  %v3955_v61 = vrot.slane %v3857_v8, 2  ;;  %v3867_v33 = vmul.f32 %v10907_v52, %v13059_v13  ;;  %v3855_v54 = vmul.f32 %v10808_v39, %v13060_v63  ;;  %v3429_v39 = vld [vmem:[#allocation2 + $0xb8] sm:$0x3] }
 0xa5f   :  { %v11223_v45 = vadd.f32 %v3695_v26, %v11002_v21  ;;  %v3868_v27 = vmul.f32 %v13059_v13, %v3420_v0  ;;  %v3602_v2 = vmul.f32 %v13061_v30, %v3426_v6  ;;  %v3856_v57 = vmul.f32 %v13060_v63, %v11054_v55  ;;  %v11245_v55 = vpop.permute.xlu0 %5550 }
 0xa60   :  { %v11230_v53 = vadd.f32 %v3692_v22, %v10929_v10  ;;  %v11233_v14 = vadd.f32 %v3707_v29, %v11073_v59  ;;  %v11236_v52 = vadd.f32 %v3705_v35, %v11077_v50  ;;  %v3854_v21 = vmul.f32 %v10819_v7, %v13060_v63  ;;  %v11247_v10 = vpop.permute.xlu1 %5552  ;;  %v13063_v29 = vld [vmem:[#allocation207_spill] sm:$0xff] }
 0xa61   :  { %v3794_v0 = vadd.f32 %v3690_v60, %v10937_v48  ;;  %v3702_v41 = vsel %vm730_vm6, %v3699_v31, %v3701_v17  ;;  %v11243_v34 = vmul.f32 %v13062_v12, %v3429_v39  ;;  %v3959_v59 = vsel %vm1003_vm7, %v3956_v20, %v3958_v32  ;;  %v13064_v32 = vld [vmem:[#allocation195_spill] sm:$0xff] }
 0xa62   :  { %v3957_v50 = vsel %vm1003_vm7, %v3955_v61, %v3956_v20  ;;  %v3971_v4 = vrot.slane %v3867_v33, 2  ;;  %v3700_v8 = vsel %vm730_vm6, %v3698_v28, %v3699_v31  ;;  %v3951_v26 = vrot.slane %v3855_v54, 2  ;;  %v13065_v28 = vld [vmem:[#allocation222_spill] sm:$0xff] }
 0xa63   :  { %v3973_v7 = vrot.slane %v3868_v27, 2  ;;  %v3866_v48 = vmul.f32 %v10903_v16, %v13059_v13  ;;  %v3711_v47 = vrot.slane %v3602_v2, 1  ;;  %v3953_v22 = vrot.slane %v3856_v57, 2  ;;  %v13066_v57 = vld [vmem:[#allocation239_spill] sm:$0xff] }
 0xa64   :  { %v3861_v35 = vmul.f32 %v10890_v58, %v13063_v29  ;;  %v3862_v60 = vmul.f32 %v13063_v29, %v11160_v25  ;;  %v3860_v17 = vmul.f32 %v10895_v37, %v13063_v29  ;;  %v3950_v20 = vrot.slane %v3854_v21, 2  ;;  %v11276_v21 = vpop.permute.xlu0 %5554 }
 0xa65   :  { %v3864_v31 = vmul.f32 %v10960_v9, %v13064_v32  ;;  %v3874_v61 = vmul.f32 %v13065_v28, %v3426_v6  ;;  %v3716_v33 = vrot.slane %v11243_v34, 1  ;;  %v11264_v16 = vadd.f32 %v3959_v59, %v3793_v24  ;;  %v11278_v24 = vpop.permute.xlu1 %5556 }
 0xa66   :  { %v11266_v54 = vadd.f32 %v3957_v50, %v3792_v44  ;;  %v3865_v58 = vmul.f32 %v13064_v32, %v11124_v56  ;;  %v3799_v25 = vadd.f32 %v3702_v41, %v10944_v1  ;;  %v3974_v27 = vsel %vm1003_vm7, %v3971_v4, %v3973_v7  ;;  %v13068_v7 = vld [vmem:[#allocation22_spill] sm:$0xff] }
 0xa67   :  { %v3798_v37 = vadd.f32 %v3700_v8, %v10947_v40  ;;  %v3970_v2 = vrot.slane %v3866_v48, 2  ;;  %v13067_v9 = vrot.slane %v13066_v57, 1  ;;  %v3954_v44 = vsel %vm1003_vm7, %v3951_v26, %v3953_v22 }
 0xa68   :  { %v3961_v34 = vrot.slane %v3861_v35, 2  ;;  %v3963_v59 = vrot.slane %v3862_v60, 2  ;;  %v3960_v56 = vrot.slane %v3860_v17, 2  ;;  %v3952_v1 = vsel %vm1003_vm7, %v3950_v20, %v3951_v26  ;;  %v13069_v17 = vld [vmem:[#allocation6_spill] sm:$0xff] }
 0xa69   :  { %v3712_v6 = vsel %vm730_vm6, %v13067_v9, %v3711_v47  ;;  %v3966_v41 = vrot.slane %v3864_v31, 2  ;;  %v3863_v40 = vmul.f32 %v10956_v62, %v13064_v32  ;;  %v3983_v50 = vrot.slane %v3874_v61, 2 }
 0xa6a   :  { %v3968_v8 = vrot.slane %v3865_v58, 2  ;;  %v3870_v48 = vmul.f32 %v11016_v3, %v13068_v7  ;;  %v3871_v47 = vmul.f32 %v13068_v7, %v11155_v5  ;;  %v3869_v22 = vmul.f32 %v11030_v46, %v13068_v7 }
 0xa6b   :  { %v11290_v35 = vadd.f32 %v3974_v27, %v3799_v25  ;;  %v3972_v60 = vsel %vm1003_vm7, %v3970_v2, %v3971_v4  ;;  %v3803_v26 = vadd.f32 %v3712_v6, %v11021_v36  ;;  %v3877_v20 = vmul.f32 %v13069_v17, %v3429_v39  ;;  %v13070_v36 = vld [vmem:[#allocation240_spill] sm:$0xff]  ;;  %v11310_v25 = vpop.permute.xlu0 %5558  ;;  %v11312_v27 = vpop.permute.xlu1 %5560 }
 0xa6c   :  { %v3964_v62 = vsel %vm1003_vm7, %v3961_v34, %v3963_v59  ;;  %v3962_v31 = vsel %vm1003_vm7, %v3960_v56, %v3961_v34  ;;  %v3879_v3 = vmul.f32 %v10839_v42, %v13060_v63  ;;  %v3880_v5 = vmul.f32 %v13060_v63, %v11079_v11  ;;  %v13072_v56 = vld [vmem:[#allocation147_spill] sm:$0xff] }
 0xa6d   :  { %v11302_v46 = vadd.f32 %v3954_v44, %v11195_v51  ;;  %v11305_v61 = vadd.f32 %v3952_v1, %v11204_v38  ;;  %v3965_v4 = vrot.slane %v3863_v40, 2  ;;  %v13071_v58 = vrot.slane %v13070_v36, 2  ;;  %v3435_v40 = vld [vmem:[#allocation2 + $0xe8] sm:$0x3] }
 0xa6e   :  { %v3969_v42 = vsel %vm1003_vm7, %v3966_v41, %v3968_v8  ;;  %v3976_v2 = vrot.slane %v3870_v48, 2  ;;  %v3978_v57 = vrot.slane %v3871_v47, 2  ;;  %v3975_v11 = vrot.slane %v3869_v22, 2  ;;  %v13074_v48 = vld [vmem:[#allocation257_spill] sm:$0xff] }
 0xa6f   :  { %v3984_v39 = vsel %vm1003_vm7, %v13071_v58, %v3983_v50  ;;  %v11316_v51 = vadd.f32 %v3964_v62, %v11230_v53  ;;  %v11318_v9 = vadd.f32 %v3962_v31, %v3794_v0  ;;  %v11320_v38 = vadd.f32 %v3972_v60, %v3798_v37  ;;  %v13073_v53 = vld [vmem:[#allocation218_spill] sm:$0xff]  ;;  %v13075_v60 = vld [vmem:[#allocation111_spill] sm:$0xff]  ;;  %v11350_v58 = vpop.permute.xlu0 %5562 }
 0xa70   :  { %v3988_v6 = vrot.slane %v3877_v20, 2  ;;  %v3991_v44 = vrot.slane %v3879_v3, 2  ;;  %v3993_v34 = vrot.slane %v3880_v5, 2  ;;  %v3718_v59 = vrot.slane %v11096_v43, 1  ;;  %v13077_v62 = vld [vmem:[#allocation94_spill] sm:$0xff]  ;;  %v13080_v3 = vld [vmem:[#allocation27_spill] sm:$0xff] }
 0xa71   :  { %v3878_v1 = vmul.f32 %v13072_v56, %v13060_v63  ;;  %v11326_v50 = vadd.f32 %v3969_v42, %v11208_v15  ;;  %v11328_v8 = vadd.f32 %v3984_v39, %v3803_v26  ;;  %v3610_v0 = vmul.f32 %v13074_v48, %v13073_v53  ;;  %13082 = vst [vmem:[#allocation157_spill] sm:$0xff] %v11350_v58  ;;  %v11352_v39 = vpop.permute.xlu1 %5564 }
 0xa72   :  { %v3611_v37 = vmul.f32 %v13073_v53, %v3435_v40  ;;  %v3967_v47 = vsel %vm1003_vm7, %v3965_v4, %v3966_v41  ;;  %v3979_v22 = vsel %vm1003_vm7, %v3976_v2, %v3978_v57  ;;  %v3977_v43 = vsel %vm1003_vm7, %v3975_v11, %v3976_v2  ;;  %v13084_v57 = vld [vmem:[#allocation21_spill] sm:$0xff] }
 0xa73   :  { %v13076_v20 = vrot.slane %v13075_v60, 1  ;;  %v13078_v15 = vrot.slane %v13077_v62, 2  ;;  %v13079_v31 = vrot.slane %v11091_v23, 1  ;;  %v13081_v5 = vrot.slane %v13080_v3, 1  ;;  %v13085_v60 = vld [vmem:[#allocation211_spill] sm:$0xff]  ;;  %v13088_v3 = vld [vmem:[#allocation186_spill] sm:$0xff] }
 0xa74   :  { %v3882_v41 = vmul.f32 %v13074_v48, %v13057_v49  ;;  %v3883_v4 = vmul.f32 %v13057_v49, %v3435_v40  ;;  %v3990_v23 = vrot.slane %v3878_v1, 2  ;;  %v3609_v11 = vmul.f32 %v13084_v57, %v13073_v53  ;;  %v3438_v40 = vld [vmem:[#allocation2 + $0x100] sm:$0x3] }
 0xa75   :  { %v3717_v63 = vsel %vm730_vm6, %v13076_v20, %v3716_v33  ;;  %v3989_v26 = vsel %vm1003_vm7, %v13078_v15, %v3988_v6  ;;  %v3722_v36 = vsel %vm730_vm6, %v13081_v5, %v13079_v31  ;;  %v3994_v33 = vsel %vm1003_vm7, %v3991_v44, %v3993_v34  ;;  %v13086_v20 = vld [vmem:[#allocation67_spill] sm:$0xff]  ;;  %v13087_v34 = vld [vmem:[#allocation108_spill] sm:$0xff] }
 0xa76   :  { %v13083_v42 = vmov %v13081_v5  ;;  %v3724_v6 = vrot.slane %v3610_v0, 1  ;;  %v3726_v56 = vrot.slane %v3611_v37, 1  ;;  %v3881_v48 = vmul.f32 %v13084_v57, %v13057_v49 }
 0xa77   :  { %v3720_v2 = vsel %vm730_vm6, %v3718_v59, %v13083_v42  ;;  %v3613_v62 = vmul.f32 %v13086_v20, %v13085_v60  ;;  %v11365_v15 = vadd.f32 %v3967_v47, %v11223_v45  ;;  %v3805_v31 = vadd.f32 %v3717_v63, %v13087_v34  ;;  %v13089_v45 = vld [vmem:[#allocation99_spill] sm:$0xff] }
 0xa78   :  { %v3807_v59 = vadd.f32 %v3722_v36, %v13088_v3  ;;  %v3614_v1 = vmul.f32 %v13085_v60, %v3438_v40  ;;  %v11371_v53 = vadd.f32 %v3979_v22, %v11233_v14  ;;  %v11374_v0 = vadd.f32 %v3977_v43, %v11236_v52  ;;  %v11383_v14 = vpop.permute.xlu0 %5566  ;;  %v11385_v22 = vpop.permute.xlu1 %5568 }
 0xa79   :  { %v3996_v49 = vrot.slane %v3882_v41, 2  ;;  %v3998_v37 = vrot.slane %v3883_v4, 2  ;;  %v11376_v5 = vadd.f32 %v3989_v26, %v3805_v31  ;;  %v3806_v47 = vadd.f32 %v3720_v2, %v13089_v45  ;;  %13090 = vst [vmem:[#allocation107_spill] sm:$0xff] %v11383_v14  ;;  %13091 = vst [vmem:[#allocation126_spill] sm:$0xff] %v11385_v22  ;;  %v13092_v41 = vld [vmem:[#allocation120_spill] sm:$0xff]  ;;  %v13095_v31 = vld [vmem:[#allocation187_spill] sm:$0xff] }
 0xa7a   :  { %v11378_v42 = vadd.f32 %v3994_v33, %v3807_v59  ;;  %v3723_v57 = vrot.slane %v3609_v11, 1  ;;  %v3992_v63 = vsel %vm1003_vm7, %v3990_v23, %v3991_v44  ;;  %v3727_v36 = vsel %vm730_vm6, %v3724_v6, %v3726_v56  ;;  %v3441_v33 = vld [vmem:[#allocation2 + $0x118] sm:$0x3]  ;;  %v13094_v11 = vld [vmem:[#allocation104_spill] sm:$0xff]  ;;  %v13096_v59 = vld [vmem:[#allocation103_spill] sm:$0xff] }
 0xa7b   :  { %v3995_v34 = vrot.slane %v3881_v48, 2  ;;  %v3729_v3 = vrot.slane %v3613_v62, 1  ;;  %v3731_v52 = vrot.slane %v3614_v1, 1  ;;  %v3885_v43 = vmul.f32 %v13086_v20, %v13063_v29  ;;  %v13093_v23 = vld [vmem:[#allocation210_spill] sm:$0xff]  ;;  %v3444_v14 = vld [vmem:[#allocation2 + $0x130] sm:$0x3] }
 0xa7c   :  { %v3886_v26 = vmul.f32 %v13063_v29, %v3438_v40  ;;  %v3612_v4 = vmul.f32 %v13092_v41, %v13085_v60  ;;  %v3999_v44 = vsel %vm1003_vm7, %v3996_v49, %v3998_v37  ;;  %v3884_v2 = vmul.f32 %v13092_v41, %v13063_v29 }
 0xa7d   :  { %v3616_v56 = vmul.f32 %v13094_v11, %v13093_v23  ;;  %v3617_v48 = vmul.f32 %v13093_v23, %v3441_v33  ;;  %v11398_v62 = vadd.f32 %v3992_v63, %v3806_v47  ;;  %v3809_v20 = vadd.f32 %v3727_v36, %v13095_v31 }
 0xa7e   :  { %v3725_v40 = vsel %vm730_vm6, %v3723_v57, %v3724_v6  ;;  %v3615_v60 = vmul.f32 %v13096_v59, %v13093_v23  ;;  %v3997_v1 = vsel %vm1003_vm7, %v3995_v34, %v3996_v49  ;;  %v3888_v37 = vmul.f32 %v13094_v11, %v13064_v32  ;;  %v11413_v49 = vpop.permute.xlu0 %5570  ;;  %v11415_v34 = vpop.permute.xlu1 %5572 }
 0xa7f   :  { %v3889_v29 = vmul.f32 %v13064_v32, %v3441_v33  ;;  %v3887_v45 = vmul.f32 %v13096_v59, %v13064_v32  ;;  %v11410_v41 = vadd.f32 %v3999_v44, %v3809_v20  ;;  %v4001_v47 = vrot.slane %v3885_v43, 2  ;;  %13097 = vst [vmem:[#allocation125_spill] sm:$0xff] %v11413_v49  ;;  %13098 = vst [vmem:[#allocation12_spill] sm:$0xff] %v11415_v34  ;;  %v13099_v33 = vld [vmem:[#allocation68_spill] sm:$0xff]  ;;  %v13100_v43 = vld [vmem:[#allocation119_spill] sm:$0xff] }
 0xa80   :  { %v4003_v63 = vrot.slane %v3886_v26, 2  ;;  %v3728_v36 = vrot.slane %v3612_v4, 1  ;;  %v3732_v6 = vsel %vm730_vm6, %v3729_v3, %v3731_v52  ;;  %v4000_v57 = vrot.slane %v3884_v2, 2  ;;  %v13101_v4 = vld [vmem:[#allocation188_spill] sm:$0xff]  ;;  %v13102_v34 = vld [vmem:[#allocation189_spill] sm:$0xff] }
 0xa81   :  { %v3734_v31 = vrot.slane %v3616_v56, 1  ;;  %v3736_v23 = vrot.slane %v3617_v48, 1  ;;  %v3733_v11 = vrot.slane %v3615_v60, 1  ;;  %v3619_v22 = vmul.f32 %v13099_v33, %v13055_v19 }
 0xa82   :  { %v3620_v32 = vmul.f32 %v13055_v19, %v3444_v14  ;;  %v3618_v26 = vmul.f32 %v13100_v43, %v13055_v19  ;;  %v3808_v44 = vadd.f32 %v3725_v40, %v13101_v4  ;;  %v4006_v52 = vrot.slane %v3888_v37, 2 }
 0xa83   :  { %v4008_v2 = vrot.slane %v3889_v29, 2  ;;  %v4005_v56 = vrot.slane %v3887_v45, 2  ;;  %v4004_v48 = vsel %vm1003_vm7, %v4001_v47, %v4003_v63  ;;  %v3730_v20 = vsel %vm730_vm6, %v3728_v36, %v3729_v3  ;;  %v13103_v3 = vld [vmem:[#allocation190_spill] sm:$0xff] }
 0xa84   :  { %v3891_v59 = vmul.f32 %v13099_v33, %v13059_v13  ;;  %v3892_v60 = vmul.f32 %v13059_v13, %v3444_v14  ;;  %v11428_v49 = vadd.f32 %v3997_v1, %v3808_v44  ;;  %v3811_v58 = vadd.f32 %v3732_v6, %v13102_v34  ;;  %v11439_v1 = vpop.permute.xlu0 %5574  ;;  %v11441_v6 = vpop.permute.xlu1 %5576 }
 0xa85   :  { %v4002_v19 = vsel %vm1003_vm7, %v4000_v57, %v4001_v47  ;;  %v3737_v40 = vsel %vm730_vm6, %v3734_v31, %v3736_v23  ;;  %v3735_v37 = vsel %vm730_vm6, %v3733_v11, %v3734_v31  ;;  %v3739_v29 = vrot.slane %v3619_v22, 1  ;;  %13104 = vst [vmem:[#allocation128_spill] sm:$0xff] %v11439_v1  ;;  %13105 = vst [vmem:[#allocation198_spill] sm:$0xff] %v11441_v6  ;;  %v13106_v47 = vld [vmem:[#allocation256_spill] sm:$0xff]  ;;  %v13135_v6 = vld [vmem:[#allocation173_spill] sm:$0xff] }
 0xa86   :  { %v3741_v45 = vrot.slane %v3620_v32, 1  ;;  %v3738_v63 = vrot.slane %v3618_v26, 1  ;;  %v11434_v4 = vadd.f32 %v4004_v48, %v3811_v58  ;;  %v3810_v36 = vadd.f32 %v3730_v20, %v13103_v3  ;;  %v13107_v31 = vld [vmem:[#allocation232_spill] sm:$0xff]  ;;  %v13109_v26 = vld [vmem:[#allocation71_spill] sm:$0xff]  ;;  %v13110_v48 = vld [vmem:[#allocation54_spill] sm:$0xff] }
 0xa87   :  { %v4009_v33 = vsel %vm1003_vm7, %v4006_v52, %v4008_v2  ;;  %v4007_v14 = vsel %vm1003_vm7, %v4005_v56, %v4006_v52  ;;  %v4335_v57 = vadd.f32 %v13106_v47, %v11302_v46  ;;  %v4334_v22 = vadd.f32 %v13107_v31, %v11305_v61  ;;  %v13108_v11 = vld [vmem:[#allocation72_spill] sm:$0xff]  ;;  %v13111_v20 = vld [vmem:[#allocation25_spill] sm:$0xff] }
 0xa88   :  { %v4011_v23 = vrot.slane %v3891_v59, 2  ;;  %v4013_v34 = vrot.slane %v3892_v60, 2  ;;  %v11447_v58 = vadd.f32 %v4002_v19, %v3810_v36  ;;  %v3813_v32 = vadd.f32 %v3737_v40, %v13108_v11  ;;  %v13112_v60 = vld [vmem:[#allocation196_spill] sm:$0xff]  ;;  %v13113_v19 = vld [vmem:[#allocation105_spill] sm:$0xff] }
 0xa89   :  { %v3812_v44 = vadd.f32 %v3735_v37, %v13109_v26  ;;  %v3890_v52 = vmul.f32 %v13100_v43, %v13059_v13  ;;  %v3742_v2 = vsel %vm730_vm6, %v3739_v29, %v3741_v45  ;;  %v3740_v56 = vsel %vm730_vm6, %v3738_v63, %v3739_v29  ;;  %v13114_v37 = vld [vmem:[#allocation219_spill] sm:$0xff]  ;;  %v13115_v36 = vld [vmem:[#allocation9_spill] sm:$0xff]  ;;  %v13116_v13 = vld [vmem:[#allocation24_spill] sm:$0xff] }
 0xa8a   :  { %v4670_v46 = vadd.f32 %v13110_v48, %v4334_v22  ;;  %v4671_v3 = vadd.f32 %v13111_v20, %v4335_v57  ;;  %v11457_v61 = vadd.f32 %v4009_v33, %v3813_v32  ;;  %v11463_v40 = vadd.f32 %v13113_v19, %v13112_v60  ;;  %v13117_v45 = vld [vmem:[#allocation234_spill] sm:$0xff]  ;;  %v13118_v57 = vld [vmem:[#allocation36_spill] sm:$0xff]  ;;  %v13121_v32 = vld [vmem:[#allocation155_spill] sm:$0xff]  ;;  %v11478_v20 = vpop.permute.xlu0 %5578  ;;  %v11480_v19 = vpop.permute.xlu1 %5580 }
 0xa8b   :  { %v11459_v59 = vadd.f32 %v4007_v14, %v3812_v44  ;;  %v11467_v47 = vmul.f32 %v13115_v36, %v13114_v37  ;;  %v4337_v43 = vadd.f32 %v13116_v13, %v11264_v16  ;;  %v4014_v29 = vsel %vm1003_vm7, %v4011_v23, %v4013_v34  ;;  %v13119_v14 = vld [vmem:[#allocation10_spill] sm:$0xff]  ;;  %v3447_v48 = vld [vmem:[#allocation2 + $0x148] sm:$0x3]  ;;  %13122 = vst [vmem:[#allocation127_spill] sm:$0xff] %v11478_v20 }
 0xa8c   :  { %v5007_v63 = vadd.f32 %v13117_v45, %v4671_v3  ;;  %v5006_v33 = vadd.f32 %v13118_v57, %v4670_v46  ;;  %v4336_v31 = vadd.f32 %v13119_v14, %v11266_v54  ;;  %v13120_v22 = vld [vmem:[#allocation154_spill] sm:$0xff]  ;;  %v3814_v26 = vadd.f32 %v3740_v56, %v13121_v32  ;;  %13123 = vst [vmem:[#allocation160_spill] sm:$0xff] %v11480_v19  ;;  %v13125_v13 = vld [vmem:[#allocation152_spill] sm:$0xff]  ;;  %v13126_v45 = vld [vmem:[#allocation171_spill] sm:$0xff] }
 0xa8d   :  { %v3815_v11 = vadd.f32 %v3742_v2, %v13120_v22  ;;  %v4010_v44 = vrot.slane %v3890_v52, 2  ;;  %v11483_v16 = vmul.f32 %v13114_v37, %v3447_v48  ;;  %v13124_v34 = vld [vmem:[#allocation26_spill] sm:$0xff]  ;;  %v11493_v52 = vmul.f32 %v13115_v36, %v13068_v7  ;;  %v13127_v56 = vld [vmem:[#allocation59_spill] sm:$0xff] }
 0xa8e   :  { %v4673_v3 = vadd.f32 %v13124_v34, %v4337_v43  ;;  %v5278_v46 = vadd.f32 %v13125_v13, %v5006_v33  ;;  %v5279_v57 = vadd.f32 %v13126_v45, %v5007_v63  ;;  %v4672_v14 = vadd.f32 %v13127_v56, %v4336_v31  ;;  %v13128_v22 = vld [vmem:[#allocation23_spill] sm:$0xff]  ;;  %v13129_v20 = vld [vmem:[#allocation74_spill] sm:$0xff]  ;;  %v13131_v33 = vld [vmem:[#allocation141_spill] sm:$0xff] }
 0xa8f   :  { %v11488_v54 = vadd.f32 %v4014_v29, %v3815_v11  ;;  %v4339_v32 = vadd.f32 %v13128_v22, %v11316_v51  ;;  %v13130_v43 = vld [vmem:[#allocation58_spill] sm:$0xff]  ;;  %v13132_v29 = vld [vmem:[#allocation7_spill] sm:$0xff]  ;;  %v4012_v11 = vsel %vm1003_vm7, %v4010_v44, %v4011_v23  ;;  %v13133_v45 = vld [vmem:[#allocation77_spill] sm:$0xff] }
 0xa90   :  { %v5009_v19 = vadd.f32 %v13129_v20, %v4673_v3  ;;  %v5615_v34 = vadd.f32 %v13130_v43, %v5279_v57  ;;  %v5614_v13 = vadd.f32 %v13131_v33, %v5278_v46  ;;  %v4338_v63 = vadd.f32 %v13132_v29, %v11318_v9  ;;  %v13134_v31 = vld [vmem:[#allocation61_spill] sm:$0xff]  ;;  %v13136_v46 = vld [vmem:[#allocation192_spill] sm:$0xff]  ;;  %v13139_v43 = vld [vmem:[#allocation130_spill] sm:$0xff] }
 0xa91   :  { %v5008_v2 = vadd.f32 %v13133_v45, %v4672_v14  ;;  %v4675_v56 = vadd.f32 %v13134_v31, %v4339_v32  ;;  %v11508_v3 = vmul.f32 %v13068_v7, %v3447_v48  ;;  %v11512_v57 = vadd.f32 %v13136_v46, %v13112_v60  ;;  %v13137_v9 = vld [vmem:[#allocation60_spill] sm:$0xff]  ;;  %v13140_v32 = vld [vmem:[#allocation78_spill] sm:$0xff]  ;;  %v13142_v60 = vld [vmem:[#allocation165_spill] sm:$0xff] }
 0xa92   :  { %v5855_v36 = vpop.permute.xlu0 %5854  ;;  %v5857_v1 = vpop.permute.xlu1 %5856  ;;  %v5281_v51 = vadd.f32 %v13135_v6, %v5009_v19  ;;  %v4674_v23 = vadd.f32 %v13137_v9, %v4338_v63  ;;  %v13138_v44 = vld [vmem:[#allocation172_spill] sm:$0xff]  ;;  %v4341_v33 = vadd.f32 %v13139_v43, %v11326_v50  ;;  %v11518_v29 = vadd.f32 %v4012_v11, %v3814_v26  ;;  %v13141_v19 = vld [vmem:[#allocation179_spill] sm:$0xff]  ;;  %v13145_v45 = vld [vmem:[#allocation65_spill] sm:$0xff] }
 0xa93   :  { %v5950_v22 = vadd.f32 %v5855_v36, %v5614_v13  ;;  %v5951_v20 = vadd.f32 %v5857_v1, %v5615_v34  ;;  %v5280_v14 = vadd.f32 %v13138_v44, %v5008_v2  ;;  %v5011_v6 = vadd.f32 %v13140_v32, %v4675_v56  ;;  %v13143_v26 = vld [vmem:[#allocation35_spill] sm:$0xff]  ;;  %v13144_v34 = vld [vmem:[#allocation112_spill] sm:$0xff]  ;;  %v13146_v31 = vld [vmem:[#allocation129_spill] sm:$0xff] }
 0xa94   :  { %v5617_v1 = vadd.f32 %v13141_v19, %v5281_v51  ;;  %v4340_v48 = vadd.f32 %v13142_v60, %v11365_v15  ;;  %v3746_v50 = vrot.slane %v11483_v16, 1  ;;  %v5010_v2 = vadd.f32 %v13143_v26, %v4674_v23  ;;  %v13148_v15 = vld [vmem:[#allocation62_spill] sm:$0xff]  ;;  %v13149_v16 = vld [vmem:[#allocation216_spill] sm:$0xff]  ;;  %v13151_v19 = vld [vmem:[#allocation37_spill] sm:$0xff] }
 0xa95   :  { %5983 = vst.msk [vmem:[%s11899_s3] sm:$0xff] %vm5982_vm5, %v5950_v22  ;;  %5984 = vst.msk [vmem:[%s11899_s3 + $0x8] sm:$0xff] %vm5982_vm5, %v5951_v20  ;;  %v5616_v13 = vadd.f32 %v13144_v34, %v5280_v14  ;;  %v4016_v11 = vrot.slane %v11493_v52, 2  ;;  %v4677_v36 = vadd.f32 %v13145_v45, %v4341_v33  ;;  %v5283_v56 = vadd.f32 %v13146_v31, %v5011_v6  ;;  %v13147_v20 = vld [vmem:[#allocation124_spill] sm:$0xff]  ;;  %v13152_v60 = vld [vmem:[#allocation254_spill] sm:$0xff] }
 0xa96   :  { %v5861_v63 = vpop.permute.xlu1 %5860  ;;  %v11540_v46 = vmul.f32 %v13147_v20, %v13114_v37  ;;  %v4676_v9 = vadd.f32 %v13148_v15, %v4340_v48  ;;  %v5282_v44 = vadd.f32 %v13149_v16, %v5010_v2  ;;  %v13150_v14 = vld [vmem:[#allocation204_spill] sm:$0xff]  ;;  %v4018_v32 = vrot.slane %v11508_v3, 2  ;;  %v13153_v37 = vld [vmem:[#allocation205_spill] sm:$0xff]  ;;  %v13154_v26 = vld [vmem:[#allocation39_spill] sm:$0xff] }
 0xa97   :  { %v5859_v51 = vpop.permute.xlu0 %5858  ;;  %v5953_v22 = vadd.f32 %v5861_v63, %v5617_v1  ;;  %v4343_v43 = vadd.f32 %v13150_v14, %v11290_v35  ;;  %v5013_v33 = vadd.f32 %v13151_v19, %v4677_v36  ;;  %v5619_v6 = vadd.f32 %v13152_v60, %v5283_v56  ;;  %v13155_v2 = vld [vmem:[#allocation180_spill] sm:$0xff]  ;;  %v13156_v63 = vld [vmem:[#allocation153_spill] sm:$0xff]  ;;  %v13158_v31 = vld [vmem:[#allocation174_spill] sm:$0xff] }
 0xa98   :  { %v5952_v23 = vadd.f32 %v5859_v51, %v5616_v13  ;;  %v4342_v1 = vadd.f32 %v13153_v37, %v11320_v38  ;;  %v11557_v48 = vmul.f32 %v13147_v20, %v13068_v7  ;;  %v5012_v35 = vadd.f32 %v13154_v26, %v4676_v9  ;;  %v3450_v13 = vld [vmem:[#allocation2 + $0x160] sm:$0x3]  ;;  %v13157_v38 = vld [vmem:[#allocation69_spill] sm:$0xff]  ;;  %v13159_v20 = vld [vmem:[#allocation66_spill] sm:$0xff] }
 0xa99   :  { %5986 = vst.msk [vmem:[%s11899_s3 + $0x18] sm:$0xff] %vm5982_vm5, %v5953_v22  ;;  %v5618_v3 = vadd.f32 %v13155_v2, %v5282_v44  ;;  %v11567_v45 = vmul.f32 %v13156_v63, %v13061_v30  ;;  %v4679_v36 = vadd.f32 %v13157_v38, %v4343_v43  ;;  %v5285_v7 = vadd.f32 %v13158_v31, %v5013_v33  ;;  %v13160_v9 = vld [vmem:[#allocation84_spill] sm:$0xff]  ;;  %v13163_v37 = vld [vmem:[#allocation233_spill] sm:$0xff]  ;;  %v13164_v26 = vld [vmem:[#allocation146_spill] sm:$0xff] }
 0xa9a   :  { %5985 = vst.msk [vmem:[%s11899_s3 + $0x10] sm:$0xff] %vm5982_vm5, %v5952_v23  ;;  %v5865_v34 = vpop.permute.xlu1 %5864  ;;  %v3626_v22 = vmul.f32 %v13061_v30, %v3450_v13  ;;  %v4678_v15 = vadd.f32 %v13159_v20, %v4342_v1  ;;  %v5284_v16 = vadd.f32 %v13160_v9, %v5012_v35  ;;  %v13161_v23 = vld [vmem:[#allocation227_spill] sm:$0xff]  ;;  %v13162_v19 = vrot.slane %v11467_v47, 1  ;;  %v13166_v2 = vld [vmem:[#allocation109_spill] sm:$0xff]  ;;  %v13170_v20 = vld [vmem:[#allocation70_spill] sm:$0xff] }
 0xa9b   :  { %v5863_v56 = vpop.permute.xlu0 %5862  ;;  %v5955_v51 = vadd.f32 %v5865_v34, %v5619_v6  ;;  %v4345_v14 = vadd.f32 %v13161_v23, %v11371_v53  ;;  %v5015_v43 = vadd.f32 %v13163_v37, %v4679_v36  ;;  %v5621_v33 = vadd.f32 %v13164_v26, %v5285_v7  ;;  %v13165_v6 = vld [vmem:[#allocation164_spill] sm:$0xff]  ;;  %v13168_v36 = vld [vmem:[#allocation79_spill] sm:$0xff]  ;;  %v13169_v7 = vld [vmem:[#allocation170_spill] sm:$0xff] }
 0xa9c   :  { %v5954_v44 = vadd.f32 %v5863_v56, %v5618_v3  ;;  %v3747_v60 = vsel %vm730_vm6, %v13162_v19, %v3746_v50  ;;  %v4344_v1 = vadd.f32 %v13165_v6, %v11374_v0  ;;  %v3743_v35 = vrot.slane %v11540_v46, 1  ;;  %v13167_v3 = vld [vmem:[#allocation93_spill] sm:$0xff]  ;;  %v13173_v37 = vld [vmem:[#allocation110_spill] sm:$0xff]  ;;  %v13175_v6 = vld [vmem:[#allocation116_spill] sm:$0xff] }
 0xa9d   :  { %5988 = vst.msk [vmem:[%s11899_s3 + $0x28] sm:$0xff] %vm5982_vm5, %v5955_v51  ;;  %v5014_v53 = vadd.f32 %v13166_v2, %v4678_v15  ;;  %v5620_v34 = vadd.f32 %v13167_v3, %v5284_v16  ;;  %v11596_v38 = vmul.f32 %v13156_v63, %v13065_v28  ;;  %v4681_v31 = vadd.f32 %v13168_v36, %v4345_v14  ;;  %v13171_v9 = vld [vmem:[#allocation177_spill] sm:$0xff]  ;;  %v13177_v3 = vld [vmem:[#allocation80_spill] sm:$0xff]  ;;  %v13187_v52 = vld [vmem:[#allocation83_spill] sm:$0xff] }
 0xa9e   :  { %5987 = vst.msk [vmem:[%s11899_s3 + $0x20] sm:$0xff] %vm5982_vm5, %v5954_v44  ;;  %v5869_v50 = vpop.permute.xlu1 %5868  ;;  %v5287_v0 = vadd.f32 %v13169_v7, %v5015_v43  ;;  %v3898_v51 = vmul.f32 %v13065_v28, %v3450_v13  ;;  %v4680_v15 = vadd.f32 %v13170_v20, %v4344_v1  ;;  %v13172_v44 = vld [vmem:[#allocation208_spill] sm:$0xff]  ;;  %v4019_v63 = vsel %vm1003_vm7, %v4016_v11, %v4018_v32  ;;  %v13174_v26 = vld [vmem:[#allocation145_spill] sm:$0xff] }
 0xa9f   :  { %v5867_v56 = vpop.permute.xlu0 %5866  ;;  %v5957_v46 = vadd.f32 %v5869_v50, %v5621_v33  ;;  %v5286_v16 = vadd.f32 %v13171_v9, %v5014_v53  ;;  %v4347_v19 = vadd.f32 %v13172_v44, %v11328_v8  ;;  %v5017_v14 = vadd.f32 %v13173_v37, %v4681_v31  ;;  %v13176_v8 = vld [vmem:[#allocation255_spill] sm:$0xff]  ;;  %v13178_v50 = vld [vmem:[#allocation217_spill] sm:$0xff] }
 0xaa0   :  { %v5956_v23 = vadd.f32 %v5867_v56, %v5620_v34  ;;  %v5623_v43 = vadd.f32 %v13174_v26, %v5287_v0  ;;  %v4015_v13 = vrot.slane %v11557_v48, 2  ;;  %v3749_v33 = vrot.slane %v11567_v45, 1  ;;  %v13181_v9 = vld [vmem:[#allocation209_spill] sm:$0xff] }
 0xaa1   :  { %5990 = vst.msk [vmem:[%s11899_s3 + $0x38] sm:$0xff] %vm5982_vm5, %v5957_v46  ;;  %v5016_v1 = vadd.f32 %v13175_v6, %v4680_v15  ;;  %v5622_v2 = vadd.f32 %v13176_v8, %v5286_v16  ;;  %v3751_v53 = vrot.slane %v3626_v22, 1  ;;  %v4683_v34 = vadd.f32 %v13177_v3, %v4347_v19  ;;  %v13180_v46 = vld [vmem:[#allocation169_spill] sm:$0xff]  ;;  %v13182_v22 = vld [vmem:[#allocation115_spill] sm:$0xff]  ;;  %v13188_v3 = vld [vmem:[#allocation242_spill] sm:$0xff] }
 0xaa2   :  { %5989 = vst.msk [vmem:[%s11899_s3 + $0x30] sm:$0xff] %vm5982_vm5, %v5956_v23  ;;  %v5873_v32 = vpop.permute.xlu1 %5872  ;;  %v5289_v36 = vadd.f32 %v13178_v50, %v5017_v14  ;;  %v13179_v48 = vrot.slane %v11467_v47, 1  ;;  %v4021_v56 = vrot.slane %v11596_v38, 2  ;;  %v4349_v16 = vadd.f32 %v13181_v9, %v11376_v5  ;;  %v13183_v19 = vld [vmem:[#allocation63_spill] sm:$0xff]  ;;  %v13184_v14 = vld [vmem:[#allocation156_spill] sm:$0xff]  ;;  %v13185_v5 = vld [vmem:[#allocation114_spill] sm:$0xff] }
 0xaa3   :  { %v5871_v31 = vpop.permute.xlu0 %5870  ;;  %v5959_v7 = vadd.f32 %v5873_v32, %v5623_v43  ;;  %v5288_v20 = vadd.f32 %v13180_v46, %v5016_v1  ;;  %v4023_v23 = vrot.slane %v3898_v51, 2  ;;  %v5019_v44 = vadd.f32 %v13182_v22, %v4683_v34  ;;  %v13189_v50 = vld [vmem:[#allocation118_spill] sm:$0xff] }
 0xaa4   :  { %v3745_v0 = vsel %vm730_vm6, %v3743_v35, %v13179_v48  ;;  %v5958_v15 = vadd.f32 %v5871_v31, %v5622_v2  ;;  %v5625_v37 = vadd.f32 %v13183_v19, %v5289_v36  ;;  %v3817_v47 = vadd.f32 %v3747_v60, %v11463_v40  ;;  %v13186_v40 = vld [vmem:[#allocation81_spill] sm:$0xff]  ;;  %v13190_v31 = vld [vmem:[#allocation183_spill] sm:$0xff]  ;;  %v13196_v22 = vld [vmem:[#allocation178_spill] sm:$0xff] }
 0xaa5   :  { %5992 = vst.msk [vmem:[%s11899_s3 + $0x48] sm:$0xff] %vm5982_vm5, %v5959_v7  ;;  %v4017_v35 = vsel %vm1003_vm7, %v4015_v13, %v4016_v11  ;;  %v3624_v26 = vmul.f32 %v13184_v14, %v13061_v30  ;;  %v5624_v51 = vadd.f32 %v13185_v5, %v5288_v20  ;;  %v3752_v6 = vsel %vm730_vm6, %v3749_v33, %v3751_v53  ;;  %v13192_v48 = vld [vmem:[#allocation191_spill] sm:$0xff]  ;;  %v13193_v20 = vld [vmem:[#allocation206_spill] sm:$0xff] }
 0xaa6   :  { %5991 = vst.msk [vmem:[%s11899_s3 + $0x40] sm:$0xff] %vm5982_vm5, %v5958_v15  ;;  %v5877_v43 = vpop.permute.xlu1 %5876  ;;  %v4685_v60 = vadd.f32 %v13186_v40, %v4349_v16  ;;  %v5291_v1 = vadd.f32 %v13187_v52, %v5019_v44  ;;  %v11653_v8 = vadd.f32 %v4019_v63, %v3817_v47  ;;  %v3816_v30 = vadd.f32 %v3745_v0, %v11512_v57  ;;  %v13191_v57 = vld [vmem:[#allocation246_spill] sm:$0xff]  ;;  %v13201_v52 = vld [vmem:[#allocation253_spill] sm:$0xff] }
 0xaa7   :  { %v5875_v11 = vpop.permute.xlu0 %5874  ;;  %v5961_v13 = vadd.f32 %v5877_v43, %v5625_v37  ;;  %v3896_v2 = vmul.f32 %v13184_v14, %v13065_v28  ;;  %v4351_v34 = vadd.f32 %v13188_v3, %v11378_v42  ;;  %v4024_v53 = vsel %vm1003_vm7, %v4021_v56, %v4023_v23  ;;  %v13194_v15 = vld [vmem:[#allocation158_spill] sm:$0xff] }
 0xaa8   :  { %v5960_v32 = vadd.f32 %v5875_v11, %v5624_v51  ;;  %v5021_v36 = vadd.f32 %v13189_v50, %v4685_v60  ;;  %v5627_v7 = vadd.f32 %v13190_v31, %v5291_v1  ;;  %v4350_v28 = vadd.f32 %v13191_v57, %v11398_v62  ;;  %v13195_v16 = vld [vmem:[#allocation82_spill] sm:$0xff]  ;;  %v13199_v51 = vld [vmem:[#allocation113_spill] sm:$0xff] }
 0xaa9   :  { %5994 = vst.msk [vmem:[%s11899_s3 + $0x58] sm:$0xff] %vm5982_vm5, %v5961_v13  ;;  %v11671_v63 = vadd.f32 %v4017_v35, %v3816_v30  ;;  %v3819_v42 = vadd.f32 %v3752_v6, %v13192_v48  ;;  %v3748_v0 = vrot.slane %v3624_v26, 1  ;;  %v11680_v9 = vadd.f32 %v13194_v15, %v13193_v20  ;;  %v3453_v47 = vld [vmem:[#allocation2 + $0x178] sm:$0x3]  ;;  %v13197_v35 = vld [vmem:[#allocation193_spill] sm:$0xff]  ;;  %v13200_v6 = vld [vmem:[#allocation248_spill] sm:$0xff] }
 0xaaa   :  { %5993 = vst.msk [vmem:[%s11899_s3 + $0x50] sm:$0xff] %vm5982_vm5, %v5960_v32  ;;  %v5881_v46 = vpop.permute.xlu1 %5880  ;;  %v4687_v23 = vadd.f32 %v13195_v16, %v4351_v34  ;;  %v5293_v44 = vadd.f32 %v13196_v22, %v5021_v36  ;;  %v4020_v37 = vrot.slane %v3896_v2, 2  ;;  %v11686_v14 = vmul.f32 %v13197_v35, %v13062_v12  ;;  %v13198_v26 = vld [vmem:[#allocation230_spill] sm:$0xff]  ;;  %v13203_v32 = vld [vmem:[#allocation117_spill] sm:$0xff]  ;;  %v13208_v15 = vld [vmem:[#allocation64_spill] sm:$0xff] }
 0xaab   :  { %v5879_v62 = vpop.permute.xlu0 %5878  ;;  %v5963_v19 = vadd.f32 %v5881_v46, %v5627_v7  ;;  %v4686_v5 = vadd.f32 %v13198_v26, %v4350_v28  ;;  %v4353_v40 = vadd.f32 %v13200_v6, %v11410_v41  ;;  %v11693_v60 = vmul.f32 %v13062_v12, %v3453_v47  ;;  %v13202_v13 = vld [vmem:[#allocation14_spill] sm:$0xff]  ;;  %v13206_v28 = vld [vmem:[#allocation85_spill] sm:$0xff] }
 0xaac   :  { %v5962_v43 = vadd.f32 %v5879_v62, %v13199_v51  ;;  %v5023_v1 = vadd.f32 %v13201_v52, %v4687_v23  ;;  %v5629_v11 = vadd.f32 %v11211_v18, %v5293_v44  ;;  %v4352_v30 = vadd.f32 %v13202_v13, %v11428_v49  ;;  %v13204_v50 = vld [vmem:[#allocation42_spill] sm:$0xff]  ;;  %v13209_v23 = vld [vmem:[#allocation213_spill] sm:$0xff] }
 0xaad   :  { %5996 = vst.msk [vmem:[%s11899_s3 + $0x68] sm:$0xff] %vm5982_vm5, %v5963_v19  ;;  %v11703_v2 = vadd.f32 %v4024_v53, %v3819_v42  ;;  %v11707_v41 = vmul.f32 %v13197_v35, %v13069_v17  ;;  %v5022_v3 = vadd.f32 %v13203_v32, %v4686_v5  ;;  %v3750_v34 = vsel %vm730_vm6, %v3748_v0, %v3749_v33  ;;  %v13205_v53 = vld [vmem:[#allocation224_spill] sm:$0xff]  ;;  %v13207_v42 = vld [vmem:[#allocation181_spill] sm:$0xff]  ;;  %v13212_v19 = vld [vmem:[#allocation250_spill] sm:$0xff] }
 0xaae   :  { %5995 = vst.msk [vmem:[%s11899_s3 + $0x60] sm:$0xff] %vm5982_vm5, %v5962_v43  ;;  %v5885_v18 = vpop.permute.xlu1 %5884  ;;  %v4689_v49 = vadd.f32 %v13204_v50, %v4353_v40  ;;  %v5295_v36 = vadd.f32 %v13205_v53, %v5023_v1  ;;  %v11720_v57 = vmul.f32 %v13069_v17, %v3453_v47  ;;  %v4688_v48 = vadd.f32 %v13206_v28, %v4352_v30  ;;  %v13210_v33 = vld [vmem:[#allocation5_spill] sm:$0xff]  ;;  %v13213_v35 = vld [vmem:[#allocation123_spill] sm:$0xff]  ;;  %v13214_v5 = vld [vmem:[#allocation122_spill] sm:$0xff] }
 0xaaf   :  { %v5883_v31 = vpop.permute.xlu0 %5882  ;;  %v5965_v7 = vadd.f32 %v5885_v18, %v5629_v11  ;;  %v5294_v46 = vadd.f32 %v13207_v42, %v5022_v3  ;;  %v4355_v45 = vadd.f32 %v13209_v23, %v11434_v4  ;;  %v11729_v0 = vadd.f32 %v13210_v33, %v13193_v20  ;;  %v13211_v22 = vld [vmem:[#allocation121_spill] sm:$0xff]  ;;  %v13215_v43 = vld [vmem:[#allocation86_spill] sm:$0xff]  ;;  %v13216_v40 = vld [vmem:[#allocation51_spill] sm:$0xff] }
 0xab0   :  { %v5964_v16 = vadd.f32 %v5883_v31, %v13208_v15  ;;  %v5025_v44 = vadd.f32 %v13211_v22, %v4689_v49  ;;  %v5631_v62 = vadd.f32 %v11247_v10, %v5295_v36  ;;  %v4354_v47 = vadd.f32 %v13212_v19, %v11447_v58  ;;  %v13217_v13 = vld [vmem:[#allocation41_spill] sm:$0xff]  ;;  %v13218_v30 = vld [vmem:[#allocation38_spill] sm:$0xff]  ;;  %v13219_v18 = vld [vmem:[#allocation252_spill] sm:$0xff] }
 0xab1   :  { %5998 = vst.msk [vmem:[%s11899_s3 + $0x78] sm:$0xff] %vm5982_vm5, %v5965_v7  ;;  %v3818_v26 = vadd.f32 %v3750_v34, %v13213_v35  ;;  %v5024_v4 = vadd.f32 %v13214_v5, %v4688_v48  ;;  %v5630_v51 = vadd.f32 %v11245_v55, %v5294_v46  ;;  %v4022_v20 = vsel %vm1003_vm7, %v4020_v37, %v4021_v56  ;;  %v13220_v50 = vld [vmem:[#allocation34_spill] sm:$0xff]  ;;  %v13222_v36 = vld [vmem:[#allocation73_spill] sm:$0xff]  ;;  %v13225_v42 = vld [vmem:[#allocation75_spill] sm:$0xff] }
 0xab2   :  { %5997 = vst.msk [vmem:[%s11899_s3 + $0x70] sm:$0xff] %vm5982_vm5, %v5964_v16  ;;  %v5889_v10 = vpop.permute.xlu1 %5888  ;;  %v4691_v6 = vadd.f32 %v13215_v43, %v4355_v45  ;;  %v5297_v58 = vadd.f32 %v13216_v40, %v5025_v44  ;;  %v3754_v11 = vrot.slane %v11686_v14, 1  ;;  %v4690_v55 = vadd.f32 %v13217_v13, %v4354_v47  ;;  %v13221_v14 = vld [vmem:[#allocation237_spill] sm:$0xff]  ;;  %v13224_v28 = vld [vmem:[#allocation90_spill] sm:$0xff] }
 0xab3   :  { %v5887_v52 = vpop.permute.xlu0 %5886  ;;  %v5967_v1 = vadd.f32 %v5889_v10, %v5631_v62  ;;  %v5296_v32 = vadd.f32 %v13218_v30, %v5024_v4  ;;  %v4357_v34 = vadd.f32 %v13219_v18, %v11457_v61  ;;  %v3756_v38 = vrot.slane %v11693_v60, 1  ;;  %v13223_v60 = vld [vmem:[#allocation106_spill] sm:$0xff]  ;;  %v13226_v16 = vld [vmem:[#allocation89_spill] sm:$0xff]  ;;  %v13232_v10 = vld [vmem:[#allocation95_spill] sm:$0xff] }
 0xab4   :  { %v5966_v3 = vadd.f32 %v5887_v52, %v5630_v51  ;;  %v5027_v56 = vadd.f32 %v13220_v50, %v4691_v6  ;;  %v5633_v37 = vadd.f32 %v11278_v24, %v5297_v58  ;;  %v4356_v49 = vadd.f32 %v13221_v14, %v11459_v59  ;;  %v13228_v22 = vld [vmem:[#allocation238_spill] sm:$0xff]  ;;  %v13231_v4 = vld [vmem:[#allocation133_spill] sm:$0xff] }
 0xab5   :  { %6000 = vst.msk [vmem:[%s11899_s3 + $0x88] sm:$0xff] %vm5982_vm5, %v5967_v1  ;;  %v4026_v53 = vrot.slane %v11707_v41, 2  ;;  %v5026_v31 = vadd.f32 %v13222_v36, %v4690_v55  ;;  %v5632_v61 = vadd.f32 %v11276_v21, %v5296_v32  ;;  %v3627_v7 = vmul.f32 %v13223_v60, %v13062_v12  ;;  %v13227_v21 = vld [vmem:[#allocation225_spill] sm:$0xff]  ;;  %v13229_v12 = vld [vmem:[#allocation134_spill] sm:$0xff]  ;;  %v13235_v55 = vld [vmem:[#allocation52_spill] sm:$0xff] }
 0xab6   :  { %5999 = vst.msk [vmem:[%s11899_s3 + $0x80] sm:$0xff] %vm5982_vm5, %v5966_v3  ;;  %v5893_v24 = vpop.permute.xlu1 %5892  ;;  %v4693_v48 = vadd.f32 %v13224_v28, %v4357_v34  ;;  %v5299_v46 = vadd.f32 %v13225_v42, %v5027_v56  ;;  %v4028_v41 = vrot.slane %v11720_v57, 2  ;;  %v4692_v23 = vadd.f32 %v13226_v16, %v4356_v49  ;;  %v13230_v57 = vld [vmem:[#allocation16_spill] sm:$0xff]  ;;  %v13233_v6 = vld [vmem:[#allocation138_spill] sm:$0xff]  ;;  %v13234_v1 = vld [vmem:[#allocation17_spill] sm:$0xff] }
 0xab7   :  { %v5891_v59 = vpop.permute.xlu0 %5890  ;;  %v5969_v15 = vadd.f32 %v5893_v24, %v5633_v37  ;;  %v5298_v45 = vadd.f32 %v13227_v21, %v5026_v31  ;;  %v4359_v44 = vadd.f32 %v13228_v22, %v11488_v54  ;;  %v3899_v62 = vmul.f32 %v13223_v60, %v13069_v17  ;;  %v13237_v34 = vld [vmem:[#allocation135_spill] sm:$0xff]  ;;  %v13240_v49 = vld [vmem:[#allocation157_spill] sm:$0xff]  ;;  %v13242_v24 = vld [vmem:[#allocation182_spill] sm:$0xff] }
 0xab8   :  { %v5968_v33 = vadd.f32 %v5891_v59, %v5632_v61  ;;  %v5029_v19 = vadd.f32 %v13229_v12, %v4693_v48  ;;  %v5635_v47 = vadd.f32 %v11312_v27, %v5299_v46  ;;  %v4358_v35 = vadd.f32 %v13230_v57, %v11518_v29  ;;  %v13239_v37 = vld [vmem:[#allocation19_spill] sm:$0xff]  ;;  %v13241_v31 = vld [vmem:[#allocation97_spill] sm:$0xff]  ;;  %v13243_v28 = vld [vmem:[#allocation96_spill] sm:$0xff] }
 0xab9   :  { %6002 = vst.msk [vmem:[%s11899_s3 + $0x98] sm:$0xff] %vm5982_vm5, %v5969_v15  ;;  %v3757_v5 = vsel %vm730_vm6, %v3754_v11, %v3756_v38  ;;  %v5028_v51 = vadd.f32 %v13231_v4, %v4692_v23  ;;  %v5634_v54 = vadd.f32 %v11310_v25, %v5298_v45  ;;  %v3753_v27 = vrot.slane %v3627_v7, 1  ;;  %v13236_v25 = vld [vmem:[#allocation226_spill] sm:$0xff]  ;;  %v13244_v42 = vld [vmem:[#allocation88_spill] sm:$0xff]  ;;  %v13245_v15 = vld [vmem:[#allocation223_spill] sm:$0xff] }
 0xaba   :  { %6001 = vst.msk [vmem:[%s11899_s3 + $0x90] sm:$0xff] %vm5982_vm5, %v5968_v33  ;;  %v5897_v17 = vpop.permute.xlu1 %5896  ;;  %v4695_v43 = vadd.f32 %v13232_v10, %v4359_v44  ;;  %v5301_v40 = vadd.f32 %v13233_v6, %v5029_v19  ;;  %v4090_v29 = vadd.f32 %v4022_v20, %v3818_v26  ;;  %v4694_v13 = vadd.f32 %v13234_v1, %v4358_v35  ;;  %v13238_v26 = vld [vmem:[#allocation220_spill] sm:$0xff]  ;;  %v13246_v21 = vld [vmem:[#allocation139_spill] sm:$0xff]  ;;  %v13247_v45 = vld [vmem:[#allocation126_spill] sm:$0xff] }
 0xabb   :  { %v5895_v58 = vpop.permute.xlu0 %5894  ;;  %v5971_v52 = vadd.f32 %v5897_v17, %v5635_v47  ;;  %v5300_v30 = vadd.f32 %v13235_v55, %v5028_v51  ;;  %v4361_v3 = vadd.f32 %v13236_v25, %v11653_v8  ;;  %v4025_v18 = vrot.slane %v3899_v62, 2  ;;  %v13249_v62 = vld [vmem:[#allocation136_spill] sm:$0xff]  ;;  %v13250_v19 = vld [vmem:[#allocation107_spill] sm:$0xff]  ;;  %v13251_v57 = vld [vmem:[#allocation101_spill] sm:$0xff] }
 0xabc   :  { %v5970_v32 = vadd.f32 %v5895_v58, %v5634_v54  ;;  %v5031_v38 = vadd.f32 %v13237_v34, %v4695_v43  ;;  %v5637_v50 = vadd.f32 %v11352_v39, %v5301_v40  ;;  %v4360_v20 = vadd.f32 %v13238_v26, %v11671_v63  ;;  %v13254_v10 = vld [vmem:[#allocation137_spill] sm:$0xff]  ;;  %v13255_v40 = vld [vmem:[#allocation44_spill] sm:$0xff]  ;;  %v13262_v26 = vld [vmem:[#allocation55_spill] sm:$0xff] }
 0xabd   :  { %6004 = vst.msk [vmem:[%s11899_s3 + $0xa8] sm:$0xff] %vm5982_vm5, %v5971_v52  ;;  %v3821_v56 = vadd.f32 %v3757_v5, %v11680_v9  ;;  %v5030_v14 = vadd.f32 %v13239_v37, %v4694_v13  ;;  %v5636_v36 = vadd.f32 %v13240_v49, %v5300_v30  ;;  %v3755_v8 = vsel %vm730_vm6, %v3753_v27, %v3754_v11  ;;  %v13252_v5 = vld [vmem:[#allocation87_spill] sm:$0xff]  ;;  %v13253_v27 = vld [vmem:[#allocation98_spill] sm:$0xff]  ;;  %v13257_v1 = vld [vmem:[#allocation12_spill] sm:$0xff] }
 0xabe   :  { %6003 = vst.msk [vmem:[%s11899_s3 + $0xa0] sm:$0xff] %vm5982_vm5, %v5970_v32  ;;  %v5901_v39 = vpop.permute.xlu1 %5900  ;;  %v4697_v61 = vadd.f32 %v13241_v31, %v4361_v3  ;;  %v5303_v60 = vadd.f32 %v13242_v24, %v5031_v38  ;;  %v4029_v9 = vsel %vm1003_vm7, %v4026_v53, %v4028_v41  ;;  %v4696_v48 = vadd.f32 %v13243_v28, %v4360_v20  ;;  %v13248_v41 = vld [vmem:[#allocation43_spill] sm:$0xff]  ;;  %v13258_v55 = vld [vmem:[#allocation45_spill] sm:$0xff]  ;;  %v13259_v32 = vld [vmem:[#allocation140_spill] sm:$0xff] }
 0xabf   :  { %v5899_v7 = vpop.permute.xlu0 %5898  ;;  %v5973_v63 = vadd.f32 %v5901_v39, %v5637_v50  ;;  %v5302_v46 = vadd.f32 %v13244_v42, %v5030_v14  ;;  %v4363_v16 = vadd.f32 %v13245_v15, %v11703_v2  ;;  %v4027_v23 = vsel %vm1003_vm7, %v4025_v18, %v4026_v53  ;;  %v13256_v52 = vld [vmem:[#allocation143_spill] sm:$0xff]  ;;  %v13260_v3 = vld [vmem:[#allocation125_spill] sm:$0xff]  ;;  %v13263_v14 = vld [vmem:[#allocation102_spill] sm:$0xff] }
 0xac0   :  { %v5972_v59 = vadd.f32 %v5899_v7, %v5636_v36  ;;  %v5033_v11 = vadd.f32 %v13246_v21, %v4697_v61  ;;  %v5639_v33 = vadd.f32 %v13247_v45, %v5303_v60  ;;  %v4362_v22 = vadd.f32 %v13248_v41, %v4090_v29  ;;  %v13261_v38 = vld [vmem:[#allocation33_spill] sm:$0xff]  ;;  %v13264_v36 = vld [vmem:[#allocation56_spill] sm:$0xff]  ;;  %v13265_v31 = vld [vmem:[#allocation47_spill] sm:$0xff] }
 0xac1   :  { %6006 = vst.msk [vmem:[%s11899_s3 + $0xb8] sm:$0xff] %vm5982_vm5, %v5973_v63  ;;  %v3820_v44 = vadd.f32 %v3755_v8, %v11729_v0  ;;  %v5032_v12 = vadd.f32 %v13249_v62, %v4696_v48  ;;  %v5638_v47 = vadd.f32 %v13250_v19, %v5302_v46  ;;  %v4093_v53 = vadd.f32 %v4029_v9, %v3821_v56  ;;  %v13266_v24 = vld [vmem:[#allocation198_spill] sm:$0xff]  ;;  %v13267_v7 = vld [vmem:[#allocation144_spill] sm:$0xff] }
 0xac2   :  { %6005 = vst.msk [vmem:[%s11899_s3 + $0xb0] sm:$0xff] %vm5982_vm5, %v5972_v59  ;;  %v5905_v2 = vpop.permute.xlu1 %5904  ;;  %v4699_v35 = vadd.f32 %v13251_v57, %v4363_v16  ;;  %v5305_v4 = vadd.f32 %v13252_v5, %v5033_v11  ;;  %v4698_v0 = vadd.f32 %v13253_v27, %v4362_v22  ;;  %v13268_v9 = vld [vmem:[#allocation128_spill] sm:$0xff]  ;;  %v13270_v16 = vld [vmem:[#allocation175_spill] sm:$0xff] }
 0xac3   :  { %v5903_v51 = vpop.permute.xlu0 %5902  ;;  %v5975_v54 = vadd.f32 %v5905_v2, %v5639_v33  ;;  %v4092_v17 = vadd.f32 %v4027_v23, %v3820_v44  ;;  %v5304_v43 = vadd.f32 %v13254_v10, %v5032_v12  ;;  %v4365_v58 = vadd.f32 %v13255_v40, %v4093_v53  ;;  %v13269_v42 = vld [vmem:[#allocation40_spill] sm:$0xff]  ;;  %v13272_v33 = vld [vmem:[#allocation127_spill] sm:$0xff] }
 0xac4   :  { %v5974_v6 = vadd.f32 %v5903_v51, %v5638_v47  ;;  %v5035_v29 = vadd.f32 %v13256_v52, %v4699_v35  ;;  %v5641_v13 = vadd.f32 %v13257_v1, %v5305_v4  ;;  %v5034_v25 = vadd.f32 %v13259_v32, %v4698_v0  ;;  %v13271_v11 = vld [vmem:[#allocation160_spill] sm:$0xff] }
 0xac5   :  { %6008 = vst.msk [vmem:[%s11899_s3 + $0xc8] sm:$0xff] %vm5982_vm5, %v5975_v54  ;;  %v4364_v30 = vadd.f32 %v13258_v55, %v4092_v17  ;;  %v5640_v18 = vadd.f32 %v13260_v3, %v5304_v43  ;;  %v4701_v50 = vadd.f32 %v13261_v38, %v4365_v58 }
 0xac6   :  { %6007 = vst.msk [vmem:[%s11899_s3 + $0xc0] sm:$0xff] %vm5982_vm5, %v5974_v6  ;;  %v5909_v34 = vpop.permute.xlu1 %5908  ;;  %v5307_v20 = vadd.f32 %v13262_v26, %v5035_v29  ;;  %v5306_v39 = vadd.f32 %v13264_v36, %v5034_v25 }
 0xac7   :  { %v5907_v56 = vpop.permute.xlu0 %5906  ;;  %v5977_v37 = vadd.f32 %v5909_v34, %v5641_v13  ;;  %v4700_v49 = vadd.f32 %v13263_v14, %v4364_v30  ;;  %v5037_v61 = vadd.f32 %v13265_v31, %v4701_v50 }
 0xac8   :  { %v5976_v8 = vadd.f32 %v5907_v56, %v5640_v18  ;;  %v5643_v60 = vadd.f32 %v13266_v24, %v5307_v20  ;;  %v5642_v28 = vadd.f32 %v13268_v9, %v5306_v39 }
 0xac9   :  { %6010 = vst.msk [vmem:[%s11899_s3 + $0xd8] sm:$0xff] %vm5982_vm5, %v5977_v37  ;;  %v5036_v63 = vadd.f32 %v13267_v7, %v4700_v49  ;;  %v5309_v46 = vadd.f32 %v13269_v42, %v5037_v61 }
 0xaca   :  { %6009 = vst.msk [vmem:[%s11899_s3 + $0xd0] sm:$0xff] %vm5982_vm5, %v5976_v8  ;;  %v5913_v48 = vpop.permute.xlu1 %5912 }
 0xacb   :  { %v5911_v59 = vpop.permute.xlu0 %5910  ;;  %v5979_v15 = vadd.f32 %v5913_v48, %v5643_v60  ;;  %v5308_v23 = vadd.f32 %v13270_v16, %v5036_v63  ;;  %v5645_v45 = vadd.f32 %v13271_v11, %v5309_v46 }
 0xacc   :  { %v5978_v21 = vadd.f32 %v5911_v59, %v5642_v28 }
 0xacd   :  { %6012 = vst.msk [vmem:[%s11899_s3 + $0xe8] sm:$0xff] %vm5982_vm5, %v5979_v15  ;;  %v5644_v41 = vadd.f32 %v13272_v33, %v5308_v23 }
 0xace   :  { %6011 = vst.msk [vmem:[%s11899_s3 + $0xe0] sm:$0xff] %vm5982_vm5, %v5978_v21  ;;  %v5917_v22 = vpop.permute.xlu1 %5916 }
 0xacf   :  { %v5915_v44 = vpop.permute.xlu0 %5914  ;;  %v5981_v62 = vadd.f32 %v5917_v22, %v5645_v45 }
 0xad0   :  { %v5980_v12 = vadd.f32 %v5915_v44, %v5644_v41 }
 0xad1   :  { %6014 = vst.msk [vmem:[%s11899_s3 + $0xf8] sm:$0xff] %vm5982_vm5, %v5981_v62 }
 0xad2   :  { %6013 = vst.msk [vmem:[%s11899_s3 + $0xf0] sm:$0xff] %vm5982_vm5, %v5980_v12 }

</bundles_post_ra>
